<compile_context>
chip_gen: v6e
topology: v6e:2x2x1
jax: 0.10.0
libtpu: 0.0.40
codegen_flags: <defaults>
</compile_context>

<pallas_src>
import jax
import jax.numpy as jnp
from jax.experimental import pallas as pl
from jax.experimental.pallas import tpu as pltpu

_ROW_CHUNK = 8          # output rows per M-chunk for the 16x16 conv layers (M = 128)


# ----------------------------- in-kernel helpers -----------------------------

def _zero_border(p_ref):
    """Zero only the 1-pixel border frame of a padded scratch buffer."""
    hp, wp, c = p_ref.shape
    zr = jnp.zeros((1, wp, c), jnp.float32)
    zc = jnp.zeros((hp, 1, c), jnp.float32)
    p_ref[0:1, :, :] = zr
    p_ref[hp - 1:hp, :, :] = zr
    p_ref[:, 0:1, :] = zc
    p_ref[:, wp - 1:wp, :] = zc


def _store_interior(p_ref, val):
    h, w, _ = val.shape
    p_ref[1:h + 1, 1:w + 1, :] = val


def _maxpool2(y):
    """2x2 max pool, stride 2, on an (H, W, C) value."""
    H, W, C = y.shape
    y = y.reshape(H, W // 2, 2, C).max(axis=2)
    y = y.reshape(H // 2, 2, W // 2, C).max(axis=1)
    return y


def _upsample2(y):
    """Nearest-neighbor 2x upsample of an (H, W, C) value."""
    H, W, C = y.shape
    y = jnp.broadcast_to(y[:, :, None, :], (H, W, 2, C)).reshape(H, 2 * W, C)
    y = jnp.broadcast_to(y[:, None, :, :], (H, 2, 2 * W, C)).reshape(2 * H, 2 * W, C)
    return y


def _conv_rows(p_ref, w_ref, b_ref, act, r0, rows):
    """3x3 stride-1 conv (+folded-BN bias +activation) of `rows` output rows
    starting at row r0, reading a zero-padded VMEM scratch ref.

    Weight layouts:
      (9, Cin, Cout): per-tap weights -> 9 accumulated MXU dots (K = Cin).  Used
        when Cin is not a multiple of 128, avoiding lane-misaligned im2col concat.
      (9*Cin, Cout): im2col weights -> single dot on a lane-aligned concat
        (only used when Cin % 128 == 0, i.e. dec1).
    Returns (rows, W, Cout) float32.
    """
    cin = p_ref.shape[2]
    w = p_ref.shape[1] - 2
    m = rows * w
    if w_ref.ndim == 2:                                   # lane-aligned im2col path
        cout = w_ref.shape[1]
        taps = [p_ref[r0 + dy:r0 + dy + rows, dx:dx + w, :]
                .reshape(m, cin).astype(w_ref.dtype)
                for dy in range(3) for dx in range(3)]
        col = jnp.concatenate(taps, axis=1)               # (m, 9*cin), 128-aligned
        y = jnp.dot(col, w_ref[...], preferred_element_type=jnp.float32)
    else:                                                 # 9 accumulated dots
        cout = w_ref.shape[2]
        y = jnp.zeros((m, cout), jnp.float32)
        t = 0
        for dy in range(3):
            for dx in range(3):
                tap = (p_ref[r0 + dy:r0 + dy + rows, dx:dx + w, :]
                       .reshape(m, cin).astype(w_ref.dtype))
                y = y + jnp.dot(tap, w_ref[t],
                                preferred_element_type=jnp.float32)
                t += 1
    y = y + b_ref[...]                                    # folded BN shift (f32)
    y = jnp.maximum(y, 0.0) if act == "relu" else jax.nn.sigmoid(y)
    return y.reshape(rows, w, cout)


def _conv_rows_cm(p_ref, wt_ref, b_ref, act, r0, rows):
    """Channel-major conv for the final layer: returns (Cout, rows*W) so the
    CHW-ordered flatten needs no in-kernel transpose and the output store is
    lane-dense (last dim = 128 per chunk).  wt_ref: (9, Cout, Cin); b_ref: (Cout, 1)."""
    cin = p_ref.shape[2]
    w = p_ref.shape[1] - 2
    m = rows * w
    cout = wt_ref.shape[1]
    y = jnp.zeros((cout, m), jnp.float32)
    t = 0
    for dy in range(3):
        for dx in range(3):
            tap = (p_ref[r0 + dy:r0 + dy + rows, dx:dx + w, :]
                   .reshape(m, cin).astype(wt_ref.dtype))
            # (Cout, Cin) x (M, Cin) contracted on Cin -> (Cout, M); the
            # transposed-RHS contraction is MXU-native (same as q @ k^T).
            y = y + jax.lax.dot_general(
                wt_ref[t], tap, (((1,), (1,)), ((), ())),
                preferred_element_type=jnp.float32)
            t += 1
    y = y + b_ref[...]
    y = jnp.maximum(y, 0.0) if act == "relu" else jax.nn.sigmoid(y)
    return y                                              # (Cout, rows*W)


# --------------------------------- the kernel --------------------------------

def _cae_kernel(x_ref,
                w1, w2, w3, w4, w5, w6,
                b1, b2, b3, b4, b5, b6,
                o_ref,
                p1, p2, p3, p4, p5, p6):
    H, W = x_ref.shape[1], x_ref.shape[2]
    rc = _ROW_CHUNK if H % _ROW_CHUNK == 0 else H

    # Border-only zeroing of the padded activation scratch (conv padding=1);
    # interiors are fully overwritten below, every grid step.
    for p in (p1, p2, p3, p4, p5, p6):
        _zero_border(p)

    # ------------------------------- encoder --------------------------------
    _store_interior(p1, x_ref[0])                                      # HxWxCin
    # enc1: 16x16 conv, M-chunked; maxpool + store streamed per chunk.
    for r0 in range(0, H, rc):
        yc = _maxpool2(_conv_rows(p1, w1, b1, "relu", r0, rc))         # (rc/2, W/2, 32)
        p2[1 + r0 // 2:1 + r0 // 2 + rc // 2, 1:1 + W // 2, :] = yc
    _store_interior(p3, _maxpool2(_conv_rows(p2, w2, b2, "relu", 0, H // 2)))  # 4x4x64
    a = _maxpool2(_conv_rows(p3, w3, b3, "relu", 0, H // 4))                   # 2x2x128

    # ------------------------------- decoder --------------------------------
    _store_interior(p4, _upsample2(a))                                          # 4x4x128
    _store_interior(p5, _upsample2(_conv_rows(p4, w4, b4, "relu", 0, H // 4)))  # 8x8x64
    _store_interior(p6, _upsample2(_conv_rows(p5, w5, b5, "relu", 0, H // 2)))  # 16x16x32
    # dec3: conv + sigmoid, produced channel-major and written straight into the
    # lane-dense (Cout, H*W) output block in CHW (PyTorch .view) order.
    for r0 in range(0, H, rc):
        o_ref[0, :, r0 * W:(r0 + rc) * W] = \
            _conv_rows_cm(p6, w6, b6, "sigmoid", r0, rc)


# --------------------------------- wrapper ------------------------------------

def _const_spec(arr):
    if arr.ndim == 2:
        return pl.BlockSpec(arr.shape, lambda n: (0, 0))
    return pl.BlockSpec(arr.shape, lambda n: (0, 0, 0))


def cae_forward(x_nchw, params):
    """x_nchw: (N, l, H, W) f32.  params: 6 tuples (w_kernel, b_kernel).
    Returns (N, l*H*W) f32 flattened in (C, H, W) order, matching x.view(N, -1)."""
    # NCHW -> NHWC (channels on the lane axis).  Tiny (~4 KB/image) XLA op; the
    # larger output-side transpose is done in-kernel so output stores are
    # lane-dense and the final flatten is a free contiguous reshape.
    x = jnp.transpose(x_nchw, (0, 2, 3, 1))
    N, H, W, cin0 = x.shape
    ws = [p[0] for p in params]
    bs = [p[1] for p in params]
    c1, c2, c3 = ws[0].shape[-1], ws[1].shape[-1], ws[2].shape[-1]
    c4, c5 = ws[3].shape[-1], ws[4].shape[-1]
    c6 = ws[5].shape[1]                       # final weights are (9, Cout, Cin)

    out = pl.pallas_call(
        _cae_kernel,
        out_shape=jax.ShapeDtypeStruct((N, c6, H * W), jnp.float32),
        grid=(N,),
        in_specs=(
            [pl.BlockSpec((1, H, W, cin0), lambda n: (n, 0, 0, 0))]
            + [_const_spec(w) for w in ws]
            + [_const_spec(b) for b in bs]
        ),
        out_specs=pl.BlockSpec((1, c6, H * W), lambda n: (n, 0, 0)),
        scratch_shapes=[
            # zero-padded per-layer conv inputs, VMEM-resident across the net
            pltpu.VMEM((H + 2, W + 2, cin0), jnp.float32),            # enc1 in
            pltpu.VMEM((H // 2 + 2, W // 2 + 2, c1), jnp.float32),    # enc2 in
            pltpu.VMEM((H // 4 + 2, W // 4 + 2, c2), jnp.float32),    # enc3 in
            pltpu.VMEM((H // 4 + 2, W // 4 + 2, c3), jnp.float32),    # dec1 in
            pltpu.VMEM((H // 2 + 2, W // 2 + 2, c4), jnp.float32),    # dec2 in
            pltpu.VMEM((H + 2, W + 2, c5), jnp.float32),              # dec3 in
        ],
        compiler_params=pltpu.CompilerParams(
            dimension_semantics=("parallel",),        # v7x: one image per core
            vmem_limit_bytes=32 * 1024 * 1024,
        ),
    )(x, *ws, *bs)

    # (N, C, H*W) -> (N, C*H*W): contiguous, matches PyTorch x.view(N, -1).
    return out.reshape(N, -1)


def init_layer(key, cin, cout, *, final=False, mxu_dtype=jnp.bfloat16):
    """Synthetic params: conv (w, b) + inference-mode BN, with BN scale folded
    into the weights and BN shift folded into the bias.
    Returns (w_kernel, b_kernel, w_hwio_f32):
      w_kernel: (9, Cin, Cout) per-tap | (9*Cin, Cout) im2col (Cin%128==0)
                | (9, Cout, Cin) channel-major (final layer); cast to mxu_dtype.
      b_kernel: f32 folded bias, (1, Cout) (or (Cout, 1) for the final layer).
      w_hwio_f32: (3, 3, Cin, Cout) f32 folded weights (for the pure-JAX ref).
    NOTE: real PyTorch Conv2d weights are OIHW; permute to (kH, kW, Cin, Cout)
    before applying this tap ordering."""
    kw, kb, kg, kbt, km, kv = jax.random.split(key, 6)
    w = 0.1 * jax.random.normal(kw, (3, 3, cin, cout), jnp.float32)
    b = 0.1 * jax.random.normal(kb, (cout,), jnp.float32)
    gamma = 1.0 + 0.1 * jax.random.normal(kg, (cout,), jnp.float32)
    beta = 0.1 * jax.random.normal(kbt, (cout,), jnp.float32)
    mean = 0.1 * jax.random.normal(km, (cout,), jnp.float32)
    var = jax.random.uniform(kv, (cout,), jnp.float32, 0.5, 1.5)
    s = gamma * jax.lax.rsqrt(var + 1e-5)                 # BN eps = 1e-5
    w_hwio = w * s                                        # fold BN scale into conv w
    shift = (b - mean) * s + beta                         # folded bias + BN shift
    if final:
        w_kernel = jnp.transpose(w_hwio, (0, 1, 3, 2)).reshape(9, cout, cin)
        b_kernel = shift.reshape(cout, 1)
    elif cin % 128 == 0:
        w_kernel = w_hwio.reshape(9 * cin, cout)
        b_kernel = shift.reshape(1, cout)
    else:
        w_kernel = w_hwio.reshape(9, cin, cout)
        b_kernel = shift.reshape(1, cout)
    return w_kernel.astype(mxu_dtype), b_kernel, w_hwio


def cae_reference(x_nchw, params):
    """Pure-JAX f32 reference of the same BN-folded network (correctness check)."""
    x = jnp.transpose(x_nchw, (0, 2, 3, 1))
    for i, (_, b, w_hwio) in enumerate(params):
        if i >= 3:                                        # decoder: nearest 2x upsample
            x = jnp.repeat(jnp.repeat(x, 2, axis=1), 2, axis=2)
        x = jax.lax.conv_general_dilated(
            x, w_hwio, window_strides=(1, 1), padding=((1, 1), (1, 1)),
            dimension_numbers=("NHWC", "HWIO", "NHWC"),
            precision=jax.lax.Precision.HIGHEST,
            preferred_element_type=jnp.float32)
        x = x + jnp.reshape(b, (1, 1, 1, -1))
        x = jnp.maximum(x, 0.0) if i < 5 else jax.nn.sigmoid(x)
        if i < 3:                                         # encoder: 2x2 max pool
            n, h, w, c = x.shape
            x = x.reshape(n, h // 2, 2, w // 2, 2, c).max(axis=(2, 4))
    return jnp.transpose(x, (0, 3, 1, 2)).reshape(x.shape[0], -1)


if __name__ == "__main__":
    l = 4                      # number of spectral bands (in/out channels)
    N, H, W = 2, 16, 16
    key = jax.random.PRNGKey(0)
    kx, k1, k2, k3, k4, k5, k6 = jax.random.split(key, 7)

    x = jax.random.normal(kx, (N, l, H, W), jnp.float32)   # PyTorch NCHW input
    chans = [(l, 32), (32, 64), (64, 128), (128, 64), (64, 32), (32, l)]
    params = [init_layer(k, ci, co, final=(i == 5))
              for i, (k, (ci, co)) in enumerate(zip([k1, k2, k3, k4, k5, k6], chans))]

    kparams = [(w, b) for (w, b, _) in params]
    out = jax.jit(cae_forward)(x, kparams)
    out = jax.block_until_ready(out)

    assert out.shape == (N, l * H * W), out.shape
    assert out.dtype == jnp.float32

    # correctness vs pure-JAX f32 reference (bf16 MXU operands -> loose tol)
    ref = cae_reference(x, params)
    max_err = float(jnp.max(jnp.abs(out - ref)))
    assert max_err < 0.1, f"kernel vs reference max abs err {max_err}"

    print("KERNEL_OK")
</pallas_src>

<mosaic_0001>
module attributes {stable_mosaic.version = 11 : i64} {
  func.func @_cae_kernel(%arg0: i32, %arg1: memref<1x16x16x4xf32, #tpu.memory_space<vmem>>, %arg2: memref<9x4x32xbf16, #tpu.memory_space<vmem>>, %arg3: memref<9x32x64xbf16, #tpu.memory_space<vmem>>, %arg4: memref<9x64x128xbf16, #tpu.memory_space<vmem>>, %arg5: memref<1152x64xbf16, #tpu.memory_space<vmem>>, %arg6: memref<9x64x32xbf16, #tpu.memory_space<vmem>>, %arg7: memref<9x4x32xbf16, #tpu.memory_space<vmem>>, %arg8: memref<1x32xf32, #tpu.memory_space<vmem>>, %arg9: memref<1x64xf32, #tpu.memory_space<vmem>>, %arg10: memref<1x128xf32, #tpu.memory_space<vmem>>, %arg11: memref<1x64xf32, #tpu.memory_space<vmem>>, %arg12: memref<1x32xf32, #tpu.memory_space<vmem>>, %arg13: memref<4x1xf32, #tpu.memory_space<vmem>>, %arg14: memref<1x4x256xf32, #tpu.memory_space<vmem>>, %arg15: memref<18x18x4xf32, #tpu.memory_space<vmem>>, %arg16: memref<10x10x32xf32, #tpu.memory_space<vmem>>, %arg17: memref<6x6x64xf32, #tpu.memory_space<vmem>>, %arg18: memref<6x6x128xf32, #tpu.memory_space<vmem>>, %arg19: memref<10x10x64xf32, #tpu.memory_space<vmem>>, %arg20: memref<18x18x32xf32, #tpu.memory_space<vmem>>) attributes {dimension_semantics = [#tpu.dimension_semantics<parallel>], iteration_bounds = array<i64: 2>, scalar_prefetch = 0 : i64, scratch_operands = 6 : i64, tpu.core_type = #tpu.core_type<tc>, window_params = [{transform_indices = @transform_0, window_bounds = array<i64: 1, 16, 16, 4>}, {pipeline_mode = #tpu.pipeline_mode<synchronous>, transform_indices = @transform_1, window_bounds = array<i64: 9, 4, 32>}, {pipeline_mode = #tpu.pipeline_mode<synchronous>, transform_indices = @transform_2, window_bounds = array<i64: 9, 32, 64>}, {pipeline_mode = #tpu.pipeline_mode<synchronous>, transform_indices = @transform_3, window_bounds = array<i64: 9, 64, 128>}, {pipeline_mode = #tpu.pipeline_mode<synchronous>, transform_indices = @transform_4, window_bounds = array<i64: 1152, 64>}, {pipeline_mode = #tpu.pipeline_mode<synchronous>, transform_indices = @transform_5, window_bounds = array<i64: 9, 64, 32>}, {pipeline_mode = #tpu.pipeline_mode<synchronous>, transform_indices = @transform_6, window_bounds = array<i64: 9, 4, 32>}, {pipeline_mode = #tpu.pipeline_mode<synchronous>, transform_indices = @transform_7, window_bounds = array<i64: 1, 32>}, {pipeline_mode = #tpu.pipeline_mode<synchronous>, transform_indices = @transform_8, window_bounds = array<i64: 1, 64>}, {pipeline_mode = #tpu.pipeline_mode<synchronous>, transform_indices = @transform_9, window_bounds = array<i64: 1, 128>}, {pipeline_mode = #tpu.pipeline_mode<synchronous>, transform_indices = @transform_10, window_bounds = array<i64: 1, 64>}, {pipeline_mode = #tpu.pipeline_mode<synchronous>, transform_indices = @transform_11, window_bounds = array<i64: 1, 32>}, {pipeline_mode = #tpu.pipeline_mode<synchronous>, transform_indices = @transform_12, window_bounds = array<i64: 4, 1>}, {transform_indices = @transform_13, window_bounds = array<i64: 1, 4, 256>}]} {
    %cst = arith.constant 0.000000e+00 : f32
    %0 = vector.broadcast %cst : f32 to vector<1x18x4xf32>
    %cst_0 = arith.constant 0.000000e+00 : f32
    %1 = vector.broadcast %cst_0 : f32 to vector<18x1x4xf32>
    %c0 = arith.constant 0 : index
    %c0_1 = arith.constant 0 : index
    %c0_2 = arith.constant 0 : index
    %2 = vector.load %arg15[%c0, %c0_1, %c0_2] : memref<18x18x4xf32, #tpu.memory_space<vmem>>, vector<1x18x4xf32>
    tpu.vector_store %arg15[%c0, %c0_1, %c0_2], %0 {strides = array<i32>} : memref<18x18x4xf32, #tpu.memory_space<vmem>>, vector<1x18x4xf32>,
    %c17 = arith.constant 17 : index
    %c0_3 = arith.constant 0 : index
    %c0_4 = arith.constant 0 : index
    %3 = vector.load %arg15[%c17, %c0_3, %c0_4] : memref<18x18x4xf32, #tpu.memory_space<vmem>>, vector<1x18x4xf32>
    tpu.vector_store %arg15[%c17, %c0_3, %c0_4], %0 {strides = array<i32>} : memref<18x18x4xf32, #tpu.memory_space<vmem>>, vector<1x18x4xf32>,
    %c0_5 = arith.constant 0 : index
    %c0_6 = arith.constant 0 : index
    %c0_7 = arith.constant 0 : index
    %4 = vector.load %arg15[%c0_5, %c0_6, %c0_7] : memref<18x18x4xf32, #tpu.memory_space<vmem>>, vector<18x1x4xf32>
    tpu.vector_store %arg15[%c0_5, %c0_6, %c0_7], %1 {strides = array<i32>} : memref<18x18x4xf32, #tpu.memory_space<vmem>>, vector<18x1x4xf32>,
    %c0_8 = arith.constant 0 : index
    %c17_9 = arith.constant 17 : index
    %c0_10 = arith.constant 0 : index
    %5 = vector.load %arg15[%c0_8, %c17_9, %c0_10] : memref<18x18x4xf32, #tpu.memory_space<vmem>>, vector<18x1x4xf32>
    tpu.vector_store %arg15[%c0_8, %c17_9, %c0_10], %1 {strides = array<i32>} : memref<18x18x4xf32, #tpu.memory_space<vmem>>, vector<18x1x4xf32>,
    %cst_11 = arith.constant 0.000000e+00 : f32
    %6 = vector.broadcast %cst_11 : f32 to vector<1x10x32xf32>
    %cst_12 = arith.constant 0.000000e+00 : f32
    %7 = vector.broadcast %cst_12 : f32 to vector<10x1x32xf32>
    %c0_13 = arith.constant 0 : index
    %c0_14 = arith.constant 0 : index
    %c0_15 = arith.constant 0 : index
    %8 = vector.load %arg16[%c0_13, %c0_14, %c0_15] : memref<10x10x32xf32, #tpu.memory_space<vmem>>, vector<1x10x32xf32>
    tpu.vector_store %arg16[%c0_13, %c0_14, %c0_15], %6 {strides = array<i32>} : memref<10x10x32xf32, #tpu.memory_space<vmem>>, vector<1x10x32xf32>,
    %c9 = arith.constant 9 : index
    %c0_16 = arith.constant 0 : index
    %c0_17 = arith.constant 0 : index
    %9 = vector.load %arg16[%c9, %c0_16, %c0_17] : memref<10x10x32xf32, #tpu.memory_space<vmem>>, vector<1x10x32xf32>
    tpu.vector_store %arg16[%c9, %c0_16, %c0_17], %6 {strides = array<i32>} : memref<10x10x32xf32, #tpu.memory_space<vmem>>, vector<1x10x32xf32>,
    %c0_18 = arith.constant 0 : index
    %c0_19 = arith.constant 0 : index
    %c0_20 = arith.constant 0 : index
    %10 = vector.load %arg16[%c0_18, %c0_19, %c0_20] : memref<10x10x32xf32, #tpu.memory_space<vmem>>, vector<10x1x32xf32>
    tpu.vector_store %arg16[%c0_18, %c0_19, %c0_20], %7 {strides = array<i32>} : memref<10x10x32xf32, #tpu.memory_space<vmem>>, vector<10x1x32xf32>,
    %c0_21 = arith.constant 0 : index
    %c9_22 = arith.constant 9 : index
    %c0_23 = arith.constant 0 : index
    %11 = vector.load %arg16[%c0_21, %c9_22, %c0_23] : memref<10x10x32xf32, #tpu.memory_space<vmem>>, vector<10x1x32xf32>
    tpu.vector_store %arg16[%c0_21, %c9_22, %c0_23], %7 {strides = array<i32>} : memref<10x10x32xf32, #tpu.memory_space<vmem>>, vector<10x1x32xf32>,
    %cst_24 = arith.constant 0.000000e+00 : f32
    %12 = vector.broadcast %cst_24 : f32 to vector<1x6x64xf32>
    %cst_25 = arith.constant 0.000000e+00 : f32
    %13 = vector.broadcast %cst_25 : f32 to vector<6x1x64xf32>
    %c0_26 = arith.constant 0 : index
    %c0_27 = arith.constant 0 : index
    %c0_28 = arith.constant 0 : index
    %14 = vector.load %arg17[%c0_26, %c0_27, %c0_28] : memref<6x6x64xf32, #tpu.memory_space<vmem>>, vector<1x6x64xf32>
    tpu.vector_store %arg17[%c0_26, %c0_27, %c0_28], %12 {strides = array<i32>} : memref<6x6x64xf32, #tpu.memory_space<vmem>>, vector<1x6x64xf32>,
    %c5 = arith.constant 5 : index
    %c0_29 = arith.constant 0 : index
    %c0_30 = arith.constant 0 : index
    %15 = vector.load %arg17[%c5, %c0_29, %c0_30] : memref<6x6x64xf32, #tpu.memory_space<vmem>>, vector<1x6x64xf32>
    tpu.vector_store %arg17[%c5, %c0_29, %c0_30], %12 {strides = array<i32>} : memref<6x6x64xf32, #tpu.memory_space<vmem>>, vector<1x6x64xf32>,
    %c0_31 = arith.constant 0 : index
    %c0_32 = arith.constant 0 : index
    %c0_33 = arith.constant 0 : index
    %16 = vector.load %arg17[%c0_31, %c0_32, %c0_33] : memref<6x6x64xf32, #tpu.memory_space<vmem>>, vector<6x1x64xf32>
    tpu.vector_store %arg17[%c0_31, %c0_32, %c0_33], %13 {strides = array<i32>} : memref<6x6x64xf32, #tpu.memory_space<vmem>>, vector<6x1x64xf32>,
    %c0_34 = arith.constant 0 : index
    %c5_35 = arith.constant 5 : index
    %c0_36 = arith.constant 0 : index
    %17 = vector.load %arg17[%c0_34, %c5_35, %c0_36] : memref<6x6x64xf32, #tpu.memory_space<vmem>>, vector<6x1x64xf32>
    tpu.vector_store %arg17[%c0_34, %c5_35, %c0_36], %13 {strides = array<i32>} : memref<6x6x64xf32, #tpu.memory_space<vmem>>, vector<6x1x64xf32>,
    %cst_37 = arith.constant 0.000000e+00 : f32
    %18 = vector.broadcast %cst_37 : f32 to vector<1x6x128xf32>
    %cst_38 = arith.constant 0.000000e+00 : f32
    %19 = vector.broadcast %cst_38 : f32 to vector<6x1x128xf32>
    %c0_39 = arith.constant 0 : index
    %c0_40 = arith.constant 0 : index
    %c0_41 = arith.constant 0 : index
    %20 = vector.load %arg18[%c0_39, %c0_40, %c0_41] : memref<6x6x128xf32, #tpu.memory_space<vmem>>, vector<1x6x128xf32>
    tpu.vector_store %arg18[%c0_39, %c0_40, %c0_41], %18 {strides = array<i32>} : memref<6x6x128xf32, #tpu.memory_space<vmem>>, vector<1x6x128xf32>,
    %c5_42 = arith.constant 5 : index
    %c0_43 = arith.constant 0 : index
    %c0_44 = arith.constant 0 : index
    %21 = vector.load %arg18[%c5_42, %c0_43, %c0_44] : memref<6x6x128xf32, #tpu.memory_space<vmem>>, vector<1x6x128xf32>
    tpu.vector_store %arg18[%c5_42, %c0_43, %c0_44], %18 {strides = array<i32>} : memref<6x6x128xf32, #tpu.memory_space<vmem>>, vector<1x6x128xf32>,
    %c0_45 = arith.constant 0 : index
    %c0_46 = arith.constant 0 : index
    %c0_47 = arith.constant 0 : index
    %22 = vector.load %arg18[%c0_45, %c0_46, %c0_47] : memref<6x6x128xf32, #tpu.memory_space<vmem>>, vector<6x1x128xf32>
    tpu.vector_store %arg18[%c0_45, %c0_46, %c0_47], %19 {strides = array<i32>} : memref<6x6x128xf32, #tpu.memory_space<vmem>>, vector<6x1x128xf32>,
    %c0_48 = arith.constant 0 : index
    %c5_49 = arith.constant 5 : index
    %c0_50 = arith.constant 0 : index
    %23 = vector.load %arg18[%c0_48, %c5_49, %c0_50] : memref<6x6x128xf32, #tpu.memory_space<vmem>>, vector<6x1x128xf32>
    tpu.vector_store %arg18[%c0_48, %c5_49, %c0_50], %19 {strides = array<i32>} : memref<6x6x128xf32, #tpu.memory_space<vmem>>, vector<6x1x128xf32>,
    %cst_51 = arith.constant 0.000000e+00 : f32
    %24 = vector.broadcast %cst_51 : f32 to vector<1x10x64xf32>
    %cst_52 = arith.constant 0.000000e+00 : f32
    %25 = vector.broadcast %cst_52 : f32 to vector<10x1x64xf32>
    %c0_53 = arith.constant 0 : index
    %c0_54 = arith.constant 0 : index
    %c0_55 = arith.constant 0 : index
    %26 = vector.load %arg19[%c0_53, %c0_54, %c0_55] : memref<10x10x64xf32, #tpu.memory_space<vmem>>, vector<1x10x64xf32>
    tpu.vector_store %arg19[%c0_53, %c0_54, %c0_55], %24 {strides = array<i32>} : memref<10x10x64xf32, #tpu.memory_space<vmem>>, vector<1x10x64xf32>,
    %c9_56 = arith.constant 9 : index
    %c0_57 = arith.constant 0 : index
    %c0_58 = arith.constant 0 : index
    %27 = vector.load %arg19[%c9_56, %c0_57, %c0_58] : memref<10x10x64xf32, #tpu.memory_space<vmem>>, vector<1x10x64xf32>
    tpu.vector_store %arg19[%c9_56, %c0_57, %c0_58], %24 {strides = array<i32>} : memref<10x10x64xf32, #tpu.memory_space<vmem>>, vector<1x10x64xf32>,
    %c0_59 = arith.constant 0 : index
    %c0_60 = arith.constant 0 : index
    %c0_61 = arith.constant 0 : index
    %28 = vector.load %arg19[%c0_59, %c0_60, %c0_61] : memref<10x10x64xf32, #tpu.memory_space<vmem>>, vector<10x1x64xf32>
    tpu.vector_store %arg19[%c0_59, %c0_60, %c0_61], %25 {strides = array<i32>} : memref<10x10x64xf32, #tpu.memory_space<vmem>>, vector<10x1x64xf32>,
    %c0_62 = arith.constant 0 : index
    %c9_63 = arith.constant 9 : index
    %c0_64 = arith.constant 0 : index
    %29 = vector.load %arg19[%c0_62, %c9_63, %c0_64] : memref<10x10x64xf32, #tpu.memory_space<vmem>>, vector<10x1x64xf32>
    tpu.vector_store %arg19[%c0_62, %c9_63, %c0_64], %25 {strides = array<i32>} : memref<10x10x64xf32, #tpu.memory_space<vmem>>, vector<10x1x64xf32>,
    %cst_65 = arith.constant 0.000000e+00 : f32
    %30 = vector.broadcast %cst_65 : f32 to vector<1x18x32xf32>
    %cst_66 = arith.constant 0.000000e+00 : f32
    %31 = vector.broadcast %cst_66 : f32 to vector<18x1x32xf32>
    %c0_67 = arith.constant 0 : index
    %c0_68 = arith.constant 0 : index
    %c0_69 = arith.constant 0 : index
    %32 = vector.load %arg20[%c0_67, %c0_68, %c0_69] : memref<18x18x32xf32, #tpu.memory_space<vmem>>, vector<1x18x32xf32>
    tpu.vector_store %arg20[%c0_67, %c0_68, %c0_69], %30 {strides = array<i32>} : memref<18x18x32xf32, #tpu.memory_space<vmem>>, vector<1x18x32xf32>,
    %c17_70 = arith.constant 17 : index
    %c0_71 = arith.constant 0 : index
    %c0_72 = arith.constant 0 : index
    %33 = vector.load %arg20[%c17_70, %c0_71, %c0_72] : memref<18x18x32xf32, #tpu.memory_space<vmem>>, vector<1x18x32xf32>
    tpu.vector_store %arg20[%c17_70, %c0_71, %c0_72], %30 {strides = array<i32>} : memref<18x18x32xf32, #tpu.memory_space<vmem>>, vector<1x18x32xf32>,
    %c0_73 = arith.constant 0 : index
    %c0_74 = arith.constant 0 : index
    %c0_75 = arith.constant 0 : index
    %34 = vector.load %arg20[%c0_73, %c0_74, %c0_75] : memref<18x18x32xf32, #tpu.memory_space<vmem>>, vector<18x1x32xf32>
    tpu.vector_store %arg20[%c0_73, %c0_74, %c0_75], %31 {strides = array<i32>} : memref<18x18x32xf32, #tpu.memory_space<vmem>>, vector<18x1x32xf32>,
    %c0_76 = arith.constant 0 : index
    %c17_77 = arith.constant 17 : index
    %c0_78 = arith.constant 0 : index
    %35 = vector.load %arg20[%c0_76, %c17_77, %c0_78] : memref<18x18x32xf32, #tpu.memory_space<vmem>>, vector<18x1x32xf32>
    tpu.vector_store %arg20[%c0_76, %c17_77, %c0_78], %31 {strides = array<i32>} : memref<18x18x32xf32, #tpu.memory_space<vmem>>, vector<18x1x32xf32>,
    %c0_79 = arith.constant 0 : index
    %c0_80 = arith.constant 0 : index
    %c0_81 = arith.constant 0 : index
    %c0_82 = arith.constant 0 : index
    %36 = vector.load %arg1[%c0_79, %c0_80, %c0_81, %c0_82] : memref<1x16x16x4xf32, #tpu.memory_space<vmem>>, vector<1x16x16x4xf32>
    %37 = vector.shape_cast %36 : vector<1x16x16x4xf32> to vector<16x16x4xf32>
    %c1 = arith.constant 1 : index
    %c1_83 = arith.constant 1 : index
    %c0_84 = arith.constant 0 : index
    %38 = vector.load %arg15[%c1, %c1_83, %c0_84] : memref<18x18x4xf32, #tpu.memory_space<vmem>>, vector<16x16x4xf32>
    tpu.vector_store %arg15[%c1, %c1_83, %c0_84], %37 {strides = array<i32>} : memref<18x18x4xf32, #tpu.memory_space<vmem>>, vector<16x16x4xf32>,
    %cst_85 = arith.constant 0.000000e+00 : f32
    %39 = vector.broadcast %cst_85 : f32 to vector<128x32xf32>
    %c0_86 = arith.constant 0 : index
    %c0_87 = arith.constant 0 : index
    %c0_88 = arith.constant 0 : index
    %40 = vector.load %arg15[%c0_86, %c0_87, %c0_88] : memref<18x18x4xf32, #tpu.memory_space<vmem>>, vector<8x16x4xf32>
    %41 = vector.shape_cast %40 : vector<8x16x4xf32> to vector<128x4xf32>
    %42 = arith.truncf %41 : vector<128x4xf32> to vector<128x4xbf16>
    %c0_89 = arith.constant 0 : index
    %c0_90 = arith.constant 0 : index
    %c0_91 = arith.constant 0 : index
    %43 = vector.load %arg2[%c0_89, %c0_90, %c0_91] : memref<9x4x32xbf16, #tpu.memory_space<vmem>>, vector<1x4x32xbf16>
    %44 = vector.shape_cast %43 : vector<1x4x32xbf16> to vector<4x32xbf16>
    %cst_92 = arith.constant dense<0.000000e+00> : vector<128x32xf32>
    %45 = tpu.matmul %42, %44, %cst_92 {dimension_numbers = #tpu.dot_dimension_numbers<[1], [0], [0], [1], [0, 0, 1, 1], [], []>} : vector<128x4xbf16>, vector<4x32xbf16>, vector<128x32xf32> -> vector<128x32xf32>
    %46 = arith.addf %39, %45 : vector<128x32xf32>
    %c0_93 = arith.constant 0 : index
    %c1_94 = arith.constant 1 : index
    %c0_95 = arith.constant 0 : index
    %47 = vector.load %arg15[%c0_93, %c1_94, %c0_95] : memref<18x18x4xf32, #tpu.memory_space<vmem>>, vector<8x16x4xf32>
    %48 = vector.shape_cast %47 : vector<8x16x4xf32> to vector<128x4xf32>
    %49 = arith.truncf %48 : vector<128x4xf32> to vector<128x4xbf16>
    %c1_96 = arith.constant 1 : index
    %c0_97 = arith.constant 0 : index
    %c0_98 = arith.constant 0 : index
    %50 = vector.load %arg2[%c1_96, %c0_97, %c0_98] : memref<9x4x32xbf16, #tpu.memory_space<vmem>>, vector<1x4x32xbf16>
    %51 = vector.shape_cast %50 : vector<1x4x32xbf16> to vector<4x32xbf16>
    %cst_99 = arith.constant dense<0.000000e+00> : vector<128x32xf32>
    %52 = tpu.matmul %49, %51, %cst_99 {dimension_numbers = #tpu.dot_dimension_numbers<[1], [0], [0], [1], [0, 0, 1, 1], [], []>} : vector<128x4xbf16>, vector<4x32xbf16>, vector<128x32xf32> -> vector<128x32xf32>
    %53 = arith.addf %46, %52 : vector<128x32xf32>
    %c0_100 = arith.constant 0 : index
    %c2 = arith.constant 2 : index
    %c0_101 = arith.constant 0 : index
    %54 = vector.load %arg15[%c0_100, %c2, %c0_101] : memref<18x18x4xf32, #tpu.memory_space<vmem>>, vector<8x16x4xf32>
    %55 = vector.shape_cast %54 : vector<8x16x4xf32> to vector<128x4xf32>
    %56 = arith.truncf %55 : vector<128x4xf32> to vector<128x4xbf16>
    %c2_102 = arith.constant 2 : index
    %c0_103 = arith.constant 0 : index
    %c0_104 = arith.constant 0 : index
    %57 = vector.load %arg2[%c2_102, %c0_103, %c0_104] : memref<9x4x32xbf16, #tpu.memory_space<vmem>>, vector<1x4x32xbf16>
    %58 = vector.shape_cast %57 : vector<1x4x32xbf16> to vector<4x32xbf16>
    %cst_105 = arith.constant dense<0.000000e+00> : vector<128x32xf32>
    %59 = tpu.matmul %56, %58, %cst_105 {dimension_numbers = #tpu.dot_dimension_numbers<[1], [0], [0], [1], [0, 0, 1, 1], [], []>} : vector<128x4xbf16>, vector<4x32xbf16>, vector<128x32xf32> -> vector<128x32xf32>
    %60 = arith.addf %53, %59 : vector<128x32xf32>
    %c1_106 = arith.constant 1 : index
    %c0_107 = arith.constant 0 : index
    %c0_108 = arith.constant 0 : index
    %61 = vector.load %arg15[%c1_106, %c0_107, %c0_108] : memref<18x18x4xf32, #tpu.memory_space<vmem>>, vector<8x16x4xf32>
    %62 = vector.shape_cast %61 : vector<8x16x4xf32> to vector<128x4xf32>
    %63 = arith.truncf %62 : vector<128x4xf32> to vector<128x4xbf16>
    %c3 = arith.constant 3 : index
    %c0_109 = arith.constant 0 : index
    %c0_110 = arith.constant 0 : index
    %64 = vector.load %arg2[%c3, %c0_109, %c0_110] : memref<9x4x32xbf16, #tpu.memory_space<vmem>>, vector<1x4x32xbf16>
    %65 = vector.shape_cast %64 : vector<1x4x32xbf16> to vector<4x32xbf16>
    %cst_111 = arith.constant dense<0.000000e+00> : vector<128x32xf32>
    %66 = tpu.matmul %63, %65, %cst_111 {dimension_numbers = #tpu.dot_dimension_numbers<[1], [0], [0], [1], [0, 0, 1, 1], [], []>} : vector<128x4xbf16>, vector<4x32xbf16>, vector<128x32xf32> -> vector<128x32xf32>
    %67 = arith.addf %60, %66 : vector<128x32xf32>
    %c1_112 = arith.constant 1 : index
    %c1_113 = arith.constant 1 : index
    %c0_114 = arith.constant 0 : index
    %68 = vector.load %arg15[%c1_112, %c1_113, %c0_114] : memref<18x18x4xf32, #tpu.memory_space<vmem>>, vector<8x16x4xf32>
    %69 = vector.shape_cast %68 : vector<8x16x4xf32> to vector<128x4xf32>
    %70 = arith.truncf %69 : vector<128x4xf32> to vector<128x4xbf16>
    %c4 = arith.constant 4 : index
    %c0_115 = arith.constant 0 : index
    %c0_116 = arith.constant 0 : index
    %71 = vector.load %arg2[%c4, %c0_115, %c0_116] : memref<9x4x32xbf16, #tpu.memory_space<vmem>>, vector<1x4x32xbf16>
    %72 = vector.shape_cast %71 : vector<1x4x32xbf16> to vector<4x32xbf16>
    %cst_117 = arith.constant dense<0.000000e+00> : vector<128x32xf32>
    %73 = tpu.matmul %70, %72, %cst_117 {dimension_numbers = #tpu.dot_dimension_numbers<[1], [0], [0], [1], [0, 0, 1, 1], [], []>} : vector<128x4xbf16>, vector<4x32xbf16>, vector<128x32xf32> -> vector<128x32xf32>
    %74 = arith.addf %67, %73 : vector<128x32xf32>
    %c1_118 = arith.constant 1 : index
    %c2_119 = arith.constant 2 : index
    %c0_120 = arith.constant 0 : index
    %75 = vector.load %arg15[%c1_118, %c2_119, %c0_120] : memref<18x18x4xf32, #tpu.memory_space<vmem>>, vector<8x16x4xf32>
    %76 = vector.shape_cast %75 : vector<8x16x4xf32> to vector<128x4xf32>
    %77 = arith.truncf %76 : vector<128x4xf32> to vector<128x4xbf16>
    %c5_121 = arith.constant 5 : index
    %c0_122 = arith.constant 0 : index
    %c0_123 = arith.constant 0 : index
    %78 = vector.load %arg2[%c5_121, %c0_122, %c0_123] : memref<9x4x32xbf16, #tpu.memory_space<vmem>>, vector<1x4x32xbf16>
    %79 = vector.shape_cast %78 : vector<1x4x32xbf16> to vector<4x32xbf16>
    %cst_124 = arith.constant dense<0.000000e+00> : vector<128x32xf32>
    %80 = tpu.matmul %77, %79, %cst_124 {dimension_numbers = #tpu.dot_dimension_numbers<[1], [0], [0], [1], [0, 0, 1, 1], [], []>} : vector<128x4xbf16>, vector<4x32xbf16>, vector<128x32xf32> -> vector<128x32xf32>
    %81 = arith.addf %74, %80 : vector<128x32xf32>
    %c2_125 = arith.constant 2 : index
    %c0_126 = arith.constant 0 : index
    %c0_127 = arith.constant 0 : index
    %82 = vector.load %arg15[%c2_125, %c0_126, %c0_127] : memref<18x18x4xf32, #tpu.memory_space<vmem>>, vector<8x16x4xf32>
    %83 = vector.shape_cast %82 : vector<8x16x4xf32> to vector<128x4xf32>
    %84 = arith.truncf %83 : vector<128x4xf32> to vector<128x4xbf16>
    %c6 = arith.constant 6 : index
    %c0_128 = arith.constant 0 : index
    %c0_129 = arith.constant 0 : index
    %85 = vector.load %arg2[%c6, %c0_128, %c0_129] : memref<9x4x32xbf16, #tpu.memory_space<vmem>>, vector<1x4x32xbf16>
    %86 = vector.shape_cast %85 : vector<1x4x32xbf16> to vector<4x32xbf16>
    %cst_130 = arith.constant dense<0.000000e+00> : vector<128x32xf32>
    %87 = tpu.matmul %84, %86, %cst_130 {dimension_numbers = #tpu.dot_dimension_numbers<[1], [0], [0], [1], [0, 0, 1, 1], [], []>} : vector<128x4xbf16>, vector<4x32xbf16>, vector<128x32xf32> -> vector<128x32xf32>
    %88 = arith.addf %81, %87 : vector<128x32xf32>
    %c2_131 = arith.constant 2 : index
    %c1_132 = arith.constant 1 : index
    %c0_133 = arith.constant 0 : index
    %89 = vector.load %arg15[%c2_131, %c1_132, %c0_133] : memref<18x18x4xf32, #tpu.memory_space<vmem>>, vector<8x16x4xf32>
    %90 = vector.shape_cast %89 : vector<8x16x4xf32> to vector<128x4xf32>
    %91 = arith.truncf %90 : vector<128x4xf32> to vector<128x4xbf16>
    %c7 = arith.constant 7 : index
    %c0_134 = arith.constant 0 : index
    %c0_135 = arith.constant 0 : index
    %92 = vector.load %arg2[%c7, %c0_134, %c0_135] : memref<9x4x32xbf16, #tpu.memory_space<vmem>>, vector<1x4x32xbf16>
    %93 = vector.shape_cast %92 : vector<1x4x32xbf16> to vector<4x32xbf16>
    %cst_136 = arith.constant dense<0.000000e+00> : vector<128x32xf32>
    %94 = tpu.matmul %91, %93, %cst_136 {dimension_numbers = #tpu.dot_dimension_numbers<[1], [0], [0], [1], [0, 0, 1, 1], [], []>} : vector<128x4xbf16>, vector<4x32xbf16>, vector<128x32xf32> -> vector<128x32xf32>
    %95 = arith.addf %88, %94 : vector<128x32xf32>
    %c2_137 = arith.constant 2 : index
    %c2_138 = arith.constant 2 : index
    %c0_139 = arith.constant 0 : index
    %96 = vector.load %arg15[%c2_137, %c2_138, %c0_139] : memref<18x18x4xf32, #tpu.memory_space<vmem>>, vector<8x16x4xf32>
    %97 = vector.shape_cast %96 : vector<8x16x4xf32> to vector<128x4xf32>
    %98 = arith.truncf %97 : vector<128x4xf32> to vector<128x4xbf16>
    %c8 = arith.constant 8 : index
    %c0_140 = arith.constant 0 : index
    %c0_141 = arith.constant 0 : index
    %99 = vector.load %arg2[%c8, %c0_140, %c0_141] : memref<9x4x32xbf16, #tpu.memory_space<vmem>>, vector<1x4x32xbf16>
    %100 = vector.shape_cast %99 : vector<1x4x32xbf16> to vector<4x32xbf16>
    %cst_142 = arith.constant dense<0.000000e+00> : vector<128x32xf32>
    %101 = tpu.matmul %98, %100, %cst_142 {dimension_numbers = #tpu.dot_dimension_numbers<[1], [0], [0], [1], [0, 0, 1, 1], [], []>} : vector<128x4xbf16>, vector<4x32xbf16>, vector<128x32xf32> -> vector<128x32xf32>
    %102 = arith.addf %95, %101 : vector<128x32xf32>
    %c0_143 = arith.constant 0 : index
    %c0_144 = arith.constant 0 : index
    %103 = vector.load %arg8[%c0_143, %c0_144] : memref<1x32xf32, #tpu.memory_space<vmem>>, vector<1x32xf32>
    %104 = vector.broadcast %103 : vector<1x32xf32> to vector<128x32xf32>
    %105 = arith.addf %102, %104 : vector<128x32xf32>
    %cst_145 = arith.constant 0.000000e+00 : f32
    %106 = vector.broadcast %cst_145 : f32 to vector<128x32xf32>
    %107 = arith.maximumf %105, %106 : vector<128x32xf32>
    %108 = vector.shape_cast %107 : vector<128x32xf32> to vector<8x16x32xf32>
    %109 = vector.shape_cast %108 : vector<8x16x32xf32> to vector<8x8x2x32xf32>
    %cst_146 = arith.constant dense<0xFF800000> : vector<8x8x32xf32>
    %110 = vector.multi_reduction <maximumf>, %109, %cst_146 [2] : vector<8x8x2x32xf32> to vector<8x8x32xf32>
    %111 = vector.shape_cast %110 : vector<8x8x32xf32> to vector<4x2x8x32xf32>
    %cst_147 = arith.constant dense<0xFF800000> : vector<4x8x32xf32>
    %112 = vector.multi_reduction <maximumf>, %111, %cst_147 [1] : vector<4x2x8x32xf32> to vector<4x8x32xf32>
    %c1_148 = arith.constant 1 : index
    %c1_149 = arith.constant 1 : index
    %c0_150 = arith.constant 0 : index
    %113 = vector.load %arg16[%c1_148, %c1_149, %c0_150] : memref<10x10x32xf32, #tpu.memory_space<vmem>>, vector<4x8x32xf32>
    tpu.vector_store %arg16[%c1_148, %c1_149, %c0_150], %112 {strides = array<i32>} : memref<10x10x32xf32, #tpu.memory_space<vmem>>, vector<4x8x32xf32>,
    %cst_151 = arith.constant 0.000000e+00 : f32
    %114 = vector.broadcast %cst_151 : f32 to vector<128x32xf32>
    %c8_152 = arith.constant 8 : index
    %c0_153 = arith.constant 0 : index
    %c0_154 = arith.constant 0 : index
    %115 = vector.load %arg15[%c8_152, %c0_153, %c0_154] : memref<18x18x4xf32, #tpu.memory_space<vmem>>, vector<8x16x4xf32>
    %116 = vector.shape_cast %115 : vector<8x16x4xf32> to vector<128x4xf32>
    %117 = arith.truncf %116 : vector<128x4xf32> to vector<128x4xbf16>
    %c0_155 = arith.constant 0 : index
    %c0_156 = arith.constant 0 : index
    %c0_157 = arith.constant 0 : index
    %118 = vector.load %arg2[%c0_155, %c0_156, %c0_157] : memref<9x4x32xbf16, #tpu.memory_space<vmem>>, vector<1x4x32xbf16>
    %119 = vector.shape_cast %118 : vector<1x4x32xbf16> to vector<4x32xbf16>
    %cst_158 = arith.constant dense<0.000000e+00> : vector<128x32xf32>
    %120 = tpu.matmul %117, %119, %cst_158 {dimension_numbers = #tpu.dot_dimension_numbers<[1], [0], [0], [1], [0, 0, 1, 1], [], []>} : vector<128x4xbf16>, vector<4x32xbf16>, vector<128x32xf32> -> vector<128x32xf32>
    %121 = arith.addf %114, %120 : vector<128x32xf32>
    %c8_159 = arith.constant 8 : index
    %c1_160 = arith.constant 1 : index
    %c0_161 = arith.constant 0 : index
    %122 = vector.load %arg15[%c8_159, %c1_160, %c0_161] : memref<18x18x4xf32, #tpu.memory_space<vmem>>, vector<8x16x4xf32>
    %123 = vector.shape_cast %122 : vector<8x16x4xf32> to vector<128x4xf32>
    %124 = arith.truncf %123 : vector<128x4xf32> to vector<128x4xbf16>
    %c1_162 = arith.constant 1 : index
    %c0_163 = arith.constant 0 : index
    %c0_164 = arith.constant 0 : index
    %125 = vector.load %arg2[%c1_162, %c0_163, %c0_164] : memref<9x4x32xbf16, #tpu.memory_space<vmem>>, vector<1x4x32xbf16>
    %126 = vector.shape_cast %125 : vector<1x4x32xbf16> to vector<4x32xbf16>
    %cst_165 = arith.constant dense<0.000000e+00> : vector<128x32xf32>
    %127 = tpu.matmul %124, %126, %cst_165 {dimension_numbers = #tpu.dot_dimension_numbers<[1], [0], [0], [1], [0, 0, 1, 1], [], []>} : vector<128x4xbf16>, vector<4x32xbf16>, vector<128x32xf32> -> vector<128x32xf32>
    %128 = arith.addf %121, %127 : vector<128x32xf32>
    %c8_166 = arith.constant 8 : index
    %c2_167 = arith.constant 2 : index
    %c0_168 = arith.constant 0 : index
    %129 = vector.load %arg15[%c8_166, %c2_167, %c0_168] : memref<18x18x4xf32, #tpu.memory_space<vmem>>, vector<8x16x4xf32>
    %130 = vector.shape_cast %129 : vector<8x16x4xf32> to vector<128x4xf32>
    %131 = arith.truncf %130 : vector<128x4xf32> to vector<128x4xbf16>
    %c2_169 = arith.constant 2 : index
    %c0_170 = arith.constant 0 : index
    %c0_171 = arith.constant 0 : index
    %132 = vector.load %arg2[%c2_169, %c0_170, %c0_171] : memref<9x4x32xbf16, #tpu.memory_space<vmem>>, vector<1x4x32xbf16>
    %133 = vector.shape_cast %132 : vector<1x4x32xbf16> to vector<4x32xbf16>
    %cst_172 = arith.constant dense<0.000000e+00> : vector<128x32xf32>
    %134 = tpu.matmul %131, %133, %cst_172 {dimension_numbers = #tpu.dot_dimension_numbers<[1], [0], [0], [1], [0, 0, 1, 1], [], []>} : vector<128x4xbf16>, vector<4x32xbf16>, vector<128x32xf32> -> vector<128x32xf32>
    %135 = arith.addf %128, %134 : vector<128x32xf32>
    %c9_173 = arith.constant 9 : index
    %c0_174 = arith.constant 0 : index
    %c0_175 = arith.constant 0 : index
    %136 = vector.load %arg15[%c9_173, %c0_174, %c0_175] : memref<18x18x4xf32, #tpu.memory_space<vmem>>, vector<8x16x4xf32>
    %137 = vector.shape_cast %136 : vector<8x16x4xf32> to vector<128x4xf32>
    %138 = arith.truncf %137 : vector<128x4xf32> to vector<128x4xbf16>
    %c3_176 = arith.constant 3 : index
    %c0_177 = arith.constant 0 : index
    %c0_178 = arith.constant 0 : index
    %139 = vector.load %arg2[%c3_176, %c0_177, %c0_178] : memref<9x4x32xbf16, #tpu.memory_space<vmem>>, vector<1x4x32xbf16>
    %140 = vector.shape_cast %139 : vector<1x4x32xbf16> to vector<4x32xbf16>
    %cst_179 = arith.constant dense<0.000000e+00> : vector<128x32xf32>
    %141 = tpu.matmul %138, %140, %cst_179 {dimension_numbers = #tpu.dot_dimension_numbers<[1], [0], [0], [1], [0, 0, 1, 1], [], []>} : vector<128x4xbf16>, vector<4x32xbf16>, vector<128x32xf32> -> vector<128x32xf32>
    %142 = arith.addf %135, %141 : vector<128x32xf32>
    %c9_180 = arith.constant 9 : index
    %c1_181 = arith.constant 1 : index
    %c0_182 = arith.constant 0 : index
    %143 = vector.load %arg15[%c9_180, %c1_181, %c0_182] : memref<18x18x4xf32, #tpu.memory_space<vmem>>, vector<8x16x4xf32>
    %144 = vector.shape_cast %143 : vector<8x16x4xf32> to vector<128x4xf32>
    %145 = arith.truncf %144 : vector<128x4xf32> to vector<128x4xbf16>
    %c4_183 = arith.constant 4 : index
    %c0_184 = arith.constant 0 : index
    %c0_185 = arith.constant 0 : index
    %146 = vector.load %arg2[%c4_183, %c0_184, %c0_185] : memref<9x4x32xbf16, #tpu.memory_space<vmem>>, vector<1x4x32xbf16>
    %147 = vector.shape_cast %146 : vector<1x4x32xbf16> to vector<4x32xbf16>
    %cst_186 = arith.constant dense<0.000000e+00> : vector<128x32xf32>
    %148 = tpu.matmul %145, %147, %cst_186 {dimension_numbers = #tpu.dot_dimension_numbers<[1], [0], [0], [1], [0, 0, 1, 1], [], []>} : vector<128x4xbf16>, vector<4x32xbf16>, vector<128x32xf32> -> vector<128x32xf32>
    %149 = arith.addf %142, %148 : vector<128x32xf32>
    %c9_187 = arith.constant 9 : index
    %c2_188 = arith.constant 2 : index
    %c0_189 = arith.constant 0 : index
    %150 = vector.load %arg15[%c9_187, %c2_188, %c0_189] : memref<18x18x4xf32, #tpu.memory_space<vmem>>, vector<8x16x4xf32>
    %151 = vector.shape_cast %150 : vector<8x16x4xf32> to vector<128x4xf32>
    %152 = arith.truncf %151 : vector<128x4xf32> to vector<128x4xbf16>
    %c5_190 = arith.constant 5 : index
    %c0_191 = arith.constant 0 : index
    %c0_192 = arith.constant 0 : index
    %153 = vector.load %arg2[%c5_190, %c0_191, %c0_192] : memref<9x4x32xbf16, #tpu.memory_space<vmem>>, vector<1x4x32xbf16>
    %154 = vector.shape_cast %153 : vector<1x4x32xbf16> to vector<4x32xbf16>
    %cst_193 = arith.constant dense<0.000000e+00> : vector<128x32xf32>
    %155 = tpu.matmul %152, %154, %cst_193 {dimension_numbers = #tpu.dot_dimension_numbers<[1], [0], [0], [1], [0, 0, 1, 1], [], []>} : vector<128x4xbf16>, vector<4x32xbf16>, vector<128x32xf32> -> vector<128x32xf32>
    %156 = arith.addf %149, %155 : vector<128x32xf32>
    %c10 = arith.constant 10 : index
    %c0_194 = arith.constant 0 : index
    %c0_195 = arith.constant 0 : index
    %157 = vector.load %arg15[%c10, %c0_194, %c0_195] : memref<18x18x4xf32, #tpu.memory_space<vmem>>, vector<8x16x4xf32>
    %158 = vector.shape_cast %157 : vector<8x16x4xf32> to vector<128x4xf32>
    %159 = arith.truncf %158 : vector<128x4xf32> to vector<128x4xbf16>
    %c6_196 = arith.constant 6 : index
    %c0_197 = arith.constant 0 : index
    %c0_198 = arith.constant 0 : index
    %160 = vector.load %arg2[%c6_196, %c0_197, %c0_198] : memref<9x4x32xbf16, #tpu.memory_space<vmem>>, vector<1x4x32xbf16>
    %161 = vector.shape_cast %160 : vector<1x4x32xbf16> to vector<4x32xbf16>
    %cst_199 = arith.constant dense<0.000000e+00> : vector<128x32xf32>
    %162 = tpu.matmul %159, %161, %cst_199 {dimension_numbers = #tpu.dot_dimension_numbers<[1], [0], [0], [1], [0, 0, 1, 1], [], []>} : vector<128x4xbf16>, vector<4x32xbf16>, vector<128x32xf32> -> vector<128x32xf32>
    %163 = arith.addf %156, %162 : vector<128x32xf32>
    %c10_200 = arith.constant 10 : index
    %c1_201 = arith.constant 1 : index
    %c0_202 = arith.constant 0 : index
    %164 = vector.load %arg15[%c10_200, %c1_201, %c0_202] : memref<18x18x4xf32, #tpu.memory_space<vmem>>, vector<8x16x4xf32>
    %165 = vector.shape_cast %164 : vector<8x16x4xf32> to vector<128x4xf32>
    %166 = arith.truncf %165 : vector<128x4xf32> to vector<128x4xbf16>
    %c7_203 = arith.constant 7 : index
    %c0_204 = arith.constant 0 : index
    %c0_205 = arith.constant 0 : index
    %167 = vector.load %arg2[%c7_203, %c0_204, %c0_205] : memref<9x4x32xbf16, #tpu.memory_space<vmem>>, vector<1x4x32xbf16>
    %168 = vector.shape_cast %167 : vector<1x4x32xbf16> to vector<4x32xbf16>
    %cst_206 = arith.constant dense<0.000000e+00> : vector<128x32xf32>
    %169 = tpu.matmul %166, %168, %cst_206 {dimension_numbers = #tpu.dot_dimension_numbers<[1], [0], [0], [1], [0, 0, 1, 1], [], []>} : vector<128x4xbf16>, vector<4x32xbf16>, vector<128x32xf32> -> vector<128x32xf32>
    %170 = arith.addf %163, %169 : vector<128x32xf32>
    %c10_207 = arith.constant 10 : index
    %c2_208 = arith.constant 2 : index
    %c0_209 = arith.constant 0 : index
    %171 = vector.load %arg15[%c10_207, %c2_208, %c0_209] : memref<18x18x4xf32, #tpu.memory_space<vmem>>, vector<8x16x4xf32>
    %172 = vector.shape_cast %171 : vector<8x16x4xf32> to vector<128x4xf32>
    %173 = arith.truncf %172 : vector<128x4xf32> to vector<128x4xbf16>
    %c8_210 = arith.constant 8 : index
    %c0_211 = arith.constant 0 : index
    %c0_212 = arith.constant 0 : index
    %174 = vector.load %arg2[%c8_210, %c0_211, %c0_212] : memref<9x4x32xbf16, #tpu.memory_space<vmem>>, vector<1x4x32xbf16>
    %175 = vector.shape_cast %174 : vector<1x4x32xbf16> to vector<4x32xbf16>
    %cst_213 = arith.constant dense<0.000000e+00> : vector<128x32xf32>
    %176 = tpu.matmul %173, %175, %cst_213 {dimension_numbers = #tpu.dot_dimension_numbers<[1], [0], [0], [1], [0, 0, 1, 1], [], []>} : vector<128x4xbf16>, vector<4x32xbf16>, vector<128x32xf32> -> vector<128x32xf32>
    %177 = arith.addf %170, %176 : vector<128x32xf32>
    %c0_214 = arith.constant 0 : index
    %c0_215 = arith.constant 0 : index
    %178 = vector.load %arg8[%c0_214, %c0_215] : memref<1x32xf32, #tpu.memory_space<vmem>>, vector<1x32xf32>
    %179 = vector.broadcast %178 : vector<1x32xf32> to vector<128x32xf32>
    %180 = arith.addf %177, %179 : vector<128x32xf32>
    %cst_216 = arith.constant 0.000000e+00 : f32
    %181 = vector.broadcast %cst_216 : f32 to vector<128x32xf32>
    %182 = arith.maximumf %180, %181 : vector<128x32xf32>
    %183 = vector.shape_cast %182 : vector<128x32xf32> to vector<8x16x32xf32>
    %184 = vector.shape_cast %183 : vector<8x16x32xf32> to vector<8x8x2x32xf32>
    %cst_217 = arith.constant dense<0xFF800000> : vector<8x8x32xf32>
    %185 = vector.multi_reduction <maximumf>, %184, %cst_217 [2] : vector<8x8x2x32xf32> to vector<8x8x32xf32>
    %186 = vector.shape_cast %185 : vector<8x8x32xf32> to vector<4x2x8x32xf32>
    %cst_218 = arith.constant dense<0xFF800000> : vector<4x8x32xf32>
    %187 = vector.multi_reduction <maximumf>, %186, %cst_218 [1] : vector<4x2x8x32xf32> to vector<4x8x32xf32>
    %c5_219 = arith.constant 5 : index
    %c1_220 = arith.constant 1 : index
    %c0_221 = arith.constant 0 : index
    %188 = vector.load %arg16[%c5_219, %c1_220, %c0_221] : memref<10x10x32xf32, #tpu.memory_space<vmem>>, vector<4x8x32xf32>
    tpu.vector_store %arg16[%c5_219, %c1_220, %c0_221], %187 {strides = array<i32>} : memref<10x10x32xf32, #tpu.memory_space<vmem>>, vector<4x8x32xf32>,
    %cst_222 = arith.constant 0.000000e+00 : f32
    %189 = vector.broadcast %cst_222 : f32 to vector<64x64xf32>
    %c0_223 = arith.constant 0 : index
    %c0_224 = arith.constant 0 : index
    %c0_225 = arith.constant 0 : index
    %190 = vector.load %arg16[%c0_223, %c0_224, %c0_225] : memref<10x10x32xf32, #tpu.memory_space<vmem>>, vector<8x8x32xf32>
    %191 = vector.shape_cast %190 : vector<8x8x32xf32> to vector<64x32xf32>
    %192 = arith.truncf %191 : vector<64x32xf32> to vector<64x32xbf16>
    %c0_226 = arith.constant 0 : index
    %c0_227 = arith.constant 0 : index
    %c0_228 = arith.constant 0 : index
    %193 = vector.load %arg3[%c0_226, %c0_227, %c0_228] : memref<9x32x64xbf16, #tpu.memory_space<vmem>>, vector<1x32x64xbf16>
    %194 = vector.shape_cast %193 : vector<1x32x64xbf16> to vector<32x64xbf16>
    %cst_229 = arith.constant dense<0.000000e+00> : vector<64x64xf32>
    %195 = tpu.matmul %192, %194, %cst_229 {dimension_numbers = #tpu.dot_dimension_numbers<[1], [0], [0], [1], [0, 0, 1, 1], [], []>} : vector<64x32xbf16>, vector<32x64xbf16>, vector<64x64xf32> -> vector<64x64xf32>
    %196 = arith.addf %189, %195 : vector<64x64xf32>
    %c0_230 = arith.constant 0 : index
    %c1_231 = arith.constant 1 : index
    %c0_232 = arith.constant 0 : index
    %197 = vector.load %arg16[%c0_230, %c1_231, %c0_232] : memref<10x10x32xf32, #tpu.memory_space<vmem>>, vector<8x8x32xf32>
    %198 = vector.shape_cast %197 : vector<8x8x32xf32> to vector<64x32xf32>
    %199 = arith.truncf %198 : vector<64x32xf32> to vector<64x32xbf16>
    %c1_233 = arith.constant 1 : index
    %c0_234 = arith.constant 0 : index
    %c0_235 = arith.constant 0 : index
    %200 = vector.load %arg3[%c1_233, %c0_234, %c0_235] : memref<9x32x64xbf16, #tpu.memory_space<vmem>>, vector<1x32x64xbf16>
    %201 = vector.shape_cast %200 : vector<1x32x64xbf16> to vector<32x64xbf16>
    %cst_236 = arith.constant dense<0.000000e+00> : vector<64x64xf32>
    %202 = tpu.matmul %199, %201, %cst_236 {dimension_numbers = #tpu.dot_dimension_numbers<[1], [0], [0], [1], [0, 0, 1, 1], [], []>} : vector<64x32xbf16>, vector<32x64xbf16>, vector<64x64xf32> -> vector<64x64xf32>
    %203 = arith.addf %196, %202 : vector<64x64xf32>
    %c0_237 = arith.constant 0 : index
    %c2_238 = arith.constant 2 : index
    %c0_239 = arith.constant 0 : index
    %204 = vector.load %arg16[%c0_237, %c2_238, %c0_239] : memref<10x10x32xf32, #tpu.memory_space<vmem>>, vector<8x8x32xf32>
    %205 = vector.shape_cast %204 : vector<8x8x32xf32> to vector<64x32xf32>
    %206 = arith.truncf %205 : vector<64x32xf32> to vector<64x32xbf16>
    %c2_240 = arith.constant 2 : index
    %c0_241 = arith.constant 0 : index
    %c0_242 = arith.constant 0 : index
    %207 = vector.load %arg3[%c2_240, %c0_241, %c0_242] : memref<9x32x64xbf16, #tpu.memory_space<vmem>>, vector<1x32x64xbf16>
    %208 = vector.shape_cast %207 : vector<1x32x64xbf16> to vector<32x64xbf16>
    %cst_243 = arith.constant dense<0.000000e+00> : vector<64x64xf32>
    %209 = tpu.matmul %206, %208, %cst_243 {dimension_numbers = #tpu.dot_dimension_numbers<[1], [0], [0], [1], [0, 0, 1, 1], [], []>} : vector<64x32xbf16>, vector<32x64xbf16>, vector<64x64xf32> -> vector<64x64xf32>
    %210 = arith.addf %203, %209 : vector<64x64xf32>
    %c1_244 = arith.constant 1 : index
    %c0_245 = arith.constant 0 : index
    %c0_246 = arith.constant 0 : index
    %211 = vector.load %arg16[%c1_244, %c0_245, %c0_246] : memref<10x10x32xf32, #tpu.memory_space<vmem>>, vector<8x8x32xf32>
    %212 = vector.shape_cast %211 : vector<8x8x32xf32> to vector<64x32xf32>
    %213 = arith.truncf %212 : vector<64x32xf32> to vector<64x32xbf16>
    %c3_247 = arith.constant 3 : index
    %c0_248 = arith.constant 0 : index
    %c0_249 = arith.constant 0 : index
    %214 = vector.load %arg3[%c3_247, %c0_248, %c0_249] : memref<9x32x64xbf16, #tpu.memory_space<vmem>>, vector<1x32x64xbf16>
    %215 = vector.shape_cast %214 : vector<1x32x64xbf16> to vector<32x64xbf16>
    %cst_250 = arith.constant dense<0.000000e+00> : vector<64x64xf32>
    %216 = tpu.matmul %213, %215, %cst_250 {dimension_numbers = #tpu.dot_dimension_numbers<[1], [0], [0], [1], [0, 0, 1, 1], [], []>} : vector<64x32xbf16>, vector<32x64xbf16>, vector<64x64xf32> -> vector<64x64xf32>
    %217 = arith.addf %210, %216 : vector<64x64xf32>
    %c1_251 = arith.constant 1 : index
    %c1_252 = arith.constant 1 : index
    %c0_253 = arith.constant 0 : index
    %218 = vector.load %arg16[%c1_251, %c1_252, %c0_253] : memref<10x10x32xf32, #tpu.memory_space<vmem>>, vector<8x8x32xf32>
    %219 = vector.shape_cast %218 : vector<8x8x32xf32> to vector<64x32xf32>
    %220 = arith.truncf %219 : vector<64x32xf32> to vector<64x32xbf16>
    %c4_254 = arith.constant 4 : index
    %c0_255 = arith.constant 0 : index
    %c0_256 = arith.constant 0 : index
    %221 = vector.load %arg3[%c4_254, %c0_255, %c0_256] : memref<9x32x64xbf16, #tpu.memory_space<vmem>>, vector<1x32x64xbf16>
    %222 = vector.shape_cast %221 : vector<1x32x64xbf16> to vector<32x64xbf16>
    %cst_257 = arith.constant dense<0.000000e+00> : vector<64x64xf32>
    %223 = tpu.matmul %220, %222, %cst_257 {dimension_numbers = #tpu.dot_dimension_numbers<[1], [0], [0], [1], [0, 0, 1, 1], [], []>} : vector<64x32xbf16>, vector<32x64xbf16>, vector<64x64xf32> -> vector<64x64xf32>
    %224 = arith.addf %217, %223 : vector<64x64xf32>
    %c1_258 = arith.constant 1 : index
    %c2_259 = arith.constant 2 : index
    %c0_260 = arith.constant 0 : index
    %225 = vector.load %arg16[%c1_258, %c2_259, %c0_260] : memref<10x10x32xf32, #tpu.memory_space<vmem>>, vector<8x8x32xf32>
    %226 = vector.shape_cast %225 : vector<8x8x32xf32> to vector<64x32xf32>
    %227 = arith.truncf %226 : vector<64x32xf32> to vector<64x32xbf16>
    %c5_261 = arith.constant 5 : index
    %c0_262 = arith.constant 0 : index
    %c0_263 = arith.constant 0 : index
    %228 = vector.load %arg3[%c5_261, %c0_262, %c0_263] : memref<9x32x64xbf16, #tpu.memory_space<vmem>>, vector<1x32x64xbf16>
    %229 = vector.shape_cast %228 : vector<1x32x64xbf16> to vector<32x64xbf16>
    %cst_264 = arith.constant dense<0.000000e+00> : vector<64x64xf32>
    %230 = tpu.matmul %227, %229, %cst_264 {dimension_numbers = #tpu.dot_dimension_numbers<[1], [0], [0], [1], [0, 0, 1, 1], [], []>} : vector<64x32xbf16>, vector<32x64xbf16>, vector<64x64xf32> -> vector<64x64xf32>
    %231 = arith.addf %224, %230 : vector<64x64xf32>
    %c2_265 = arith.constant 2 : index
    %c0_266 = arith.constant 0 : index
    %c0_267 = arith.constant 0 : index
    %232 = vector.load %arg16[%c2_265, %c0_266, %c0_267] : memref<10x10x32xf32, #tpu.memory_space<vmem>>, vector<8x8x32xf32>
    %233 = vector.shape_cast %232 : vector<8x8x32xf32> to vector<64x32xf32>
    %234 = arith.truncf %233 : vector<64x32xf32> to vector<64x32xbf16>
    %c6_268 = arith.constant 6 : index
    %c0_269 = arith.constant 0 : index
    %c0_270 = arith.constant 0 : index
    %235 = vector.load %arg3[%c6_268, %c0_269, %c0_270] : memref<9x32x64xbf16, #tpu.memory_space<vmem>>, vector<1x32x64xbf16>
    %236 = vector.shape_cast %235 : vector<1x32x64xbf16> to vector<32x64xbf16>
    %cst_271 = arith.constant dense<0.000000e+00> : vector<64x64xf32>
    %237 = tpu.matmul %234, %236, %cst_271 {dimension_numbers = #tpu.dot_dimension_numbers<[1], [0], [0], [1], [0, 0, 1, 1], [], []>} : vector<64x32xbf16>, vector<32x64xbf16>, vector<64x64xf32> -> vector<64x64xf32>
    %238 = arith.addf %231, %237 : vector<64x64xf32>
    %c2_272 = arith.constant 2 : index
    %c1_273 = arith.constant 1 : index
    %c0_274 = arith.constant 0 : index
    %239 = vector.load %arg16[%c2_272, %c1_273, %c0_274] : memref<10x10x32xf32, #tpu.memory_space<vmem>>, vector<8x8x32xf32>
    %240 = vector.shape_cast %239 : vector<8x8x32xf32> to vector<64x32xf32>
    %241 = arith.truncf %240 : vector<64x32xf32> to vector<64x32xbf16>
    %c7_275 = arith.constant 7 : index
    %c0_276 = arith.constant 0 : index
    %c0_277 = arith.constant 0 : index
    %242 = vector.load %arg3[%c7_275, %c0_276, %c0_277] : memref<9x32x64xbf16, #tpu.memory_space<vmem>>, vector<1x32x64xbf16>
    %243 = vector.shape_cast %242 : vector<1x32x64xbf16> to vector<32x64xbf16>
    %cst_278 = arith.constant dense<0.000000e+00> : vector<64x64xf32>
    %244 = tpu.matmul %241, %243, %cst_278 {dimension_numbers = #tpu.dot_dimension_numbers<[1], [0], [0], [1], [0, 0, 1, 1], [], []>} : vector<64x32xbf16>, vector<32x64xbf16>, vector<64x64xf32> -> vector<64x64xf32>
    %245 = arith.addf %238, %244 : vector<64x64xf32>
    %c2_279 = arith.constant 2 : index
    %c2_280 = arith.constant 2 : index
    %c0_281 = arith.constant 0 : index
    %246 = vector.load %arg16[%c2_279, %c2_280, %c0_281] : memref<10x10x32xf32, #tpu.memory_space<vmem>>, vector<8x8x32xf32>
    %247 = vector.shape_cast %246 : vector<8x8x32xf32> to vector<64x32xf32>
    %248 = arith.truncf %247 : vector<64x32xf32> to vector<64x32xbf16>
    %c8_282 = arith.constant 8 : index
    %c0_283 = arith.constant 0 : index
    %c0_284 = arith.constant 0 : index
    %249 = vector.load %arg3[%c8_282, %c0_283, %c0_284] : memref<9x32x64xbf16, #tpu.memory_space<vmem>>, vector<1x32x64xbf16>
    %250 = vector.shape_cast %249 : vector<1x32x64xbf16> to vector<32x64xbf16>
    %cst_285 = arith.constant dense<0.000000e+00> : vector<64x64xf32>
    %251 = tpu.matmul %248, %250, %cst_285 {dimension_numbers = #tpu.dot_dimension_numbers<[1], [0], [0], [1], [0, 0, 1, 1], [], []>} : vector<64x32xbf16>, vector<32x64xbf16>, vector<64x64xf32> -> vector<64x64xf32>
    %252 = arith.addf %245, %251 : vector<64x64xf32>
    %c0_286 = arith.constant 0 : index
    %c0_287 = arith.constant 0 : index
    %253 = vector.load %arg9[%c0_286, %c0_287] : memref<1x64xf32, #tpu.memory_space<vmem>>, vector<1x64xf32>
    %254 = vector.broadcast %253 : vector<1x64xf32> to vector<64x64xf32>
    %255 = arith.addf %252, %254 : vector<64x64xf32>
    %cst_288 = arith.constant 0.000000e+00 : f32
    %256 = vector.broadcast %cst_288 : f32 to vector<64x64xf32>
    %257 = arith.maximumf %255, %256 : vector<64x64xf32>
    %258 = vector.shape_cast %257 : vector<64x64xf32> to vector<8x8x64xf32>
    %259 = vector.shape_cast %258 : vector<8x8x64xf32> to vector<8x4x2x64xf32>
    %cst_289 = arith.constant dense<0xFF800000> : vector<8x4x64xf32>
    %260 = vector.multi_reduction <maximumf>, %259, %cst_289 [2] : vector<8x4x2x64xf32> to vector<8x4x64xf32>
    %261 = vector.shape_cast %260 : vector<8x4x64xf32> to vector<4x2x4x64xf32>
    %cst_290 = arith.constant dense<0xFF800000> : vector<4x4x64xf32>
    %262 = vector.multi_reduction <maximumf>, %261, %cst_290 [1] : vector<4x2x4x64xf32> to vector<4x4x64xf32>
    %c1_291 = arith.constant 1 : index
    %c1_292 = arith.constant 1 : index
    %c0_293 = arith.constant 0 : index
    %263 = vector.load %arg17[%c1_291, %c1_292, %c0_293] : memref<6x6x64xf32, #tpu.memory_space<vmem>>, vector<4x4x64xf32>
    tpu.vector_store %arg17[%c1_291, %c1_292, %c0_293], %262 {strides = array<i32>} : memref<6x6x64xf32, #tpu.memory_space<vmem>>, vector<4x4x64xf32>,
    %cst_294 = arith.constant 0.000000e+00 : f32
    %264 = vector.broadcast %cst_294 : f32 to vector<16x128xf32>
    %c0_295 = arith.constant 0 : index
    %c0_296 = arith.constant 0 : index
    %c0_297 = arith.constant 0 : index
    %265 = vector.load %arg17[%c0_295, %c0_296, %c0_297] : memref<6x6x64xf32, #tpu.memory_space<vmem>>, vector<4x4x64xf32>
    %266 = vector.shape_cast %265 : vector<4x4x64xf32> to vector<16x64xf32>
    %267 = arith.truncf %266 : vector<16x64xf32> to vector<16x64xbf16>
    %c0_298 = arith.constant 0 : index
    %c0_299 = arith.constant 0 : index
    %c0_300 = arith.constant 0 : index
    %268 = vector.load %arg4[%c0_298, %c0_299, %c0_300] : memref<9x64x128xbf16, #tpu.memory_space<vmem>>, vector<1x64x128xbf16>
    %269 = vector.shape_cast %268 : vector<1x64x128xbf16> to vector<64x128xbf16>
    %cst_301 = arith.constant dense<0.000000e+00> : vector<16x128xf32>
    %270 = tpu.matmul %267, %269, %cst_301 {dimension_numbers = #tpu.dot_dimension_numbers<[1], [0], [0], [1], [0, 0, 1, 1], [], []>} : vector<16x64xbf16>, vector<64x128xbf16>, vector<16x128xf32> -> vector<16x128xf32>
    %271 = arith.addf %264, %270 : vector<16x128xf32>
    %c0_302 = arith.constant 0 : index
    %c1_303 = arith.constant 1 : index
    %c0_304 = arith.constant 0 : index
    %272 = vector.load %arg17[%c0_302, %c1_303, %c0_304] : memref<6x6x64xf32, #tpu.memory_space<vmem>>, vector<4x4x64xf32>
    %273 = vector.shape_cast %272 : vector<4x4x64xf32> to vector<16x64xf32>
    %274 = arith.truncf %273 : vector<16x64xf32> to vector<16x64xbf16>
    %c1_305 = arith.constant 1 : index
    %c0_306 = arith.constant 0 : index
    %c0_307 = arith.constant 0 : index
    %275 = vector.load %arg4[%c1_305, %c0_306, %c0_307] : memref<9x64x128xbf16, #tpu.memory_space<vmem>>, vector<1x64x128xbf16>
    %276 = vector.shape_cast %275 : vector<1x64x128xbf16> to vector<64x128xbf16>
    %cst_308 = arith.constant dense<0.000000e+00> : vector<16x128xf32>
    %277 = tpu.matmul %274, %276, %cst_308 {dimension_numbers = #tpu.dot_dimension_numbers<[1], [0], [0], [1], [0, 0, 1, 1], [], []>} : vector<16x64xbf16>, vector<64x128xbf16>, vector<16x128xf32> -> vector<16x128xf32>
    %278 = arith.addf %271, %277 : vector<16x128xf32>
    %c0_309 = arith.constant 0 : index
    %c2_310 = arith.constant 2 : index
    %c0_311 = arith.constant 0 : index
    %279 = vector.load %arg17[%c0_309, %c2_310, %c0_311] : memref<6x6x64xf32, #tpu.memory_space<vmem>>, vector<4x4x64xf32>
    %280 = vector.shape_cast %279 : vector<4x4x64xf32> to vector<16x64xf32>
    %281 = arith.truncf %280 : vector<16x64xf32> to vector<16x64xbf16>
    %c2_312 = arith.constant 2 : index
    %c0_313 = arith.constant 0 : index
    %c0_314 = arith.constant 0 : index
    %282 = vector.load %arg4[%c2_312, %c0_313, %c0_314] : memref<9x64x128xbf16, #tpu.memory_space<vmem>>, vector<1x64x128xbf16>
    %283 = vector.shape_cast %282 : vector<1x64x128xbf16> to vector<64x128xbf16>
    %cst_315 = arith.constant dense<0.000000e+00> : vector<16x128xf32>
    %284 = tpu.matmul %281, %283, %cst_315 {dimension_numbers = #tpu.dot_dimension_numbers<[1], [0], [0], [1], [0, 0, 1, 1], [], []>} : vector<16x64xbf16>, vector<64x128xbf16>, vector<16x128xf32> -> vector<16x128xf32>
    %285 = arith.addf %278, %284 : vector<16x128xf32>
    %c1_316 = arith.constant 1 : index
    %c0_317 = arith.constant 0 : index
    %c0_318 = arith.constant 0 : index
    %286 = vector.load %arg17[%c1_316, %c0_317, %c0_318] : memref<6x6x64xf32, #tpu.memory_space<vmem>>, vector<4x4x64xf32>
    %287 = vector.shape_cast %286 : vector<4x4x64xf32> to vector<16x64xf32>
    %288 = arith.truncf %287 : vector<16x64xf32> to vector<16x64xbf16>
    %c3_319 = arith.constant 3 : index
    %c0_320 = arith.constant 0 : index
    %c0_321 = arith.constant 0 : index
    %289 = vector.load %arg4[%c3_319, %c0_320, %c0_321] : memref<9x64x128xbf16, #tpu.memory_space<vmem>>, vector<1x64x128xbf16>
    %290 = vector.shape_cast %289 : vector<1x64x128xbf16> to vector<64x128xbf16>
    %cst_322 = arith.constant dense<0.000000e+00> : vector<16x128xf32>
    %291 = tpu.matmul %288, %290, %cst_322 {dimension_numbers = #tpu.dot_dimension_numbers<[1], [0], [0], [1], [0, 0, 1, 1], [], []>} : vector<16x64xbf16>, vector<64x128xbf16>, vector<16x128xf32> -> vector<16x128xf32>
    %292 = arith.addf %285, %291 : vector<16x128xf32>
    %c1_323 = arith.constant 1 : index
    %c1_324 = arith.constant 1 : index
    %c0_325 = arith.constant 0 : index
    %293 = vector.load %arg17[%c1_323, %c1_324, %c0_325] : memref<6x6x64xf32, #tpu.memory_space<vmem>>, vector<4x4x64xf32>
    %294 = vector.shape_cast %293 : vector<4x4x64xf32> to vector<16x64xf32>
    %295 = arith.truncf %294 : vector<16x64xf32> to vector<16x64xbf16>
    %c4_326 = arith.constant 4 : index
    %c0_327 = arith.constant 0 : index
    %c0_328 = arith.constant 0 : index
    %296 = vector.load %arg4[%c4_326, %c0_327, %c0_328] : memref<9x64x128xbf16, #tpu.memory_space<vmem>>, vector<1x64x128xbf16>
    %297 = vector.shape_cast %296 : vector<1x64x128xbf16> to vector<64x128xbf16>
    %cst_329 = arith.constant dense<0.000000e+00> : vector<16x128xf32>
    %298 = tpu.matmul %295, %297, %cst_329 {dimension_numbers = #tpu.dot_dimension_numbers<[1], [0], [0], [1], [0, 0, 1, 1], [], []>} : vector<16x64xbf16>, vector<64x128xbf16>, vector<16x128xf32> -> vector<16x128xf32>
    %299 = arith.addf %292, %298 : vector<16x128xf32>
    %c1_330 = arith.constant 1 : index
    %c2_331 = arith.constant 2 : index
    %c0_332 = arith.constant 0 : index
    %300 = vector.load %arg17[%c1_330, %c2_331, %c0_332] : memref<6x6x64xf32, #tpu.memory_space<vmem>>, vector<4x4x64xf32>
    %301 = vector.shape_cast %300 : vector<4x4x64xf32> to vector<16x64xf32>
    %302 = arith.truncf %301 : vector<16x64xf32> to vector<16x64xbf16>
    %c5_333 = arith.constant 5 : index
    %c0_334 = arith.constant 0 : index
    %c0_335 = arith.constant 0 : index
    %303 = vector.load %arg4[%c5_333, %c0_334, %c0_335] : memref<9x64x128xbf16, #tpu.memory_space<vmem>>, vector<1x64x128xbf16>
    %304 = vector.shape_cast %303 : vector<1x64x128xbf16> to vector<64x128xbf16>
    %cst_336 = arith.constant dense<0.000000e+00> : vector<16x128xf32>
    %305 = tpu.matmul %302, %304, %cst_336 {dimension_numbers = #tpu.dot_dimension_numbers<[1], [0], [0], [1], [0, 0, 1, 1], [], []>} : vector<16x64xbf16>, vector<64x128xbf16>, vector<16x128xf32> -> vector<16x128xf32>
    %306 = arith.addf %299, %305 : vector<16x128xf32>
    %c2_337 = arith.constant 2 : index
    %c0_338 = arith.constant 0 : index
    %c0_339 = arith.constant 0 : index
    %307 = vector.load %arg17[%c2_337, %c0_338, %c0_339] : memref<6x6x64xf32, #tpu.memory_space<vmem>>, vector<4x4x64xf32>
    %308 = vector.shape_cast %307 : vector<4x4x64xf32> to vector<16x64xf32>
    %309 = arith.truncf %308 : vector<16x64xf32> to vector<16x64xbf16>
    %c6_340 = arith.constant 6 : index
    %c0_341 = arith.constant 0 : index
    %c0_342 = arith.constant 0 : index
    %310 = vector.load %arg4[%c6_340, %c0_341, %c0_342] : memref<9x64x128xbf16, #tpu.memory_space<vmem>>, vector<1x64x128xbf16>
    %311 = vector.shape_cast %310 : vector<1x64x128xbf16> to vector<64x128xbf16>
    %cst_343 = arith.constant dense<0.000000e+00> : vector<16x128xf32>
    %312 = tpu.matmul %309, %311, %cst_343 {dimension_numbers = #tpu.dot_dimension_numbers<[1], [0], [0], [1], [0, 0, 1, 1], [], []>} : vector<16x64xbf16>, vector<64x128xbf16>, vector<16x128xf32> -> vector<16x128xf32>
    %313 = arith.addf %306, %312 : vector<16x128xf32>
    %c2_344 = arith.constant 2 : index
    %c1_345 = arith.constant 1 : index
    %c0_346 = arith.constant 0 : index
    %314 = vector.load %arg17[%c2_344, %c1_345, %c0_346] : memref<6x6x64xf32, #tpu.memory_space<vmem>>, vector<4x4x64xf32>
    %315 = vector.shape_cast %314 : vector<4x4x64xf32> to vector<16x64xf32>
    %316 = arith.truncf %315 : vector<16x64xf32> to vector<16x64xbf16>
    %c7_347 = arith.constant 7 : index
    %c0_348 = arith.constant 0 : index
    %c0_349 = arith.constant 0 : index
    %317 = vector.load %arg4[%c7_347, %c0_348, %c0_349] : memref<9x64x128xbf16, #tpu.memory_space<vmem>>, vector<1x64x128xbf16>
    %318 = vector.shape_cast %317 : vector<1x64x128xbf16> to vector<64x128xbf16>
    %cst_350 = arith.constant dense<0.000000e+00> : vector<16x128xf32>
    %319 = tpu.matmul %316, %318, %cst_350 {dimension_numbers = #tpu.dot_dimension_numbers<[1], [0], [0], [1], [0, 0, 1, 1], [], []>} : vector<16x64xbf16>, vector<64x128xbf16>, vector<16x128xf32> -> vector<16x128xf32>
    %320 = arith.addf %313, %319 : vector<16x128xf32>
    %c2_351 = arith.constant 2 : index
    %c2_352 = arith.constant 2 : index
    %c0_353 = arith.constant 0 : index
    %321 = vector.load %arg17[%c2_351, %c2_352, %c0_353] : memref<6x6x64xf32, #tpu.memory_space<vmem>>, vector<4x4x64xf32>
    %322 = vector.shape_cast %321 : vector<4x4x64xf32> to vector<16x64xf32>
    %323 = arith.truncf %322 : vector<16x64xf32> to vector<16x64xbf16>
    %c8_354 = arith.constant 8 : index
    %c0_355 = arith.constant 0 : index
    %c0_356 = arith.constant 0 : index
    %324 = vector.load %arg4[%c8_354, %c0_355, %c0_356] : memref<9x64x128xbf16, #tpu.memory_space<vmem>>, vector<1x64x128xbf16>
    %325 = vector.shape_cast %324 : vector<1x64x128xbf16> to vector<64x128xbf16>
    %cst_357 = arith.constant dense<0.000000e+00> : vector<16x128xf32>
    %326 = tpu.matmul %323, %325, %cst_357 {dimension_numbers = #tpu.dot_dimension_numbers<[1], [0], [0], [1], [0, 0, 1, 1], [], []>} : vector<16x64xbf16>, vector<64x128xbf16>, vector<16x128xf32> -> vector<16x128xf32>
    %327 = arith.addf %320, %326 : vector<16x128xf32>
    %c0_358 = arith.constant 0 : index
    %c0_359 = arith.constant 0 : index
    %328 = vector.load %arg10[%c0_358, %c0_359] : memref<1x128xf32, #tpu.memory_space<vmem>>, vector<1x128xf32>
    %329 = vector.broadcast %328 : vector<1x128xf32> to vector<16x128xf32>
    %330 = arith.addf %327, %329 : vector<16x128xf32>
    %cst_360 = arith.constant 0.000000e+00 : f32
    %331 = vector.broadcast %cst_360 : f32 to vector<16x128xf32>
    %332 = arith.maximumf %330, %331 : vector<16x128xf32>
    %333 = vector.shape_cast %332 : vector<16x128xf32> to vector<4x4x128xf32>
    %334 = vector.shape_cast %333 : vector<4x4x128xf32> to vector<4x2x2x128xf32>
    %cst_361 = arith.constant dense<0xFF800000> : vector<4x2x128xf32>
    %335 = vector.multi_reduction <maximumf>, %334, %cst_361 [2] : vector<4x2x2x128xf32> to vector<4x2x128xf32>
    %336 = vector.shape_cast %335 : vector<4x2x128xf32> to vector<2x2x2x128xf32>
    %cst_362 = arith.constant dense<0xFF800000> : vector<2x2x128xf32>
    %337 = vector.multi_reduction <maximumf>, %336, %cst_362 [1] : vector<2x2x2x128xf32> to vector<2x2x128xf32>
    %338 = vector.shape_cast %337 : vector<2x2x128xf32> to vector<2x2x1x128xf32>
    %339 = vector.shape_cast %338 : vector<2x2x1x128xf32> to vector<2x2x1x128xf32>
    %340 = vector.broadcast %339 : vector<2x2x1x128xf32> to vector<2x2x2x128xf32>
    %341 = vector.shape_cast %340 : vector<2x2x2x128xf32> to vector<2x4x128xf32>
    %342 = vector.shape_cast %341 : vector<2x4x128xf32> to vector<2x1x4x128xf32>
    %343 = vector.shape_cast %342 : vector<2x1x4x128xf32> to vector<2x1x4x128xf32>
    %344 = vector.broadcast %343 : vector<2x1x4x128xf32> to vector<2x2x4x128xf32>
    %345 = vector.shape_cast %344 : vector<2x2x4x128xf32> to vector<4x4x128xf32>
    %c1_363 = arith.constant 1 : index
    %c1_364 = arith.constant 1 : index
    %c0_365 = arith.constant 0 : index
    %346 = vector.load %arg18[%c1_363, %c1_364, %c0_365] : memref<6x6x128xf32, #tpu.memory_space<vmem>>, vector<4x4x128xf32>
    tpu.vector_store %arg18[%c1_363, %c1_364, %c0_365], %345 {strides = array<i32>} : memref<6x6x128xf32, #tpu.memory_space<vmem>>, vector<4x4x128xf32>,
    %c0_366 = arith.constant 0 : index
    %c0_367 = arith.constant 0 : index
    %c0_368 = arith.constant 0 : index
    %347 = vector.load %arg18[%c0_366, %c0_367, %c0_368] : memref<6x6x128xf32, #tpu.memory_space<vmem>>, vector<4x4x128xf32>
    %348 = vector.shape_cast %347 : vector<4x4x128xf32> to vector<16x128xf32>
    %349 = arith.truncf %348 : vector<16x128xf32> to vector<16x128xbf16>
    %c0_369 = arith.constant 0 : index
    %c1_370 = arith.constant 1 : index
    %c0_371 = arith.constant 0 : index
    %350 = vector.load %arg18[%c0_369, %c1_370, %c0_371] : memref<6x6x128xf32, #tpu.memory_space<vmem>>, vector<4x4x128xf32>
    %351 = vector.shape_cast %350 : vector<4x4x128xf32> to vector<16x128xf32>
    %352 = arith.truncf %351 : vector<16x128xf32> to vector<16x128xbf16>
    %c0_372 = arith.constant 0 : index
    %c2_373 = arith.constant 2 : index
    %c0_374 = arith.constant 0 : index
    %353 = vector.load %arg18[%c0_372, %c2_373, %c0_374] : memref<6x6x128xf32, #tpu.memory_space<vmem>>, vector<4x4x128xf32>
    %354 = vector.shape_cast %353 : vector<4x4x128xf32> to vector<16x128xf32>
    %355 = arith.truncf %354 : vector<16x128xf32> to vector<16x128xbf16>
    %c1_375 = arith.constant 1 : index
    %c0_376 = arith.constant 0 : index
    %c0_377 = arith.constant 0 : index
    %356 = vector.load %arg18[%c1_375, %c0_376, %c0_377] : memref<6x6x128xf32, #tpu.memory_space<vmem>>, vector<4x4x128xf32>
    %357 = vector.shape_cast %356 : vector<4x4x128xf32> to vector<16x128xf32>
    %358 = arith.truncf %357 : vector<16x128xf32> to vector<16x128xbf16>
    %c1_378 = arith.constant 1 : index
    %c1_379 = arith.constant 1 : index
    %c0_380 = arith.constant 0 : index
    %359 = vector.load %arg18[%c1_378, %c1_379, %c0_380] : memref<6x6x128xf32, #tpu.memory_space<vmem>>, vector<4x4x128xf32>
    %360 = vector.shape_cast %359 : vector<4x4x128xf32> to vector<16x128xf32>
    %361 = arith.truncf %360 : vector<16x128xf32> to vector<16x128xbf16>
    %c1_381 = arith.constant 1 : index
    %c2_382 = arith.constant 2 : index
    %c0_383 = arith.constant 0 : index
    %362 = vector.load %arg18[%c1_381, %c2_382, %c0_383] : memref<6x6x128xf32, #tpu.memory_space<vmem>>, vector<4x4x128xf32>
    %363 = vector.shape_cast %362 : vector<4x4x128xf32> to vector<16x128xf32>
    %364 = arith.truncf %363 : vector<16x128xf32> to vector<16x128xbf16>
    %c2_384 = arith.constant 2 : index
    %c0_385 = arith.constant 0 : index
    %c0_386 = arith.constant 0 : index
    %365 = vector.load %arg18[%c2_384, %c0_385, %c0_386] : memref<6x6x128xf32, #tpu.memory_space<vmem>>, vector<4x4x128xf32>
    %366 = vector.shape_cast %365 : vector<4x4x128xf32> to vector<16x128xf32>
    %367 = arith.truncf %366 : vector<16x128xf32> to vector<16x128xbf16>
    %c2_387 = arith.constant 2 : index
    %c1_388 = arith.constant 1 : index
    %c0_389 = arith.constant 0 : index
    %368 = vector.load %arg18[%c2_387, %c1_388, %c0_389] : memref<6x6x128xf32, #tpu.memory_space<vmem>>, vector<4x4x128xf32>
    %369 = vector.shape_cast %368 : vector<4x4x128xf32> to vector<16x128xf32>
    %370 = arith.truncf %369 : vector<16x128xf32> to vector<16x128xbf16>
    %c2_390 = arith.constant 2 : index
    %c2_391 = arith.constant 2 : index
    %c0_392 = arith.constant 0 : index
    %371 = vector.load %arg18[%c2_390, %c2_391, %c0_392] : memref<6x6x128xf32, #tpu.memory_space<vmem>>, vector<4x4x128xf32>
    %372 = vector.shape_cast %371 : vector<4x4x128xf32> to vector<16x128xf32>
    %373 = arith.truncf %372 : vector<16x128xf32> to vector<16x128xbf16>
    %374 = tpu.concatenate %349, %352, %355, %358, %361, %364, %367, %370, %373 in 1 : vector<16x128xbf16>, vector<16x128xbf16>, vector<16x128xbf16>, vector<16x128xbf16>, vector<16x128xbf16>, vector<16x128xbf16>, vector<16x128xbf16>, vector<16x128xbf16>, vector<16x128xbf16> -> vector<16x1152xbf16>
    %c0_393 = arith.constant 0 : index
    %c0_394 = arith.constant 0 : index
    %375 = vector.load %arg5[%c0_393, %c0_394] : memref<1152x64xbf16, #tpu.memory_space<vmem>>, vector<1152x64xbf16>
    %cst_395 = arith.constant dense<0.000000e+00> : vector<16x64xf32>
    %376 = tpu.matmul %374, %375, %cst_395 {dimension_numbers = #tpu.dot_dimension_numbers<[1], [0], [0], [1], [0, 0, 1, 1], [], []>} : vector<16x1152xbf16>, vector<1152x64xbf16>, vector<16x64xf32> -> vector<16x64xf32>
    %c0_396 = arith.constant 0 : index
    %c0_397 = arith.constant 0 : index
    %377 = vector.load %arg11[%c0_396, %c0_397] : memref<1x64xf32, #tpu.memory_space<vmem>>, vector<1x64xf32>
    %378 = vector.broadcast %377 : vector<1x64xf32> to vector<16x64xf32>
    %379 = arith.addf %376, %378 : vector<16x64xf32>
    %cst_398 = arith.constant 0.000000e+00 : f32
    %380 = vector.broadcast %cst_398 : f32 to vector<16x64xf32>
    %381 = arith.maximumf %379, %380 : vector<16x64xf32>
    %382 = vector.shape_cast %381 : vector<16x64xf32> to vector<4x4x64xf32>
    %383 = vector.shape_cast %382 : vector<4x4x64xf32> to vector<4x4x1x64xf32>
    %384 = vector.shape_cast %383 : vector<4x4x1x64xf32> to vector<4x4x1x64xf32>
    %385 = vector.broadcast %384 : vector<4x4x1x64xf32> to vector<4x4x2x64xf32>
    %386 = vector.shape_cast %385 : vector<4x4x2x64xf32> to vector<4x8x64xf32>
    %387 = vector.shape_cast %386 : vector<4x8x64xf32> to vector<4x1x8x64xf32>
    %388 = vector.shape_cast %387 : vector<4x1x8x64xf32> to vector<4x1x8x64xf32>
    %389 = vector.broadcast %388 : vector<4x1x8x64xf32> to vector<4x2x8x64xf32>
    %390 = vector.shape_cast %389 : vector<4x2x8x64xf32> to vector<8x8x64xf32>
    %c1_399 = arith.constant 1 : index
    %c1_400 = arith.constant 1 : index
    %c0_401 = arith.constant 0 : index
    %391 = vector.load %arg19[%c1_399, %c1_400, %c0_401] : memref<10x10x64xf32, #tpu.memory_space<vmem>>, vector<8x8x64xf32>
    tpu.vector_store %arg19[%c1_399, %c1_400, %c0_401], %390 {strides = array<i32>} : memref<10x10x64xf32, #tpu.memory_space<vmem>>, vector<8x8x64xf32>,
    %cst_402 = arith.constant 0.000000e+00 : f32
    %392 = vector.broadcast %cst_402 : f32 to vector<64x32xf32>
    %c0_403 = arith.constant 0 : index
    %c0_404 = arith.constant 0 : index
    %c0_405 = arith.constant 0 : index
    %393 = vector.load %arg19[%c0_403, %c0_404, %c0_405] : memref<10x10x64xf32, #tpu.memory_space<vmem>>, vector<8x8x64xf32>
    %394 = vector.shape_cast %393 : vector<8x8x64xf32> to vector<64x64xf32>
    %395 = arith.truncf %394 : vector<64x64xf32> to vector<64x64xbf16>
    %c0_406 = arith.constant 0 : index
    %c0_407 = arith.constant 0 : index
    %c0_408 = arith.constant 0 : index
    %396 = vector.load %arg6[%c0_406, %c0_407, %c0_408] : memref<9x64x32xbf16, #tpu.memory_space<vmem>>, vector<1x64x32xbf16>
    %397 = vector.shape_cast %396 : vector<1x64x32xbf16> to vector<64x32xbf16>
    %cst_409 = arith.constant dense<0.000000e+00> : vector<64x32xf32>
    %398 = tpu.matmul %395, %397, %cst_409 {dimension_numbers = #tpu.dot_dimension_numbers<[1], [0], [0], [1], [0, 0, 1, 1], [], []>} : vector<64x64xbf16>, vector<64x32xbf16>, vector<64x32xf32> -> vector<64x32xf32>
    %399 = arith.addf %392, %398 : vector<64x32xf32>
    %c0_410 = arith.constant 0 : index
    %c1_411 = arith.constant 1 : index
    %c0_412 = arith.constant 0 : index
    %400 = vector.load %arg19[%c0_410, %c1_411, %c0_412] : memref<10x10x64xf32, #tpu.memory_space<vmem>>, vector<8x8x64xf32>
    %401 = vector.shape_cast %400 : vector<8x8x64xf32> to vector<64x64xf32>
    %402 = arith.truncf %401 : vector<64x64xf32> to vector<64x64xbf16>
    %c1_413 = arith.constant 1 : index
    %c0_414 = arith.constant 0 : index
    %c0_415 = arith.constant 0 : index
    %403 = vector.load %arg6[%c1_413, %c0_414, %c0_415] : memref<9x64x32xbf16, #tpu.memory_space<vmem>>, vector<1x64x32xbf16>
    %404 = vector.shape_cast %403 : vector<1x64x32xbf16> to vector<64x32xbf16>
    %cst_416 = arith.constant dense<0.000000e+00> : vector<64x32xf32>
    %405 = tpu.matmul %402, %404, %cst_416 {dimension_numbers = #tpu.dot_dimension_numbers<[1], [0], [0], [1], [0, 0, 1, 1], [], []>} : vector<64x64xbf16>, vector<64x32xbf16>, vector<64x32xf32> -> vector<64x32xf32>
    %406 = arith.addf %399, %405 : vector<64x32xf32>
    %c0_417 = arith.constant 0 : index
    %c2_418 = arith.constant 2 : index
    %c0_419 = arith.constant 0 : index
    %407 = vector.load %arg19[%c0_417, %c2_418, %c0_419] : memref<10x10x64xf32, #tpu.memory_space<vmem>>, vector<8x8x64xf32>
    %408 = vector.shape_cast %407 : vector<8x8x64xf32> to vector<64x64xf32>
    %409 = arith.truncf %408 : vector<64x64xf32> to vector<64x64xbf16>
    %c2_420 = arith.constant 2 : index
    %c0_421 = arith.constant 0 : index
    %c0_422 = arith.constant 0 : index
    %410 = vector.load %arg6[%c2_420, %c0_421, %c0_422] : memref<9x64x32xbf16, #tpu.memory_space<vmem>>, vector<1x64x32xbf16>
    %411 = vector.shape_cast %410 : vector<1x64x32xbf16> to vector<64x32xbf16>
    %cst_423 = arith.constant dense<0.000000e+00> : vector<64x32xf32>
    %412 = tpu.matmul %409, %411, %cst_423 {dimension_numbers = #tpu.dot_dimension_numbers<[1], [0], [0], [1], [0, 0, 1, 1], [], []>} : vector<64x64xbf16>, vector<64x32xbf16>, vector<64x32xf32> -> vector<64x32xf32>
    %413 = arith.addf %406, %412 : vector<64x32xf32>
    %c1_424 = arith.constant 1 : index
    %c0_425 = arith.constant 0 : index
    %c0_426 = arith.constant 0 : index
    %414 = vector.load %arg19[%c1_424, %c0_425, %c0_426] : memref<10x10x64xf32, #tpu.memory_space<vmem>>, vector<8x8x64xf32>
    %415 = vector.shape_cast %414 : vector<8x8x64xf32> to vector<64x64xf32>
    %416 = arith.truncf %415 : vector<64x64xf32> to vector<64x64xbf16>
    %c3_427 = arith.constant 3 : index
    %c0_428 = arith.constant 0 : index
    %c0_429 = arith.constant 0 : index
    %417 = vector.load %arg6[%c3_427, %c0_428, %c0_429] : memref<9x64x32xbf16, #tpu.memory_space<vmem>>, vector<1x64x32xbf16>
    %418 = vector.shape_cast %417 : vector<1x64x32xbf16> to vector<64x32xbf16>
    %cst_430 = arith.constant dense<0.000000e+00> : vector<64x32xf32>
    %419 = tpu.matmul %416, %418, %cst_430 {dimension_numbers = #tpu.dot_dimension_numbers<[1], [0], [0], [1], [0, 0, 1, 1], [], []>} : vector<64x64xbf16>, vector<64x32xbf16>, vector<64x32xf32> -> vector<64x32xf32>
    %420 = arith.addf %413, %419 : vector<64x32xf32>
    %c1_431 = arith.constant 1 : index
    %c1_432 = arith.constant 1 : index
    %c0_433 = arith.constant 0 : index
    %421 = vector.load %arg19[%c1_431, %c1_432, %c0_433] : memref<10x10x64xf32, #tpu.memory_space<vmem>>, vector<8x8x64xf32>
    %422 = vector.shape_cast %421 : vector<8x8x64xf32> to vector<64x64xf32>
    %423 = arith.truncf %422 : vector<64x64xf32> to vector<64x64xbf16>
    %c4_434 = arith.constant 4 : index
    %c0_435 = arith.constant 0 : index
    %c0_436 = arith.constant 0 : index
    %424 = vector.load %arg6[%c4_434, %c0_435, %c0_436] : memref<9x64x32xbf16, #tpu.memory_space<vmem>>, vector<1x64x32xbf16>
    %425 = vector.shape_cast %424 : vector<1x64x32xbf16> to vector<64x32xbf16>
    %cst_437 = arith.constant dense<0.000000e+00> : vector<64x32xf32>
    %426 = tpu.matmul %423, %425, %cst_437 {dimension_numbers = #tpu.dot_dimension_numbers<[1], [0], [0], [1], [0, 0, 1, 1], [], []>} : vector<64x64xbf16>, vector<64x32xbf16>, vector<64x32xf32> -> vector<64x32xf32>
    %427 = arith.addf %420, %426 : vector<64x32xf32>
    %c1_438 = arith.constant 1 : index
    %c2_439 = arith.constant 2 : index
    %c0_440 = arith.constant 0 : index
    %428 = vector.load %arg19[%c1_438, %c2_439, %c0_440] : memref<10x10x64xf32, #tpu.memory_space<vmem>>, vector<8x8x64xf32>
    %429 = vector.shape_cast %428 : vector<8x8x64xf32> to vector<64x64xf32>
    %430 = arith.truncf %429 : vector<64x64xf32> to vector<64x64xbf16>
    %c5_441 = arith.constant 5 : index
    %c0_442 = arith.constant 0 : index
    %c0_443 = arith.constant 0 : index
    %431 = vector.load %arg6[%c5_441, %c0_442, %c0_443] : memref<9x64x32xbf16, #tpu.memory_space<vmem>>, vector<1x64x32xbf16>
    %432 = vector.shape_cast %431 : vector<1x64x32xbf16> to vector<64x32xbf16>
    %cst_444 = arith.constant dense<0.000000e+00> : vector<64x32xf32>
    %433 = tpu.matmul %430, %432, %cst_444 {dimension_numbers = #tpu.dot_dimension_numbers<[1], [0], [0], [1], [0, 0, 1, 1], [], []>} : vector<64x64xbf16>, vector<64x32xbf16>, vector<64x32xf32> -> vector<64x32xf32>
    %434 = arith.addf %427, %433 : vector<64x32xf32>
    %c2_445 = arith.constant 2 : index
    %c0_446 = arith.constant 0 : index
    %c0_447 = arith.constant 0 : index
    %435 = vector.load %arg19[%c2_445, %c0_446, %c0_447] : memref<10x10x64xf32, #tpu.memory_space<vmem>>, vector<8x8x64xf32>
    %436 = vector.shape_cast %435 : vector<8x8x64xf32> to vector<64x64xf32>
    %437 = arith.truncf %436 : vector<64x64xf32> to vector<64x64xbf16>
    %c6_448 = arith.constant 6 : index
    %c0_449 = arith.constant 0 : index
    %c0_450 = arith.constant 0 : index
    %438 = vector.load %arg6[%c6_448, %c0_449, %c0_450] : memref<9x64x32xbf16, #tpu.memory_space<vmem>>, vector<1x64x32xbf16>
    %439 = vector.shape_cast %438 : vector<1x64x32xbf16> to vector<64x32xbf16>
    %cst_451 = arith.constant dense<0.000000e+00> : vector<64x32xf32>
    %440 = tpu.matmul %437, %439, %cst_451 {dimension_numbers = #tpu.dot_dimension_numbers<[1], [0], [0], [1], [0, 0, 1, 1], [], []>} : vector<64x64xbf16>, vector<64x32xbf16>, vector<64x32xf32> -> vector<64x32xf32>
    %441 = arith.addf %434, %440 : vector<64x32xf32>
    %c2_452 = arith.constant 2 : index
    %c1_453 = arith.constant 1 : index
    %c0_454 = arith.constant 0 : index
    %442 = vector.load %arg19[%c2_452, %c1_453, %c0_454] : memref<10x10x64xf32, #tpu.memory_space<vmem>>, vector<8x8x64xf32>
    %443 = vector.shape_cast %442 : vector<8x8x64xf32> to vector<64x64xf32>
    %444 = arith.truncf %443 : vector<64x64xf32> to vector<64x64xbf16>
    %c7_455 = arith.constant 7 : index
    %c0_456 = arith.constant 0 : index
    %c0_457 = arith.constant 0 : index
    %445 = vector.load %arg6[%c7_455, %c0_456, %c0_457] : memref<9x64x32xbf16, #tpu.memory_space<vmem>>, vector<1x64x32xbf16>
    %446 = vector.shape_cast %445 : vector<1x64x32xbf16> to vector<64x32xbf16>
    %cst_458 = arith.constant dense<0.000000e+00> : vector<64x32xf32>
    %447 = tpu.matmul %444, %446, %cst_458 {dimension_numbers = #tpu.dot_dimension_numbers<[1], [0], [0], [1], [0, 0, 1, 1], [], []>} : vector<64x64xbf16>, vector<64x32xbf16>, vector<64x32xf32> -> vector<64x32xf32>
    %448 = arith.addf %441, %447 : vector<64x32xf32>
    %c2_459 = arith.constant 2 : index
    %c2_460 = arith.constant 2 : index
    %c0_461 = arith.constant 0 : index
    %449 = vector.load %arg19[%c2_459, %c2_460, %c0_461] : memref<10x10x64xf32, #tpu.memory_space<vmem>>, vector<8x8x64xf32>
    %450 = vector.shape_cast %449 : vector<8x8x64xf32> to vector<64x64xf32>
    %451 = arith.truncf %450 : vector<64x64xf32> to vector<64x64xbf16>
    %c8_462 = arith.constant 8 : index
    %c0_463 = arith.constant 0 : index
    %c0_464 = arith.constant 0 : index
    %452 = vector.load %arg6[%c8_462, %c0_463, %c0_464] : memref<9x64x32xbf16, #tpu.memory_space<vmem>>, vector<1x64x32xbf16>
    %453 = vector.shape_cast %452 : vector<1x64x32xbf16> to vector<64x32xbf16>
    %cst_465 = arith.constant dense<0.000000e+00> : vector<64x32xf32>
    %454 = tpu.matmul %451, %453, %cst_465 {dimension_numbers = #tpu.dot_dimension_numbers<[1], [0], [0], [1], [0, 0, 1, 1], [], []>} : vector<64x64xbf16>, vector<64x32xbf16>, vector<64x32xf32> -> vector<64x32xf32>
    %455 = arith.addf %448, %454 : vector<64x32xf32>
    %c0_466 = arith.constant 0 : index
    %c0_467 = arith.constant 0 : index
    %456 = vector.load %arg12[%c0_466, %c0_467] : memref<1x32xf32, #tpu.memory_space<vmem>>, vector<1x32xf32>
    %457 = vector.broadcast %456 : vector<1x32xf32> to vector<64x32xf32>
    %458 = arith.addf %455, %457 : vector<64x32xf32>
    %cst_468 = arith.constant 0.000000e+00 : f32
    %459 = vector.broadcast %cst_468 : f32 to vector<64x32xf32>
    %460 = arith.maximumf %458, %459 : vector<64x32xf32>
    %461 = vector.shape_cast %460 : vector<64x32xf32> to vector<8x8x32xf32>
    %462 = vector.shape_cast %461 : vector<8x8x32xf32> to vector<8x8x1x32xf32>
    %463 = vector.shape_cast %462 : vector<8x8x1x32xf32> to vector<8x8x1x32xf32>
    %464 = vector.broadcast %463 : vector<8x8x1x32xf32> to vector<8x8x2x32xf32>
    %465 = vector.shape_cast %464 : vector<8x8x2x32xf32> to vector<8x16x32xf32>
    %466 = vector.shape_cast %465 : vector<8x16x32xf32> to vector<8x1x16x32xf32>
    %467 = vector.shape_cast %466 : vector<8x1x16x32xf32> to vector<8x1x16x32xf32>
    %468 = vector.broadcast %467 : vector<8x1x16x32xf32> to vector<8x2x16x32xf32>
    %469 = vector.shape_cast %468 : vector<8x2x16x32xf32> to vector<16x16x32xf32>
    %c1_469 = arith.constant 1 : index
    %c1_470 = arith.constant 1 : index
    %c0_471 = arith.constant 0 : index
    %470 = vector.load %arg20[%c1_469, %c1_470, %c0_471] : memref<18x18x32xf32, #tpu.memory_space<vmem>>, vector<16x16x32xf32>
    tpu.vector_store %arg20[%c1_469, %c1_470, %c0_471], %469 {strides = array<i32>} : memref<18x18x32xf32, #tpu.memory_space<vmem>>, vector<16x16x32xf32>,
    %cst_472 = arith.constant 0.000000e+00 : f32
    %471 = vector.broadcast %cst_472 : f32 to vector<4x128xf32>
    %c0_473 = arith.constant 0 : index
    %c0_474 = arith.constant 0 : index
    %c0_475 = arith.constant 0 : index
    %472 = vector.load %arg20[%c0_473, %c0_474, %c0_475] : memref<18x18x32xf32, #tpu.memory_space<vmem>>, vector<8x16x32xf32>
    %473 = vector.shape_cast %472 : vector<8x16x32xf32> to vector<128x32xf32>
    %474 = arith.truncf %473 : vector<128x32xf32> to vector<128x32xbf16>
    %c0_476 = arith.constant 0 : index
    %c0_477 = arith.constant 0 : index
    %c0_478 = arith.constant 0 : index
    %475 = vector.load %arg7[%c0_476, %c0_477, %c0_478] : memref<9x4x32xbf16, #tpu.memory_space<vmem>>, vector<1x4x32xbf16>
    %476 = vector.shape_cast %475 : vector<1x4x32xbf16> to vector<4x32xbf16>
    %cst_479 = arith.constant dense<0.000000e+00> : vector<4x128xf32>
    %477 = tpu.matmul %476, %474, %cst_479 {dimension_numbers = #tpu.dot_dimension_numbers<[1], [1], [0], [0], [0, 0, 1, 0], [], []>} : vector<4x32xbf16>, vector<128x32xbf16>, vector<4x128xf32> -> vector<4x128xf32>
    %478 = arith.addf %471, %477 : vector<4x128xf32>
    %c0_480 = arith.constant 0 : index
    %c1_481 = arith.constant 1 : index
    %c0_482 = arith.constant 0 : index
    %479 = vector.load %arg20[%c0_480, %c1_481, %c0_482] : memref<18x18x32xf32, #tpu.memory_space<vmem>>, vector<8x16x32xf32>
    %480 = vector.shape_cast %479 : vector<8x16x32xf32> to vector<128x32xf32>
    %481 = arith.truncf %480 : vector<128x32xf32> to vector<128x32xbf16>
    %c1_483 = arith.constant 1 : index
    %c0_484 = arith.constant 0 : index
    %c0_485 = arith.constant 0 : index
    %482 = vector.load %arg7[%c1_483, %c0_484, %c0_485] : memref<9x4x32xbf16, #tpu.memory_space<vmem>>, vector<1x4x32xbf16>
    %483 = vector.shape_cast %482 : vector<1x4x32xbf16> to vector<4x32xbf16>
    %cst_486 = arith.constant dense<0.000000e+00> : vector<4x128xf32>
    %484 = tpu.matmul %483, %481, %cst_486 {dimension_numbers = #tpu.dot_dimension_numbers<[1], [1], [0], [0], [0, 0, 1, 0], [], []>} : vector<4x32xbf16>, vector<128x32xbf16>, vector<4x128xf32> -> vector<4x128xf32>
    %485 = arith.addf %478, %484 : vector<4x128xf32>
    %c0_487 = arith.constant 0 : index
    %c2_488 = arith.constant 2 : index
    %c0_489 = arith.constant 0 : index
    %486 = vector.load %arg20[%c0_487, %c2_488, %c0_489] : memref<18x18x32xf32, #tpu.memory_space<vmem>>, vector<8x16x32xf32>
    %487 = vector.shape_cast %486 : vector<8x16x32xf32> to vector<128x32xf32>
    %488 = arith.truncf %487 : vector<128x32xf32> to vector<128x32xbf16>
    %c2_490 = arith.constant 2 : index
    %c0_491 = arith.constant 0 : index
    %c0_492 = arith.constant 0 : index
    %489 = vector.load %arg7[%c2_490, %c0_491, %c0_492] : memref<9x4x32xbf16, #tpu.memory_space<vmem>>, vector<1x4x32xbf16>
    %490 = vector.shape_cast %489 : vector<1x4x32xbf16> to vector<4x32xbf16>
    %cst_493 = arith.constant dense<0.000000e+00> : vector<4x128xf32>
    %491 = tpu.matmul %490, %488, %cst_493 {dimension_numbers = #tpu.dot_dimension_numbers<[1], [1], [0], [0], [0, 0, 1, 0], [], []>} : vector<4x32xbf16>, vector<128x32xbf16>, vector<4x128xf32> -> vector<4x128xf32>
    %492 = arith.addf %485, %491 : vector<4x128xf32>
    %c1_494 = arith.constant 1 : index
    %c0_495 = arith.constant 0 : index
    %c0_496 = arith.constant 0 : index
    %493 = vector.load %arg20[%c1_494, %c0_495, %c0_496] : memref<18x18x32xf32, #tpu.memory_space<vmem>>, vector<8x16x32xf32>
    %494 = vector.shape_cast %493 : vector<8x16x32xf32> to vector<128x32xf32>
    %495 = arith.truncf %494 : vector<128x32xf32> to vector<128x32xbf16>
    %c3_497 = arith.constant 3 : index
    %c0_498 = arith.constant 0 : index
    %c0_499 = arith.constant 0 : index
    %496 = vector.load %arg7[%c3_497, %c0_498, %c0_499] : memref<9x4x32xbf16, #tpu.memory_space<vmem>>, vector<1x4x32xbf16>
    %497 = vector.shape_cast %496 : vector<1x4x32xbf16> to vector<4x32xbf16>
    %cst_500 = arith.constant dense<0.000000e+00> : vector<4x128xf32>
    %498 = tpu.matmul %497, %495, %cst_500 {dimension_numbers = #tpu.dot_dimension_numbers<[1], [1], [0], [0], [0, 0, 1, 0], [], []>} : vector<4x32xbf16>, vector<128x32xbf16>, vector<4x128xf32> -> vector<4x128xf32>
    %499 = arith.addf %492, %498 : vector<4x128xf32>
    %c1_501 = arith.constant 1 : index
    %c1_502 = arith.constant 1 : index
    %c0_503 = arith.constant 0 : index
    %500 = vector.load %arg20[%c1_501, %c1_502, %c0_503] : memref<18x18x32xf32, #tpu.memory_space<vmem>>, vector<8x16x32xf32>
    %501 = vector.shape_cast %500 : vector<8x16x32xf32> to vector<128x32xf32>
    %502 = arith.truncf %501 : vector<128x32xf32> to vector<128x32xbf16>
    %c4_504 = arith.constant 4 : index
    %c0_505 = arith.constant 0 : index
    %c0_506 = arith.constant 0 : index
    %503 = vector.load %arg7[%c4_504, %c0_505, %c0_506] : memref<9x4x32xbf16, #tpu.memory_space<vmem>>, vector<1x4x32xbf16>
    %504 = vector.shape_cast %503 : vector<1x4x32xbf16> to vector<4x32xbf16>
    %cst_507 = arith.constant dense<0.000000e+00> : vector<4x128xf32>
    %505 = tpu.matmul %504, %502, %cst_507 {dimension_numbers = #tpu.dot_dimension_numbers<[1], [1], [0], [0], [0, 0, 1, 0], [], []>} : vector<4x32xbf16>, vector<128x32xbf16>, vector<4x128xf32> -> vector<4x128xf32>
    %506 = arith.addf %499, %505 : vector<4x128xf32>
    %c1_508 = arith.constant 1 : index
    %c2_509 = arith.constant 2 : index
    %c0_510 = arith.constant 0 : index
    %507 = vector.load %arg20[%c1_508, %c2_509, %c0_510] : memref<18x18x32xf32, #tpu.memory_space<vmem>>, vector<8x16x32xf32>
    %508 = vector.shape_cast %507 : vector<8x16x32xf32> to vector<128x32xf32>
    %509 = arith.truncf %508 : vector<128x32xf32> to vector<128x32xbf16>
    %c5_511 = arith.constant 5 : index
    %c0_512 = arith.constant 0 : index
    %c0_513 = arith.constant 0 : index
    %510 = vector.load %arg7[%c5_511, %c0_512, %c0_513] : memref<9x4x32xbf16, #tpu.memory_space<vmem>>, vector<1x4x32xbf16>
    %511 = vector.shape_cast %510 : vector<1x4x32xbf16> to vector<4x32xbf16>
    %cst_514 = arith.constant dense<0.000000e+00> : vector<4x128xf32>
    %512 = tpu.matmul %511, %509, %cst_514 {dimension_numbers = #tpu.dot_dimension_numbers<[1], [1], [0], [0], [0, 0, 1, 0], [], []>} : vector<4x32xbf16>, vector<128x32xbf16>, vector<4x128xf32> -> vector<4x128xf32>
    %513 = arith.addf %506, %512 : vector<4x128xf32>
    %c2_515 = arith.constant 2 : index
    %c0_516 = arith.constant 0 : index
    %c0_517 = arith.constant 0 : index
    %514 = vector.load %arg20[%c2_515, %c0_516, %c0_517] : memref<18x18x32xf32, #tpu.memory_space<vmem>>, vector<8x16x32xf32>
    %515 = vector.shape_cast %514 : vector<8x16x32xf32> to vector<128x32xf32>
    %516 = arith.truncf %515 : vector<128x32xf32> to vector<128x32xbf16>
    %c6_518 = arith.constant 6 : index
    %c0_519 = arith.constant 0 : index
    %c0_520 = arith.constant 0 : index
    %517 = vector.load %arg7[%c6_518, %c0_519, %c0_520] : memref<9x4x32xbf16, #tpu.memory_space<vmem>>, vector<1x4x32xbf16>
    %518 = vector.shape_cast %517 : vector<1x4x32xbf16> to vector<4x32xbf16>
    %cst_521 = arith.constant dense<0.000000e+00> : vector<4x128xf32>
    %519 = tpu.matmul %518, %516, %cst_521 {dimension_numbers = #tpu.dot_dimension_numbers<[1], [1], [0], [0], [0, 0, 1, 0], [], []>} : vector<4x32xbf16>, vector<128x32xbf16>, vector<4x128xf32> -> vector<4x128xf32>
    %520 = arith.addf %513, %519 : vector<4x128xf32>
    %c2_522 = arith.constant 2 : index
    %c1_523 = arith.constant 1 : index
    %c0_524 = arith.constant 0 : index
    %521 = vector.load %arg20[%c2_522, %c1_523, %c0_524] : memref<18x18x32xf32, #tpu.memory_space<vmem>>, vector<8x16x32xf32>
    %522 = vector.shape_cast %521 : vector<8x16x32xf32> to vector<128x32xf32>
    %523 = arith.truncf %522 : vector<128x32xf32> to vector<128x32xbf16>
    %c7_525 = arith.constant 7 : index
    %c0_526 = arith.constant 0 : index
    %c0_527 = arith.constant 0 : index
    %524 = vector.load %arg7[%c7_525, %c0_526, %c0_527] : memref<9x4x32xbf16, #tpu.memory_space<vmem>>, vector<1x4x32xbf16>
    %525 = vector.shape_cast %524 : vector<1x4x32xbf16> to vector<4x32xbf16>
    %cst_528 = arith.constant dense<0.000000e+00> : vector<4x128xf32>
    %526 = tpu.matmul %525, %523, %cst_528 {dimension_numbers = #tpu.dot_dimension_numbers<[1], [1], [0], [0], [0, 0, 1, 0], [], []>} : vector<4x32xbf16>, vector<128x32xbf16>, vector<4x128xf32> -> vector<4x128xf32>
    %527 = arith.addf %520, %526 : vector<4x128xf32>
    %c2_529 = arith.constant 2 : index
    %c2_530 = arith.constant 2 : index
    %c0_531 = arith.constant 0 : index
    %528 = vector.load %arg20[%c2_529, %c2_530, %c0_531] : memref<18x18x32xf32, #tpu.memory_space<vmem>>, vector<8x16x32xf32>
    %529 = vector.shape_cast %528 : vector<8x16x32xf32> to vector<128x32xf32>
    %530 = arith.truncf %529 : vector<128x32xf32> to vector<128x32xbf16>
    %c8_532 = arith.constant 8 : index
    %c0_533 = arith.constant 0 : index
    %c0_534 = arith.constant 0 : index
    %531 = vector.load %arg7[%c8_532, %c0_533, %c0_534] : memref<9x4x32xbf16, #tpu.memory_space<vmem>>, vector<1x4x32xbf16>
    %532 = vector.shape_cast %531 : vector<1x4x32xbf16> to vector<4x32xbf16>
    %cst_535 = arith.constant dense<0.000000e+00> : vector<4x128xf32>
    %533 = tpu.matmul %532, %530, %cst_535 {dimension_numbers = #tpu.dot_dimension_numbers<[1], [1], [0], [0], [0, 0, 1, 0], [], []>} : vector<4x32xbf16>, vector<128x32xbf16>, vector<4x128xf32> -> vector<4x128xf32>
    %534 = arith.addf %527, %533 : vector<4x128xf32>
    %c0_536 = arith.constant 0 : index
    %c0_537 = arith.constant 0 : index
    %535 = vector.load %arg13[%c0_536, %c0_537] : memref<4x1xf32, #tpu.memory_space<vmem>>, vector<4x1xf32>
    %536 = vector.broadcast %535 : vector<4x1xf32> to vector<4x128xf32>
    %537 = arith.addf %534, %536 : vector<4x128xf32>
    %538 = arith.negf %537 : vector<4x128xf32>
    %539 = math.exp %538 : vector<4x128xf32>
    %cst_538 = arith.constant 1.000000e+00 : f32
    %540 = vector.broadcast %cst_538 : f32 to vector<4x128xf32>
    %541 = arith.addf %540, %539 : vector<4x128xf32>
    %542 = arith.divf %540, %541 : vector<4x128xf32>
    %c0_539 = arith.constant 0 : index
    %c0_540 = arith.constant 0 : index
    %c0_541 = arith.constant 0 : index
    %543 = vector.load %arg14[%c0_539, %c0_540, %c0_541] : memref<1x4x256xf32, #tpu.memory_space<vmem>>, vector<1x4x128xf32>
    %544 = vector.shape_cast %543 : vector<1x4x128xf32> to vector<4x128xf32>
    %545 = vector.shape_cast %542 : vector<4x128xf32> to vector<1x4x128xf32>
    tpu.vector_store %arg14[%c0_539, %c0_540, %c0_541], %545 {strides = array<i32>} : memref<1x4x256xf32, #tpu.memory_space<vmem>>, vector<1x4x128xf32>,
    %cst_542 = arith.constant 0.000000e+00 : f32
    %546 = vector.broadcast %cst_542 : f32 to vector<4x128xf32>
    %c8_543 = arith.constant 8 : index
    %c0_544 = arith.constant 0 : index
    %c0_545 = arith.constant 0 : index
    %547 = vector.load %arg20[%c8_543, %c0_544, %c0_545] : memref<18x18x32xf32, #tpu.memory_space<vmem>>, vector<8x16x32xf32>
    %548 = vector.shape_cast %547 : vector<8x16x32xf32> to vector<128x32xf32>
    %549 = arith.truncf %548 : vector<128x32xf32> to vector<128x32xbf16>
    %c0_546 = arith.constant 0 : index
    %c0_547 = arith.constant 0 : index
    %c0_548 = arith.constant 0 : index
    %550 = vector.load %arg7[%c0_546, %c0_547, %c0_548] : memref<9x4x32xbf16, #tpu.memory_space<vmem>>, vector<1x4x32xbf16>
    %551 = vector.shape_cast %550 : vector<1x4x32xbf16> to vector<4x32xbf16>
    %cst_549 = arith.constant dense<0.000000e+00> : vector<4x128xf32>
    %552 = tpu.matmul %551, %549, %cst_549 {dimension_numbers = #tpu.dot_dimension_numbers<[1], [1], [0], [0], [0, 0, 1, 0], [], []>} : vector<4x32xbf16>, vector<128x32xbf16>, vector<4x128xf32> -> vector<4x128xf32>
    %553 = arith.addf %546, %552 : vector<4x128xf32>
    %c8_550 = arith.constant 8 : index
    %c1_551 = arith.constant 1 : index
    %c0_552 = arith.constant 0 : index
    %554 = vector.load %arg20[%c8_550, %c1_551, %c0_552] : memref<18x18x32xf32, #tpu.memory_space<vmem>>, vector<8x16x32xf32>
    %555 = vector.shape_cast %554 : vector<8x16x32xf32> to vector<128x32xf32>
    %556 = arith.truncf %555 : vector<128x32xf32> to vector<128x32xbf16>
    %c1_553 = arith.constant 1 : index
    %c0_554 = arith.constant 0 : index
    %c0_555 = arith.constant 0 : index
    %557 = vector.load %arg7[%c1_553, %c0_554, %c0_555] : memref<9x4x32xbf16, #tpu.memory_space<vmem>>, vector<1x4x32xbf16>
    %558 = vector.shape_cast %557 : vector<1x4x32xbf16> to vector<4x32xbf16>
    %cst_556 = arith.constant dense<0.000000e+00> : vector<4x128xf32>
    %559 = tpu.matmul %558, %556, %cst_556 {dimension_numbers = #tpu.dot_dimension_numbers<[1], [1], [0], [0], [0, 0, 1, 0], [], []>} : vector<4x32xbf16>, vector<128x32xbf16>, vector<4x128xf32> -> vector<4x128xf32>
    %560 = arith.addf %553, %559 : vector<4x128xf32>
    %c8_557 = arith.constant 8 : index
    %c2_558 = arith.constant 2 : index
    %c0_559 = arith.constant 0 : index
    %561 = vector.load %arg20[%c8_557, %c2_558, %c0_559] : memref<18x18x32xf32, #tpu.memory_space<vmem>>, vector<8x16x32xf32>
    %562 = vector.shape_cast %561 : vector<8x16x32xf32> to vector<128x32xf32>
    %563 = arith.truncf %562 : vector<128x32xf32> to vector<128x32xbf16>
    %c2_560 = arith.constant 2 : index
    %c0_561 = arith.constant 0 : index
    %c0_562 = arith.constant 0 : index
    %564 = vector.load %arg7[%c2_560, %c0_561, %c0_562] : memref<9x4x32xbf16, #tpu.memory_space<vmem>>, vector<1x4x32xbf16>
    %565 = vector.shape_cast %564 : vector<1x4x32xbf16> to vector<4x32xbf16>
    %cst_563 = arith.constant dense<0.000000e+00> : vector<4x128xf32>
    %566 = tpu.matmul %565, %563, %cst_563 {dimension_numbers = #tpu.dot_dimension_numbers<[1], [1], [0], [0], [0, 0, 1, 0], [], []>} : vector<4x32xbf16>, vector<128x32xbf16>, vector<4x128xf32> -> vector<4x128xf32>
    %567 = arith.addf %560, %566 : vector<4x128xf32>
    %c9_564 = arith.constant 9 : index
    %c0_565 = arith.constant 0 : index
    %c0_566 = arith.constant 0 : index
    %568 = vector.load %arg20[%c9_564, %c0_565, %c0_566] : memref<18x18x32xf32, #tpu.memory_space<vmem>>, vector<8x16x32xf32>
    %569 = vector.shape_cast %568 : vector<8x16x32xf32> to vector<128x32xf32>
    %570 = arith.truncf %569 : vector<128x32xf32> to vector<128x32xbf16>
    %c3_567 = arith.constant 3 : index
    %c0_568 = arith.constant 0 : index
    %c0_569 = arith.constant 0 : index
    %571 = vector.load %arg7[%c3_567, %c0_568, %c0_569] : memref<9x4x32xbf16, #tpu.memory_space<vmem>>, vector<1x4x32xbf16>
    %572 = vector.shape_cast %571 : vector<1x4x32xbf16> to vector<4x32xbf16>
    %cst_570 = arith.constant dense<0.000000e+00> : vector<4x128xf32>
    %573 = tpu.matmul %572, %570, %cst_570 {dimension_numbers = #tpu.dot_dimension_numbers<[1], [1], [0], [0], [0, 0, 1, 0], [], []>} : vector<4x32xbf16>, vector<128x32xbf16>, vector<4x128xf32> -> vector<4x128xf32>
    %574 = arith.addf %567, %573 : vector<4x128xf32>
    %c9_571 = arith.constant 9 : index
    %c1_572 = arith.constant 1 : index
    %c0_573 = arith.constant 0 : index
    %575 = vector.load %arg20[%c9_571, %c1_572, %c0_573] : memref<18x18x32xf32, #tpu.memory_space<vmem>>, vector<8x16x32xf32>
    %576 = vector.shape_cast %575 : vector<8x16x32xf32> to vector<128x32xf32>
    %577 = arith.truncf %576 : vector<128x32xf32> to vector<128x32xbf16>
    %c4_574 = arith.constant 4 : index
    %c0_575 = arith.constant 0 : index
    %c0_576 = arith.constant 0 : index
    %578 = vector.load %arg7[%c4_574, %c0_575, %c0_576] : memref<9x4x32xbf16, #tpu.memory_space<vmem>>, vector<1x4x32xbf16>
    %579 = vector.shape_cast %578 : vector<1x4x32xbf16> to vector<4x32xbf16>
    %cst_577 = arith.constant dense<0.000000e+00> : vector<4x128xf32>
    %580 = tpu.matmul %579, %577, %cst_577 {dimension_numbers = #tpu.dot_dimension_numbers<[1], [1], [0], [0], [0, 0, 1, 0], [], []>} : vector<4x32xbf16>, vector<128x32xbf16>, vector<4x128xf32> -> vector<4x128xf32>
    %581 = arith.addf %574, %580 : vector<4x128xf32>
    %c9_578 = arith.constant 9 : index
    %c2_579 = arith.constant 2 : index
    %c0_580 = arith.constant 0 : index
    %582 = vector.load %arg20[%c9_578, %c2_579, %c0_580] : memref<18x18x32xf32, #tpu.memory_space<vmem>>, vector<8x16x32xf32>
    %583 = vector.shape_cast %582 : vector<8x16x32xf32> to vector<128x32xf32>
    %584 = arith.truncf %583 : vector<128x32xf32> to vector<128x32xbf16>
    %c5_581 = arith.constant 5 : index
    %c0_582 = arith.constant 0 : index
    %c0_583 = arith.constant 0 : index
    %585 = vector.load %arg7[%c5_581, %c0_582, %c0_583] : memref<9x4x32xbf16, #tpu.memory_space<vmem>>, vector<1x4x32xbf16>
    %586 = vector.shape_cast %585 : vector<1x4x32xbf16> to vector<4x32xbf16>
    %cst_584 = arith.constant dense<0.000000e+00> : vector<4x128xf32>
    %587 = tpu.matmul %586, %584, %cst_584 {dimension_numbers = #tpu.dot_dimension_numbers<[1], [1], [0], [0], [0, 0, 1, 0], [], []>} : vector<4x32xbf16>, vector<128x32xbf16>, vector<4x128xf32> -> vector<4x128xf32>
    %588 = arith.addf %581, %587 : vector<4x128xf32>
    %c10_585 = arith.constant 10 : index
    %c0_586 = arith.constant 0 : index
    %c0_587 = arith.constant 0 : index
    %589 = vector.load %arg20[%c10_585, %c0_586, %c0_587] : memref<18x18x32xf32, #tpu.memory_space<vmem>>, vector<8x16x32xf32>
    %590 = vector.shape_cast %589 : vector<8x16x32xf32> to vector<128x32xf32>
    %591 = arith.truncf %590 : vector<128x32xf32> to vector<128x32xbf16>
    %c6_588 = arith.constant 6 : index
    %c0_589 = arith.constant 0 : index
    %c0_590 = arith.constant 0 : index
    %592 = vector.load %arg7[%c6_588, %c0_589, %c0_590] : memref<9x4x32xbf16, #tpu.memory_space<vmem>>, vector<1x4x32xbf16>
    %593 = vector.shape_cast %592 : vector<1x4x32xbf16> to vector<4x32xbf16>
    %cst_591 = arith.constant dense<0.000000e+00> : vector<4x128xf32>
    %594 = tpu.matmul %593, %591, %cst_591 {dimension_numbers = #tpu.dot_dimension_numbers<[1], [1], [0], [0], [0, 0, 1, 0], [], []>} : vector<4x32xbf16>, vector<128x32xbf16>, vector<4x128xf32> -> vector<4x128xf32>
    %595 = arith.addf %588, %594 : vector<4x128xf32>
    %c10_592 = arith.constant 10 : index
    %c1_593 = arith.constant 1 : index
    %c0_594 = arith.constant 0 : index
    %596 = vector.load %arg20[%c10_592, %c1_593, %c0_594] : memref<18x18x32xf32, #tpu.memory_space<vmem>>, vector<8x16x32xf32>
    %597 = vector.shape_cast %596 : vector<8x16x32xf32> to vector<128x32xf32>
    %598 = arith.truncf %597 : vector<128x32xf32> to vector<128x32xbf16>
    %c7_595 = arith.constant 7 : index
    %c0_596 = arith.constant 0 : index
    %c0_597 = arith.constant 0 : index
    %599 = vector.load %arg7[%c7_595, %c0_596, %c0_597] : memref<9x4x32xbf16, #tpu.memory_space<vmem>>, vector<1x4x32xbf16>
    %600 = vector.shape_cast %599 : vector<1x4x32xbf16> to vector<4x32xbf16>
    %cst_598 = arith.constant dense<0.000000e+00> : vector<4x128xf32>
    %601 = tpu.matmul %600, %598, %cst_598 {dimension_numbers = #tpu.dot_dimension_numbers<[1], [1], [0], [0], [0, 0, 1, 0], [], []>} : vector<4x32xbf16>, vector<128x32xbf16>, vector<4x128xf32> -> vector<4x128xf32>
    %602 = arith.addf %595, %601 : vector<4x128xf32>
    %c10_599 = arith.constant 10 : index
    %c2_600 = arith.constant 2 : index
    %c0_601 = arith.constant 0 : index
    %603 = vector.load %arg20[%c10_599, %c2_600, %c0_601] : memref<18x18x32xf32, #tpu.memory_space<vmem>>, vector<8x16x32xf32>
    %604 = vector.shape_cast %603 : vector<8x16x32xf32> to vector<128x32xf32>
    %605 = arith.truncf %604 : vector<128x32xf32> to vector<128x32xbf16>
    %c8_602 = arith.constant 8 : index
    %c0_603 = arith.constant 0 : index
    %c0_604 = arith.constant 0 : index
    %606 = vector.load %arg7[%c8_602, %c0_603, %c0_604] : memref<9x4x32xbf16, #tpu.memory_space<vmem>>, vector<1x4x32xbf16>
    %607 = vector.shape_cast %606 : vector<1x4x32xbf16> to vector<4x32xbf16>
    %cst_605 = arith.constant dense<0.000000e+00> : vector<4x128xf32>
    %608 = tpu.matmul %607, %605, %cst_605 {dimension_numbers = #tpu.dot_dimension_numbers<[1], [1], [0], [0], [0, 0, 1, 0], [], []>} : vector<4x32xbf16>, vector<128x32xbf16>, vector<4x128xf32> -> vector<4x128xf32>
    %609 = arith.addf %602, %608 : vector<4x128xf32>
    %c0_606 = arith.constant 0 : index
    %c0_607 = arith.constant 0 : index
    %610 = vector.load %arg13[%c0_606, %c0_607] : memref<4x1xf32, #tpu.memory_space<vmem>>, vector<4x1xf32>
    %611 = vector.broadcast %610 : vector<4x1xf32> to vector<4x128xf32>
    %612 = arith.addf %609, %611 : vector<4x128xf32>
    %613 = arith.negf %612 : vector<4x128xf32>
    %614 = math.exp %613 : vector<4x128xf32>
    %cst_608 = arith.constant 1.000000e+00 : f32
    %615 = vector.broadcast %cst_608 : f32 to vector<4x128xf32>
    %616 = arith.addf %615, %614 : vector<4x128xf32>
    %617 = arith.divf %615, %616 : vector<4x128xf32>
    %c0_609 = arith.constant 0 : index
    %c0_610 = arith.constant 0 : index
    %c128 = arith.constant 128 : index
    %618 = vector.load %arg14[%c0_609, %c0_610, %c128] : memref<1x4x256xf32, #tpu.memory_space<vmem>>, vector<1x4x128xf32>
    %619 = vector.shape_cast %618 : vector<1x4x128xf32> to vector<4x128xf32>
    %620 = vector.shape_cast %617 : vector<4x128xf32> to vector<1x4x128xf32>
    tpu.vector_store %arg14[%c0_609, %c0_610, %c128], %620 {strides = array<i32>} : memref<1x4x256xf32, #tpu.memory_space<vmem>>, vector<1x4x128xf32>,
    return
  }
  func.func @transform_0(%arg0: i32) -> (i32, i32, i32, i32) {
    %c0_i32 = arith.constant 0 : i32
    %c0_i32_0 = arith.constant 0 : i32
    %c0_i32_1 = arith.constant 0 : i32
    %c0_i32_2 = arith.constant 0 : i32
    return %arg0, %c0_i32, %c0_i32_0, %c0_i32_1 : i32, i32, i32, i32
  }
  func.func @transform_1(%arg0: i32) -> (i32, i32, i32) {
    %c0_i32 = arith.constant 0 : i32
    %c0_i32_0 = arith.constant 0 : i32
    %c0_i32_1 = arith.constant 0 : i32
    %c0_i32_2 = arith.constant 0 : i32
    return %c0_i32, %c0_i32_0, %c0_i32_1 : i32, i32, i32
  }
  func.func @transform_2(%arg0: i32) -> (i32, i32, i32) {
    %c0_i32 = arith.constant 0 : i32
    %c0_i32_0 = arith.constant 0 : i32
    %c0_i32_1 = arith.constant 0 : i32
    %c0_i32_2 = arith.constant 0 : i32
    return %c0_i32, %c0_i32_0, %c0_i32_1 : i32, i32, i32
  }
  func.func @transform_3(%arg0: i32) -> (i32, i32, i32) {
    %c0_i32 = arith.constant 0 : i32
    %c0_i32_0 = arith.constant 0 : i32
    %c0_i32_1 = arith.constant 0 : i32
    %c0_i32_2 = arith.constant 0 : i32
    return %c0_i32, %c0_i32_0, %c0_i32_1 : i32, i32, i32
  }
  func.func @transform_4(%arg0: i32) -> (i32, i32) {
    %c0_i32 = arith.constant 0 : i32
    %c0_i32_0 = arith.constant 0 : i32
    %c0_i32_1 = arith.constant 0 : i32
    return %c0_i32, %c0_i32_0 : i32, i32
  }
  func.func @transform_5(%arg0: i32) -> (i32, i32, i32) {
    %c0_i32 = arith.constant 0 : i32
    %c0_i32_0 = arith.constant 0 : i32
    %c0_i32_1 = arith.constant 0 : i32
    %c0_i32_2 = arith.constant 0 : i32
    return %c0_i32, %c0_i32_0, %c0_i32_1 : i32, i32, i32
  }
  func.func @transform_6(%arg0: i32) -> (i32, i32, i32) {
    %c0_i32 = arith.constant 0 : i32
    %c0_i32_0 = arith.constant 0 : i32
    %c0_i32_1 = arith.constant 0 : i32
    %c0_i32_2 = arith.constant 0 : i32
    return %c0_i32, %c0_i32_0, %c0_i32_1 : i32, i32, i32
  }
  func.func @transform_7(%arg0: i32) -> (i32, i32) {
    %c0_i32 = arith.constant 0 : i32
    %c0_i32_0 = arith.constant 0 : i32
    %c0_i32_1 = arith.constant 0 : i32
    return %c0_i32, %c0_i32_0 : i32, i32
  }
  func.func @transform_8(%arg0: i32) -> (i32, i32) {
    %c0_i32 = arith.constant 0 : i32
    %c0_i32_0 = arith.constant 0 : i32
    %c0_i32_1 = arith.constant 0 : i32
    return %c0_i32, %c0_i32_0 : i32, i32
  }
  func.func @transform_9(%arg0: i32) -> (i32, i32) {
    %c0_i32 = arith.constant 0 : i32
    %c0_i32_0 = arith.constant 0 : i32
    %c0_i32_1 = arith.constant 0 : i32
    return %c0_i32, %c0_i32_0 : i32, i32
  }
  func.func @transform_10(%arg0: i32) -> (i32, i32) {
    %c0_i32 = arith.constant 0 : i32
    %c0_i32_0 = arith.constant 0 : i32
    %c0_i32_1 = arith.constant 0 : i32
    return %c0_i32, %c0_i32_0 : i32, i32
  }
  func.func @transform_11(%arg0: i32) -> (i32, i32) {
    %c0_i32 = arith.constant 0 : i32
    %c0_i32_0 = arith.constant 0 : i32
    %c0_i32_1 = arith.constant 0 : i32
    return %c0_i32, %c0_i32_0 : i32, i32
  }
  func.func @transform_12(%arg0: i32) -> (i32, i32) {
    %c0_i32 = arith.constant 0 : i32
    %c0_i32_0 = arith.constant 0 : i32
    %c0_i32_1 = arith.constant 0 : i32
    return %c0_i32, %c0_i32_0 : i32, i32
  }
  func.func @transform_13(%arg0: i32) -> (i32, i32, i32) {
    %c0_i32 = arith.constant 0 : i32
    %c0_i32_0 = arith.constant 0 : i32
    %c0_i32_1 = arith.constant 0 : i32
    return %arg0, %c0_i32, %c0_i32_0 : i32, i32, i32
  }
}

</mosaic_0001>

<bundles_post_ra>
// kernel: cae_forward.1
= control target key start
LH: loop header
LB: loop body
LE: loop exit
PB: predicated region body
PF: predicated region fallthrough
CT: control target
= control target key end

     0   :  { %s15778_s25 = smov 0   ;;  %s19910_s0 = inlined_call_operand.vmem [shape: f32[2,16,16,4], index: 0, kind: input, shape index: {}]   ;;  %s19911_s1 = inlined_call_operand.vmem [shape: bf16[9,4,32], index: 1, kind: input, shape index: {}]   ;;  %s19912_s2 = inlined_call_operand.vmem [shape: bf16[9,32,64], index: 2, kind: input, shape index: {}]   ;;  %s19913_s3 = inlined_call_operand.vmem [shape: bf16[9,64,128], index: 3, kind: input, shape index: {}]   ;;  %s19914_s4 = inlined_call_operand.vmem [shape: bf16[1152,64], index: 4, kind: input, shape index: {}]   ;;  %s19915_s5 = inlined_call_operand.vmem [shape: bf16[9,64,32], index: 5, kind: input, shape index: {}]   ;;  %s19916_s6 = inlined_call_operand.vmem [shape: bf16[9,4,32], index: 6, kind: input, shape index: {}]   ;;  %s19917_s7 = inlined_call_operand.vmem [shape: f32[1,32], index: 7, kind: input, shape index: {}]   ;;  %s19918_s8 = inlined_call_operand.vmem [shape: f32[1,64], index: 8, kind: input, shape index: {}]   ;;  %s19919_s9 = inlined_call_operand.vmem [shape: f32[1,128], index: 9, kind: input, shape index: {}]   ;;  %s19920_s10 = inlined_call_operand.vmem [shape: f32[1,64], index: 10, kind: input, shape index: {}]   ;;  %s19921_s11 = inlined_call_operand.vmem [shape: f32[1,32], index: 11, kind: input, shape index: {}]   ;;  %s19922_s12 = inlined_call_operand.vmem [shape: f32[4,1], index: 12, kind: input, shape index: {}]   ;;  %s19923_s13 = inlined_call_operand.vmem [shape: f32[2,4,256], index: 13, kind: output, shape index: {}]  }
   0x1 LB: > { %s13174_s26 = sadd.s32 4294967295, %s15701_s25   ;;  %p13178_p0 = scmp.ge.s32.totalorder %s15701_s25, 1  ;;  %s15701_s25 = sphi %s15778_s25, %s23_s25  }
   0x2   : > { %p387_p1 = scmp.lt.s32.totalorder %s15701_s25, 3 }
   0x4   : > { %p388_p2 = pnand %p13178_p0, %p387_p1 }
   0x6   : > { %391 = sbr.rel (%p388_p2) target bundleno = 2842 (0xb1a), region = 72 }
   0xb   : > { %v13183_v0 = vld [vmem:[%s19911_s1 + $0x2] sm:$0x3]  ;;  %vm758_vm0 = vcmask 1041408   ;;  %vm442_vm1 = vcmask 31744   ;;  %vm445_vm2 = vcmask 25600   ;;  %v19924_v2 = vmov 0.0  }
   0xc   : > { %15454 = vmatprep.subr.msk.bf16.mxu0 %vm758_vm0, %v13183_v0  ;;  %15455 = vmatprep.subr.msk.bf16.mxu1 %vm758_vm0, %v13183_v0  ;;  %v760_v1 = vsel %vm758_vm0, %v13183_v0, 0  ;;  %443 = vst.msk [vmem:[#allocation2] sm:$0xff] %vm442_vm1, %v19924_v2  ;;  %444 = vst.msk [vmem:[#allocation2 + $0x8] sm:$0xff] %vm442_vm1, %v19924_v2  ;;  %vm451_vm3 = vcmask 24576   ;;  %p15814_p3 = scmp.lt.s32.totalorder %s13174_s26, 1  ;;  %vm488_vm4 = vcmask 261120  }
   0xd   : > { %446 = vst.msk [vmem:[#allocation2 + $0x10] sm:$0x3] %vm445_vm2, %v19924_v2  ;;  %450 = vst.msk [vmem:[#allocation2 + $0x1a8] sm:$0x3] %vm445_vm2, %v19924_v2  ;;  %v15821_v3 = vld [vmem:[%s19911_s1] sm:$0x3]  ;;  %14389 = vmatpush3.bf16.msra.mxu0 %v760_v1  ;;  %15453 = vmatpush3.bf16.msra.mxu1 %v760_v1 }
   0xe   : > { %448 = vst.msk [vmem:[#allocation2 + $0x198] sm:$0xff] %vm442_vm1, %v19924_v2  ;;  %449 = vst.msk [vmem:[#allocation2 + $0x1a0] sm:$0xff] %vm442_vm1, %v19924_v2  ;;  %v13200_v4 = vld [vmem:[%s19911_s1 + $0x4] sm:$0x3]  ;;  %s20094_s26 = smov (!%p15814_p3, %s13174_s26), 1  ;;  %15456 = vmatprep.subr.msk.bf16.mxu1 %vm758_vm0, %v15821_v3  ;;  %v884_v40 = vsel %vm758_vm0, %v15821_v3, 0 }
   0xf   : > { %533 = vst [vmem:[#allocation5] sm:$0x3f] %v19924_v2  ;;  %535 = vst [vmem:[#allocation5 + $0x28] sm:$0x3f] %v19924_v2  ;;  %15457 = vmatprep.subr.msk.bf16.mxu0 %vm758_vm0, %v13200_v4  ;;  %s13794_s17 = sshll.u32 %s20094_s26, 8  ;;  %v1034_v33 = vsel %vm758_vm0, %v13200_v4, 0 }
  0x10   : > { %537 = vst [vmem:[#allocation5 + $0x8] sm:$0x1] %v19924_v2  ;;  %538 = vst [vmem:[#allocation5 + $0x10] sm:$0x1] %v19924_v2  ;;  %s15915_s20 = scalar_lea.vmem %s19910_s0, %s13794_s17  ;;  %v15960_v34 = vld [vmem:[%s19911_s1 + $0x8] sm:$0x3] }
  0x11   : > { %539 = vst [vmem:[#allocation5 + $0x18] sm:$0x1] %v19924_v2  ;;  %540 = vst [vmem:[#allocation5 + $0x20] sm:$0x1] %v19924_v2  ;;  %v618_v5 = vld [vmem:[%s15915_s20] sm:$0xff]  ;;  %v619_v6 = vld [vmem:[%s15915_s20 + $0x8] sm:$0xff] }
  0x12   : > { %543 = vst [vmem:[#allocation5 + $0xd] sm:$0x1] %v19924_v2  ;;  %544 = vst [vmem:[#allocation5 + $0x15] sm:$0x1] %v19924_v2  ;;  %v628_v7 = vld [vmem:[%s15915_s20 + $0x50] sm:$0xff]  ;;  %v629_v10 = vld [vmem:[%s15915_s20 + $0x58] sm:$0xff] }
  0x13   : > { %545 = vst [vmem:[#allocation5 + $0x1d] sm:$0x1] %v19924_v2  ;;  %546 = vst [vmem:[#allocation5 + $0x25] sm:$0x1] %v19924_v2  ;;  %v708_v8 = vld [vmem:[#allocation2 + $0x1] sm:$0xff]  ;;  %v620_v14 = vld [vmem:[%s15915_s20 + $0x10] sm:$0xff] }
  0x14   : > { %452 = vst.msk [vmem:[#allocation2] sm:$0x1] %vm451_vm3, %v19924_v2  ;;  %470 = vst.msk [vmem:[#allocation2 + $0x11] sm:$0x1] %vm451_vm3, %v19924_v2  ;;  %v709_v9 = vld [vmem:[#allocation2 + $0x9] sm:$0xff]  ;;  %v630_v12 = vld [vmem:[%s15915_s20 + $0x60] sm:$0xff] }
  0x15   : > { %487 = vst.msk [vmem:[#allocation2 + $0x1a9] sm:$0x1] %vm451_vm3, %v19924_v2  ;;  %453 = vst.msk [vmem:[#allocation2 + $0x18] sm:$0x1] %vm451_vm3, %v19924_v2  ;;  %v724_v11 = vpack.c.bf16 %v709_v9, %v708_v8  ;;  %v631_v13 = vld [vmem:[%s15915_s20 + $0x68] sm:$0xff]  ;;  %v621_v15 = vld [vmem:[%s15915_s20 + $0x18] sm:$0xff] }
  0x16   : > { %454 = vst.msk [vmem:[#allocation2 + $0x30] sm:$0x1] %vm451_vm3, %v19924_v2  ;;  %455 = vst.msk [vmem:[#allocation2 + $0x48] sm:$0x1] %vm451_vm3, %v19924_v2  ;;  %v622_v16 = vld [vmem:[%s15915_s20 + $0x20] sm:$0xff]  ;;  %v623_v17 = vld [vmem:[%s15915_s20 + $0x28] sm:$0xff] }
  0x17   : > { %456 = vst.msk [vmem:[#allocation2 + $0x60] sm:$0x1] %vm451_vm3, %v19924_v2  ;;  %457 = vst.msk [vmem:[#allocation2 + $0x78] sm:$0x1] %vm451_vm3, %v19924_v2  ;;  %14390 = vmatprep.mubr.msk.bf16.mxu0 %vm442_vm1, %v724_v11  ;;  %v624_v18 = vld [vmem:[%s15915_s20 + $0x30] sm:$0xff]  ;;  %v625_v19 = vld [vmem:[%s15915_s20 + $0x38] sm:$0xff] }
  0x18   : > { %458 = vst.msk [vmem:[#allocation2 + $0x90] sm:$0x1] %vm451_vm3, %v19924_v2  ;;  %459 = vst.msk [vmem:[#allocation2 + $0xa8] sm:$0x1] %vm451_vm3, %v19924_v2  ;;  %v626_v20 = vld [vmem:[%s15915_s20 + $0x40] sm:$0xff]  ;;  %v627_v21 = vld [vmem:[%s15915_s20 + $0x48] sm:$0xff] }
  0x19   : > { %460 = vst.msk [vmem:[#allocation2 + $0xc0] sm:$0x1] %vm451_vm3, %v19924_v2  ;;  %461 = vst.msk [vmem:[#allocation2 + $0xd8] sm:$0x1] %vm451_vm3, %v19924_v2  ;;  %v684_v23 = vld [vmem:[#allocation2 + $0x8] sm:$0xff]  ;;  %v632_v24 = vld [vmem:[%s15915_s20 + $0x70] sm:$0xff] }
  0x1a   : > { %462 = vst.msk [vmem:[#allocation2 + $0xf0] sm:$0x1] %vm451_vm3, %v19924_v2  ;;  %463 = vst.msk [vmem:[#allocation2 + $0x108] sm:$0x1] %vm451_vm3, %v19924_v2  ;;  %v633_v25 = vld [vmem:[%s15915_s20 + $0x78] sm:$0xff]  ;;  %v634_v26 = vld [vmem:[%s15915_s20 + $0x80] sm:$0xff] }
  0x1b   : > { %464 = vst.msk [vmem:[#allocation2 + $0x120] sm:$0x1] %vm451_vm3, %v19924_v2  ;;  %465 = vst.msk [vmem:[#allocation2 + $0x138] sm:$0x1] %vm451_vm3, %v19924_v2  ;;  %v683_v22 = vld [vmem:[#allocation2] sm:$0xff]  ;;  %v635_v27 = vld [vmem:[%s15915_s20 + $0x88] sm:$0xff] }
  0x1c   : > { %466 = vst.msk [vmem:[#allocation2 + $0x150] sm:$0x1] %vm451_vm3, %v19924_v2  ;;  %467 = vst.msk [vmem:[#allocation2 + $0x168] sm:$0x1] %vm451_vm3, %v19924_v2  ;;  %v699_v42 = vpack.c.bf16 %v684_v23, %v683_v22  ;;  %v13209_v46 = vld [vmem:[%s19911_s1 + $0x6] sm:$0x3] }
  0x1d   : > { %468 = vst.msk [vmem:[#allocation2 + $0x180] sm:$0x1] %vm451_vm3, %v19924_v2  ;;  %471 = vst.msk [vmem:[#allocation2 + $0x29] sm:$0x1] %vm451_vm3, %v19924_v2  ;;  %v1200_v57 = vsel %vm758_vm0, %v13209_v46, 0  ;;  %v983_v61 = vld [vmem:[#allocation2 + $0x2] sm:$0xff] }
  0x1e   : > { %472 = vst.msk [vmem:[#allocation2 + $0x41] sm:$0x1] %vm451_vm3, %v19924_v2  ;;  %473 = vst.msk [vmem:[#allocation2 + $0x59] sm:$0x1] %vm451_vm3, %v19924_v2  ;;  %v16001_v60 = vld [vmem:[%s19911_s1 + $0xa] sm:$0x3] }
  0x1f   : > { %474 = vst.msk [vmem:[#allocation2 + $0x71] sm:$0x1] %vm451_vm3, %v19924_v2  ;;  %475 = vst.msk [vmem:[#allocation2 + $0x89] sm:$0x1] %vm451_vm3, %v19924_v2  ;;  %v984_v62 = vld [vmem:[#allocation2 + $0xa] sm:$0xff]  ;;  %vm490_vm5 = vcmask 254976  }
  0x20   : > { %476 = vst.msk [vmem:[#allocation2 + $0xa1] sm:$0x1] %vm451_vm3, %v19924_v2  ;;  %477 = vst.msk [vmem:[#allocation2 + $0xb9] sm:$0x1] %vm451_vm3, %v19924_v2  ;;  %v643_v23 = vld [vmem:[%s15915_s20 + $0xc8] sm:$0xff]  ;;  %vm3113_vm6 = vcmask 1041409  }
  0x21   : > { %478 = vst.msk [vmem:[#allocation2 + $0xd1] sm:$0x1] %vm451_vm3, %v19924_v2  ;;  %479 = vst.msk [vmem:[#allocation2 + $0xe9] sm:$0x1] %vm451_vm3, %v19924_v2  ;;  %vm3115_vm7 = vcmask 1042434   ;;  %vm3117_vm8 = vcmask 1043459  }
  0x22   : > { %480 = vst.msk [vmem:[#allocation2 + $0x101] sm:$0x1] %vm451_vm3, %v19924_v2  ;;  %481 = vst.msk [vmem:[#allocation2 + $0x119] sm:$0x1] %vm451_vm3, %v19924_v2  ;;  %vm3119_vm9 = vcmask 1044484   ;;  %vm3121_vm10 = vcmask 1045509  }
  0x23   : > { %482 = vst.msk [vmem:[#allocation2 + $0x131] sm:$0x1] %vm451_vm3, %v19924_v2  ;;  %483 = vst.msk [vmem:[#allocation2 + $0x149] sm:$0x1] %vm451_vm3, %v19924_v2  ;;  %vm3123_vm11 = vcmask 1046534   ;;  %vm3125_vm12 = vcmask 1047559  }
  0x24   : > { %484 = vst.msk [vmem:[#allocation2 + $0x161] sm:$0x1] %vm451_vm3, %v19924_v2  ;;  %485 = vst.msk [vmem:[#allocation2 + $0x179] sm:$0x1] %vm451_vm3, %v19924_v2  ;;  %vm495_vm13 = vcmask 253952   ;;  %vm548_vm14 = vcmask 523264  }
  0x25   : > { %486 = vst.msk [vmem:[#allocation2 + $0x191] sm:$0x1] %vm451_vm3, %v19924_v2  ;;  %469 = vst.msk [vmem:[#allocation2 + $0x198] sm:$0x1] %vm451_vm3, %v19924_v2  ;;  %vm550_vm15 = vcmask 517120   ;;  %vm15705_vm2 = vmmov 0  }
  0x26   : > { %536 = vst [vmem:[#allocation5] sm:$0x1] %v19924_v2  ;;  %541 = vst [vmem:[#allocation5 + $0x28] sm:$0x1] %v19924_v2  ;;  %vm520_vm3 = vcmask 516096   ;;  %s13795_s22 = sshll.u32 %s20094_s26, 3 }
  0x27   : > { %542 = vst [vmem:[#allocation5 + $0x5] sm:$0x1] %v19924_v2  ;;  %547 = vst [vmem:[#allocation5 + $0x2d] sm:$0x1] %v19924_v2  ;;  %s19882_s27 = scalar_lea.vmem %s19923_s13, %s13795_s22 }
  0x28   : > { %651 = vst.msk [vmem:[#allocation2 + $0x19] sm:$0xff] %vm442_vm1, %v618_v5  ;;  %652 = vst.msk [vmem:[#allocation2 + $0x21] sm:$0xff] %vm442_vm1, %v619_v6  ;;  %v999_v5 = vpack.c.bf16 %v984_v62, %v983_v61  ;;  %v13254_v62 = vld [vmem:[%s19911_s1 + $0x10] sm:$0x3] }
  0x29   : > { %661 = vst.msk [vmem:[#allocation2 + $0x91] sm:$0xff] %vm442_vm1, %v628_v7  ;;  %662 = vst.msk [vmem:[#allocation2 + $0x99] sm:$0xff] %vm442_vm1, %v629_v10  ;;  %v636_v10 = vld [vmem:[%s15915_s20 + $0x90] sm:$0xff] }
  0x2a   : > { %663 = vst.msk [vmem:[#allocation2 + $0xa9] sm:$0xff] %vm442_vm1, %v630_v12  ;;  %664 = vst.msk [vmem:[#allocation2 + $0xb1] sm:$0xff] %vm442_vm1, %v631_v13  ;;  %v637_v13 = vld [vmem:[%s15915_s20 + $0x98] sm:$0xff] }
  0x2b   : > { %653 = vst.msk [vmem:[#allocation2 + $0x31] sm:$0xff] %vm442_vm1, %v620_v14  ;;  %654 = vst.msk [vmem:[#allocation2 + $0x39] sm:$0xff] %vm442_vm1, %v621_v15  ;;  %v638_v14 = vld [vmem:[%s15915_s20 + $0xa0] sm:$0xff]  ;;  %v639_v15 = vld [vmem:[%s15915_s20 + $0xa8] sm:$0xff] }
  0x2c   : > { %655 = vst.msk [vmem:[#allocation2 + $0x49] sm:$0xff] %vm442_vm1, %v622_v16  ;;  %656 = vst.msk [vmem:[#allocation2 + $0x51] sm:$0xff] %vm442_vm1, %v623_v17 }
  0x2d   : > { %657 = vst.msk [vmem:[#allocation2 + $0x61] sm:$0xff] %vm442_vm1, %v624_v18  ;;  %658 = vst.msk [vmem:[#allocation2 + $0x69] sm:$0xff] %vm442_vm1, %v625_v19  ;;  %v640_v18 = vld [vmem:[%s15915_s20 + $0xb0] sm:$0xff]  ;;  %v641_v19 = vld [vmem:[%s15915_s20 + $0xb8] sm:$0xff] }
  0x2e   : > { %659 = vst.msk [vmem:[#allocation2 + $0x79] sm:$0xff] %vm442_vm1, %v626_v20  ;;  %660 = vst.msk [vmem:[#allocation2 + $0x81] sm:$0xff] %vm442_vm1, %v627_v21  ;;  %v642_v20 = vld [vmem:[%s15915_s20 + $0xc0] sm:$0xff] }
  0x2f   : > { %665 = vst.msk [vmem:[#allocation2 + $0xc1] sm:$0xff] %vm442_vm1, %v632_v24  ;;  %v710_v28 = vld [vmem:[#allocation2 + $0x19] sm:$0xff]  ;;  %v711_v29 = vld [vmem:[#allocation2 + $0x21] sm:$0xff]  ;;  %666 = vst.msk [vmem:[#allocation2 + $0xc9] sm:$0xff] %vm442_vm1, %v633_v25 }
  0x30   : > { %v720_v30 = vld [vmem:[#allocation2 + $0x91] sm:$0xff]  ;;  %667 = vst.msk [vmem:[#allocation2 + $0xd9] sm:$0xff] %vm442_vm1, %v634_v26  ;;  %668 = vst.msk [vmem:[#allocation2 + $0xe1] sm:$0xff] %vm442_vm1, %v635_v27  ;;  %v15954_v31 = vpack.c.bf16 %v711_v29, %v710_v28  ;;  %v721_v32 = vld [vmem:[#allocation2 + $0x99] sm:$0xff]  ;;  %v1366_v27 = vsel %vm758_vm0, %v15960_v34, 0 }
  0x31   : > { %v15962_v35 = vpack.c.bf16 %v721_v32, %v720_v30  ;;  %v722_v36 = vld [vmem:[#allocation2 + $0xa9] sm:$0xff]  ;;  %v723_v37 = vld [vmem:[#allocation2 + $0xb1] sm:$0xff]  ;;  %v686_v50 = vld [vmem:[#allocation2 + $0x20] sm:$0xff]  ;;  %669 = vst.msk [vmem:[#allocation2 + $0xf1] sm:$0xff] %vm442_vm1, %v636_v10 }
  0x32   : > { %v712_v38 = vld [vmem:[#allocation2 + $0x31] sm:$0xff]  ;;  %14391 = vmatmul.mubr.msk.bf16.vlgmr.msra.gmra.mxu0 %vm442_vm1, %v15954_v31  ;;  %v15966_v39 = vpack.c.bf16 %v723_v37, %v722_v36  ;;  %v713_v41 = vld [vmem:[#allocation2 + $0x39] sm:$0xff]  ;;  %v986_v9 = vld [vmem:[#allocation2 + $0x22] sm:$0xff]  ;;  %670 = vst.msk [vmem:[#allocation2 + $0xf9] sm:$0xff] %vm442_vm1, %v637_v13 }
  0x33   : > { %14402 = vmatprep.mubr.msk.bf16.mxu1 %vm442_vm1, %v15962_v35  ;;  %v15972_v43 = vpack.c.bf16 %v713_v41, %v712_v38  ;;  %v714_v44 = vld [vmem:[#allocation2 + $0x49] sm:$0xff]  ;;  %v715_v45 = vld [vmem:[#allocation2 + $0x51] sm:$0xff]  ;;  %14425 = vmatpush3.bf16.msra.mxu0 %v1034_v33  ;;  %v985_v8 = vld [vmem:[#allocation2 + $0x1a] sm:$0xff]  ;;  %671 = vst.msk [vmem:[#allocation2 + $0x109] sm:$0xff] %vm442_vm1, %v638_v14 }
  0x34   : > { %14403 = vmatmul.mubr.msk.bf16.vlgmr.msra.gmra.mxu1 %vm442_vm1, %v15966_v39  ;;  %v716_v47 = vld [vmem:[#allocation2 + $0x61] sm:$0xff]  ;;  %v717_v48 = vld [vmem:[#allocation2 + $0x69] sm:$0xff]  ;;  %15459 = vmatprep.subr.msk.bf16.mxu0 %vm758_vm0, %v15960_v34  ;;  %v685_v49 = vld [vmem:[#allocation2 + $0x18] sm:$0xff]  ;;  %v15983_v51 = vpack.c.bf16 %v715_v45, %v714_v44  ;;  %672 = vst.msk [vmem:[#allocation2 + $0x111] sm:$0xff] %vm442_vm1, %v639_v15  ;;  %v16038_v24 = vpack.c.bf16 %v986_v9, %v985_v8 }
  0x35   : > { %14407 = vmatpush3.bf16.msra.mxu1 %v884_v40  ;;  %14394 = vmatprep.mubr.msk.bf16.mxu0 %vm442_vm1, %v15972_v43  ;;  %v687_v52 = vld [vmem:[#allocation2 + $0x30] sm:$0xff]  ;;  %v688_v53 = vld [vmem:[#allocation2 + $0x38] sm:$0xff]  ;;  %v15987_v54 = vpack.c.bf16 %v717_v48, %v716_v47  ;;  %v15989_v55 = vpack.c.bf16 %v686_v50, %v685_v49  ;;  %v719_v59 = vld [vmem:[#allocation2 + $0x81] sm:$0xff]  ;;  %673 = vst.msk [vmem:[#allocation2 + $0x121] sm:$0xff] %vm442_vm1, %v640_v18 }
  0x36   : > { %14408 = vmatprep.mubr.msk.bf16.mxu1 %vm442_vm1, %v699_v42  ;;  %15458 = vmatprep.subr.msk.bf16.mxu1 %vm758_vm0, %v13209_v46  ;;  %v15991_v56 = vpack.c.bf16 %v688_v53, %v687_v52  ;;  %v718_v58 = vld [vmem:[#allocation2 + $0x79] sm:$0xff]  ;;  %v689_v63 = vld [vmem:[#allocation2 + $0x48] sm:$0xff]  ;;  %v690_v0 = vld [vmem:[#allocation2 + $0x50] sm:$0xff]  ;;  %674 = vst.msk [vmem:[#allocation2 + $0x129] sm:$0xff] %vm442_vm1, %v641_v19 }
  0x37   : > { %v16007_v1 = vpack.c.bf16 %v719_v59, %v718_v58  ;;  %v691_v3 = vld [vmem:[#allocation2 + $0x60] sm:$0xff]  ;;  %v692_v4 = vld [vmem:[#allocation2 + $0x68] sm:$0xff]  ;;  %v16011_v6 = vpack.c.bf16 %v690_v0, %v689_v63  ;;  %v987_v11 = vld [vmem:[#allocation2 + $0x32] sm:$0xff]  ;;  %675 = vst.msk [vmem:[#allocation2 + $0x139] sm:$0xff] %vm442_vm1, %v642_v20  ;;  %v1532_v59 = vsel %vm758_vm0, %v16001_v60, 0 }
  0x38   : > { %v16013_v7 = vpack.c.bf16 %v692_v4, %v691_v3  ;;  %v988_v12 = vld [vmem:[#allocation2 + $0x3a] sm:$0xff]  ;;  %v695_v21 = vld [vmem:[#allocation2 + $0x90] sm:$0xff]  ;;  %676 = vst.msk [vmem:[#allocation2 + $0x141] sm:$0xff] %vm442_vm1, %v643_v23  ;;  %v13236_v32 = vld [vmem:[%s19911_s1 + $0xc] sm:$0x3] }
  0x39   : > { %v693_v16 = vld [vmem:[#allocation2 + $0x78] sm:$0xff]  ;;  %v694_v17 = vld [vmem:[#allocation2 + $0x80] sm:$0xff]  ;;  %v16040_v25 = vpack.c.bf16 %v988_v12, %v987_v11  ;;  %v644_v28 = vld [vmem:[%s15915_s20 + $0xd0] sm:$0xff]  ;;  %v2031_v12 = vsel %vm758_vm0, %v13254_v62, 0  ;;  %489 = vst.msk [vmem:[#allocation3] sm:$0xff] %vm488_vm4, %v19924_v2 }
  0x3a   : > { %14395 = vmatmul.mubr.msk.bf16.gmra.mxu0 %vm442_vm1, %v15983_v51  ;;  %v696_v22 = vld [vmem:[#allocation2 + $0x98] sm:$0xff]  ;;  %v16042_v26 = vpack.c.bf16 %v694_v17, %v693_v16  ;;  %677 = vst.msk [vmem:[#allocation2 + $0x151] sm:$0xff] %vm442_vm1, %v644_v28  ;;  %v646_v33 = vld [vmem:[%s15915_s20 + $0xe0] sm:$0xff]  ;;  %v647_v36 = vld [vmem:[%s15915_s20 + $0xe8] sm:$0xff] }
  0x3b   : > { %14398 = vmatprep.mubr.msk.bf16.mxu0 %vm442_vm1, %v15987_v54  ;;  %v645_v29 = vld [vmem:[%s15915_s20 + $0xd8] sm:$0xff]  ;;  %v16048_v30 = vpack.c.bf16 %v696_v22, %v695_v21  ;;  %679 = vst.msk [vmem:[#allocation2 + $0x169] sm:$0xff] %vm442_vm1, %v646_v33  ;;  %680 = vst.msk [vmem:[#allocation2 + $0x171] sm:$0xff] %vm442_vm1, %v647_v36  ;;  %v989_v34 = vld [vmem:[#allocation2 + $0x4a] sm:$0xff] }
  0x3c   : > { %14409 = vmatmul.mubr.msk.bf16.vlgmr.msra.gmra.mxu1 %vm442_vm1, %v15989_v55  ;;  %678 = vst.msk [vmem:[#allocation2 + $0x159] sm:$0xff] %vm442_vm1, %v645_v29  ;;  %v990_v37 = vld [vmem:[#allocation2 + $0x52] sm:$0xff]  ;;  %v991_v38 = vld [vmem:[#allocation2 + $0x62] sm:$0xff]  ;;  %v992_v40 = vld [vmem:[#allocation2 + $0x6a] sm:$0xff] }
  0x3d   : > { %14443 = vmatpush3.bf16.msra.mxu1 %v1200_v57  ;;  %14412 = vmatprep.mubr.msk.bf16.mxu1 %vm442_vm1, %v15991_v56  ;;  %v697_v41 = vld [vmem:[#allocation2 + $0xa8] sm:$0xff]  ;;  %v698_v42 = vld [vmem:[#allocation2 + $0xb0] sm:$0xff]  ;;  %v16068_v44 = vpack.c.bf16 %v990_v37, %v989_v34  ;;  %v16070_v45 = vpack.c.bf16 %v992_v40, %v991_v38  ;;  %v993_v47 = vld [vmem:[#allocation2 + $0x7a] sm:$0xff]  ;;  %491 = vst.msk [vmem:[#allocation3 + $0x8] sm:$0x3] %vm490_vm5, %v19924_v2 }
  0x3e   : > { %15460 = vmatprep.subr.msk.bf16.mxu1 %vm758_vm0, %v16001_v60  ;;  %v16072_v46 = vpack.c.bf16 %v698_v42, %v697_v41  ;;  %v994_v48 = vld [vmem:[#allocation2 + $0x82] sm:$0xff]  ;;  %v995_v49 = vld [vmem:[#allocation2 + $0x92] sm:$0xff]  ;;  %v996_v50 = vld [vmem:[#allocation2 + $0x9a] sm:$0xff]  ;;  %v1699_v60 = vsel %vm758_vm0, %v13236_v32, 0  ;;  %493 = vst.msk [vmem:[#allocation3 + $0x90] sm:$0xff] %vm488_vm4, %v19924_v2 }
  0x3f   : > { %v16082_v52 = vpack.c.bf16 %v994_v48, %v993_v47  ;;  %v16084_v53 = vpack.c.bf16 %v996_v50, %v995_v49  ;;  %v997_v57 = vld [vmem:[#allocation2 + $0xaa] sm:$0xff]  ;;  %v998_v61 = vld [vmem:[#allocation2 + $0xb2] sm:$0xff]  ;;  %v1329_v9 = vld [vmem:[#allocation2 + $0xc1] sm:$0xff]  ;;  %494 = vst.msk [vmem:[#allocation3 + $0x98] sm:$0x3] %vm490_vm5, %v19924_v2 }
  0x40   : > { %v13245_v58 = vld [vmem:[%s19911_s1 + $0xe] sm:$0x3]  ;;  %v648_v3 = vld [vmem:[%s15915_s20 + $0xf0] sm:$0xff]  ;;  %v649_v4 = vld [vmem:[%s15915_s20 + $0xf8] sm:$0xff]  ;;  %575 = vst.msk [vmem:[#allocation7] sm:$0xff] %vm488_vm4, %v19924_v2 }
  0x41   : > { %v1164_v63 = vld [vmem:[#allocation2 + $0xc8] sm:$0xff]  ;;  %681 = vst.msk [vmem:[#allocation2 + $0x181] sm:$0xff] %vm442_vm1, %v648_v3  ;;  %682 = vst.msk [vmem:[#allocation2 + $0x189] sm:$0xff] %vm442_vm1, %v649_v4  ;;  %v1865_v8 = vsel %vm758_vm0, %v13245_v58, 0  ;;  %v3182_v13 = vld [vmem:[%s19911_s1] sm:$0x3] }
  0x42   : > { %14399 = vmatmul.mubr.msk.bf16.gmra.mxu0 %vm442_vm1, %v16007_v1  ;;  %v1330_v10 = vld [vmem:[#allocation2 + $0xc9] sm:$0xff]  ;;  %v1663_v16 = vld [vmem:[#allocation2 + $0xe0] sm:$0xff]  ;;  %v3357_v18 = vsel %vm758_vm0, %v3182_v13, 0  ;;  %v3187_v20 = vld [vmem:[#allocation2 + $0xf1] sm:$0xff]  ;;  %576 = vst.msk [vmem:[#allocation7 + $0x8] sm:$0xff] %vm488_vm4, %v19924_v2 }
  0x43   : > { %14426 = vmatprep.mubr.msk.bf16.mxu0 %vm442_vm1, %v999_v5  ;;  %v13264_v5 = vld [vmem:[%s19911_s1 + $0x2] sm:$0x3]  ;;  %v1338_v11 = vpack.c.bf16 %v1330_v10, %v1329_v9  ;;  %v1496_v15 = vld [vmem:[#allocation2 + $0xca] sm:$0xff]  ;;  %v13281_v17 = vld [vmem:[%s19911_s1 + $0x4] sm:$0x3]  ;;  %579 = vst.msk [vmem:[#allocation7 + $0x198] sm:$0xff] %vm488_vm4, %v19924_v2 }
  0x44   : > { %14413 = vmatmul.mubr.msk.bf16.gmra.mxu1 %vm442_vm1, %v16011_v6  ;;  %v1495_v14 = vld [vmem:[#allocation2 + $0xc2] sm:$0xff]  ;;  %v3188_v21 = vld [vmem:[#allocation2 + $0xf9] sm:$0xff]  ;;  %v3162_v33 = vld [vmem:[#allocation2 + $0xf0] sm:$0xff]  ;;  %577 = vst.msk [vmem:[#allocation7 + $0x10] sm:$0x3] %vm490_vm5, %v19924_v2 }
  0x45   : > { %14416 = vmatprep.mubr.msk.bf16.mxu1 %vm442_vm1, %v16013_v7  ;;  %v1829_v19 = vld [vmem:[#allocation2 + $0xe1] sm:$0xff]  ;;  %v16225_v23 = vpack.c.bf16 %v3188_v21, %v3187_v20  ;;  %v3192_v28 = vld [vmem:[#allocation2 + $0x129] sm:$0xff]  ;;  %v3163_v36 = vld [vmem:[#allocation2 + $0xf8] sm:$0xff]  ;;  %580 = vst.msk [vmem:[#allocation7 + $0x1a0] sm:$0xff] %vm488_vm4, %v19924_v2 }
  0x46   : > { %v1995_v22 = vld [vmem:[#allocation2 + $0xe2] sm:$0xff]  ;;  %v3193_v34 = vld [vmem:[#allocation2 + $0x139] sm:$0xff]  ;;  %v3195_v38 = vld [vmem:[#allocation2 + $0x151] sm:$0xff]  ;;  %v16253_v41 = vpack.c.bf16 %v3163_v36, %v3162_v33  ;;  %581 = vst.msk [vmem:[#allocation7 + $0x1a8] sm:$0x3] %vm490_vm5, %v19924_v2 }
  0x47   : > { %v3194_v37 = vld [vmem:[#allocation2 + $0x141] sm:$0xff]  ;;  %v3196_v40 = vld [vmem:[#allocation2 + $0x159] sm:$0xff]  ;;  %v3165_v48 = vld [vmem:[#allocation2 + $0x110] sm:$0xff] }
  0x48   : > { %v16255_v42 = vpack.c.bf16 %v3194_v37, %v3193_v34  ;;  %v3164_v47 = vld [vmem:[#allocation2 + $0x108] sm:$0xff]  ;;  %v3166_v49 = vld [vmem:[#allocation2 + $0x120] sm:$0xff]  ;;  %v3173_v9 = vld [vmem:[#allocation2 + $0x170] sm:$0xff] }
  0x49   : > { %v3167_v50 = vld [vmem:[#allocation2 + $0x128] sm:$0xff]  ;;  %v3471_v20 = vld [vmem:[#allocation2 + $0x172] sm:$0xff]  ;;  %v3636_v37 = vld [vmem:[#allocation2 + $0x180] sm:$0xff] }
  0x4a   : > { %14427 = vmatmul.mubr.msk.bf16.vlgmr.msra.gmra.mxu0 %vm442_vm1, %v16038_v24  ;;  %v13317_v10 = vld [vmem:[%s19911_s1 + $0xc] sm:$0x3] }
  0x4b   : > { %14430 = vmatprep.mubr.msk.bf16.mxu0 %vm442_vm1, %v16040_v25  ;;  %14461 = vmatpush3.bf16.msra.mxu0 %v1366_v27  ;;  %v3191_v27 = vld [vmem:[#allocation2 + $0x121] sm:$0xff]  ;;  %v4168_v34 = vsel %vm758_vm0, %v13317_v10, 0 }
  0x4c   : > { %14417 = vmatmul.mubr.msk.bf16.gmra.mxu1 %vm442_vm1, %v16042_v26  ;;  %15461 = vmatprep.subr.msk.bf16.mxu0 %vm758_vm0, %v13236_v32  ;;  %v16243_v32 = vpack.c.bf16 %v3192_v28, %v3191_v27 }
  0x4d   : > { %14420 = vmatprep.mubr.msk.bf16.mxu1 %vm442_vm1, %v16048_v30 }
  0x52   : > { %14431 = vmatmul.mubr.msk.bf16.gmra.mxu0 %vm442_vm1, %v16068_v44 }
  0x53   : > { %14434 = vmatprep.mubr.msk.bf16.mxu0 %vm442_vm1, %v16070_v45 }
  0x54   : > { %14421 = vmatmul.mubr.msk.bf16.gmra.mxu1 %vm442_vm1, %v16072_v46 }
  0x55   : > { %14444 = vmatprep.mubr.msk.bf16.mxu1 %vm442_vm1, %v15989_v55  ;;  %v16099_v55 = vpack.c.bf16 %v998_v61, %v997_v57  ;;  %v16272_v57 = vpack.c.bf16 %v3165_v48, %v3164_v47  ;;  %v3168_v61 = vld [vmem:[#allocation2 + $0x138] sm:$0xff] }
  0x5a   : > { %14435 = vmatmul.mubr.msk.bf16.gmra.mxu0 %vm442_vm1, %v16082_v52 }
  0x5b   : > { %14438 = vmatprep.mubr.msk.bf16.mxu0 %vm442_vm1, %v16084_v53 }
  0x5c   : > { %14445 = vmatmul.mubr.msk.bf16.vlgmr.msra.gmra.mxu1 %vm442_vm1, %v15991_v56 }
  0x5d   : > { %14479 = vmatpush3.bf16.msra.mxu1 %v1532_v59  ;;  %14448 = vmatprep.mubr.msk.bf16.mxu1 %vm442_vm1, %v16011_v6 }
  0x5e   : > { %15462 = vmatprep.subr.msk.bf16.mxu1 %vm758_vm0, %v13245_v58  ;;  %v16274_v58 = vpack.c.bf16 %v3167_v50, %v3166_v49 }
  0x62   : > { %14439 = vmatmul.mubr.msk.bf16.gmra.mxu0 %vm442_vm1, %v16099_v55 }
  0x63   : > { %14462 = vmatprep.mubr.msk.bf16.mxu0 %vm442_vm1, %v15954_v31  ;;  %v1163_v31 = vld [vmem:[#allocation2 + $0xc0] sm:$0xff] }
  0x64   : > { %14449 = vmatmul.mubr.msk.bf16.gmra.mxu1 %vm442_vm1, %v16013_v7  ;;  %v16123_v0 = vpack.c.bf16 %v1164_v63, %v1163_v31  ;;  %v3460_v63 = vld [vmem:[#allocation2 + $0xf2] sm:$0xff] }
  0x65   : > { %14452 = vmatprep.mubr.msk.bf16.mxu1 %vm442_vm1, %v16042_v26 }
  0x6a   : > { %14463 = vmatmul.mubr.msk.bf16.vlgmr.msra.gmra.mxu0 %vm442_vm1, %v15972_v43 }
  0x6b   : > { %14466 = vmatprep.mubr.msk.bf16.mxu0 %vm442_vm1, %v15983_v51  ;;  %14497 = vmatpush3.bf16.msra.mxu0 %v1699_v60  ;;  %v3170_v60 = vld [vmem:[#allocation2 + $0x150] sm:$0xff] }
  0x6c   : > { %14453 = vmatmul.mubr.msk.bf16.gmra.mxu1 %vm442_vm1, %v16048_v30  ;;  %15463 = vmatprep.subr.msk.bf16.mxu0 %vm758_vm0, %v13254_v62  ;;  %v3171_v62 = vld [vmem:[#allocation2 + $0x158] sm:$0xff] }
  0x6d   : > { %14456 = vmatprep.mubr.msk.bf16.mxu1 %vm442_vm1, %v16072_v46  ;;  %v16288_v3 = vpack.c.bf16 %v3171_v62, %v3170_v60 }
  0x72   : > { %14467 = vmatmul.mubr.msk.bf16.gmra.mxu0 %vm442_vm1, %v15987_v54 }
  0x73   : > { %14470 = vmatprep.mubr.msk.bf16.mxu0 %vm442_vm1, %v16007_v1 }
  0x74   : > { %14457 = vmatmul.mubr.msk.bf16.gmra.mxu1 %vm442_vm1, %v16123_v0 }
  0x75   : > { %14480 = vmatprep.mubr.msk.bf16.mxu1 %vm442_vm1, %v16038_v24  ;;  %v13299_v24 = vld [vmem:[%s19911_s1 + $0x8] sm:$0x3] }
  0x7a   : > { %14471 = vmatmul.mubr.msk.bf16.gmra.mxu0 %vm442_vm1, %v15962_v35 }
  0x7b   : > { %14474 = vmatprep.mubr.msk.bf16.mxu0 %vm442_vm1, %v15966_v39 }
  0x7c   : > { %14481 = vmatmul.mubr.msk.bf16.vlgmr.msra.gmra.mxu1 %vm442_vm1, %v16040_v25 }
  0x7d   : > { %14515 = vmatpush3.bf16.msra.mxu1 %v1865_v8  ;;  %14484 = vmatprep.mubr.msk.bf16.mxu1 %vm442_vm1, %v16068_v44  ;;  %v3172_v8 = vld [vmem:[#allocation2 + $0x168] sm:$0xff] }
  0x7e   : > { %15464 = vmatprep.subr.msk.bf16.mxu1 %vm758_vm0, %v13264_v5 }
  0x82   : > { %14475 = vmatmul.mubr.msk.bf16.gmra.mxu0 %vm442_vm1, %v1338_v11 }
  0x83   : > { %14498 = vmatprep.mubr.msk.bf16.mxu0 %vm442_vm1, %v15991_v56  ;;  %v16170_v56 = vpack.c.bf16 %v1496_v15, %v1495_v14  ;;  %v3464_v14 = vld [vmem:[#allocation2 + $0x122] sm:$0xff]  ;;  %v3465_v15 = vld [vmem:[#allocation2 + $0x12a] sm:$0xff] }
  0x84   : > { %14485 = vmatmul.mubr.msk.bf16.gmra.mxu1 %vm442_vm1, %v16070_v45 }
  0x85   : > { %14488 = vmatprep.mubr.msk.bf16.mxu1 %vm442_vm1, %v16082_v52 }
  0x8a   : > { %14499 = vmatmul.mubr.msk.bf16.vlgmr.msra.gmra.mxu0 %vm442_vm1, %v16011_v6  ;;  %v3233_v6 = vsel %vm758_vm0, %v13264_v5, 0  ;;  %v3837_v5 = vsel %vm758_vm0, %v13299_v24, 0 }
  0x8b   : > { %14502 = vmatprep.mubr.msk.bf16.mxu0 %vm442_vm1, %v16013_v7  ;;  %14533 = vmatpush3.bf16.msra.mxu0 %v2031_v12  ;;  %v1662_v7 = vld [vmem:[#allocation2 + $0xd8] sm:$0xff] }
  0x8c   : > { %14489 = vmatmul.mubr.msk.bf16.gmra.mxu1 %vm442_vm1, %v16084_v53  ;;  %15465 = vmatprep.subr.msk.bf16.mxu0 %vm758_vm0, %v3182_v13  ;;  %v3463_v12 = vld [vmem:[#allocation2 + $0x112] sm:$0xff]  ;;  %v16304_v13 = vpack.c.bf16 %v3173_v9, %v3172_v8 }
  0x8d   : > { %14492 = vmatprep.mubr.msk.bf16.mxu1 %vm442_vm1, %v16099_v55 }
  0x92   : > { %14503 = vmatmul.mubr.msk.bf16.gmra.mxu0 %vm442_vm1, %v16042_v26  ;;  %v3190_v26 = vld [vmem:[#allocation2 + $0x111] sm:$0xff] }
  0x93   : > { %14506 = vmatprep.mubr.msk.bf16.mxu0 %vm442_vm1, %v16048_v30 }
  0x94   : > { %14493 = vmatmul.mubr.msk.bf16.gmra.mxu1 %vm442_vm1, %v16170_v56 }
  0x95   : > { %14516 = vmatprep.mubr.msk.bf16.mxu1 %vm442_vm1, %v15972_v43  ;;  %v16192_v43 = vpack.c.bf16 %v1663_v16, %v1662_v7  ;;  %v3466_v7 = vld [vmem:[#allocation2 + $0x13a] sm:$0xff]  ;;  %v3467_v16 = vld [vmem:[#allocation2 + $0x142] sm:$0xff] }
  0x9a   : > { %14507 = vmatmul.mubr.msk.bf16.gmra.mxu0 %vm442_vm1, %v16072_v46  ;;  %v13308_v46 = vld [vmem:[%s19911_s1 + $0xa] sm:$0x3] }
  0x9b   : > { %14510 = vmatprep.mubr.msk.bf16.mxu0 %vm442_vm1, %v16123_v0 }
  0x9c   : > { %14517 = vmatmul.mubr.msk.bf16.vlgmr.msra.gmra.mxu1 %vm442_vm1, %v15983_v51  ;;  %v13290_v51 = vld [vmem:[%s19911_s1 + $0x6] sm:$0x3] }
  0x9d   : > { %14551 = vmatpush3.bf16.msra.mxu1 %v3233_v6  ;;  %14520 = vmatprep.mubr.msk.bf16.mxu1 %vm442_vm1, %v15987_v54  ;;  %v1828_v54 = vld [vmem:[#allocation2 + $0xd9] sm:$0xff]  ;;  %v16309_v6 = vpack.c.bf16 %v3465_v15, %v3464_v14 }
  0x9e   : > { %15466 = vmatprep.subr.msk.bf16.mxu1 %vm758_vm0, %v13281_v17 }
  0xa2   : > { %14511 = vmatmul.mubr.msk.bf16.gmra.mxu0 %vm442_vm1, %v16192_v43 }
  0xa3   : > { %14534 = vmatprep.mubr.msk.bf16.mxu0 %vm442_vm1, %v16040_v25  ;;  %v3189_v25 = vld [vmem:[#allocation2 + $0x109] sm:$0xff] }
  0xa4   : > { %14521 = vmatmul.mubr.msk.bf16.gmra.mxu1 %vm442_vm1, %v16007_v1  ;;  %v3506_v1 = vsel %vm758_vm0, %v13281_v17, 0  ;;  %v16241_v30 = vpack.c.bf16 %v3190_v26, %v3189_v25  ;;  %v3468_v17 = vld [vmem:[#allocation2 + $0x152] sm:$0xff] }
  0xa5   : > { %14524 = vmatprep.mubr.msk.bf16.mxu1 %vm442_vm1, %v15962_v35  ;;  %v16215_v35 = vpack.c.bf16 %v1829_v19, %v1828_v54  ;;  %v4002_v54 = vsel %vm758_vm0, %v13308_v46, 0 }
  0xaa   : > { %14535 = vmatmul.mubr.msk.bf16.vlgmr.msra.gmra.mxu0 %vm442_vm1, %v16068_v44  ;;  %v3672_v44 = vsel %vm758_vm0, %v13290_v51, 0 }
  0xab   : > { %14538 = vmatprep.mubr.msk.bf16.mxu0 %vm442_vm1, %v16070_v45  ;;  %14569 = vmatpush3.bf16.msra.mxu0 %v3357_v18  ;;  %v16258_v45 = vpack.c.bf16 %v3196_v40, %v3195_v38  ;;  %v3469_v18 = vld [vmem:[#allocation2 + $0x15a] sm:$0xff]  ;;  %v3637_v38 = vld [vmem:[#allocation2 + $0x188] sm:$0xff] }
  0xac   : > { %14525 = vmatmul.mubr.msk.bf16.gmra.mxu1 %vm442_vm1, %v15966_v39  ;;  %15467 = vmatprep.subr.msk.bf16.mxu0 %vm758_vm0, %v13290_v51  ;;  %v1994_v39 = vld [vmem:[#allocation2 + $0xda] sm:$0xff]  ;;  %v16319_v51 = vpack.c.bf16 %v3467_v16, %v3466_v7  ;;  %v16322_v19 = vpack.c.bf16 %v3469_v18, %v3468_v17  ;;  %v16391_v49 = vpack.c.bf16 %v3637_v38, %v3636_v37 }
  0xad   : > { %14528 = vmatprep.mubr.msk.bf16.mxu1 %vm442_vm1, %v1338_v11  ;;  %v16238_v29 = vpack.c.bf16 %v1995_v22, %v1994_v39 }
  0xb2   : > { %14539 = vmatmul.mubr.msk.bf16.gmra.mxu0 %vm442_vm1, %v16082_v52  ;;  %v3197_v52 = vld [vmem:[#allocation2 + $0x169] sm:$0xff] }
  0xb3   : > { %14542 = vmatprep.mubr.msk.bf16.mxu0 %vm442_vm1, %v16084_v53  ;;  %v3198_v53 = vld [vmem:[#allocation2 + $0x171] sm:$0xff] }
  0xb4   : > { %14529 = vmatmul.mubr.msk.bf16.gmra.mxu1 %vm442_vm1, %v16215_v35  ;;  %v16276_v59 = vpack.c.bf16 %v3198_v53, %v3197_v52 }
  0xb5   : > { %14552 = vmatprep.mubr.msk.bf16.mxu1 %vm442_vm1, %v1338_v11  ;;  %v3462_v11 = vld [vmem:[#allocation2 + $0x10a] sm:$0xff] }
  0xba   : > { %14543 = vmatmul.mubr.msk.bf16.gmra.mxu0 %vm442_vm1, %v16099_v55  ;;  %v3169_v55 = vld [vmem:[#allocation2 + $0x140] sm:$0xff] }
  0xbb   : > { %14546 = vmatprep.mubr.msk.bf16.mxu0 %vm442_vm1, %v16170_v56  ;;  %v16286_v31 = vpack.c.bf16 %v3169_v55, %v3168_v61 }
  0xbc   : > { %14553 = vmatmul.mubr.msk.bf16.vlgmr.msra.gmra.mxu1 %vm442_vm1, %v16215_v35 }
  0xbd   : > { %14587 = vmatpush3.bf16.msra.mxu1 %v3506_v1  ;;  %14556 = vmatprep.mubr.msk.bf16.mxu1 %vm442_vm1, %v16225_v23  ;;  %v3470_v1 = vld [vmem:[#allocation2 + $0x16a] sm:$0xff] }
  0xbe   : > { %15468 = vmatprep.subr.msk.bf16.mxu1 %vm758_vm0, %v13299_v24  ;;  %v16359_v21 = vpack.c.bf16 %v3471_v20, %v3470_v1 }
  0xc2   : > { %14547 = vmatmul.mubr.msk.bf16.gmra.mxu0 %vm442_vm1, %v16238_v29 }
  0xc3   : > { %14570 = vmatprep.mubr.msk.bf16.mxu0 %vm442_vm1, %v16123_v0  ;;  %v3461_v0 = vld [vmem:[#allocation2 + $0xfa] sm:$0xff] }
  0xc4   : > { %14557 = vmatmul.mubr.msk.bf16.gmra.mxu1 %vm442_vm1, %v16241_v30  ;;  %v16290_v4 = vpack.c.bf16 %v3461_v0, %v3460_v63 }
  0xc5   : > { %14560 = vmatprep.mubr.msk.bf16.mxu1 %vm442_vm1, %v16243_v32 }
  0xca   : > { %14571 = vmatmul.mubr.msk.bf16.vlgmr.msra.gmra.mxu0 %vm442_vm1, %v16192_v43 }
  0xcb   : > { %14574 = vmatprep.mubr.msk.bf16.mxu0 %vm442_vm1, %v16253_v41  ;;  %14605 = vmatpush3.bf16.msra.mxu0 %v3672_v44 }
  0xcc   : > { %14561 = vmatmul.mubr.msk.bf16.gmra.mxu1 %vm442_vm1, %v16255_v42  ;;  %15469 = vmatprep.subr.msk.bf16.mxu0 %vm758_vm0, %v13308_v46 }
  0xcd   : > { %14564 = vmatprep.mubr.msk.bf16.mxu1 %vm442_vm1, %v16258_v45 }
  0xd2   : > { %14575 = vmatmul.mubr.msk.bf16.gmra.mxu0 %vm442_vm1, %v16272_v57 }
  0xd3   : > { %14578 = vmatprep.mubr.msk.bf16.mxu0 %vm442_vm1, %v16274_v58 }
  0xd4   : > { %14565 = vmatmul.mubr.msk.bf16.gmra.mxu1 %vm442_vm1, %v16276_v59 }
  0xd5   : > { %14588 = vmatprep.mubr.msk.bf16.mxu1 %vm442_vm1, %v16170_v56  ;;  %v16307_v56 = vpack.c.bf16 %v3463_v12, %v3462_v11 }
  0xda   : > { %14579 = vmatmul.mubr.msk.bf16.gmra.mxu0 %vm442_vm1, %v16286_v31 }
  0xdb   : > { %14582 = vmatprep.mubr.msk.bf16.mxu0 %vm442_vm1, %v16288_v3 }
  0xdc   : > { %14589 = vmatmul.mubr.msk.bf16.vlgmr.msra.gmra.mxu1 %vm442_vm1, %v16238_v29 }
  0xdd   : > { %14623 = vmatpush3.bf16.msra.mxu1 %v3837_v5  ;;  %14592 = vmatprep.mubr.msk.bf16.mxu1 %vm442_vm1, %v16290_v4 }
  0xde   : > { %15470 = vmatprep.subr.msk.bf16.mxu1 %vm758_vm0, %v13317_v10 }
  0xe2   : > { %14583 = vmatmul.mubr.msk.bf16.gmra.mxu0 %vm442_vm1, %v16304_v13 }
  0xe3   : > { %14606 = vmatprep.mubr.msk.bf16.mxu0 %vm442_vm1, %v16192_v43  ;;  %v16327_v43 = vld [vmem:[%s19911_s1 + $0xe] sm:$0x3] }
  0xe4   : > { %14593 = vmatmul.mubr.msk.bf16.gmra.mxu1 %vm442_vm1, %v16307_v56  ;;  %v4333_v14 = vsel %vm758_vm0, %v16327_v43, 0 }
  0xe5   : > { %14596 = vmatprep.mubr.msk.bf16.mxu1 %vm442_vm1, %v16309_v6 }
  0xea   : > { %14607 = vmatmul.mubr.msk.bf16.vlgmr.msra.gmra.mxu0 %vm442_vm1, %v16253_v41 }
  0xeb   : > { %14610 = vmatprep.mubr.msk.bf16.mxu0 %vm442_vm1, %v16272_v57  ;;  %14641 = vmatpush3.bf16.msra.mxu0 %v4002_v54 }
  0xec   : > { %14597 = vmatmul.mubr.msk.bf16.gmra.mxu1 %vm442_vm1, %v16319_v51  ;;  %15471 = vmatprep.subr.msk.bf16.mxu0 %vm758_vm0, %v16327_v43  ;;  %v3801_v43 = vld [vmem:[#allocation2 + $0x181] sm:$0xff] }
  0xed   : > { %14600 = vmatprep.mubr.msk.bf16.mxu1 %vm442_vm1, %v16322_v19 }
  0xf2   : > { %v14392_v39 = vpop.f32.mrf.mxu0  ;;  %14611 = vmatmul.mubr.msk.bf16.gmra.mxu0 %vm442_vm1, %v16274_v58 }
  0xf3   : > { %14614 = vmatprep.mubr.msk.bf16.mxu0 %vm442_vm1, %v16286_v31 }
  0xf4   : > { %v16365_v22 = vpop.f32.mrf.mxu1  ;;  %14601 = vmatmul.mubr.msk.bf16.gmra.mxu1 %vm442_vm1, %v16359_v21  ;;  %v796_v24 = vpop.f32.mrf.mxu0 }
  0xf5   : > { %14624 = vmatprep.mubr.msk.bf16.mxu1 %vm442_vm1, %v16215_v35  ;;  %v16385_v35 = vld [vmem:[%s19911_s1 + $0x10] sm:$0x3] }
  0xf6   : > { %v16371_v25 = vpop.f32.mrf.mxu1  ;;  %v14393_v26 = vpop.f32.mrf.mxu0 }
  0xf8   : > { %v16373_v27 = vpop.f32.mrf.mxu1  ;;  %v799_v28 = vpop.f32.mrf.mxu0 }
  0xfa   : > { %v16375_v33 = vpop.f32.mrf.mxu1  ;;  %v14396_v36 = vpop.f32.mrf.mxu0  ;;  %14615 = vmatmul.mubr.msk.bf16.gmra.mxu0 %vm442_vm1, %v16288_v3 }
  0xfb   : > { %14618 = vmatprep.mubr.msk.bf16.mxu0 %vm442_vm1, %v16304_v13 }
  0xfc   : > { %v14410_v40 = vpop.f32.mrf.mxu1  ;;  %14625 = vmatmul.mubr.msk.bf16.vlgmr.msra.gmra.mxu1 %vm442_vm1, %v16225_v23  ;;  %v812_v44 = vpop.f32.mrf.mxu0 }
  0xfd   : > { %v929_v46 = vadd.f32 %v14410_v40, %v14392_v39  ;;  %14659 = vmatpush3.bf16.msra.mxu1 %v4168_v34  ;;  %14628 = vmatprep.mubr.msk.bf16.mxu1 %vm442_vm1, %v16241_v30  ;;  %v3802_v39 = vld [vmem:[#allocation2 + $0x189] sm:$0xff] }
  0xfe   : > { %v920_v47 = vpop.f32.mrf.mxu1  ;;  %v14397_v48 = vpop.f32.mrf.mxu0  ;;  %15472 = vmatprep.subr.msk.bf16.mxu1 %vm758_vm0, %v16385_v35  ;;  %v16415_v38 = vpack.c.bf16 %v3802_v39, %v3801_v43 }
  0xff   : > { %v921_v50 = vadd.f32 %v920_v47, %v796_v24 }
 0x100   : > { %v14411_v52 = vpop.f32.mrf.mxu1  ;;  %v815_v53 = vpop.f32.mrf.mxu0 }
 0x101   : > { %v932_v61 = vadd.f32 %v14411_v52, %v14393_v26 }
 0x102   : > { %v923_v55 = vpop.f32.mrf.mxu1  ;;  %v14400_v60 = vpop.f32.mrf.mxu0  ;;  %14619 = vmatmul.mubr.msk.bf16.gmra.mxu0 %vm442_vm1, %v16391_v49 }
 0x103   : > { %v924_v62 = vadd.f32 %v923_v55, %v799_v28  ;;  %14642 = vmatprep.mubr.msk.bf16.mxu0 %vm442_vm1, %v16238_v29 }
 0x104   : > { %v14414_v63 = vpop.f32.mrf.mxu1  ;;  %14629 = vmatmul.mubr.msk.bf16.gmra.mxu1 %vm442_vm1, %v16243_v32  ;;  %v828_v0 = vpop.f32.mrf.mxu0 }
 0x105   : > { %v945_v5 = vadd.f32 %v14414_v63, %v14396_v36  ;;  %14632 = vmatprep.mubr.msk.bf16.mxu1 %vm442_vm1, %v16255_v42 }
 0x106   : > { %v936_v8 = vpop.f32.mrf.mxu1  ;;  %v14401_v9 = vpop.f32.mrf.mxu0 }
 0x107   : > { %v937_v10 = vadd.f32 %v936_v8, %v812_v44 }
 0x108   : > { %v14415_v11 = vpop.f32.mrf.mxu1  ;;  %v831_v12 = vpop.f32.mrf.mxu0 }
 0x109   : > { %v948_v15 = vadd.f32 %v14415_v11, %v14397_v48 }
 0x10a   : > { %v939_v7 = vpop.f32.mrf.mxu1  ;;  %v14428_v29 = vpop.f32.mrf.mxu0  ;;  %14643 = vmatmul.mubr.msk.bf16.vlgmr.msra.gmra.mxu0 %vm442_vm1, %v16290_v4 }
 0x10b   : > { %v940_v16 = vadd.f32 %v939_v7, %v815_v53  ;;  %v1135_v17 = vadd.f32 %v14428_v29, %v929_v46  ;;  %14646 = vmatprep.mubr.msk.bf16.mxu0 %vm442_vm1, %v16307_v56  ;;  %14677 = vmatpush3.bf16.msra.mxu0 %v4333_v14 }
 0x10c   : > { %v14418_v18 = vpop.f32.mrf.mxu1  ;;  %14633 = vmatmul.mubr.msk.bf16.gmra.mxu1 %vm442_vm1, %v16258_v45  ;;  %v1070_v54 = vpop.f32.mrf.mxu0 }
 0x10d   : > { %v961_v1 = vadd.f32 %v14418_v18, %v14400_v60  ;;  %v16411_v20 = vadd.f32 %v1070_v54, %v921_v50  ;;  %14636 = vmatprep.mubr.msk.bf16.mxu1 %vm442_vm1, %v16276_v59 }
 0x10e   : > { %v952_v24 = vpop.f32.mrf.mxu1  ;;  %v14429_v26 = vpop.f32.mrf.mxu0 }
 0x10f   : > { %v953_v28 = vadd.f32 %v952_v24, %v828_v0  ;;  %v1136_v36 = vadd.f32 %v14429_v26, %v932_v61 }
 0x110   : > { %v14419_v34 = vpop.f32.mrf.mxu1  ;;  %v1073_v37 = vpop.f32.mrf.mxu0 }
 0x111   : > { %v964_v40 = vadd.f32 %v14419_v34, %v14401_v9  ;;  %v16417_v44 = vadd.f32 %v1073_v37, %v924_v62 }
 0x112   : > { %v955_v46 = vpop.f32.mrf.mxu1  ;;  %v14432_v47 = vpop.f32.mrf.mxu0  ;;  %14647 = vmatmul.mubr.msk.bf16.gmra.mxu0 %vm442_vm1, %v16309_v6 }
 0x113   : > { %v956_v48 = vadd.f32 %v955_v46, %v831_v12  ;;  %v1139_v50 = vadd.f32 %v14432_v47, %v945_v5  ;;  %14650 = vmatprep.mubr.msk.bf16.mxu0 %vm442_vm1, %v16319_v51 }
 0x114   : > { %v14422_v52 = vpop.f32.mrf.mxu1  ;;  %14637 = vmatmul.mubr.msk.bf16.gmra.mxu1 %vm442_vm1, %v16415_v38  ;;  %v1086_v53 = vpop.f32.mrf.mxu0 }
 0x115   : > { %v977_v61 = vadd.f32 %v14422_v52, %v16365_v22  ;;  %v1137_v55 = vadd.f32 %v1086_v53, %v937_v10  ;;  %14660 = vmatprep.mubr.msk.bf16.mxu1 %vm442_vm1, %v16253_v41  ;;  %v4498_v22 = vsel %vm758_vm0, %v16385_v35, 0 }
 0x116   : > { %v968_v60 = vpop.f32.mrf.mxu1  ;;  %v14433_v62 = vpop.f32.mrf.mxu0 }
 0x117   : > { %v969_v63 = vadd.f32 %v968_v60, %v16371_v25  ;;  %v1140_v0 = vadd.f32 %v14433_v62, %v948_v15  ;;  %v3966_v25 = vld [vmem:[#allocation2 + $0x182] sm:$0xff]  ;;  %v3967_v15 = vld [vmem:[#allocation2 + $0x18a] sm:$0xff]  ;;  %v4132_v62 = vld [vmem:[#allocation2 + $0x198] sm:$0xff] }
 0x118   : > { %v14423_v5 = vpop.f32.mrf.mxu1  ;;  %v1089_v8 = vpop.f32.mrf.mxu0  ;;  %v16445_v18 = vpack.c.bf16 %v3967_v15, %v3966_v25 }
 0x119   : > { %v980_v9 = vadd.f32 %v14423_v5, %v16373_v27  ;;  %v1138_v11 = vadd.f32 %v1089_v8, %v940_v16 }
 0x11a   : > { %v971_v12 = vpop.f32.mrf.mxu1  ;;  %v14436_v14 = vpop.f32.mrf.mxu0  ;;  %14651 = vmatmul.mubr.msk.bf16.gmra.mxu0 %vm442_vm1, %v16322_v19 }
 0x11b   : > { %v972_v41 = vadd.f32 %v971_v12, %v16375_v33  ;;  %v1143_v10 = vadd.f32 %v14436_v14, %v961_v1  ;;  %14654 = vmatprep.mubr.msk.bf16.mxu0 %vm442_vm1, %v16359_v21 }
 0x11c   : > { %v14446_v7 = vpop.f32.mrf.mxu1  ;;  %14661 = vmatmul.mubr.msk.bf16.vlgmr.msra.gmra.mxu1 %vm442_vm1, %v16272_v57  ;;  %v1102_v27 = vpop.f32.mrf.mxu0 }
 0x11d   : > { %v16439_v29 = vadd.f32 %v14446_v7, %v1135_v17  ;;  %14695 = vmatpush3.bf16.msra.mxu1 %v4498_v22  ;;  %v1141_v16 = vadd.f32 %v1102_v27, %v953_v28  ;;  %14664 = vmatprep.mubr.msk.bf16.mxu1 %vm442_vm1, %v16274_v58 }
 0x11e   : > { %v16443_v35 = vpop.f32.mrf.mxu1  ;;  %v14437_v33 = vpop.f32.mrf.mxu0 }
 0x11f   : > { %v1144_v54 = vadd.f32 %v14437_v33, %v964_v40 }
 0x120   : > { %v14447_v1 = vpop.f32.mrf.mxu1  ;;  %v1105_v43 = vpop.f32.mrf.mxu0 }
 0x121   : > { %v16447_v39 = vadd.f32 %v14447_v1, %v1136_v36  ;;  %v1142_v24 = vadd.f32 %v1105_v43, %v956_v48 }
 0x122   : > { %v16449_v57 = vpop.f32.mrf.mxu1  ;;  %v14440_v17 = vpop.f32.mrf.mxu0  ;;  %14655 = vmatmul.mubr.msk.bf16.gmra.mxu0 %vm442_vm1, %v16445_v18 }
 0x123   : > { %v1147_v26 = vadd.f32 %v14440_v17, %v977_v61  ;;  %14678 = vmatprep.mubr.msk.bf16.mxu0 %vm442_vm1, %v16225_v23  ;;  %v4298_v17 = vld [vmem:[#allocation2 + $0x1a1] sm:$0xff] }
 0x124   : > { %v14450_v58 = vpop.f32.mrf.mxu1  ;;  %14665 = vmatmul.mubr.msk.bf16.gmra.mxu1 %vm442_vm1, %v16286_v31  ;;  %v1118_v28 = vpop.f32.mrf.mxu0 }
 0x125   : > { %v1305_v34 = vadd.f32 %v14450_v58, %v1139_v50  ;;  %v1145_v37 = vadd.f32 %v1118_v28, %v969_v63  ;;  %14668 = vmatprep.mubr.msk.bf16.mxu1 %vm442_vm1, %v16288_v3  ;;  %v4133_v63 = vld [vmem:[#allocation2 + $0x1a0] sm:$0xff] }
 0x126   : > { %v1252_v36 = vpop.f32.mrf.mxu1  ;;  %v14441_v40 = vpop.f32.mrf.mxu0 }
 0x127   : > { %v1303_v46 = vadd.f32 %v1252_v36, %v1137_v55  ;;  %v1148_v47 = vadd.f32 %v14441_v40, %v980_v9 }
 0x128   : > { %v14451_v48 = vpop.f32.mrf.mxu1  ;;  %v1121_v52 = vpop.f32.mrf.mxu0 }
 0x129   : > { %v1306_v53 = vadd.f32 %v14451_v48, %v1140_v0  ;;  %v1146_v61 = vadd.f32 %v1121_v52, %v972_v41 }
 0x12a   : > { %v1255_v60 = vpop.f32.mrf.mxu1  ;;  %v16459_v23 = vpop.f32.mrf.mxu0  ;;  %14679 = vmatmul.mubr.msk.bf16.vlgmr.msra.gmra.mxu0 %vm442_vm1, %v16241_v30 }
 0x12b   : > { %v16463_v31 = vadd.f32 %v1255_v60, %v1138_v11  ;;  %14682 = vmatprep.mubr.msk.bf16.mxu0 %vm442_vm1, %v16243_v32  ;;  %v4141_v32 = vpack.c.bf16 %v4133_v63, %v4132_v62 }
 0x12c   : > { %v14454_v3 = vpop.f32.mrf.mxu1  ;;  %14669 = vmatmul.mubr.msk.bf16.gmra.mxu1 %vm442_vm1, %v16304_v13  ;;  %v16469_v50 = vpop.f32.mrf.mxu0 }
 0x12d   : > { %v1309_v55 = vadd.f32 %v14454_v3, %v1143_v10  ;;  %14672 = vmatprep.mubr.msk.bf16.mxu1 %vm442_vm1, %v16391_v49 }
 0x12e   : > { %v1268_v0 = vpop.f32.mrf.mxu1  ;;  %v16473_v5 = vpop.f32.mrf.mxu0 }
 0x12f   : > { %v1307_v30 = vadd.f32 %v1268_v0, %v1141_v16 }
 0x130   : > { %v14455_v8 = vpop.f32.mrf.mxu1  ;;  %v16475_v9 = vpop.f32.mrf.mxu0 }
 0x131   : > { %v1310_v11 = vadd.f32 %v14455_v8, %v1144_v54 }
 0x132   : > { %v1271_v12 = vpop.f32.mrf.mxu1  ;;  %v14468_v14 = vpop.f32.mrf.mxu0  ;;  %14683 = vmatmul.mubr.msk.bf16.gmra.mxu0 %vm442_vm1, %v16255_v42 }
 0x133   : > { %v16479_v13 = vadd.f32 %v1271_v12, %v1142_v24  ;;  %v1471_v22 = vadd.f32 %v14468_v14, %v1305_v34  ;;  %14686 = vmatprep.mubr.msk.bf16.mxu0 %vm442_vm1, %v16258_v45  ;;  %v4463_v12 = vld [vmem:[#allocation2 + $0x1a2] sm:$0xff] }
 0x134   : > { %v14458_v49 = vpop.f32.mrf.mxu1  ;;  %14673 = vmatmul.mubr.msk.bf16.gmra.mxu1 %vm442_vm1, %v4141_v32  ;;  %v1418_v41 = vpop.f32.mrf.mxu0 }
 0x135   : > { %v1313_v10 = vadd.f32 %v14458_v49, %v1147_v26  ;;  %v1469_v25 = vadd.f32 %v1418_v41, %v1303_v46  ;;  %14696 = vmatprep.mubr.msk.bf16.mxu1 %vm442_vm1, %v16290_v4  ;;  %v4297_v4 = vld [vmem:[#allocation2 + $0x199] sm:$0xff] }
 0x136   : > { %v1284_v15 = vpop.f32.mrf.mxu1  ;;  %v14469_v7 = vpop.f32.mrf.mxu0 }
 0x137   : > { %v1311_v27 = vadd.f32 %v1284_v15, %v1145_v37  ;;  %v1472_v16 = vadd.f32 %v14469_v7, %v1306_v53  ;;  %v4306_v37 = vpack.c.bf16 %v4298_v17, %v4297_v4 }
 0x138   : > { %v14459_v42 = vpop.f32.mrf.mxu1  ;;  %v16486_v33 = vpop.f32.mrf.mxu0 }
 0x139   : > { %v1314_v54 = vadd.f32 %v14459_v42, %v1148_v47 }
 0x13a   : > { %v1287_v1 = vpop.f32.mrf.mxu1  ;;  %v14472_v43 = vpop.f32.mrf.mxu0  ;;  %14687 = vmatmul.mubr.msk.bf16.gmra.mxu0 %vm442_vm1, %v16276_v59 }
 0x13b   : > { %v16490_v45 = vadd.f32 %v1287_v1, %v1146_v61  ;;  %v1475_v24 = vadd.f32 %v14472_v43, %v1309_v55  ;;  %14690 = vmatprep.mubr.msk.bf16.mxu0 %vm442_vm1, %v16415_v38 }
 0x13c   : > { %v16494_v26 = vpop.f32.mrf.mxu1  ;;  %14697 = vmatmul.mubr.msk.bf16.vlgmr.msra.gmra.mxu1 %vm442_vm1, %v16307_v56  ;;  %v1434_v58 = vpop.f32.mrf.mxu0 }
 0x13d   : > { %v1473_v28 = vadd.f32 %v1434_v58, %v1307_v30  ;;  %14700 = vmatprep.mubr.msk.bf16.mxu1 %vm442_vm1, %v16309_v6 }
 0x13e   : > { %v16500_v34 = vpop.f32.mrf.mxu1  ;;  %v14473_v59 = vpop.f32.mrf.mxu0 }
 0x13f   : > { %v1476_v36 = vadd.f32 %v14473_v59, %v1310_v11 }
 0x140   : > { %v16502_v40 = vpop.f32.mrf.mxu1  ;;  %v16504_v38 = vpop.f32.mrf.mxu0 }
 0x142   : > { %v16506_v46 = vpop.f32.mrf.mxu1  ;;  %v14476_v47 = vpop.f32.mrf.mxu0  ;;  %14691 = vmatmul.mubr.msk.bf16.gmra.mxu0 %vm442_vm1, %v4306_v37 }
 0x143   : > { %v1479_v56 = vadd.f32 %v14476_v47, %v1313_v10 }
 0x144   : > { %v14486_v48 = vpop.f32.mrf.mxu1  ;;  %14701 = vmatmul.mubr.msk.bf16.gmra.mxu1 %vm442_vm1, %v16319_v51  ;;  %v1450_v6 = vpop.f32.mrf.mxu0 }
 0x145   : > { %v1637_v52 = vadd.f32 %v14486_v48, %v1471_v22  ;;  %v1477_v53 = vadd.f32 %v1450_v6, %v1311_v27  ;;  %14704 = vmatprep.mubr.msk.bf16.mxu1 %vm442_vm1, %v16322_v19  ;;  %v4462_v19 = vld [vmem:[#allocation2 + $0x19a] sm:$0xff] }
 0x146   : > { %v1584_v61 = vpop.f32.mrf.mxu1  ;;  %v14477_v60 = vpop.f32.mrf.mxu0 }
 0x147   : > { %v1635_v3 = vadd.f32 %v1584_v61, %v1469_v25  ;;  %v1480_v55 = vadd.f32 %v14477_v60, %v1314_v54  ;;  %v4471_v25 = vpack.c.bf16 %v4463_v12, %v4462_v19  ;;  %v15704_v12 = vmov 1983009808  }
 0x148   : > { %v14487_v62 = vpop.f32.mrf.mxu1  ;;  %v16513_v63 = vpop.f32.mrf.mxu0 }
 0x149   : > { %v1638_v0 = vadd.f32 %v14487_v62, %v1472_v16 }
 0x14a   : > { %v16515_v30 = vpop.f32.mrf.mxu1  ;;  %v14500_v8 = vpop.f32.mrf.mxu0 }
 0x14c   : > { %v14490_v32 = vpop.f32.mrf.mxu1  ;;  %14705 = vmatmul.mubr.msk.bf16.gmra.mxu1 %vm442_vm1, %v16359_v21  ;;  %v16519_v51 = vpop.f32.mrf.mxu0 }
 0x14d   : > { %v1641_v11 = vadd.f32 %v14490_v32, %v1475_v24  ;;  %14708 = vmatprep.mubr.msk.bf16.mxu1 %vm442_vm1, %v16445_v18 }
 0x14e   : > { %v1600_v14 = vpop.f32.mrf.mxu1  ;;  %v16523_v22 = vpop.f32.mrf.mxu0 }
 0x14f   : > { %v1639_v49 = vadd.f32 %v1600_v14, %v1473_v28  ;;  %v2203_v14 = vunpack.c.l.s4 %v15704_v12 }
 0x150   : > { %v14491_v41 = vpop.f32.mrf.mxu1  ;;  %v16525_v10 = vpop.f32.mrf.mxu0 }
 0x151   : > { %v1642_v15 = vadd.f32 %v14491_v41, %v1476_v36 }
 0x152   : > { %v16527_v7 = vpop.f32.mrf.mxu1  ;;  %v14504_v21 = vpop.f32.mrf.mxu0 }
 0x153   : > { %v16529_v27 = vadd.f32 %v14504_v21, %v1637_v52  ;;  %v1300_v21 = vadd.f32 %v16449_v57, %v16417_v44 }
 0x154   : > { %v14494_v16 = vpop.f32.mrf.mxu1  ;;  %14709 = vmatmul.mubr.msk.bf16.gmra.mxu1 %vm442_vm1, %v4471_v25  ;;  %v1751_v18 = vpop.f32.mrf.mxu0  ;;  %vm516_vm1 = vcmask 521216  }
 0x155   : > { %v1645_v42 = vadd.f32 %v14494_v16, %v1479_v56  ;;  %v16532_v54 = vadd.f32 %v1751_v18, %v1635_v3 }
 0x156   : > { %v1616_v1 = vpop.f32.mrf.mxu1  ;;  %v14505_v43 = vpop.f32.mrf.mxu0 }
 0x157   : > { %v1643_v24 = vadd.f32 %v1616_v1, %v1477_v53  ;;  %v16534_v4 = vadd.f32 %v14505_v43, %v1638_v0  ;;  %v1299_v0 = vadd.f32 %v16443_v35, %v16411_v20  ;;  %v2204_v1 = vunpack.c.0.s8 %v2203_v14 }
 0x158   : > { %v14495_v17 = vpop.f32.mrf.mxu1  ;;  %v1754_v58 = vpop.f32.mrf.mxu0 }
 0x159   : > { %v1646_v28 = vadd.f32 %v14495_v17, %v1480_v55  ;;  %v1467_v55 = vadd.f32 %v16459_v23, %v16439_v29  ;;  %v1468_v29 = vadd.f32 %v16473_v5, %v16447_v39  ;;  %v1470_v39 = vadd.f32 %v16486_v33, %v16463_v31  ;;  %v16572_v17 = vld [vmem:[%s19917_s7] ss:$0 sm:$0xff] }
 0x15a   : > { %v1619_v59 = vpop.f32.mrf.mxu1  ;;  %v14508_v37 = vpop.f32.mrf.mxu0  ;;  %v1474_v5 = vadd.f32 %v16504_v38, %v16479_v13 }
 0x15b   : > { %v16536_v36 = vadd.f32 %v14508_v37, %v1641_v11  ;;  %v1633_v41 = vadd.f32 %v16494_v26, %v1467_v55  ;;  %v1634_v43 = vadd.f32 %v16502_v40, %v1468_v29  ;;  %v1478_v37 = vadd.f32 %v16513_v63, %v16490_v45 }
 0x15c   : > { %v14518_v47 = vpop.f32.mrf.mxu1  ;;  %v1767_v48 = vpop.f32.mrf.mxu0  ;;  %v1636_v31 = vadd.f32 %v16515_v30, %v1470_v39  ;;  %v1640_v33 = vadd.f32 %v16527_v7, %v1474_v5 }
 0x15d   : > { %v16538_v6 = vadd.f32 %v1767_v48, %v1639_v49  ;;  %v1465_v49 = vadd.f32 %v16469_v50, %v1299_v0  ;;  %v1800_v16 = vadd.f32 %v14500_v8, %v1633_v41  ;;  %v1466_v50 = vadd.f32 %v16475_v9, %v1300_v21 }
 0x15e   : > { %v1901_v52 = vpop.f32.mrf.mxu1  ;;  %v14509_v56 = vpop.f32.mrf.mxu0  ;;  %v1801_v40 = vadd.f32 %v16523_v22, %v1634_v43 }
 0x15f   : > { %v16540_v61 = vadd.f32 %v14509_v56, %v1642_v15  ;;  %v2205_v15 = vlaneseq  ;;  %v1631_v23 = vadd.f32 %v16500_v34, %v1465_v49  ;;  %v1966_v44 = vadd.f32 %v14518_v47, %v1800_v16 }
 0x160   : > { %v14519_v60 = vpop.f32.mrf.mxu1  ;;  %v1770_v3 = vpop.f32.mrf.mxu0  ;;  %v1632_v34 = vadd.f32 %v16506_v46, %v1466_v50 }
 0x161   : > { %v16562_v57 = vshrl.u32 %v2205_v15, 7  ;;  %v1967_v47 = vadd.f32 %v14519_v60, %v1801_v40  ;;  %v16584_v0 = vadd.f32 %v1770_v3, %v1640_v33 }
 0x162   : > { %v1904_v53 = vpop.f32.mrf.mxu1  ;;  %v14512_v62 = vpop.f32.mrf.mxu0  ;;  %v1799_v13 = vadd.f32 %v16525_v10, %v1632_v34 }
 0x163   : > { %v16546_v32 = vadd.f32 %v14512_v62, %v1645_v42  ;;  %19932 = vst [vmem:[#allocation8_spill] sm:$0xff] %v16562_v57  ;;  %v16582_v56 = vsub.s32 %v2204_v1, %v16562_v57  ;;  %v1644_v62 = vadd.f32 %v1619_v59, %v1478_v37 }
 0x164   : > { %v14522_v11 = vpop.f32.mrf.mxu1  ;;  %v1783_v19 = vpop.f32.mrf.mxu0  ;;  %v1965_v45 = vadd.f32 %v1904_v53, %v1799_v13 }
 0x165   : > { %v16550_v25 = vadd.f32 %v1783_v19, %v1643_v24  ;;  %v1798_v24 = vadd.f32 %v16519_v51, %v1631_v23  ;;  %19933 = vst [vmem:[#allocation9_spill] sm:$0xff] %v16582_v56  ;;  %v16587_v10 = vadd.f32 %v14522_v11, %v16529_v27 }
 0x166   : > { %v1917_v20 = vpop.f32.mrf.mxu1  ;;  %v14513_v35 = vpop.f32.mrf.mxu0 }
 0x167   : > { %v16557_v18 = vadd.f32 %v14513_v35, %v1646_v28  ;;  %v1964_v51 = vadd.f32 %v1901_v52, %v1798_v24  ;;  %v1803_v52 = vadd.f32 %v1754_v58, %v1636_v31  ;;  %v16591_v19 = vadd.f32 %v1917_v20, %v16532_v54 }
 0x168   : > { %v14523_v42 = vpop.f32.mrf.mxu1  ;;  %v1786_v26 = vpop.f32.mrf.mxu0 }
 0x169   : > { %v16594_v12 = vadd.f32 %v14523_v42, %v16534_v4  ;;  %v16596_v58 = vadd.f32 %v1786_v26, %v1644_v62 }
 0x16a   : > { %v1920_v8 = vpop.f32.mrf.mxu1  ;;  %v14536_v9 = vpop.f32.mrf.mxu0 }
 0x16b   : > { %v2132_v28 = vadd.f32 %v14536_v9, %v1966_v44  ;;  %v16598_v59 = vadd.f32 %v1920_v8, %v1803_v52 }
 0x16c   : > { %v14526_v38 = vpop.f32.mrf.mxu1  ;;  %v2067_v46 = vpop.f32.mrf.mxu0 }
 0x16d   : > { %v2155_v48 = vadd.f32 %v16572_v17, %v2132_v28  ;;  %v2130_v22 = vadd.f32 %v2067_v46, %v1964_v51  ;;  %v16603_v41 = vadd.f32 %v14526_v38, %v16536_v36 }
 0x16e   : > { %v1933_v63 = vpop.f32.mrf.mxu1  ;;  %v14537_v30 = vpop.f32.mrf.mxu0 }
 0x16f   : > { %v2171_v7 = vmax.f32 %v2155_v48, 0.0  ;;  %v2153_v55 = vadd.f32 %v16572_v17, %v2130_v22  ;;  %v2133_v60 = vadd.f32 %v14537_v30, %v1967_v47  ;;  %v16606_v54 = vadd.f32 %v1933_v63, %v16538_v6 }
 0x170   : > { %v14527_v3 = vpop.f32.mrf.mxu1  ;;  %v2070_v53 = vpop.f32.mrf.mxu0 }
 0x171   : > { %v2235_v14 = vcombine.high %v2171_v7, %v2171_v7  ;;  %v2242_v27 = vrot.slane %v2171_v7, %v16582_v56  ;;  %v2169_v11 = vmax.f32 %v2153_v55, 0.0  ;;  %v2156_v49 = vadd.f32 %v16572_v17, %v2133_v60 }
 0x172   : > { %v16609_v4 = vadd.f32 %v14527_v3, %v16540_v61  ;;  %v2131_v15 = vadd.f32 %v2070_v53, %v1965_v45  ;;  %v16611_v21 = vpop.f32.mrf.mxu1  ;;  %v16613_v20 = vpop.f32.mrf.mxu0 }
 0x173   : > { %v2249_v35 = vrot.slane %v2235_v14, %v16582_v56  ;;  %v2250_v29 = vcombine.high %v2242_v27, %v2242_v27  ;;  %v2593_v23 = vsel %vm490_vm5, %v2242_v27, -inf  ;;  %v2201_v16 = vcombine.high %v2169_v11, %v2169_v11 }
 0x174   : > { %v2594_v50 = vrot.slane %v2593_v23, 4  ;;  %v2208_v36 = vrot.slane %v2169_v11, %v16582_v56  ;;  %v16618_v42 = vmax.f32 %v2156_v49, 0.0  ;;  %v16621_v6 = vadd.f32 %v16572_v17, %v2131_v15  ;;  %v16623_v61 = vpop.f32.mrf.mxu1  ;;  %v16625_v26 = vpop.f32.mrf.mxu0 }
 0x175   : > { %v2251_v1 = vcombine.high %v2249_v35, %v2249_v35  ;;  %v2600_v43 = vsel %vm490_vm5, %v2250_v29, -inf  ;;  %v2607_v24 = vsel %vm490_vm5, %v2249_v35, -inf  ;;  %v2215_v44 = vrot.slane %v2201_v16, %v16582_v56 }
 0x176   : > { %v2595_v39 = vmax.f32 %v2593_v23, %v2594_v50  ;;  %v2601_v5 = vrot.slane %v2600_v43, 4  ;;  %v2608_v34 = vrot.slane %v2607_v24, 4  ;;  %v2216_v8 = vcombine.high %v2208_v36, %v2208_v36  ;;  %v16630_v9 = vpop.f32.mrf.mxu1  ;;  %v16632_v40 = vpop.f32.mrf.mxu0 }
 0x177   : > { %v2614_v51 = vsel %vm490_vm5, %v2251_v1, -inf  ;;  %v2217_v28 = vcombine.high %v2215_v44, %v2215_v44  ;;  %v2537_v37 = vsel %vm490_vm5, %v2208_v36, -inf  ;;  %v2551_v31 = vsel %vm490_vm5, %v2215_v44, -inf }
 0x178   : > { %v2596_v13 = vrot.slane %v2595_v39, 2  ;;  %v2602_v33 = vmax.f32 %v2600_v43, %v2601_v5  ;;  %v2609_v38 = vmax.f32 %v2607_v24, %v2608_v34  ;;  %v2615_v46 = vrot.slane %v2614_v51, 4  ;;  %v16637_v47 = vpop.f32.mrf.mxu1  ;;  %v16639_v48 = vpop.f32.mrf.mxu0 }
 0x179   : > { %v2538_v22 = vrot.slane %v2537_v37, 4  ;;  %v2544_v52 = vsel %vm490_vm5, %v2216_v8, -inf  ;;  %v2552_v62 = vrot.slane %v2551_v31, 4  ;;  %v2558_v45 = vsel %vm490_vm5, %v2217_v28, -inf }
 0x17a   : > { %v2597_v63 = vmax.f32 %v2595_v39, %v2596_v13  ;;  %v2603_v30 = vrot.slane %v2602_v33, 2  ;;  %v2610_v7 = vrot.slane %v2609_v38, 2  ;;  %v2616_v55 = vmax.f32 %v2614_v51, %v2615_v46  ;;  %v16643_v60 = vpop.f32.mrf.mxu1  ;;  %v16645_v3 = vpop.f32.mrf.mxu0 }
 0x17b   : > { %v2539_v53 = vmax.f32 %v2537_v37, %v2538_v22  ;;  %v2545_v14 = vrot.slane %v2544_v52, 4  ;;  %v2553_v27 = vmax.f32 %v2551_v31, %v2552_v62  ;;  %v2559_v11 = vrot.slane %v2558_v45, 4 }
 0x17c   : > { %v2598_v49 = vrot.slane %v2597_v63, 1  ;;  %v2604_v15 = vmax.f32 %v2602_v33, %v2603_v30  ;;  %v2611_v35 = vmax.f32 %v2609_v38, %v2610_v7  ;;  %v2617_v29 = vrot.slane %v2616_v55, 2  ;;  %v16647_v23 = vpop.f32.mrf.mxu1  ;;  %v16649_v16 = vpop.f32.mrf.mxu0 }
 0x17d   : > { %v2540_v50 = vrot.slane %v2539_v53, 2  ;;  %v2546_v36 = vmax.f32 %v2544_v52, %v2545_v14  ;;  %v2554_v1 = vrot.slane %v2553_v27, 2  ;;  %v2560_v43 = vmax.f32 %v2558_v45, %v2559_v11 }
 0x17e   : > { %v2599_v24 = vmax.f32 %v2597_v63, %v2598_v49  ;;  %v2605_v44 = vrot.slane %v2604_v15, 1  ;;  %v2612_v39 = vrot.slane %v2611_v35, 1  ;;  %v2618_v5 = vmax.f32 %v2616_v55, %v2617_v29  ;;  %v16651_v34 = vpop.f32.mrf.mxu1  ;;  %v16653_v8 = vpop.f32.mrf.mxu0 }
 0x17f   : > { %19934 = vst [vmem:[#allocation10_spill] sm:$0xff] %v16651_v34  ;;  %v2541_v51 = vmax.f32 %v2539_v53, %v2540_v50  ;;  %v2547_v28 = vrot.slane %v2546_v36, 2  ;;  %v2555_v37 = vmax.f32 %v2553_v27, %v2554_v1  ;;  %v2561_v31 = vrot.slane %v2560_v43, 2 }
 0x180   : > { %v2606_v13 = vmax.f32 %v2604_v15, %v2605_v44  ;;  %v2613_v33 = vmax.f32 %v2611_v35, %v2612_v39  ;;  %v2619_v38 = vrot.slane %v2618_v5, 1  ;;  %v2986_v46 = vsel %vm488_vm4, %v2599_v24, -inf  ;;  %v16656_v22 = vpop.f32.mrf.mxu1  ;;  %v16658_v52 = vpop.f32.mrf.mxu0 }
 0x181   : > { %19935 = vst [vmem:[#allocation11_spill] sm:$0xff] %v16656_v22  ;;  %v2542_v62 = vrot.slane %v2541_v51, 1  ;;  %v2548_v45 = vmax.f32 %v2546_v36, %v2547_v28  ;;  %v2556_v63 = vrot.slane %v2555_v37, 1  ;;  %v2562_v30 = vmax.f32 %v2560_v43, %v2561_v31 }
 0x182   : > { %v2620_v7 = vmax.f32 %v2618_v5, %v2619_v38  ;;  %v2989_v55 = vsel %vm488_vm4, %v2606_v13, -inf  ;;  %v2992_v53 = vsel %vm488_vm4, %v2613_v33, -inf  ;;  %v2252_v14 = vcombine.high %v16618_v42, %v16618_v42  ;;  %v16664_v27 = vpop.f32.mrf.mxu1  ;;  %v16666_v11 = vpop.f32.mrf.mxu0 }
 0x183   : > { %19936 = vst [vmem:[#allocation12_spill] sm:$0xff] %v16664_v27  ;;  %v2543_v49 = vmax.f32 %v2541_v51, %v2542_v62  ;;  %v2549_v15 = vrot.slane %v2548_v45, 1  ;;  %v2557_v35 = vmax.f32 %v2555_v37, %v2556_v63  ;;  %v2563_v29 = vrot.slane %v2562_v30, 1 }
 0x184   : > { %v16669_v50 = vsel %vm488_vm4, %v2620_v7, -inf  ;;  %v2259_v36 = vrot.slane %v16618_v42, %v16582_v56  ;;  %v2266_v1 = vrot.slane %v2252_v14, %v16582_v56  ;;  %v2170_v43 = vmax.f32 %v16621_v6, 0.0  ;;  %v16677_v51 = vpop.f32.mrf.mxu1  ;;  %v16679_v33 = vpop.f32.mrf.mxu0 }
 0x185   : > { %v2550_v24 = vmax.f32 %v2548_v45, %v2549_v15  ;;  %v2564_v44 = vmax.f32 %v2562_v30, %v2563_v29  ;;  %v2985_v39 = vsel %vm488_vm4, %v2543_v49, -inf  ;;  %v2991_v5 = vsel %vm488_vm4, %v2557_v35, -inf  ;;  %19937 = vst [vmem:[#allocation13_spill] sm:$0xff] %v16677_v51 }
 0x186   : > { %v2987_v28 = vmax.f32 %v2985_v39, %v2986_v46  ;;  %v2993_v37 = vmax.f32 %v2991_v5, %v2992_v53  ;;  %v2267_v31 = vcombine.high %v2259_v36, %v2259_v36  ;;  %v2268_v13 = vcombine.high %v2266_v1, %v2266_v1  ;;  %v16691_v15 = vpop.f32.mrf.mxu1 }
 0x187   : > { %v2988_v42 = vsel %vm488_vm4, %v2550_v24, -inf  ;;  %v16683_v38 = vsel %vm488_vm4, %v2564_v44, -inf  ;;  %v2621_v6 = vsel %vm490_vm5, %v2259_v36, -inf  ;;  %v2635_v62 = vsel %vm490_vm5, %v2266_v1, -inf  ;;  %19938 = vst [vmem:[#allocation14_spill] sm:$0xff] %v16691_v15 }
 0x188   : > { %v2990_v45 = vmax.f32 %v2988_v42, %v2989_v55  ;;  %v2622_v30 = vrot.slane %v2621_v6, 4  ;;  %v2628_v46 = vsel %vm490_vm5, %v2267_v31, -inf  ;;  %v2636_v53 = vrot.slane %v2635_v62, 4  ;;  %v16695_v55 = vpop.f32.mrf.mxu0 }
 0x189   : > { %v2629_v7 = vrot.slane %v2628_v46, 4  ;;  %v2642_v14 = vsel %vm490_vm5, %v2268_v13, -inf  ;;  %v2218_v49 = vcombine.high %v2170_v43, %v2170_v43  ;;  %v2225_v1 = vrot.slane %v2170_v43, %v16582_v56 }
 0x18a   : > { %v3114_v35 = vsel %vm3113_vm6, %v2990_v45, %v2987_v28  ;;  %v2623_v29 = vmax.f32 %v2621_v6, %v2622_v30  ;;  %v2643_v36 = vrot.slane %v2642_v14, 4  ;;  %v2637_v39 = vmax.f32 %v2635_v62, %v2636_v53  ;;  %v16700_v30 = vpop.f32.mrf.mxu1 }
 0x18b   : > { %v3116_v24 = vsel %vm3115_vm7, %v2993_v37, %v3114_v35  ;;  %v2630_v44 = vmax.f32 %v2628_v46, %v2629_v7  ;;  %v2232_v5 = vrot.slane %v2218_v49, %v16582_v56  ;;  %v2233_v42 = vcombine.high %v2225_v1, %v2225_v1  ;;  %19939 = vst [vmem:[#allocation15_spill] sm:$0xff] %v16700_v30  ;;  %v16704_v46 = vpop.f32.mrf.mxu0 }
 0x18c   : > { %v2624_v31 = vrot.slane %v2623_v29, 2  ;;  %v2644_v13 = vmax.f32 %v2642_v14, %v2643_v36  ;;  %v2565_v2 = vsel %vm490_vm5, %v2225_v1, -inf  ;;  %v2638_v28 = vrot.slane %v2637_v39, 2 }
 0x18d   : > { %v2631_v63 = vrot.slane %v2630_v44, 2  ;;  %v2234_v6 = vcombine.high %v2232_v5, %v2232_v5  ;;  %v2566_v45 = vrot.slane %v2565_v2, 4  ;;  %v2572_v37 = vsel %vm490_vm5, %v2233_v42, -inf }
 0x18e   : > { %v2625_v43 = vmax.f32 %v2623_v29, %v2624_v31  ;;  %v2645_v57 = vrot.slane %v2644_v13, 2  ;;  %v2579_v62 = vsel %vm490_vm5, %v2232_v5, -inf  ;;  %v2639_v53 = vmax.f32 %v2637_v39, %v2638_v28  ;;  %v16707_v31 = vpop.f32.mrf.mxu1 }
 0x18f   : > { %v2632_v7 = vmax.f32 %v2630_v44, %v2631_v63  ;;  %v2567_v14 = vmax.f32 %v2565_v2, %v2566_v45  ;;  %v2573_v49 = vrot.slane %v2572_v37, 4  ;;  %v2580_v1 = vrot.slane %v2579_v62, 4  ;;  %v16709_v63 = vpop.f32.mrf.mxu0 }
 0x190   : > { %v2626_v35 = vrot.slane %v2625_v43, 1  ;;  %v2646_v36 = vmax.f32 %v2644_v13, %v2645_v57  ;;  %v2586_v15 = vsel %vm490_vm5, %v2234_v6, -inf  ;;  %v2640_v27 = vrot.slane %v2639_v53, 1 }
 0x191   : > { %v2633_v51 = vrot.slane %v2632_v7, 1  ;;  %v2568_v30 = vrot.slane %v2567_v14, 2  ;;  %v2574_v29 = vmax.f32 %v2572_v37, %v2573_v49  ;;  %v2581_v22 = vmax.f32 %v2579_v62, %v2580_v1 }
 0x192   : > { %v2627_v42 = vmax.f32 %v2625_v43, %v2626_v35  ;;  %v2647_v5 = vrot.slane %v2646_v36, 1  ;;  %v2587_v34 = vrot.slane %v2586_v15, 4  ;;  %v2641_v44 = vmax.f32 %v2639_v53, %v2640_v27  ;;  %v16714_v35 = vpop.f32.mrf.mxu1 }
 0x193   : > { %v2634_v2 = vmax.f32 %v2632_v7, %v2633_v51  ;;  %v2569_v39 = vmax.f32 %v2567_v14, %v2568_v30  ;;  %v2575_v57 = vrot.slane %v2574_v29, 2  ;;  %v2582_v6 = vrot.slane %v2581_v22, 2 }
 0x194   : > { %v2648_v13 = vmax.f32 %v2646_v36, %v2647_v5  ;;  %v2998_v28 = vsel %vm488_vm4, %v2627_v42, -inf  ;;  %v2588_v45 = vmax.f32 %v2586_v15, %v2587_v34  ;;  %v3004_v43 = vsel %vm488_vm4, %v2641_v44, -inf  ;;  %v16721_v34 = vpop.f32.mrf.mxu0 }
 0x195   : > { %v3001_v37 = vsel %vm488_vm4, %v2634_v2, -inf  ;;  %v2570_v49 = vrot.slane %v2569_v39, 1  ;;  %v2576_v62 = vmax.f32 %v2574_v29, %v2575_v57  ;;  %v2583_v27 = vmax.f32 %v2581_v22, %v2582_v6 }
 0x196   : > { %v3007_v51 = vsel %vm488_vm4, %v2648_v13, -inf  ;;  %v2589_v30 = vrot.slane %v2588_v45, 2  ;;  %v19940_v7 = vmax.f32 %v16683_v38, %v16669_v50  ;;  %v16725_v36 = vadd.f32 %v16611_v21, %v16584_v0  ;;  %v16741_v21 = vpop.f32.mrf.mxu1 }
 0x197   : > { %v2571_v15 = vmax.f32 %v2569_v39, %v2570_v49  ;;  %v2577_v14 = vrot.slane %v2576_v62, 1  ;;  %v2136_v1 = vadd.f32 %v16613_v20, %v16587_v10  ;;  %v2584_v29 = vrot.slane %v2583_v27, 1 }
 0x198   : > { %v3118_v53 = vsel %vm3117_vm8, %v19940_v7, %v3116_v24  ;;  %v2590_v22 = vmax.f32 %v2588_v45, %v2589_v30  ;;  %v16731_v42 = vadd.f32 %v16623_v61, %v16546_v32  ;;  %v2134_v50 = vadd.f32 %v16625_v26, %v16591_v19  ;;  %v16744_v61 = vpop.f32.mrf.mxu0 }
 0x199   : > { %v2578_v38 = vmax.f32 %v2576_v62, %v2577_v14  ;;  %v2997_v24 = vsel %vm488_vm4, %v2571_v15, -inf  ;;  %v2159_v5 = vadd.f32 %v16572_v17, %v2136_v1  ;;  %v16739_v0 = vadd.f32 %v16630_v9, %v16550_v25  ;;  %v16753_v25 = vpop.f32.mrf.mxu1 }
 0x19a   : > { %v2585_v10 = vmax.f32 %v2583_v27, %v2584_v29  ;;  %v2591_v20 = vrot.slane %v2590_v22, 1  ;;  %v2999_v2 = vmax.f32 %v2997_v24, %v2998_v28  ;;  %v2157_v32 = vadd.f32 %v16572_v17, %v2134_v50  ;;  %19941 = vst [vmem:[#allocation16_spill] sm:$0xff] %v16753_v25  ;;  %v16757_v6 = vpop.f32.mrf.mxu0 }
 0x19b   : > { %v3000_v19 = vsel %vm488_vm4, %v2578_v38, -inf  ;;  %v2175_v26 = vmax.f32 %v2159_v5, 0.0  ;;  %v2137_v44 = vadd.f32 %v16632_v40, %v16594_v12  ;;  %v16751_v39 = vadd.f32 %v16637_v47, %v16557_v18  ;;  %v16760_v12 = vpop.f32.mrf.mxu1 }
 0x19c   : > { %v2592_v9 = vmax.f32 %v2590_v22, %v2591_v20  ;;  %v3002_v57 = vmax.f32 %v3000_v19, %v3001_v37  ;;  %v3003_v13 = vsel %vm488_vm4, %v2585_v10, -inf  ;;  %v3120_v28 = vsel %vm3119_vm9, %v2999_v2, %v3118_v53  ;;  %19942 = vst [vmem:[#allocation17_spill] sm:$0xff] %v16760_v12  ;;  %v16769_v30 = vpop.f32.mrf.mxu0 }
 0x19d   : > { %v3005_v45 = vmax.f32 %v3003_v13, %v3004_v43  ;;  %v2303_v49 = vcombine.high %v2175_v26, %v2175_v26  ;;  %v2310_v62 = vrot.slane %v2175_v26, %v16582_v56  ;;  %v2173_v27 = vmax.f32 %v2157_v32, 0.0  ;;  %v16773_v14 = vpop.f32.mrf.mxu1 }
 0x19e   : > { %v3006_v18 = vsel %vm488_vm4, %v2592_v9, -inf  ;;  %v3122_v40 = vsel %vm3121_vm10, %v3002_v57, %v3120_v28  ;;  %v2160_v47 = vadd.f32 %v16572_v17, %v2137_v44  ;;  %v16767_v37 = vadd.f32 %v16639_v48, %v16598_v59  ;;  %19943 = vst [vmem:[#allocation18_spill] sm:$0xff] %v16773_v14  ;;  %v16779_v38 = vpop.f32.mrf.mxu0 }
 0x19f   : > { %v3008_v7 = vmax.f32 %v3006_v18, %v3007_v51  ;;  %v3124_v43 = vsel %vm3123_vm11, %v3005_v45, %v3122_v40  ;;  %v2317_v53 = vrot.slane %v2303_v49, %v16582_v56  ;;  %v2318_v15 = vcombine.high %v2310_v62, %v2310_v62  ;;  %v16783_v5 = vpop.f32.mrf.mxu1 }
 0x1a0   : > { %v2705_v1 = vsel %vm490_vm5, %v2310_v62, -inf  ;;  %v2269_v29 = vcombine.high %v2173_v27, %v2173_v27  ;;  %v2276_v22 = vrot.slane %v2173_v27, %v16582_v56  ;;  %v16777_v50 = vmax.f32 %v2160_v47, 0.0  ;;  %19944 = vst [vmem:[#allocation19_spill] sm:$0xff] %v16783_v5  ;;  %v16788_v19 = vpop.f32.mrf.mxu0 }
 0x1a1   : > { %v3126_v59 = vsel %vm3125_vm12, %v3008_v7, %v3124_v43  ;;  %v2319_v48 = vcombine.high %v2317_v53, %v2317_v53  ;;  %v2706_v51 = vrot.slane %v2705_v1, 4  ;;  %v2712_v24 = vsel %vm490_vm5, %v2318_v15, -inf  ;;  %v16794_v47 = vpop.f32.mrf.mxu1 }
 0x1a2   : > { %3153 = vst.msk [vmem:[#allocation3 + $0x11] sm:$0xff] %vm488_vm4, %v3126_v59  ;;  %v2713_v10 = vrot.slane %v2712_v24, 4  ;;  %v2719_v20 = vsel %vm490_vm5, %v2317_v53, -inf  ;;  %v2283_v2 = vrot.slane %v2269_v29, %v16582_v56  ;;  %v2284_v32 = vcombine.high %v2276_v22, %v2276_v22  ;;  %19945 = vst [vmem:[#allocation20_spill] sm:$0xff] %v16794_v47  ;;  %v16796_v7 = vpop.f32.mrf.mxu0 }
 0x1a3   : > { %v2707_v26 = vmax.f32 %v2705_v1, %v2706_v51  ;;  %v2720_v44 = vrot.slane %v2719_v20, 4  ;;  %v2726_v9 = vsel %vm490_vm5, %v2319_v48, -inf  ;;  %v2649_v57 = vsel %vm490_vm5, %v2276_v22, -inf  ;;  %v16799_v47 = vpop.f32.mrf.mxu1 }
 0x1a4   : > { %v2714_v13 = vmax.f32 %v2712_v24, %v2713_v10  ;;  %v2727_v28 = vrot.slane %v2726_v9, 4  ;;  %v2285_v45 = vcombine.high %v2283_v2, %v2283_v2  ;;  %v2650_v49 = vrot.slane %v2649_v57, 4  ;;  %19946 = vst [vmem:[#allocation21_spill] sm:$0xff] %v16799_v47  ;;  %v16801_v14 = vpop.f32.mrf.mxu0 }
 0x1a5   : > { %v2708_v62 = vrot.slane %v2707_v26, 2  ;;  %v2721_v27 = vmax.f32 %v2719_v20, %v2720_v44  ;;  %v2656_v18 = vsel %vm490_vm5, %v2284_v32, -inf  ;;  %v2663_v40 = vsel %vm490_vm5, %v2283_v2, -inf }
 0x1a6   : > { %v2715_v43 = vrot.slane %v2714_v13, 2  ;;  %v2728_v53 = vmax.f32 %v2726_v9, %v2727_v28  ;;  %v2651_v15 = vmax.f32 %v2649_v57, %v2650_v49  ;;  %v2657_v1 = vrot.slane %v2656_v18, 4  ;;  %v15488_v9 = vld [vmem:[%s19912_s2 + $0x8] sm:$0xff]   ;;  %v15489_v49 = vld [vmem:[%s19912_s2 + $0x10] sm:$0xff]  }
 0x1a7   : > { %v2709_v29 = vmax.f32 %v2707_v26, %v2708_v62  ;;  %v2722_v22 = vrot.slane %v2721_v27, 2  ;;  %v2664_v59 = vrot.slane %v2663_v40, 4  ;;  %v2670_v48 = vsel %vm490_vm5, %v2285_v45, -inf  ;;  %v15487_v26 = vld [vmem:[%s19912_s2 + $0x18] sm:$0xff]   ;;  %v15490_v62 = vld [vmem:[%s19912_s2] sm:$0xff]   ;;  %14724 = vmatprep.subr.bf16.mxu1 %v15488_v9 }
 0x1a8   : > { %v2716_v51 = vmax.f32 %v2714_v13, %v2715_v43  ;;  %v2729_v24 = vrot.slane %v2728_v53, 2  ;;  %v2652_v10 = vrot.slane %v2651_v15, 2  ;;  %v2658_v20 = vmax.f32 %v2656_v18, %v2657_v1  ;;  %v16815_v1 = vpop.f32.mrf.mxu1  ;;  %14712 = vmatprep.subr.bf16.mxu0 %v15487_v26  ;;  %14725 = vmatpush3.bf16.msra.mxu1 %v15488_v9 }
 0x1a9   : > { %v2710_v32 = vrot.slane %v2709_v29, 1  ;;  %v2723_v44 = vmax.f32 %v2721_v27, %v2722_v22  ;;  %v2665_v2 = vmax.f32 %v2663_v40, %v2664_v59  ;;  %v2671_v5 = vrot.slane %v2670_v48, 4  ;;  %v16817_v22 = vpop.f32.mrf.mxu0  ;;  %14713 = vmatpush3.bf16.msra.mxu0 %v15487_v26  ;;  %14726 = vmatprep.subr.bf16.mxu1 %v15490_v62 }
 0x1aa   : > { %v2717_v57 = vrot.slane %v2716_v51, 1  ;;  %v2730_v13 = vmax.f32 %v2728_v53, %v2729_v24  ;;  %v2653_v28 = vmax.f32 %v2651_v15, %v2652_v10  ;;  %v2659_v45 = vrot.slane %v2658_v20, 2  ;;  %14714 = vmatprep.subr.bf16.mxu0 %v15489_v49 }
 0x1ab   : > { %v2711_v27 = vmax.f32 %v2709_v29, %v2710_v32  ;;  %v2724_v18 = vrot.slane %v2723_v44, 1  ;;  %v2666_v40 = vrot.slane %v2665_v2, 2  ;;  %v2672_v43 = vmax.f32 %v2670_v48, %v2671_v5  ;;  %v16820_v32 = vpop.f32.mrf.mxu1  ;;  %v16822_v5 = vpop.f32.mrf.mxu0 }
 0x1ac   : > { %v2718_v53 = vmax.f32 %v2716_v51, %v2717_v57  ;;  %v2731_v15 = vrot.slane %v2730_v13, 1  ;;  %v2654_v59 = vrot.slane %v2653_v28, 1  ;;  %v2660_v24 = vmax.f32 %v2658_v20, %v2659_v45  ;;  %14727 = vmatpush3.bf16.msra.mxu1 %v15490_v62 }
 0x1ad   : > { %v2725_v10 = vmax.f32 %v2723_v44, %v2724_v18  ;;  %v3010_v47 = vsel %vm488_vm4, %v2711_v27, -inf  ;;  %v2667_v12 = vmax.f32 %v2665_v2, %v2666_v40  ;;  %v2673_v29 = vrot.slane %v2672_v43, 2  ;;  %v16828_v2 = vpop.f32.mrf.mxu1  ;;  %v16830_v45 = vpop.f32.mrf.mxu0  ;;  %14715 = vmatpush3.bf16.msra.mxu0 %v15489_v49 }
 0x1ae   : > { %v2732_v48 = vmax.f32 %v2730_v13, %v2731_v15  ;;  %v3013_v25 = vsel %vm488_vm4, %v2718_v53, -inf  ;;  %v2655_v51 = vmax.f32 %v2653_v28, %v2654_v59  ;;  %v2661_v57 = vrot.slane %v2660_v24, 1  ;;  %19947 = vst [vmem:[#allocation22_spill] sm:$0xff] %v16830_v45 }
 0x1af   : > { %v3016_v20 = vsel %vm488_vm4, %v2725_v10, -inf  ;;  %v2668_v26 = vrot.slane %v2667_v12, 1  ;;  %v2674_v9 = vmax.f32 %v2672_v43, %v2673_v29  ;;  %v2320_v44 = vcombine.high %v16777_v50, %v16777_v50  ;;  %v16837_v59 = vpop.f32.mrf.mxu1  ;;  %v16839_v10 = vpop.f32.mrf.mxu0 }
 0x1b0   : > { %v3019_v27 = vsel %vm488_vm4, %v2732_v48, -inf  ;;  %v2662_v18 = vmax.f32 %v2660_v24, %v2661_v57  ;;  %v3009_v13 = vsel %vm488_vm4, %v2655_v51, -inf  ;;  %v2327_v28 = vrot.slane %v16777_v50, %v16582_v56  ;;  %19948 = vst [vmem:[#allocation23_spill] sm:$0xff] %v16837_v59  ;;  %19949 = vst [vmem:[#allocation24_spill] sm:$0xff] %v16839_v10 }
 0x1b1   : > { %v2669_v40 = vmax.f32 %v2667_v12, %v2668_v26  ;;  %v2675_v53 = vrot.slane %v2674_v9, 1  ;;  %v3011_v43 = vmax.f32 %v3009_v13, %v3010_v47  ;;  %v2334_v15 = vrot.slane %v2320_v44, %v16582_v56  ;;  %v16846_v47 = vpop.f32.mrf.mxu1  ;;  %v16848_v57 = vpop.f32.mrf.mxu0 }
 0x1b2   : > { %v3012_v29 = vsel %vm488_vm4, %v2662_v18, -inf  ;;  %v2335_v48 = vcombine.high %v2327_v28, %v2327_v28  ;;  %v2733_v24 = vsel %vm490_vm5, %v2327_v28, -inf  ;;  %v2158_v51 = vadd.f32 %v16572_v17, %v16767_v37  ;;  %19950 = vst [vmem:[#allocation25_spill] sm:$0xff] %v16846_v47  ;;  %19951 = vst [vmem:[#allocation26_spill] sm:$0xff] %v16848_v57 }
 0x1b3   : > { %v2676_v50 = vmax.f32 %v2674_v9, %v2675_v53  ;;  %v3014_v49 = vmax.f32 %v3012_v29, %v3013_v25  ;;  %v3015_v12 = vsel %vm488_vm4, %v2669_v40, -inf  ;;  %v2336_v62 = vcombine.high %v2334_v15, %v2334_v15  ;;  %v16854_v25 = vpop.f32.mrf.mxu1  ;;  %v16856_v40 = vpop.f32.mrf.mxu0 }
 0x1b4   : > { %v3017_v26 = vmax.f32 %v3015_v12, %v3016_v20  ;;  %v2734_v44 = vrot.slane %v2733_v24, 4  ;;  %v2740_v13 = vsel %vm490_vm5, %v2335_v48, -inf  ;;  %v2747_v18 = vsel %vm490_vm5, %v2334_v15, -inf  ;;  %19952 = vst [vmem:[#allocation27_spill] sm:$0xff] %v16854_v25  ;;  %19953 = vst [vmem:[#allocation28_spill] sm:$0xff] %v16856_v40 }
 0x1b5   : > { %v3018_v28 = vsel %vm488_vm4, %v2676_v50, -inf  ;;  %v3127_v10 = vsel %vm3113_vm6, %v3014_v49, %v3011_v43  ;;  %v2741_v37 = vrot.slane %v2740_v13, 4  ;;  %v2748_v9 = vrot.slane %v2747_v18, 4  ;;  %v16860_v59 = vpop.f32.mrf.mxu1  ;;  %v16862_v50 = vpop.f32.mrf.mxu0 }
 0x1b6   : > { %v3020_v53 = vmax.f32 %v3018_v28, %v3019_v27  ;;  %v3128_v29 = vsel %vm3115_vm7, %v3017_v26, %v3127_v10  ;;  %v2735_v57 = vmax.f32 %v2733_v24, %v2734_v44  ;;  %v2754_v20 = vsel %vm490_vm5, %v2336_v62, -inf  ;;  %19954 = vst [vmem:[#allocation29_spill] sm:$0xff] %v16860_v59  ;;  %19955 = vst [vmem:[#allocation30_spill] sm:$0xff] %v16862_v50 }
 0x1b7   : > { %v2742_v12 = vmax.f32 %v2740_v13, %v2741_v37  ;;  %v2749_v48 = vmax.f32 %v2747_v18, %v2748_v9  ;;  %v2755_v47 = vrot.slane %v2754_v20, 4  ;;  %v2174_v15 = vmax.f32 %v2158_v51, 0.0  ;;  %v16873_v51 = vpop.f32.mrf.mxu1  ;;  %v16875_v13 = vpop.f32.mrf.mxu0 }
 0x1b8   : > { %v2736_v43 = vrot.slane %v2735_v57, 2  ;;  %v16865_v49 = vsel %vm3117_vm8, %v3020_v53, %v3128_v29  ;;  %v16869_v27 = vadd.f32 %v16643_v60, %v16596_v58  ;;  %v2140_v10 = vadd.f32 %v16645_v3, %v16603_v41  ;;  %19956 = vst [vmem:[#allocation31_spill] sm:$0xff] %v16873_v51  ;;  %19957 = vst [vmem:[#allocation32_spill] sm:$0xff] %v16875_v13 }
 0x1b9   : > { %v2743_v24 = vrot.slane %v2742_v12, 2  ;;  %v2750_v62 = vrot.slane %v2749_v48, 2  ;;  %v2756_v26 = vmax.f32 %v2754_v20, %v2755_v47  ;;  %v2286_v44 = vcombine.high %v2174_v15, %v2174_v15  ;;  %v16882_v3 = vpop.f32.mrf.mxu1  ;;  %v16884_v47 = vpop.f32.mrf.mxu0 }
 0x1ba   : > { %v2737_v18 = vmax.f32 %v2735_v57, %v2736_v43  ;;  %v2293_v28 = vrot.slane %v2174_v15, %v16582_v56  ;;  %v2163_v37 = vadd.f32 %v16572_v17, %v2140_v10  ;;  %v2138_v58 = vadd.f32 %v16649_v16, %v16606_v54  ;;  %19958 = vst [vmem:[#allocation33_spill] sm:$0xff] %v16882_v3 }
 0x1bb   : > { %v2744_v60 = vmax.f32 %v2742_v12, %v2743_v24  ;;  %v2751_v9 = vmax.f32 %v2749_v48, %v2750_v62  ;;  %v2757_v53 = vrot.slane %v2756_v26, 2  ;;  %v2300_v41 = vrot.slane %v2286_v44, %v16582_v56  ;;  %19959 = vst [vmem:[#allocation34_spill] sm:$0xff] %v16884_v47  ;;  %v16887_v50 = vpop.f32.mrf.mxu1  ;;  %v16889_v54 = vpop.f32.mrf.mxu0 }
 0x1bc   : > { %v2738_v29 = vrot.slane %v2737_v18, 1  ;;  %v2301_v20 = vcombine.high %v2293_v28, %v2293_v28  ;;  %v2677_v57 = vsel %vm490_vm5, %v2293_v28, -inf  ;;  %v2179_v43 = vmax.f32 %v2163_v37, 0.0  ;;  %19960 = vst [vmem:[#allocation35_spill] sm:$0xff] %v16887_v50  ;;  %19961 = vst [vmem:[#allocation36_spill] sm:$0xff] %v16889_v54 }
 0x1bd   : > { %v2745_v15 = vrot.slane %v2744_v60, 1  ;;  %v2752_v13 = vrot.slane %v2751_v9, 1  ;;  %v2758_v10 = vmax.f32 %v2756_v26, %v2757_v53  ;;  %v2302_v51 = vcombine.high %v2300_v41, %v2300_v41  ;;  %v16893_v28 = vpop.f32.mrf.mxu1  ;;  %v16895_v37 = vpop.f32.mrf.mxu0 }
 0x1be   : > { %v2739_v16 = vmax.f32 %v2737_v18, %v2738_v29  ;;  %v2678_v12 = vrot.slane %v2677_v57, 4  ;;  %v2684_v48 = vsel %vm490_vm5, %v2301_v20, -inf  ;;  %v2691_v24 = vsel %vm490_vm5, %v2300_v41, -inf  ;;  %19962 = vst [vmem:[#allocation37_spill] sm:$0xff] %v16893_v28  ;;  %19963 = vst [vmem:[#allocation38_spill] sm:$0xff] %v16895_v37 }
 0x1bf   : > { %v2746_v62 = vmax.f32 %v2744_v60, %v2745_v15  ;;  %v2753_v44 = vmax.f32 %v2751_v9, %v2752_v13  ;;  %v2759_v47 = vrot.slane %v2758_v10, 1  ;;  %v2685_v3 = vrot.slane %v2684_v48, 4  ;;  %v16907_v9 = vpop.f32.mrf.mxu1  ;;  %v16909_v41 = vpop.f32.mrf.mxu0 }
 0x1c0   : > { %v16898_v26 = vsel %vm488_vm4, %v2739_v16, -inf  ;;  %v2679_v53 = vmax.f32 %v2677_v57, %v2678_v12  ;;  %v2692_v50 = vrot.slane %v2691_v24, 4  ;;  %v2698_v18 = vsel %vm490_vm5, %v2302_v51, -inf  ;;  %19964 = vst [vmem:[#allocation39_spill] sm:$0xff] %v16907_v9  ;;  %19965 = vst [vmem:[#allocation40_spill] sm:$0xff] %v16909_v41 }
 0x1c1   : > { %v2760_v29 = vmax.f32 %v2758_v10, %v2759_v47  ;;  %v16902_v20 = vsel %vm488_vm4, %v2746_v62, -inf  ;;  %v16905_v60 = vsel %vm488_vm4, %v2753_v44, -inf  ;;  %v2686_v13 = vmax.f32 %v2684_v48, %v2685_v3  ;;  %v16916_v12 = vpop.f32.mrf.mxu1  ;;  %v16918_v62 = vpop.f32.mrf.mxu0 }
 0x1c2   : > { %v2680_v15 = vrot.slane %v2679_v53, 2  ;;  %v2693_v37 = vmax.f32 %v2691_v24, %v2692_v50  ;;  %v2699_v16 = vrot.slane %v2698_v18, 4  ;;  %v2371_v28 = vcombine.high %v2179_v43, %v2179_v43  ;;  %19966 = vst [vmem:[#allocation41_spill] sm:$0xff] %v16916_v12  ;;  %19967 = vst [vmem:[#allocation42_spill] sm:$0xff] %v16918_v62 }
 0x1c3   : > { %v16912_v57 = vsel %vm488_vm4, %v2760_v29, -inf  ;;  %v2687_v51 = vrot.slane %v2686_v13, 2  ;;  %v2378_v47 = vrot.slane %v2179_v43, %v16582_v56  ;;  %v2161_v10 = vadd.f32 %v16572_v17, %v2138_v58  ;;  %v16924_v54 = vpop.f32.mrf.mxu1  ;;  %v16926_v43 = vpop.f32.mrf.mxu0 }
 0x1c4   : > { %v2681_v3 = vmax.f32 %v2679_v53, %v2680_v15  ;;  %v2694_v48 = vrot.slane %v2693_v37, 2  ;;  %v2700_v44 = vmax.f32 %v2698_v18, %v2699_v16  ;;  %v2385_v41 = vrot.slane %v2371_v28, %v16582_v56  ;;  %19968 = vst [vmem:[#allocation43_spill] sm:$0xff] %v16924_v54  ;;  %19969 = vst [vmem:[#allocation44_spill] sm:$0xff] %v16926_v43 }
 0x1c5   : > { %v2688_v50 = vmax.f32 %v2686_v13, %v2687_v51  ;;  %v2386_v24 = vcombine.high %v2378_v47, %v2378_v47  ;;  %v2817_v9 = vsel %vm490_vm5, %v2378_v47, -inf  ;;  %v16922_v29 = vmax.f32 %v2161_v10, 0.0  ;;  %v16930_v13 = vpop.f32.mrf.mxu1  ;;  %v16932_v15 = vpop.f32.mrf.mxu0 }
 0x1c6   : > { %v2682_v17 = vrot.slane %v2681_v3, 1  ;;  %v2695_v58 = vmax.f32 %v2693_v37, %v2694_v48  ;;  %v2701_v12 = vrot.slane %v2700_v44, 2  ;;  %v2387_v59 = vcombine.high %v2385_v41, %v2385_v41  ;;  %19970 = vst [vmem:[#allocation45_spill] sm:$0xff] %v16930_v13  ;;  %19971 = vst [vmem:[#allocation46_spill] sm:$0xff] %v16932_v15 }
 0x1c7   : > { %v2689_v62 = vrot.slane %v2688_v50, 1  ;;  %v2818_v53 = vrot.slane %v2817_v9, 4  ;;  %v2824_v18 = vsel %vm490_vm5, %v2386_v24, -inf  ;;  %v2831_v28 = vsel %vm490_vm5, %v2385_v41, -inf  ;;  %v16935_v48 = vpop.f32.mrf.mxu1  ;;  %v16937_v25 = vpop.f32.mrf.mxu0 }
 0x1c8   : > { %v2683_v16 = vmax.f32 %v2681_v3, %v2682_v17  ;;  %v2696_v51 = vrot.slane %v2695_v58, 1  ;;  %v2702_v47 = vmax.f32 %v2700_v44, %v2701_v12  ;;  %v2825_v10 = vrot.slane %v2824_v18, 4 }
 0x1c9   : > { %v2690_v54 = vmax.f32 %v2688_v50, %v2689_v62  ;;  %v2819_v43 = vmax.f32 %v2817_v9, %v2818_v53  ;;  %v2832_v40 = vrot.slane %v2831_v28, 4  ;;  %v2838_v37 = vsel %vm490_vm5, %v2387_v59, -inf  ;;  %v16942_v62 = vpop.f32.mrf.mxu1  ;;  %v16944_v9 = vpop.f32.mrf.mxu0 }
 0x1ca   : > { %v2697_v24 = vmax.f32 %v2695_v58, %v2696_v51  ;;  %v2703_v45 = vrot.slane %v2702_v47, 1  ;;  %v3021_v41 = vsel %vm488_vm4, %v2683_v16, -inf  ;;  %v2826_v13 = vmax.f32 %v2824_v18, %v2825_v10  ;;  %19972 = vst [vmem:[#allocation47_spill] sm:$0xff] %v16944_v9 }
 0x1cb   : > { %v3023_v15 = vmax.f32 %v3021_v41, %v16898_v26  ;;  %v3024_v3 = vsel %vm488_vm4, %v2690_v54, -inf  ;;  %v2820_v12 = vrot.slane %v2819_v43, 2  ;;  %v2833_v44 = vmax.f32 %v2831_v28, %v2832_v40  ;;  %v16951_v54 = vpop.f32.mrf.mxu1  ;;  %v16953_v40 = vpop.f32.mrf.mxu0 }
 0x1cc   : > { %v2704_v59 = vmax.f32 %v2702_v47, %v2703_v45  ;;  %v3026_v50 = vmax.f32 %v3024_v3, %v16902_v20  ;;  %v3027_v17 = vsel %vm488_vm4, %v2697_v24, -inf  ;;  %v2827_v58 = vrot.slane %v2826_v13, 2  ;;  %19973 = vst [vmem:[#allocation48_spill] sm:$0xff] %v16951_v54  ;;  %19974 = vst [vmem:[#allocation49_spill] sm:$0xff] %v16953_v40 }
 0x1cd   : > { %v3029_v53 = vmax.f32 %v3027_v17, %v16905_v60  ;;  %v3130_v18 = vsel %vm3119_vm9, %v3023_v15, %v16865_v49  ;;  %v2821_v26 = vmax.f32 %v2819_v43, %v2820_v12  ;;  %v2834_v16 = vrot.slane %v2833_v44, 2  ;;  %v16959_v41 = vpop.f32.mrf.mxu1  ;;  %v16961_v49 = vpop.f32.mrf.mxu0 }
 0x1ce   : > { %v3030_v28 = vsel %vm488_vm4, %v2704_v59, -inf  ;;  %v3131_v45 = vsel %vm3121_vm10, %v3026_v50, %v3130_v18  ;;  %v2828_v51 = vmax.f32 %v2826_v13, %v2827_v58  ;;  %v2839_v20 = vrot.slane %v2838_v37, 4  ;;  %19975 = vst [vmem:[#allocation50_spill] sm:$0xff] %v16959_v41  ;;  %19976 = vst [vmem:[#allocation51_spill] sm:$0xff] %v16961_v49 }
 0x1cf   : > { %v3032_v47 = vmax.f32 %v3030_v28, %v16912_v57  ;;  %v3132_v10 = vsel %vm3123_vm11, %v3029_v53, %v3131_v45  ;;  %v2822_v60 = vrot.slane %v2821_v26, 1  ;;  %v2835_v24 = vmax.f32 %v2833_v44, %v2834_v16  ;;  %v16970_v44 = vpop.f32.mrf.mxu1  ;;  %v16972_v17 = vpop.f32.mrf.mxu0 }
 0x1d0   : > { %v2829_v43 = vrot.slane %v2828_v51, 1  ;;  %v2840_v15 = vmax.f32 %v2838_v37, %v2839_v20  ;;  %v2337_v3 = vcombine.high %v16922_v29, %v16922_v29  ;;  %v2344_v12 = vrot.slane %v16922_v29, %v16582_v56  ;;  %19977 = vst [vmem:[#allocation52_spill] sm:$0xff] %v16970_v44  ;;  %19978 = vst [vmem:[#allocation53_spill] sm:$0xff] %v16972_v17 }
 0x1d1   : > { %v3133_v13 = vsel %vm3125_vm12, %v3032_v47, %v3132_v10  ;;  %v2823_v59 = vmax.f32 %v2821_v26, %v2822_v60  ;;  %v2836_v57 = vrot.slane %v2835_v24, 1  ;;  %v2141_v50 = vadd.f32 %v16653_v8, %v16609_v4  ;;  %v16983_v4 = vld [vmem:[%s19917_s7] ss:$0 sm:$0xff]  ;;  %v16986_v28 = vpop.f32.mrf.mxu1  ;;  %v16988_v45 = vpop.f32.mrf.mxu0 }
 0x1d2   : > { %3154 = vst.msk [vmem:[#allocation3 + $0x21] sm:$0xff] %vm488_vm4, %v3133_v13  ;;  %v2830_v37 = vmax.f32 %v2828_v51, %v2829_v43  ;;  %v2841_v58 = vrot.slane %v2840_v15, 2  ;;  %v2351_v53 = vrot.slane %v2337_v3, %v16582_v56  ;;  %v2352_v18 = vcombine.high %v2344_v12, %v2344_v12  ;;  %19979 = vst [vmem:[#allocation54_spill] sm:$0xff] %v16986_v28 }
 0x1d3   : > { %v2837_v16 = vmax.f32 %v2835_v24, %v2836_v57  ;;  %v16977_v29 = vsel %vm488_vm4, %v2823_v59, -inf  ;;  %v2761_v26 = vsel %vm490_vm5, %v2344_v12, -inf  ;;  %v2164_v8 = vadd.f32 %v16983_v4, %v2141_v50  ;;  %19980 = vst [vmem:[#allocation55_spill] sm:$0xff] %v16988_v45  ;;  %v16998_v12 = vpop.f32.mrf.mxu1  ;;  %v17000_v13 = vpop.f32.mrf.mxu0 }
 0x1d4   : > { %v2842_v51 = vmax.f32 %v2840_v15, %v2841_v58  ;;  %v16991_v20 = vsel %vm488_vm4, %v2830_v37, -inf  ;;  %v2353_v47 = vcombine.high %v2351_v53, %v2351_v53  ;;  %v2762_v10 = vrot.slane %v2761_v26, 4  ;;  %19981 = vst [vmem:[#allocation56_spill] sm:$0xff] %v16998_v12  ;;  %19982 = vst [vmem:[#allocation57_spill] sm:$0xff] %v17000_v13 }
 0x1d5   : > { %v16994_v60 = vsel %vm488_vm4, %v2837_v16, -inf  ;;  %v2768_v24 = vsel %vm490_vm5, %v2352_v18, -inf  ;;  %v2775_v43 = vsel %vm490_vm5, %v2351_v53, -inf  ;;  %v2180_v3 = vmax.f32 %v2164_v8, 0.0  ;;  %v17008_v18 = vpop.f32.mrf.mxu1  ;;  %v17010_v53 = vpop.f32.mrf.mxu0 }
 0x1d6   : > { %v2843_v59 = vrot.slane %v2842_v51, 1  ;;  %v2763_v57 = vmax.f32 %v2761_v26, %v2762_v10  ;;  %v2769_v15 = vrot.slane %v2768_v24, 4  ;;  %v2776_v50 = vrot.slane %v2775_v43, 4  ;;  %19983 = vst [vmem:[#allocation58_spill] sm:$0xff] %v17008_v18  ;;  %19984 = vst [vmem:[#allocation59_spill] sm:$0xff] %v17010_v53 }
 0x1d7   : > { %v2782_v37 = vsel %vm490_vm5, %v2353_v47, -inf  ;;  %v2388_v58 = vcombine.high %v2180_v3, %v2180_v3  ;;  %v2395_v45 = vrot.slane %v2180_v3, %v16582_v56  ;;  %v17006_v16 = vadd.f32 %v16658_v52, %v16725_v36  ;;  %v17014_v44 = vpop.f32.mrf.mxu1  ;;  %v17016_v3 = vpop.f32.mrf.mxu0 }
 0x1d8   : > { %v2844_v8 = vmax.f32 %v2842_v51, %v2843_v59  ;;  %v2764_v12 = vrot.slane %v2763_v57, 2  ;;  %v2770_v13 = vmax.f32 %v2768_v24, %v2769_v15  ;;  %v2777_v28 = vmax.f32 %v2775_v43, %v2776_v50  ;;  %19985 = vst [vmem:[#allocation60_spill] sm:$0xff] %v17014_v44  ;;  %19986 = vst [vmem:[#allocation61_spill] sm:$0xff] %v17016_v3 }
 0x1d9   : > { %v2783_v26 = vrot.slane %v2782_v37, 4  ;;  %v2402_v10 = vrot.slane %v2388_v58, %v16582_v56  ;;  %v2403_v17 = vcombine.high %v2395_v45, %v2395_v45  ;;  %v2845_v47 = vsel %vm490_vm5, %v2395_v45, -inf  ;;  %v17022_v15 = vpop.f32.mrf.mxu1  ;;  %v17024_v50 = vpop.f32.mrf.mxu0 }
 0x1da   : > { %v17019_v52 = vsel %vm488_vm4, %v2844_v8, -inf  ;;  %v2765_v36 = vmax.f32 %v2763_v57, %v2764_v12  ;;  %v2771_v18 = vrot.slane %v2770_v13, 2  ;;  %v2778_v53 = vrot.slane %v2777_v28, 2  ;;  %19987 = vst [vmem:[#allocation62_spill] sm:$0xff] %v17022_v15  ;;  %19988 = vst [vmem:[#allocation63_spill] sm:$0xff] %v17024_v50 }
 0x1db   : > { %v2784_v51 = vmax.f32 %v2782_v37, %v2783_v26  ;;  %v2404_v59 = vcombine.high %v2402_v10, %v2402_v10  ;;  %v2846_v24 = vrot.slane %v2845_v47, 4  ;;  %v2852_v43 = vsel %vm490_vm5, %v2403_v17, -inf  ;;  %v17028_v57 = vpop.f32.mrf.mxu1  ;;  %v17030_v37 = vpop.f32.mrf.mxu0 }
 0x1dc   : > { %v2766_v45 = vrot.slane %v2765_v36, 1  ;;  %v2772_v58 = vmax.f32 %v2770_v13, %v2771_v18  ;;  %v2779_v44 = vmax.f32 %v2777_v28, %v2778_v53  ;;  %v2853_v49 = vrot.slane %v2852_v43, 4  ;;  %19989 = vst [vmem:[#allocation64_spill] sm:$0xff] %v17028_v57  ;;  %19990 = vst [vmem:[#allocation65_spill] sm:$0xff] %v17030_v37 }
 0x1dd   : > { %v2785_v3 = vrot.slane %v2784_v51, 2  ;;  %v2847_v41 = vmax.f32 %v2845_v47, %v2846_v24  ;;  %v2859_v8 = vsel %vm490_vm5, %v2402_v10, -inf  ;;  %v2866_v12 = vsel %vm490_vm5, %v2404_v59, -inf  ;;  %v17032_v28 = vpop.f32.mrf.mxu1  ;;  %v17034_v18 = vpop.f32.mrf.mxu0 }
 0x1de   : > { %v2767_v26 = vmax.f32 %v2765_v36, %v2766_v45  ;;  %v2773_v17 = vrot.slane %v2772_v58, 1  ;;  %v2780_v40 = vrot.slane %v2779_v44, 1  ;;  %v2854_v15 = vmax.f32 %v2852_v43, %v2853_v49  ;;  %19991 = vst [vmem:[#allocation66_spill] sm:$0xff] %v17034_v18 }
 0x1df   : > { %v2786_v54 = vmax.f32 %v2784_v51, %v2785_v3  ;;  %v2848_v50 = vrot.slane %v2847_v41, 2  ;;  %v2860_v9 = vrot.slane %v2859_v8, 4  ;;  %v2867_v13 = vrot.slane %v2866_v12, 4  ;;  %v17038_v57 = vpop.f32.mrf.mxu1  ;;  %v17040_v49 = vpop.f32.mrf.mxu0 }
 0x1e0   : > { %v2774_v53 = vmax.f32 %v2772_v58, %v2773_v17  ;;  %v2781_v10 = vmax.f32 %v2779_v44, %v2780_v40  ;;  %v3033_v47 = vsel %vm488_vm4, %v2767_v26, -inf  ;;  %v2855_v59 = vrot.slane %v2854_v15, 2  ;;  %19992 = vst [vmem:[#allocation67_spill] sm:$0xff] %v17040_v49 }
 0x1e1   : > { %v2787_v24 = vrot.slane %v2786_v54, 1  ;;  %v3035_v37 = vmax.f32 %v3033_v47, %v16977_v29  ;;  %v2849_v36 = vmax.f32 %v2847_v41, %v2848_v50  ;;  %v2861_v45 = vmax.f32 %v2859_v8, %v2860_v9  ;;  %v17046_v17 = vpop.f32.mrf.mxu1  ;;  %v17048_v41 = vpop.f32.mrf.mxu0 }
 0x1e2   : > { %v3036_v3 = vsel %vm488_vm4, %v2774_v53, -inf  ;;  %v3039_v51 = vsel %vm488_vm4, %v2781_v10, -inf  ;;  %v2856_v43 = vmax.f32 %v2854_v15, %v2855_v59  ;;  %v2868_v18 = vmax.f32 %v2866_v12, %v2867_v13  ;;  %19993 = vst [vmem:[#allocation68_spill] sm:$0xff] %v17046_v17  ;;  %19994 = vst [vmem:[#allocation69_spill] sm:$0xff] %v17048_v41 }
 0x1e3   : > { %v2788_v58 = vmax.f32 %v2786_v54, %v2787_v24  ;;  %v3038_v40 = vmax.f32 %v3036_v3, %v16991_v20  ;;  %v3041_v44 = vmax.f32 %v3039_v51, %v16994_v60  ;;  %v2850_v26 = vrot.slane %v2849_v36, 1  ;;  %v17056_v60 = vpop.f32.mrf.mxu1  ;;  %v17058_v12 = vpop.f32.mrf.mxu0 }
 0x1e4   : > { %v2857_v9 = vrot.slane %v2856_v43, 1  ;;  %v2862_v29 = vrot.slane %v2861_v45, 2  ;;  %v2869_v50 = vrot.slane %v2868_v18, 2  ;;  %v2162_v8 = vadd.f32 %v16983_v4, %v17006_v16  ;;  %19995 = vst [vmem:[#allocation70_spill] sm:$0xff] %v17056_v60  ;;  %19996 = vst [vmem:[#allocation71_spill] sm:$0xff] %v17058_v12 }
 0x1e5   : > { %v3042_v53 = vsel %vm488_vm4, %v2788_v58, -inf  ;;  %v3134_v15 = vsel %vm3113_vm6, %v3038_v40, %v3035_v37  ;;  %v2851_v54 = vmax.f32 %v2849_v36, %v2850_v26  ;;  %v2144_v20 = vadd.f32 %v16666_v11, %v16731_v42  ;;  %v17066_v36 = vpop.f32.mrf.mxu1  ;;  %v17068_v11 = vpop.f32.mrf.mxu0 }
 0x1e6   : > { %v3044_v13 = vmax.f32 %v3042_v53, %v17019_v52  ;;  %v3135_v10 = vsel %vm3115_vm7, %v3041_v44, %v3134_v15  ;;  %v2858_v47 = vmax.f32 %v2856_v43, %v2857_v9  ;;  %v2863_v59 = vmax.f32 %v2861_v45, %v2862_v29  ;;  %19997 = vst [vmem:[#allocation72_spill] sm:$0xff] %v17066_v36 }
 0x1e7   : > { %v2870_v24 = vmax.f32 %v2868_v18, %v2869_v50  ;;  %v17063_v16 = vsel %vm488_vm4, %v2851_v54, -inf  ;;  %v2178_v3 = vmax.f32 %v2162_v8, 0.0  ;;  %v2167_v37 = vadd.f32 %v16983_v4, %v2144_v20  ;;  %19998 = vst [vmem:[#allocation73_spill] sm:$0xff] %v17068_v11  ;;  %v17079_v44 = vpop.f32.mrf.mxu1  ;;  %v17081_v26 = vpop.f32.mrf.mxu0 }
 0x1e8   : > { %v2864_v42 = vrot.slane %v2863_v59, 1  ;;  %v17071_v51 = vsel %vm488_vm4, %v2858_v47, -inf  ;;  %v17074_v52 = vsel %vm3117_vm8, %v3044_v13, %v3135_v10  ;;  %v2142_v18 = vadd.f32 %v16679_v33, %v16739_v0  ;;  %19999 = vst [vmem:[#allocation74_spill] sm:$0xff] %v17079_v44  ;;  %20000 = vst [vmem:[#allocation75_spill] sm:$0xff] %v17081_v26 }
 0x1e9   : > { %v2871_v45 = vrot.slane %v2870_v24, 1  ;;  %v2354_v43 = vcombine.high %v2178_v3, %v2178_v3  ;;  %v2361_v58 = vrot.slane %v2178_v3, %v16582_v56  ;;  %v2183_v40 = vmax.f32 %v2167_v37, 0.0  ;;  %v17094_v54 = vpop.f32.mrf.mxu1  ;;  %v17096_v20 = vpop.f32.mrf.mxu0 }
 0x1ea   : > { %v2865_v9 = vmax.f32 %v2863_v59, %v2864_v42  ;;  %v2165_v29 = vadd.f32 %v16983_v4, %v2142_v18  ;;  %v17086_v50 = vadd.f32 %v16695_v55, %v16751_v39  ;;  %v17090_v8 = vadd.f32 %v16704_v46, %v16869_v27  ;;  %20001 = vst [vmem:[#allocation76_spill] sm:$0xff] %v17094_v54 }
 0x1eb   : > { %v2872_v33 = vmax.f32 %v2870_v24, %v2871_v45  ;;  %v2368_v0 = vrot.slane %v2354_v43, %v16582_v56  ;;  %v2369_v53 = vcombine.high %v2361_v58, %v2361_v58  ;;  %v2789_v15 = vsel %vm490_vm5, %v2361_v58, -inf  ;;  %20002 = vst [vmem:[#allocation77_spill] sm:$0xff] %v17096_v20  ;;  %v17107_v24 = vpop.f32.mrf.mxu1  ;;  %v17110_v45 = vpop.f32.mrf.mxu0 }
 0x1ec   : > { %v17099_v13 = vsel %vm488_vm4, %v2865_v9, -inf  ;;  %v2790_v10 = vrot.slane %v2789_v15, 4  ;;  %v2439_v55 = vcombine.high %v2183_v40, %v2183_v40  ;;  %v2446_v39 = vrot.slane %v2183_v40, %v16582_v56  ;;  %20003 = vst [vmem:[#allocation78_spill] sm:$0xff] %v17107_v24  ;;  %20004 = vst [vmem:[#allocation79_spill] sm:$0xff] %v17110_v45 }
 0x1ed   : > { %v17103_v46 = vsel %vm488_vm4, %v2872_v33, -inf  ;;  %v2370_v27 = vcombine.high %v2368_v0, %v2368_v0  ;;  %v2796_v47 = vsel %vm490_vm5, %v2369_v53, -inf  ;;  %v2803_v59 = vsel %vm490_vm5, %v2368_v0, -inf  ;;  %v17116_v20 = vpop.f32.mrf.mxu1  ;;  %v17120_v11 = vpop.f32.mrf.mxu0 }
 0x1ee   : > { %v2791_v3 = vmax.f32 %v2789_v15, %v2790_v10  ;;  %v2797_v37 = vrot.slane %v2796_v47, 4  ;;  %v2804_v42 = vrot.slane %v2803_v59, 4  ;;  %v2453_v18 = vrot.slane %v2439_v55, %v16582_v56  ;;  %20005 = vst [vmem:[#allocation80_spill] sm:$0xff] %v17116_v20  ;;  %20006 = vst [vmem:[#allocation81_spill] sm:$0xff] %v17120_v11 }
 0x1ef   : > { %v2810_v43 = vsel %vm490_vm5, %v2370_v27, -inf  ;;  %v2454_v58 = vcombine.high %v2446_v39, %v2446_v39  ;;  %v2929_v40 = vsel %vm490_vm5, %v2446_v39, -inf  ;;  %v17114_v9 = vmax.f32 %v2165_v29, 0.0  ;;  %v17123_v12 = vpop.f32.mrf.mxu1  ;;  %v17125_v11 = vpop.f32.mrf.mxu0 }
 0x1f0   : > { %v2792_v33 = vrot.slane %v2791_v3, 2  ;;  %v2798_v53 = vmax.f32 %v2796_v47, %v2797_v37  ;;  %v2805_v44 = vmax.f32 %v2803_v59, %v2804_v42  ;;  %v2811_v0 = vrot.slane %v2810_v43, 4 }
 0x1f1   : > { %v2455_v15 = vcombine.high %v2453_v18, %v2453_v18  ;;  %v2930_v10 = vrot.slane %v2929_v40, 4  ;;  %v2936_v24 = vsel %vm490_vm5, %v2454_v58, -inf  ;;  %v2943_v55 = vsel %vm490_vm5, %v2453_v18, -inf }
 0x1f2   : > { %v2793_v45 = vmax.f32 %v2791_v3, %v2792_v33  ;;  %v2799_v54 = vrot.slane %v2798_v53, 2  ;;  %v2806_v27 = vrot.slane %v2805_v44, 2  ;;  %v2812_v26 = vmax.f32 %v2810_v43, %v2811_v0 }
 0x1f3   : > { %v2931_v29 = vmax.f32 %v2929_v40, %v2930_v10  ;;  %v2937_v39 = vrot.slane %v2936_v24, 4  ;;  %v2944_v36 = vrot.slane %v2943_v55, 4  ;;  %v2950_v47 = vsel %vm490_vm5, %v2455_v15, -inf }
 0x1f4   : > { %v2794_v59 = vrot.slane %v2793_v45, 1  ;;  %v2800_v37 = vmax.f32 %v2798_v53, %v2799_v54  ;;  %v2807_v42 = vmax.f32 %v2805_v44, %v2806_v27  ;;  %v2813_v20 = vrot.slane %v2812_v26, 2  ;;  %v17128_v27 = vpop.f32.mrf.mxu1 }
 0x1f5   : > { %v2932_v58 = vrot.slane %v2931_v29, 2  ;;  %v2938_v60 = vmax.f32 %v2936_v24, %v2937_v39  ;;  %v2945_v18 = vmax.f32 %v2943_v55, %v2944_v36  ;;  %v2951_v3 = vrot.slane %v2950_v47, 4 }
 0x1f6   : > { %v2795_v33 = vmax.f32 %v2793_v45, %v2794_v59  ;;  %v2801_v41 = vrot.slane %v2800_v37, 1  ;;  %v2808_v43 = vrot.slane %v2807_v42, 1  ;;  %v2814_v0 = vmax.f32 %v2812_v26, %v2813_v20  ;;  %v17133_v59 = vpop.f32.mrf.mxu0 }
 0x1f7   : > { %v2933_v40 = vmax.f32 %v2931_v29, %v2932_v58  ;;  %v2939_v10 = vrot.slane %v2938_v60, 2  ;;  %v2946_v17 = vrot.slane %v2945_v18, 2  ;;  %v2952_v15 = vmax.f32 %v2950_v47, %v2951_v3 }
 0x1f8   : > { %v2802_v49 = vmax.f32 %v2800_v37, %v2801_v41  ;;  %v2809_v54 = vmax.f32 %v2807_v42, %v2808_v43  ;;  %v2815_v44 = vrot.slane %v2814_v0, 1  ;;  %v3045_v53 = vsel %vm488_vm4, %v2795_v33, -inf }
 0x1f9   : > { %v3047_v36 = vmax.f32 %v3045_v53, %v17063_v16  ;;  %v2934_v24 = vrot.slane %v2933_v40, 1  ;;  %v2940_v45 = vmax.f32 %v2938_v60, %v2939_v10  ;;  %v2947_v55 = vmax.f32 %v2945_v18, %v2946_v17  ;;  %v17140_v18 = vpop.f32.mrf.mxu1 }
 0x1fa   : > { %v2816_v39 = vmax.f32 %v2814_v0, %v2815_v44  ;;  %v3048_v26 = vsel %vm488_vm4, %v2802_v49, -inf  ;;  %v3051_v20 = vsel %vm488_vm4, %v2809_v54, -inf  ;;  %v2953_v29 = vrot.slane %v2952_v15, 2  ;;  %v17147_v0 = vpop.f32.mrf.mxu0 }
 0x1fb   : > { %v3050_v41 = vmax.f32 %v3048_v26, %v17071_v51  ;;  %v3053_v47 = vmax.f32 %v3051_v20, %v17099_v13  ;;  %v3137_v37 = vsel %vm3119_vm9, %v3047_v36, %v17074_v52  ;;  %v2935_v42 = vmax.f32 %v2933_v40, %v2934_v24  ;;  %v17164_v24 = vpop.f32.mrf.mxu1 }
 0x1fc   : > { %v3054_v16 = vsel %vm488_vm4, %v2816_v39, -inf  ;;  %v2941_v60 = vrot.slane %v2940_v45, 1  ;;  %v2948_v17 = vrot.slane %v2947_v55, 1  ;;  %v2954_v58 = vmax.f32 %v2952_v15, %v2953_v29  ;;  %20007 = vst [vmem:[#allocation82_spill] sm:$0xff] %v17164_v24 }
 0x1fd   : > { %v3056_v49 = vmax.f32 %v3054_v16, %v17103_v46  ;;  %v3138_v3 = vsel %vm3121_vm10, %v3050_v41, %v3137_v37  ;;  %v2405_v51 = vcombine.high %v17114_v9, %v17114_v9  ;;  %v2412_v10 = vrot.slane %v17114_v9, %v16582_v56  ;;  %v17171_v41 = vpop.f32.mrf.mxu0 }
 0x1fe   : > { %v3139_v13 = vsel %vm3123_vm11, %v3053_v47, %v3138_v3  ;;  %v2942_v33 = vmax.f32 %v2940_v45, %v2941_v60  ;;  %v2949_v43 = vmax.f32 %v2947_v55, %v2948_v17  ;;  %v2955_v52 = vrot.slane %v2954_v58, 1  ;;  %20008 = vst [vmem:[#allocation83_spill] sm:$0xff] %v17171_v41 }
 0x1ff   : > { %v3140_v40 = vsel %vm3125_vm12, %v3056_v49, %v3139_v13  ;;  %v2419_v15 = vrot.slane %v2405_v51, %v16582_v56  ;;  %v2168_v46 = vadd.f32 %v16983_v4, %v17086_v50  ;;  %v17157_v44 = vsel %vm488_vm4, %v2935_v42, -inf }
 0x200   : > { %3155 = vst.msk [vmem:[#allocation3 + $0x31] sm:$0xff] %vm488_vm4, %v3140_v40  ;;  %v2956_v54 = vmax.f32 %v2954_v58, %v2955_v52  ;;  %v17160_v53 = vsel %vm488_vm4, %v2942_v33, -inf  ;;  %v2166_v36 = vadd.f32 %v16983_v4, %v17090_v8  ;;  %v2420_v9 = vcombine.high %v2412_v10, %v2412_v10  ;;  %v17178_v58 = vpop.f32.mrf.mxu1 }
 0x201   : > { %v2421_v45 = vcombine.high %v2419_v15, %v2419_v15  ;;  %v2873_v55 = vsel %vm490_vm5, %v2412_v10, -inf  ;;  %v2887_v50 = vsel %vm490_vm5, %v2419_v15, -inf  ;;  %v17169_v39 = vsel %vm488_vm4, %v2949_v43, -inf  ;;  %20009 = vst [vmem:[#allocation84_spill] sm:$0xff] %v17178_v58  ;;  %v17184_v10 = vpop.f32.mrf.mxu0 }
 0x202   : > { %v2874_v26 = vrot.slane %v2873_v55, 4  ;;  %v2888_v20 = vrot.slane %v2887_v50, 4  ;;  %v2184_v29 = vmax.f32 %v2168_v46, 0.0  ;;  %v17174_v47 = vsel %vm488_vm4, %v2956_v54, -inf  ;;  %20010 = vst [vmem:[#allocation85_spill] sm:$0xff] %v17184_v10 }
 0x203   : > { %v2880_v4 = vsel %vm490_vm5, %v2420_v9, -inf  ;;  %v2894_v8 = vsel %vm490_vm5, %v2421_v45, -inf  ;;  %v2182_v37 = vmax.f32 %v2166_v36, 0.0 }
 0x204   : > { %v2875_v42 = vmax.f32 %v2873_v55, %v2874_v26  ;;  %v2881_v16 = vrot.slane %v2880_v4, 4  ;;  %v2889_v60 = vmax.f32 %v2887_v50, %v2888_v20  ;;  %v2895_v17 = vrot.slane %v2894_v8, 4  ;;  %v17191_v26 = vpop.f32.mrf.mxu1 }
 0x205   : > { %v2456_v49 = vcombine.high %v2184_v29, %v2184_v29  ;;  %v2463_v3 = vrot.slane %v2184_v29, %v16582_v56  ;;  %v2422_v51 = vcombine.high %v2182_v37, %v2182_v37  ;;  %v17182_v13 = vrot.slane %v2182_v37, %v16582_v56  ;;  %20011 = vst [vmem:[#allocation86_spill] sm:$0xff] %v17191_v26 }
 0x206   : > { %v2876_v33 = vrot.slane %v2875_v42, 2  ;;  %v2882_v43 = vmax.f32 %v2880_v4, %v2881_v16  ;;  %v2890_v52 = vrot.slane %v2889_v60, 2  ;;  %v2896_v40 = vmax.f32 %v2894_v8, %v2895_v17  ;;  %v17198_v10 = vpop.f32.mrf.mxu1 }
 0x207   : > { %v2470_v15 = vrot.slane %v2456_v49, %v16582_v56  ;;  %v2471_v46 = vcombine.high %v2463_v3, %v2463_v3  ;;  %v2957_v54 = vsel %vm490_vm5, %v2463_v3, -inf  ;;  %v17189_v36 = vrot.slane %v2422_v51, %v16582_v56  ;;  %v17195_v3 = vpop.f32.mrf.mxu0 }
 0x208   : > { %v2877_v9 = vmax.f32 %v2875_v42, %v2876_v33  ;;  %v2883_v45 = vrot.slane %v2882_v43, 2  ;;  %v2891_v55 = vmax.f32 %v2889_v60, %v2890_v52  ;;  %v2897_v50 = vrot.slane %v2896_v40, 2 }
 0x209   : > { %v2472_v20 = vcombine.high %v2470_v15, %v2470_v15  ;;  %v2958_v29 = vrot.slane %v2957_v54, 4  ;;  %v2964_v4 = vsel %vm490_vm5, %v2471_v46, -inf  ;;  %v2971_v8 = vsel %vm490_vm5, %v2470_v15, -inf }
 0x20a   : > { %v2878_v37 = vrot.slane %v2877_v9, 1  ;;  %v2884_v16 = vmax.f32 %v2882_v43, %v2883_v45  ;;  %v2892_v17 = vrot.slane %v2891_v55, 1  ;;  %v2898_v49 = vmax.f32 %v2896_v40, %v2897_v50  ;;  %v17202_v50 = vpop.f32.mrf.mxu0 }
 0x20b   : > { %v2959_v51 = vmax.f32 %v2957_v54, %v2958_v29  ;;  %v2965_v41 = vrot.slane %v2964_v4, 4  ;;  %v2972_v42 = vrot.slane %v2971_v8, 4  ;;  %v2978_v60 = vsel %vm490_vm5, %v2472_v20, -inf }
 0x20c   : > { %v2879_v33 = vmax.f32 %v2877_v9, %v2878_v37  ;;  %v2885_v52 = vrot.slane %v2884_v16, 1  ;;  %v2893_v56 = vmax.f32 %v2891_v55, %v2892_v17  ;;  %v2899_v26 = vrot.slane %v2898_v49, 1 }
 0x20d   : > { %v2960_v46 = vrot.slane %v2959_v51, 2  ;;  %v2966_v58 = vmax.f32 %v2964_v4, %v2965_v41  ;;  %v2973_v15 = vmax.f32 %v2971_v8, %v2972_v42  ;;  %v2979_v24 = vrot.slane %v2978_v60, 4 }
 0x20e   : > { %v2886_v43 = vmax.f32 %v2884_v16, %v2885_v52  ;;  %v2900_v45 = vmax.f32 %v2898_v49, %v2899_v26  ;;  %v3057_v40 = vsel %vm488_vm4, %v2879_v33, -inf  ;;  %v3063_v54 = vsel %vm488_vm4, %v2893_v56, -inf  ;;  %v17208_v16 = vpop.f32.mrf.mxu1 }
 0x20f   : > { %v3059_v20 = vmax.f32 %v3057_v40, %v17157_v44  ;;  %v3065_v9 = vmax.f32 %v3063_v54, %v17169_v39  ;;  %v2961_v55 = vmax.f32 %v2959_v51, %v2960_v46  ;;  %v2967_v29 = vrot.slane %v2966_v58, 2  ;;  %v17214_v51 = vpop.f32.mrf.mxu0 }
 0x210   : > { %v3060_v37 = vsel %vm488_vm4, %v2886_v43, -inf  ;;  %v3066_v41 = vsel %vm488_vm4, %v2900_v45, -inf  ;;  %v2974_v4 = vrot.slane %v2973_v15, 2  ;;  %v2980_v8 = vmax.f32 %v2978_v60, %v2979_v24 }
 0x211   : > { %v3062_v26 = vmax.f32 %v3060_v37, %v17160_v53  ;;  %v3068_v56 = vmax.f32 %v3066_v41, %v17174_v47  ;;  %v2962_v17 = vrot.slane %v2961_v55, 1  ;;  %v2968_v49 = vmax.f32 %v2966_v58, %v2967_v29 }
 0x212   : > { %v2975_v42 = vmax.f32 %v2973_v15, %v2974_v4  ;;  %v2981_v44 = vrot.slane %v2980_v8, 2  ;;  %v2437_v39 = vcombine.high %v17182_v13, %v17182_v13  ;;  %v2438_v24 = vcombine.high %v17189_v36, %v17189_v36  ;;  %v17222_v15 = vpop.f32.mrf.mxu1  ;;  %v17227_v4 = vpop.f32.mrf.mxu0 }
 0x213   : > { %v3141_v33 = vsel %vm3113_vm6, %v3062_v26, %v3059_v20  ;;  %v2969_v52 = vrot.slane %v2968_v49, 1  ;;  %v2901_v53 = vsel %vm490_vm5, %v17182_v13, -inf  ;;  %v2963_v43 = vmax.f32 %v2961_v55, %v2962_v17 }
 0x214   : > { %v3142_v47 = vsel %vm3115_vm7, %v3065_v9, %v3141_v33  ;;  %v2976_v60 = vrot.slane %v2975_v42, 1  ;;  %v2982_v58 = vmax.f32 %v2980_v8, %v2981_v44  ;;  %v2902_v46 = vrot.slane %v2901_v53, 4 }
 0x215   : > { %v2970_v45 = vmax.f32 %v2968_v49, %v2969_v52  ;;  %v2908_v40 = vsel %vm490_vm5, %v2437_v39, -inf  ;;  %v2915_v54 = vsel %vm490_vm5, %v17189_v36, -inf  ;;  %v2922_v9 = vsel %vm490_vm5, %v2438_v24, -inf  ;;  %v17233_v49 = vpop.f32.mrf.mxu1 }
 0x216   : > { %v2977_v20 = vmax.f32 %v2975_v42, %v2976_v60  ;;  %v2983_v29 = vrot.slane %v2982_v58, 1  ;;  %v2903_v37 = vmax.f32 %v2901_v53, %v2902_v46  ;;  %v2909_v41 = vrot.slane %v2908_v40, 4  ;;  %v17248_v53 = vld [vmem:[#allocation3 + $0x1] sm:$0xff]  ;;  %v17252_v60 = vpop.f32.mrf.mxu0 }
 0x217   : > { %v2916_v13 = vrot.slane %v2915_v54, 4  ;;  %v17231_v8 = vsel %vm3117_vm8, %v3068_v56, %v3142_v47  ;;  %v17236_v44 = vsel %vm488_vm4, %v2963_v43, -inf  ;;  %v2923_v42 = vrot.slane %v2922_v9, 4  ;;  %v17250_v47 = vld [vmem:[#allocation3 + $0x11] sm:$0xff]  ;;  %v20012_v43 = vld [vmem:[#allocation10_spill] sm:$0xff] }
 0x218   : > { %v2984_v26 = vmax.f32 %v2982_v58, %v2983_v29  ;;  %v2904_v55 = vrot.slane %v2903_v37, 2  ;;  %v2910_v17 = vmax.f32 %v2908_v40, %v2909_v41  ;;  %v17240_v39 = vadd.f32 %v16709_v63, %v16647_v23  ;;  %v20013_v63 = vld [vmem:[#allocation11_spill] sm:$0xff]  ;;  %v20014_v29 = vld [vmem:[#allocation12_spill] sm:$0xff]  ;;  %v17273_v41 = vpop.f32.mrf.mxu1 }
 0x219   : > { %v2917_v36 = vmax.f32 %v2915_v54, %v2916_v13  ;;  %v17243_v33 = vsel %vm488_vm4, %v2970_v45, -inf  ;;  %v17246_v56 = vsel %vm488_vm4, %v2977_v20, -inf  ;;  %v17254_v46 = vmax.f32 %v2922_v9, %v2923_v42 }
 0x21a   : > { %v2905_v52 = vmax.f32 %v2903_v37, %v2904_v55  ;;  %v2911_v24 = vrot.slane %v2910_v17, 2  ;;  %v17258_v23 = vadd.f32 %v16721_v34, %v20012_v43  ;;  %v17262_v45 = vadd.f32 %v16744_v61, %v20013_v63  ;;  %v20015_v55 = vld [vmem:[#allocation13_spill] sm:$0xff] }
 0x21b   : > { %v2918_v58 = vrot.slane %v2917_v36, 2  ;;  %v17265_v40 = vsel %vm488_vm4, %v2984_v26, -inf  ;;  %v17271_v37 = vadd.f32 %v16757_v6, %v20014_v29  ;;  %v2925_v34 = vrot.slane %v17254_v46, 2  ;;  %v20016_v6 = vld [vmem:[#allocation14_spill] sm:$0xff]  ;;  %v17426_v29 = vpop.f32.mrf.mxu1 }
 0x21c   : > { %v2906_v54 = vrot.slane %v2905_v52, 1  ;;  %v17267_v20 = vmax.f32 %v2910_v17, %v2911_v24  ;;  %v5641_v61 = vpack.c.bf16 %v17250_v47, %v17248_v53  ;;  %v17285_v17 = vadd.f32 %v16769_v30, %v20015_v55  ;;  %v17403_v30 = vpop.f32.mrf.mxu0  ;;  %v20018_v24 = vld [vmem:[#allocation15_spill] sm:$0xff] }
 0x21d   : > { %v17275_v13 = vmax.f32 %v2917_v36, %v2918_v58  ;;  %v17289_v42 = vadd.f32 %v16779_v38, %v20016_v6  ;;  %v20017_v36 = vmov 0.0   ;;  %v3421_v58 = vadd.f32 %v16788_v19, %v20018_v24 }
 0x21e   : > { %v17280_v9 = vmax.f32 %v2905_v52, %v2906_v54  ;;  %v2913_v26 = vrot.slane %v17267_v20, 1  ;;  %496 = vst.msk [vmem:[#allocation3] sm:$0x1] %vm495_vm13, %v20017_v36  ;;  %497 = vst.msk [vmem:[#allocation3 + $0x10] sm:$0x1] %vm495_vm13, %v20017_v36  ;;  %v2926_v52 = vmax.f32 %v17254_v46, %v2925_v34  ;;  %v3413_v43 = vadd.f32 %v16796_v7, %v16707_v31 }
 0x21f   : > { %498 = vst.msk [vmem:[#allocation3 + $0x20] sm:$0x1] %vm495_vm13, %v20017_v36  ;;  %499 = vst.msk [vmem:[#allocation3 + $0x30] sm:$0x1] %vm495_vm13, %v20017_v36  ;;  %v2920_v38 = vrot.slane %v17275_v13, 1  ;;  %14716 = vmatprep.mubr.msk.bf16.mxu0 %vm488_vm4, %v5641_v61  ;;  %v3434_v46 = vadd.f32 %v16801_v14, %v16714_v35  ;;  %v3607_v19 = vadd.f32 %v16815_v1, %v17240_v39  ;;  %v20019_v61 = vld [vmem:[#allocation16_spill] sm:$0xff]  ;;  %v17439_v1 = vpop.f32.mrf.mxu0 }
 0x220   : > { %500 = vst.msk [vmem:[#allocation3 + $0x40] sm:$0x1] %vm495_vm13, %v20017_v36  ;;  %501 = vst.msk [vmem:[#allocation3 + $0x50] sm:$0x1] %vm495_vm13, %v20017_v36  ;;  %v2914_v63 = vmax.f32 %v17267_v20, %v2913_v26  ;;  %v3069_v54 = vsel %vm488_vm4, %v17280_v9, -inf  ;;  %v2927_v7 = vrot.slane %v2926_v52, 1  ;;  %v3426_v47 = vadd.f32 %v16817_v22, %v16741_v21 }
 0x221   : > { %502 = vst.msk [vmem:[#allocation3 + $0x60] sm:$0x1] %vm495_vm13, %v20017_v36  ;;  %503 = vst.msk [vmem:[#allocation3 + $0x70] sm:$0x1] %vm495_vm13, %v20017_v36  ;;  %v2921_v31 = vmax.f32 %v17275_v13, %v2920_v38  ;;  %v3071_v53 = vmax.f32 %v3069_v54, %v17236_v44  ;;  %v3605_v34 = vadd.f32 %v16820_v32, %v17258_v23  ;;  %v5636_v22 = vld [vmem:[#allocation3 + $0x31] sm:$0xff]  ;;  %v20021_v23 = vld [vmem:[#allocation22_spill] sm:$0xff]  ;;  %v17452_v38 = vpop.f32.mrf.mxu1 }
 0x222   : > { %504 = vst.msk [vmem:[#allocation3 + $0x80] sm:$0x1] %vm495_vm13, %v20017_v36  ;;  %505 = vst.msk [vmem:[#allocation3 + $0x90] sm:$0x1] %vm495_vm13, %v20017_v36  ;;  %v3072_v20 = vsel %vm488_vm4, %v2914_v63, -inf  ;;  %v3437_v35 = vadd.f32 %v16822_v5, %v20019_v61  ;;  %v3608_v14 = vadd.f32 %v16828_v2, %v17262_v45  ;;  %v2928_v39 = vmax.f32 %v2926_v52, %v2927_v7  ;;  %v20020_v32 = vld [vmem:[#allocation17_spill] sm:$0xff] }
 0x223   : > { %506 = vst.msk [vmem:[#allocation3 + $0x9] sm:$0x1] %vm495_vm13, %v20017_v36  ;;  %507 = vst.msk [vmem:[#allocation3 + $0x19] sm:$0x1] %vm495_vm13, %v20017_v36  ;;  %v3074_v13 = vmax.f32 %v3072_v20, %v17243_v33  ;;  %v3075_v44 = vsel %vm488_vm4, %v2921_v31, -inf  ;;  %v3144_v21 = vsel %vm3119_vm9, %v3071_v53, %v17231_v8  ;;  %v3429_v26 = vadd.f32 %v20021_v23, %v20020_v32  ;;  %v20022_v5 = vld [vmem:[#allocation23_spill] sm:$0xff] }
 0x224   : > { %508 = vst.msk [vmem:[#allocation3 + $0x29] sm:$0x1] %vm495_vm13, %v20017_v36  ;;  %509 = vst.msk [vmem:[#allocation3 + $0x39] sm:$0x1] %vm495_vm13, %v20017_v36  ;;  %v3077_v9 = vmax.f32 %v3075_v44, %v17246_v56  ;;  %v3606_v55 = vadd.f32 %v20022_v5, %v17271_v37  ;;  %v20023_v2 = vld [vmem:[#allocation18_spill] sm:$0xff]  ;;  %v20024_v45 = vld [vmem:[#allocation24_spill] sm:$0xff] }
 0x225   : > { %510 = vst.msk [vmem:[#allocation3 + $0x49] sm:$0x1] %vm495_vm13, %v20017_v36  ;;  %511 = vst.msk [vmem:[#allocation3 + $0x59] sm:$0x1] %vm495_vm13, %v20017_v36  ;;  %v3450_v6 = vadd.f32 %v20024_v45, %v20023_v2  ;;  %v3078_v33 = vsel %vm488_vm4, %v2928_v39, -inf  ;;  %v3145_v52 = vsel %vm3121_vm10, %v3074_v13, %v3144_v21  ;;  %v5617_v24 = vld [vmem:[#allocation3] sm:$0xff]  ;;  %v17462_v39 = vpop.f32.mrf.mxu0 }
 0x226   : > { %512 = vst.msk [vmem:[#allocation3 + $0x69] sm:$0x1] %vm495_vm13, %v20017_v36  ;;  %513 = vst.msk [vmem:[#allocation3 + $0x79] sm:$0x1] %vm495_vm13, %v20017_v36  ;;  %v5618_v8 = vld [vmem:[#allocation3 + $0x10] sm:$0xff]  ;;  %v20025_v63 = vld [vmem:[#allocation25_spill] sm:$0xff]  ;;  %v3080_v37 = vmax.f32 %v3078_v33, %v17265_v40  ;;  %v3146_v20 = vsel %vm3123_vm11, %v3077_v9, %v3145_v52 }
 0x227   : > { %514 = vst.msk [vmem:[#allocation3 + $0x89] sm:$0x1] %vm495_vm13, %v20017_v36  ;;  %515 = vst.msk [vmem:[#allocation3 + $0x99] sm:$0x1] %vm495_vm13, %v20017_v36  ;;  %v3611_v56 = vadd.f32 %v20025_v63, %v17285_v17  ;;  %v20026_v54 = vld [vmem:[#allocation19_spill] sm:$0xff]  ;;  %v20027_v31 = vld [vmem:[#allocation26_spill] sm:$0xff]  ;;  %v5625_v61 = vpack.c.bf16 %v5618_v8, %v5617_v24  ;;  %v17475_v24 = vpop.f32.mrf.mxu1 }
 0x228   : > { %582 = vst.msk [vmem:[#allocation7] sm:$0x1] %vm495_vm13, %v20017_v36  ;;  %583 = vst.msk [vmem:[#allocation7 + $0x18] sm:$0x1] %vm495_vm13, %v20017_v36  ;;  %v3442_v7 = vadd.f32 %v20027_v31, %v20026_v54  ;;  %v5635_v53 = vld [vmem:[#allocation3 + $0x21] sm:$0xff]  ;;  %v5620_v23 = vld [vmem:[#allocation3 + $0x30] sm:$0xff]  ;;  %v3147_v31 = vsel %vm3125_vm12, %v3080_v37, %v3146_v20 }
 0x229   : > { %584 = vst.msk [vmem:[#allocation7 + $0x30] sm:$0x1] %vm495_vm13, %v20017_v36  ;;  %585 = vst.msk [vmem:[#allocation7 + $0x48] sm:$0x1] %vm495_vm13, %v20017_v36  ;;  %v5642_v44 = vpack.c.bf16 %v5636_v22, %v5635_v53  ;;  %v5619_v32 = vld [vmem:[#allocation3 + $0x20] sm:$0xff]  ;;  %v20028_v13 = vld [vmem:[#allocation27_spill] sm:$0xff]  ;;  %14728 = vmatprep.mubr.msk.bf16.mxu1 %vm488_vm4, %v5625_v61 }
 0x22a   : > { %586 = vst.msk [vmem:[#allocation7 + $0x60] sm:$0x1] %vm495_vm13, %v20017_v36  ;;  %587 = vst.msk [vmem:[#allocation7 + $0x78] sm:$0x1] %vm495_vm13, %v20017_v36  ;;  %v3609_v21 = vadd.f32 %v20028_v13, %v17289_v42  ;;  %v20029_v5 = vld [vmem:[#allocation20_spill] sm:$0xff]  ;;  %v20031_v45 = vld [vmem:[#allocation29_spill] sm:$0xff]  ;;  %v5626_v54 = vpack.c.bf16 %v5620_v23, %v5619_v32 }
 0x22b   : > { %588 = vst.msk [vmem:[#allocation7 + $0x90] sm:$0x1] %vm495_vm13, %v20017_v36  ;;  %589 = vst.msk [vmem:[#allocation7 + $0xa8] sm:$0x1] %vm495_vm13, %v20017_v36  ;;  %v20030_v2 = vld [vmem:[#allocation28_spill] sm:$0xff]  ;;  %v3612_v63 = vadd.f32 %v20031_v45, %v3421_v58  ;;  %v20032_v40 = vld [vmem:[#allocation21_spill] sm:$0xff]  ;;  %14717 = vmatmul.mubr.msk.bf16.vlgmr.msra.gmra.mxu0 %vm488_vm4, %v5642_v44 }
 0x22c   : > { %590 = vst.msk [vmem:[#allocation7 + $0xc0] sm:$0x1] %vm495_vm13, %v20017_v36  ;;  %591 = vst.msk [vmem:[#allocation7 + $0xd8] sm:$0x1] %vm495_vm13, %v20017_v36  ;;  %v3453_v17 = vadd.f32 %v20030_v2, %v20029_v5  ;;  %v20033_v9 = vld [vmem:[#allocation30_spill] sm:$0xff]  ;;  %v20034_v33 = vld [vmem:[#allocation31_spill] sm:$0xff]  ;;  %14729 = vmatmul.mubr.msk.bf16.vlgmr.msra.gmra.mxu1 %vm488_vm4, %v5626_v54 }
 0x22d   : > { %592 = vst.msk [vmem:[#allocation7 + $0xf0] sm:$0x1] %vm495_vm13, %v20017_v36  ;;  %593 = vst.msk [vmem:[#allocation7 + $0x108] sm:$0x1] %vm495_vm13, %v20017_v36  ;;  %v3445_v22 = vadd.f32 %v20033_v9, %v20032_v40  ;;  %v3610_v52 = vadd.f32 %v20034_v33, %v3413_v43  ;;  %v20035_v42 = vld [vmem:[#allocation32_spill] sm:$0xff]  ;;  %v20036_v8 = vld [vmem:[#allocation33_spill] sm:$0xff]  ;;  %v17487_v9 = vpop.f32.mrf.mxu0 }
 0x22e   : > { %594 = vst.msk [vmem:[#allocation7 + $0x120] sm:$0x1] %vm495_vm13, %v20017_v36  ;;  %595 = vst.msk [vmem:[#allocation7 + $0x138] sm:$0x1] %vm495_vm13, %v20017_v36  ;;  %v3773_v58 = vadd.f32 %v20035_v42, %v3607_v19  ;;  %v3615_v53 = vadd.f32 %v20036_v8, %v3434_v46  ;;  %v20037_v37 = vld [vmem:[#allocation34_spill] sm:$0xff]  ;;  %v20038_v61 = vld [vmem:[#allocation35_spill] sm:$0xff] }
 0x22f   : > { %596 = vst.msk [vmem:[#allocation7 + $0x150] sm:$0x1] %vm495_vm13, %v20017_v36  ;;  %597 = vst.msk [vmem:[#allocation7 + $0x168] sm:$0x1] %vm495_vm13, %v20017_v36  ;;  %v3771_v20 = vadd.f32 %v20037_v37, %v3605_v34  ;;  %v3613_v32 = vadd.f32 %v20038_v61, %v3426_v47  ;;  %v20039_v23 = vld [vmem:[#allocation36_spill] sm:$0xff]  ;;  %v20040_v5 = vld [vmem:[#allocation37_spill] sm:$0xff] }
 0x230   : > { %598 = vst.msk [vmem:[#allocation7 + $0x180] sm:$0x1] %vm495_vm13, %v20017_v36  ;;  %599 = vst.msk [vmem:[#allocation7 + $0x198] sm:$0x1] %vm495_vm13, %v20017_v36  ;;  %v3774_v13 = vadd.f32 %v20039_v23, %v3608_v14  ;;  %v3616_v44 = vadd.f32 %v20040_v5, %v3437_v35  ;;  %v20041_v2 = vld [vmem:[#allocation38_spill] sm:$0xff]  ;;  %v20042_v45 = vld [vmem:[#allocation39_spill] sm:$0xff]  ;;  %v17497_v5 = vpop.f32.mrf.mxu1 }
 0x231   : > { %600 = vst.msk [vmem:[#allocation7 + $0x11] sm:$0x1] %vm495_vm13, %v20017_v36  ;;  %601 = vst.msk [vmem:[#allocation7 + $0x29] sm:$0x1] %vm495_vm13, %v20017_v36  ;;  %v3772_v43 = vadd.f32 %v20041_v2, %v3606_v55  ;;  %v3614_v40 = vadd.f32 %v20042_v45, %v3429_v26  ;;  %v20044_v33 = vld [vmem:[#allocation41_spill] sm:$0xff]  ;;  %v20045_v42 = vld [vmem:[#allocation42_spill] sm:$0xff]  ;;  %v3618_v55 = vadd.f32 %v16935_v48, %v3445_v22 }
 0x232   : > { %602 = vst.msk [vmem:[#allocation7 + $0x41] sm:$0x1] %vm495_vm13, %v20017_v36  ;;  %603 = vst.msk [vmem:[#allocation7 + $0x59] sm:$0x1] %vm495_vm13, %v20017_v36  ;;  %v3619_v19 = vadd.f32 %v20044_v33, %v3450_v6  ;;  %v3775_v46 = vadd.f32 %v20045_v42, %v3609_v21  ;;  %v20046_v8 = vld [vmem:[#allocation43_spill] sm:$0xff]  ;;  %v20047_v37 = vld [vmem:[#allocation44_spill] sm:$0xff]  ;;  %v3781_v26 = vadd.f32 %v16937_v25, %v3615_v53 }
 0x233   : > { %604 = vst.msk [vmem:[#allocation7 + $0x71] sm:$0x1] %vm495_vm13, %v20017_v36  ;;  %605 = vst.msk [vmem:[#allocation7 + $0x89] sm:$0x1] %vm495_vm13, %v20017_v36  ;;  %v3617_v34 = vadd.f32 %v20046_v8, %v3442_v7  ;;  %v3778_v47 = vadd.f32 %v20047_v37, %v3612_v63  ;;  %v20048_v61 = vld [vmem:[#allocation45_spill] sm:$0xff]  ;;  %v20049_v23 = vld [vmem:[#allocation46_spill] sm:$0xff]  ;;  %v17507_v37 = vpop.f32.mrf.mxu0 }
 0x234   : > { %606 = vst.msk [vmem:[#allocation7 + $0xa1] sm:$0x1] %vm495_vm13, %v20017_v36  ;;  %607 = vst.msk [vmem:[#allocation7 + $0xb9] sm:$0x1] %vm495_vm13, %v20017_v36  ;;  %v3620_v14 = vadd.f32 %v20048_v61, %v3453_v17  ;;  %v3776_v35 = vadd.f32 %v20049_v23, %v3610_v52  ;;  %v20050_v2 = vld [vmem:[#allocation47_spill] sm:$0xff]  ;;  %v20051_v45 = vld [vmem:[#allocation48_spill] sm:$0xff] }
 0x235   : > { %608 = vst.msk [vmem:[#allocation7 + $0xd1] sm:$0x1] %vm495_vm13, %v20017_v36  ;;  %609 = vst.msk [vmem:[#allocation7 + $0xe9] sm:$0x1] %vm495_vm13, %v20017_v36  ;;  %v3779_v6 = vadd.f32 %v20050_v2, %v3613_v32  ;;  %v3936_v21 = vadd.f32 %v20051_v45, %v3771_v20  ;;  %v20053_v33 = vld [vmem:[#allocation50_spill] sm:$0xff]  ;;  %v20054_v42 = vld [vmem:[#allocation51_spill] sm:$0xff] }
 0x236   : > { %610 = vst.msk [vmem:[#allocation7 + $0x101] sm:$0x1] %vm495_vm13, %v20017_v36  ;;  %611 = vst.msk [vmem:[#allocation7 + $0x119] sm:$0x1] %vm495_vm13, %v20017_v36  ;;  %v3939_v63 = vadd.f32 %v20053_v33, %v3774_v13  ;;  %v3780_v17 = vadd.f32 %v20054_v42, %v3614_v40  ;;  %v20055_v8 = vld [vmem:[#allocation52_spill] sm:$0xff]  ;;  %v20056_v48 = vld [vmem:[#allocation53_spill] sm:$0xff] }
 0x237   : > { %612 = vst.msk [vmem:[#allocation7 + $0x131] sm:$0x1] %vm495_vm13, %v20017_v36  ;;  %613 = vst.msk [vmem:[#allocation7 + $0x149] sm:$0x1] %vm495_vm13, %v20017_v36  ;;  %v3937_v52 = vadd.f32 %v20055_v8, %v3772_v43  ;;  %v3785_v22 = vadd.f32 %v20056_v48, %v3619_v19  ;;  %v20057_v61 = vld [vmem:[#allocation54_spill] sm:$0xff]  ;;  %v20058_v53 = vld [vmem:[#allocation55_spill] sm:$0xff]  ;;  %v14699_v43 = vpop.f32.mrf.mxu1 }
 0x238   : > { %614 = vst.msk [vmem:[#allocation7 + $0x161] sm:$0x1] %vm495_vm13, %v20017_v36  ;;  %615 = vst.msk [vmem:[#allocation7 + $0x179] sm:$0x1] %vm495_vm13, %v20017_v36  ;;  %v20060_v23 = vld [vmem:[#allocation57_spill] sm:$0xff]  ;;  %v20061_v2 = vld [vmem:[#allocation58_spill] sm:$0xff] }
 0x239   : > { %616 = vst.msk [vmem:[#allocation7 + $0x191] sm:$0x1] %vm495_vm13, %v20017_v36  ;;  %617 = vst.msk [vmem:[#allocation7 + $0x1a9] sm:$0x1] %vm495_vm13, %v20017_v36  ;;  %v3786_v20 = vadd.f32 %v20060_v23, %v3620_v14  ;;  %v20062_v45 = vld [vmem:[#allocation59_spill] sm:$0xff]  ;;  %v20063_v40 = vld [vmem:[#allocation60_spill] sm:$0xff]  ;;  %v4404_v23 = vpop.f32.mrf.mxu0 }
 0x23a   : > { %3156 = vst.msk [vmem:[#allocation3 + $0x41] sm:$0xff] %vm488_vm4, %v3147_v31  ;;  %v20043_v31 = vld [vmem:[#allocation40_spill] sm:$0xff]  ;;  %v17516_v13 = vadd.f32 %v20062_v45, %v3618_v55  ;;  %v20064_v33 = vld [vmem:[#allocation61_spill] sm:$0xff]  ;;  %v20065_v8 = vld [vmem:[#allocation62_spill] sm:$0xff]  ;;  %v3945_v55 = vadd.f32 %v17038_v57, %v3780_v17 }
 0x23b   : > { %v3777_v54 = vadd.f32 %v20043_v31, %v3611_v56  ;;  %v3938_v56 = vadd.f32 %v16942_v62, %v3773_v58  ;;  %v20052_v31 = vld [vmem:[#allocation49_spill] sm:$0xff]  ;;  %v3783_v62 = vadd.f32 %v20058_v53, %v3617_v34  ;;  %v20059_v58 = vld [vmem:[#allocation56_spill] sm:$0xff]  ;;  %v3946_v19 = vadd.f32 %v20065_v8, %v3781_v26  ;;  %v20066_v48 = vld [vmem:[#allocation63_spill] sm:$0xff] }
 0x23c   : > { %v3782_v7 = vadd.f32 %v20052_v31, %v3616_v44  ;;  %v3940_v32 = vadd.f32 %v20059_v58, %v3775_v46  ;;  %v3943_v44 = vadd.f32 %v20061_v2, %v3778_v47  ;;  %v3941_v31 = vadd.f32 %v20063_v40, %v3776_v35  ;;  %v20068_v53 = vld [vmem:[#allocation65_spill] sm:$0xff]  ;;  %v20069_v58 = vld [vmem:[#allocation66_spill] sm:$0xff]  ;;  %v20070_v2 = vld [vmem:[#allocation67_spill] sm:$0xff] }
 0x23d   : > { %v3942_v25 = vadd.f32 %v20057_v61, %v3777_v54  ;;  %v4103_v42 = vadd.f32 %v20064_v33, %v3938_v56  ;;  %v4101_v54 = vadd.f32 %v20066_v48, %v3936_v21  ;;  %v20067_v61 = vld [vmem:[#allocation64_spill] sm:$0xff]  ;;  %v4104_v46 = vadd.f32 %v20068_v53, %v3939_v63  ;;  %v20072_v56 = vld [vmem:[#allocation69_spill] sm:$0xff]  ;;  %v20073_v26 = vld [vmem:[#allocation70_spill] sm:$0xff] }
 0x23e   : > { %v3944_v34 = vadd.f32 %v20067_v61, %v3779_v6  ;;  %v3947_v14 = vadd.f32 %v17032_v28, %v3782_v7  ;;  %v4102_v47 = vadd.f32 %v20069_v58, %v3937_v52  ;;  %v20071_v45 = vld [vmem:[#allocation68_spill] sm:$0xff]  ;;  %v4105_v33 = vadd.f32 %v20072_v56, %v3940_v32  ;;  %v20074_v21 = vld [vmem:[#allocation71_spill] sm:$0xff]  ;;  %v20076_v63 = vld [vmem:[#allocation73_spill] sm:$0xff]  ;;  %v4537_v52 = vpop.f32.mrf.mxu1 }
 0x23f   : > { %v4107_v35 = vadd.f32 %v20070_v2, %v3942_v25  ;;  %v3950_v40 = vadd.f32 %v20071_v45, %v3785_v22  ;;  %v3948_v8 = vadd.f32 %v20073_v26, %v3783_v62  ;;  %v4108_v48 = vadd.f32 %v20074_v21, %v3943_v44  ;;  %v20075_v6 = vld [vmem:[#allocation72_spill] sm:$0xff]  ;;  %v20077_v28 = vld [vmem:[#allocation75_spill] sm:$0xff]  ;;  %v20079_v17 = vld [vmem:[#allocation77_spill] sm:$0xff] }
 0x240   : > { %v3951_v61 = vadd.f32 %v20075_v6, %v3786_v20  ;;  %v4106_v53 = vadd.f32 %v20076_v63, %v3941_v31  ;;  %v4111_v7 = vadd.f32 %v20077_v28, %v3946_v19  ;;  %v20078_v58 = vld [vmem:[#allocation76_spill] sm:$0xff]  ;;  %v4109_v36 = vadd.f32 %v20079_v17, %v3944_v34  ;;  %v20080_v25 = vld [vmem:[#allocation78_spill] sm:$0xff]  ;;  %v20081_v22 = vld [vmem:[#allocation79_spill] sm:$0xff]  ;;  %v14692_v31 = vpop.f32.mrf.mxu0 }
 0x241   : > { %v4269_v57 = vadd.f32 %v20078_v58, %v4103_v42  ;;  %v4267_v2 = vadd.f32 %v20080_v25, %v4101_v54  ;;  %v4112_v45 = vadd.f32 %v20081_v22, %v3947_v14  ;;  %v20082_v32 = vld [vmem:[#allocation80_spill] sm:$0xff]  ;;  %v20083_v62 = vld [vmem:[#allocation81_spill] sm:$0xff]  ;;  %v4268_v44 = vadd.f32 %v17123_v12, %v4102_v47  ;;  %v20084_v54 = vld [vmem:[#allocation82_spill] sm:$0xff]  ;;  %v14702_v12 = vpop.f32.mrf.mxu1 }
 0x242   : > { %v4270_v56 = vadd.f32 %v20082_v32, %v4104_v46  ;;  %v4110_v26 = vadd.f32 %v20083_v62, %v3945_v55  ;;  %v4115_v20 = vadd.f32 %v17125_v11, %v3950_v40  ;;  %v4273_v19 = vadd.f32 %v17128_v27, %v4107_v35  ;;  %v20085_v14 = vld [vmem:[#allocation84_spill] sm:$0xff]  ;;  %v20086_v46 = vld [vmem:[#allocation85_spill] sm:$0xff]  ;;  %v20087_v55 = vld [vmem:[#allocation86_spill] sm:$0xff] }
 0x243   : > { %v4113_v21 = vadd.f32 %v17133_v59, %v3948_v8  ;;  %v4271_v42 = vadd.f32 %v17140_v18, %v4105_v33  ;;  %v4116_v34 = vadd.f32 %v17147_v0, %v3951_v61  ;;  %v4274_v6 = vadd.f32 %v20084_v54, %v4108_v48  ;;  %v4417_v33 = vpop.f32.mrf.mxu0  ;;  %v20088_v32 = vld [vmem:[#allocation9_spill] sm:$0xff] }
 0x244   : > { %v4272_v63 = vadd.f32 %v20085_v14, %v4106_v53  ;;  %v4434_v28 = vadd.f32 %v20086_v46, %v4269_v57  ;;  %v4277_v58 = vadd.f32 %v20087_v55, %v4111_v7  ;;  %v4432_v11 = vadd.f32 %v17195_v3, %v4267_v2 }
 0x245   : > { %v4275_v47 = vadd.f32 %v17198_v10, %v4109_v36  ;;  %v4435_v27 = vadd.f32 %v17202_v50, %v4270_v56  ;;  %v4278_v59 = vadd.f32 %v17208_v16, %v4112_v45  ;;  %v4433_v18 = vadd.f32 %v17214_v51, %v4268_v44  ;;  %v17566_v50 = vld [vmem:[%s19917_s7] ss:$0 sm:$0xff]  ;;  %v14693_v53 = vpop.f32.mrf.mxu0 }
 0x246   : > { %v4276_v0 = vadd.f32 %v17222_v15, %v4110_v26  ;;  %v4438_v35 = vadd.f32 %v17227_v4, %v4273_v19  ;;  %v4281_v40 = vadd.f32 %v17233_v49, %v4115_v20  ;;  %v4436_v8 = vadd.f32 %v17252_v60, %v4271_v42  ;;  %v4550_v49 = vpop.f32.mrf.mxu1 }
 0x247   : > { %v4279_v48 = vadd.f32 %v17273_v41, %v4113_v21  ;;  %v4439_v3 = vadd.f32 %v17403_v30, %v4274_v6  ;;  %v4282_v10 = vadd.f32 %v17426_v29, %v4116_v34  ;;  %v17569_v16 = vadd.f32 %v17439_v1, %v4272_v63 }
 0x248   : > { %v17572_v51 = vadd.f32 %v17462_v39, %v4277_v58  ;;  %v4599_v15 = vadd.f32 %v17475_v24, %v4434_v28  ;;  %v4597_v4 = vadd.f32 %v17497_v5, %v4432_v11  ;;  %v17577_v60 = vadd.f32 %v17487_v9, %v4275_v47  ;;  %v14703_v17 = vpop.f32.mrf.mxu1 }
 0x249   : > { %v17580_v41 = vadd.f32 %v17507_v37, %v4278_v59  ;;  %v4600_v36 = vadd.f32 %v14699_v43, %v4435_v27  ;;  %v4598_v30 = vadd.f32 %v4537_v52, %v4433_v18  ;;  %v17584_v61 = vadd.f32 %v4404_v23, %v4276_v0 }
 0x24a   : > { %v4622_v29 = vadd.f32 %v17566_v50, %v4599_v15  ;;  %v4620_v1 = vadd.f32 %v17566_v50, %v4597_v4  ;;  %v4603_v39 = vadd.f32 %v14702_v12, %v4438_v35  ;;  %v17588_v7 = vadd.f32 %v14692_v31, %v4281_v40 }
 0x24b   : > { %v4623_v24 = vadd.f32 %v17566_v50, %v4600_v36  ;;  %v4621_v5 = vadd.f32 %v17566_v50, %v4598_v30  ;;  %v4601_v9 = vadd.f32 %v4550_v49, %v4436_v8  ;;  %v17593_v52 = vadd.f32 %v4417_v33, %v4279_v48 }
 0x24c   : > { %v4638_v57 = vmax.f32 %v4622_v29, 0.0  ;;  %v4636_v37 = vmax.f32 %v4620_v1, 0.0  ;;  %v17591_v43 = vadd.f32 %v17566_v50, %v4603_v39  ;;  %v17602_v22 = vadd.f32 %v14693_v53, %v4282_v10 }
 0x24d   : > { %v17595_v25 = vmax.f32 %v4623_v24, 0.0  ;;  %v17597_v23 = vmax.f32 %v4621_v5, 0.0  ;;  %v17600_v2 = vadd.f32 %v17566_v50, %v4601_v9  ;;  %v17614_v19 = vadd.f32 %v14703_v17, %v4439_v3 }
 0x24e   : > { %v4702_v45 = vcombine.high %v4638_v57, %v4638_v57  ;;  %v4709_v56 = vrot.slane %v4638_v57, %v20088_v32  ;;  %v4668_v62 = vcombine.high %v4636_v37, %v4636_v37  ;;  %v4675_v26 = vrot.slane %v4636_v37, %v20088_v32 }
 0x24f   : > { %v4719_v44 = vcombine.high %v17595_v25, %v17595_v25  ;;  %v17610_v20 = vrot.slane %v17595_v25, %v20088_v32  ;;  %v4685_v31 = vcombine.high %v17597_v23, %v17597_v23  ;;  %v17622_v46 = vrot.slane %v17597_v23, %v20088_v32 }
 0x250   : > { %v4716_v21 = vrot.slane %v4702_v45, %v20088_v32  ;;  %v4717_v42 = vcombine.high %v4709_v56, %v4709_v56  ;;  %v5060_v34 = vsel %vm490_vm5, %v4709_v56, -inf  ;;  %v4682_v54 = vrot.slane %v4668_v62, %v20088_v32 }
 0x251   : > { %v5061_v6 = vrot.slane %v5060_v34, 4  ;;  %v4683_v14 = vcombine.high %v4675_v26, %v4675_v26  ;;  %v5004_v63 = vsel %vm490_vm5, %v4675_v26, -inf }
 0x252   : > { %v4718_v28 = vcombine.high %v4716_v21, %v4716_v21  ;;  %v5067_v55 = vsel %vm490_vm5, %v4717_v42, -inf  ;;  %v5074_v58 = vsel %vm490_vm5, %v4716_v21, -inf  ;;  %v4684_v12 = vcombine.high %v4682_v54, %v4682_v54 }
 0x253   : > { %v5062_v11 = vmax.f32 %v5060_v34, %v5061_v6  ;;  %v5068_v47 = vrot.slane %v5067_v55, 4  ;;  %v5075_v27 = vrot.slane %v5074_v58, 4  ;;  %v5005_v59 = vrot.slane %v5004_v63, 4 }
 0x254   : > { %v5081_v18 = vsel %vm490_vm5, %v4718_v28, -inf  ;;  %v5011_v0 = vsel %vm490_vm5, %v4683_v14, -inf  ;;  %v5018_v35 = vsel %vm490_vm5, %v4682_v54, -inf  ;;  %v5025_v40 = vsel %vm490_vm5, %v4684_v12, -inf }
 0x255   : > { %v5063_v33 = vrot.slane %v5062_v11, 2  ;;  %v5069_v8 = vmax.f32 %v5067_v55, %v5068_v47  ;;  %v5076_v48 = vmax.f32 %v5074_v58, %v5075_v27  ;;  %v5082_v3 = vrot.slane %v5081_v18, 4 }
 0x256   : > { %v5006_v10 = vmax.f32 %v5004_v63, %v5005_v59  ;;  %v5012_v15 = vrot.slane %v5011_v0, 4  ;;  %v5019_v4 = vrot.slane %v5018_v35, 4  ;;  %v5026_v49 = vrot.slane %v5025_v40, 4 }
 0x257   : > { %v5064_v36 = vmax.f32 %v5062_v11, %v5063_v33  ;;  %v5070_v30 = vrot.slane %v5069_v8, 2  ;;  %v5077_v29 = vrot.slane %v5076_v48, 2  ;;  %v5083_v1 = vmax.f32 %v5081_v18, %v5082_v3 }
 0x258   : > { %v5007_v39 = vrot.slane %v5006_v10, 2  ;;  %v5013_v53 = vmax.f32 %v5011_v0, %v5012_v15  ;;  %v5020_v24 = vmax.f32 %v5018_v35, %v5019_v4  ;;  %v5027_v5 = vmax.f32 %v5025_v40, %v5026_v49 }
 0x259   : > { %v5065_v9 = vrot.slane %v5064_v36, 1  ;;  %v5071_v57 = vmax.f32 %v5069_v8, %v5070_v30  ;;  %v5078_v37 = vmax.f32 %v5076_v48, %v5077_v29  ;;  %v5084_v17 = vrot.slane %v5083_v1, 2 }
 0x25a   : > { %v5008_v25 = vmax.f32 %v5006_v10, %v5007_v39  ;;  %v5014_v45 = vrot.slane %v5013_v53, 2  ;;  %v5021_v56 = vrot.slane %v5020_v24, 2  ;;  %v5028_v62 = vrot.slane %v5027_v5, 2 }
 0x25b   : > { %v5066_v26 = vmax.f32 %v5064_v36, %v5065_v9  ;;  %v5072_v21 = vrot.slane %v5071_v57, 1  ;;  %v5079_v42 = vrot.slane %v5078_v37, 1  ;;  %v5085_v34 = vmax.f32 %v5083_v1, %v5084_v17 }
 0x25c   : > { %v5009_v54 = vrot.slane %v5008_v25, 1  ;;  %v5015_v6 = vmax.f32 %v5013_v53, %v5014_v45  ;;  %v5022_v14 = vmax.f32 %v5020_v24, %v5021_v56  ;;  %v5029_v63 = vmax.f32 %v5027_v5, %v5028_v62 }
 0x25d   : > { %v5073_v28 = vmax.f32 %v5071_v57, %v5072_v21  ;;  %v5080_v55 = vmax.f32 %v5078_v37, %v5079_v42  ;;  %v5086_v58 = vrot.slane %v5085_v34, 1  ;;  %v4733_v12 = vrot.slane %v4719_v44, %v20088_v32 }
 0x25e   : > { %v5010_v11 = vmax.f32 %v5008_v25, %v5009_v54  ;;  %v5016_v47 = vrot.slane %v5015_v6, 1  ;;  %v5023_v27 = vrot.slane %v5022_v14, 1  ;;  %v5030_v59 = vrot.slane %v5029_v63, 1 }
 0x25f   : > { %v5087_v18 = vmax.f32 %v5085_v34, %v5086_v58  ;;  %v5453_v0 = vsel %vm488_vm4, %v5066_v26, -inf  ;;  %v5456_v35 = vsel %vm488_vm4, %v5073_v28, -inf  ;;  %v4734_v40 = vcombine.high %v17610_v20, %v17610_v20 }
 0x260   : > { %v5017_v33 = vmax.f32 %v5015_v6, %v5016_v47  ;;  %v5024_v8 = vmax.f32 %v5022_v14, %v5023_v27  ;;  %v5031_v48 = vmax.f32 %v5029_v63, %v5030_v59  ;;  %v5452_v3 = vsel %vm488_vm4, %v5010_v11, -inf }
 0x261   : > { %v5459_v10 = vsel %vm488_vm4, %v5080_v55, -inf  ;;  %v17638_v44 = vsel %vm488_vm4, %v5087_v18, -inf  ;;  %v4735_v15 = vcombine.high %v4733_v12, %v4733_v12  ;;  %v5088_v4 = vsel %vm490_vm5, %v17610_v20, -inf }
 0x262   : > { %v5455_v49 = vsel %vm488_vm4, %v5017_v33, -inf  ;;  %v5458_v36 = vsel %vm488_vm4, %v5024_v8, -inf  ;;  %v17645_v30 = vsel %vm488_vm4, %v5031_v48, -inf  ;;  %v5089_v29 = vrot.slane %v5088_v4, 4 }
 0x263   : > { %v5454_v1 = vmax.f32 %v5452_v3, %v5453_v0  ;;  %v5457_v39 = vmax.f32 %v5455_v49, %v5456_v35  ;;  %v5460_v53 = vmax.f32 %v5458_v36, %v5459_v10  ;;  %v5095_v24 = vsel %vm490_vm5, %v4734_v40, -inf }
 0x264   : > { %v5090_v5 = vmax.f32 %v5088_v4, %v5089_v29  ;;  %v5096_v9 = vrot.slane %v5095_v24, 4  ;;  %v5102_v57 = vsel %vm490_vm5, %v4733_v12, -inf  ;;  %v5109_v37 = vsel %vm490_vm5, %v4735_v15, -inf }
 0x265   : > { %v5463_v20 = vmax.f32 %v17645_v30, %v17638_v44  ;;  %v5103_v17 = vrot.slane %v5102_v57, 4  ;;  %v5110_v25 = vrot.slane %v5109_v37, 4  ;;  %v4699_v45 = vrot.slane %v4685_v31, %v20088_v32 }
 0x266   : > { %v5580_v56 = vsel %vm3113_vm6, %v5457_v39, %v5454_v1  ;;  %v5091_v62 = vrot.slane %v5090_v5, 2  ;;  %v5097_v26 = vmax.f32 %v5095_v24, %v5096_v9  ;;  %v4700_v21 = vcombine.high %v17622_v46, %v17622_v46 }
 0x267   : > { %v5104_v42 = vmax.f32 %v5102_v57, %v5103_v17  ;;  %v5111_v34 = vmax.f32 %v5109_v37, %v5110_v25  ;;  %v4701_v54 = vcombine.high %v4699_v45, %v4699_v45  ;;  %v5032_v6 = vsel %vm490_vm5, %v17622_v46, -inf }
 0x268   : > { %v5092_v14 = vmax.f32 %v5090_v5, %v5091_v62  ;;  %v5098_v63 = vrot.slane %v5097_v26, 2  ;;  %v5033_v28 = vrot.slane %v5032_v6, 4  ;;  %v5039_v55 = vsel %vm490_vm5, %v4700_v21, -inf }
 0x269   : > { %v5105_v23 = vrot.slane %v5104_v42, 2  ;;  %v5112_v31 = vrot.slane %v5111_v34, 2  ;;  %v5040_v58 = vrot.slane %v5039_v55, 4  ;;  %v5046_v12 = vsel %vm490_vm5, %v4699_v45, -inf }
 0x26a   : > { %v5093_v11 = vrot.slane %v5092_v14, 1  ;;  %v5099_v47 = vmax.f32 %v5097_v26, %v5098_v63  ;;  %v5034_v27 = vmax.f32 %v5032_v6, %v5033_v28  ;;  %v5047_v59 = vrot.slane %v5046_v12, 4 }
 0x26b   : > { %v5106_v18 = vmax.f32 %v5104_v42, %v5105_v23  ;;  %v5113_v0 = vmax.f32 %v5111_v34, %v5112_v31  ;;  %v5041_v35 = vmax.f32 %v5039_v55, %v5040_v58  ;;  %v5053_v40 = vsel %vm490_vm5, %v4701_v54, -inf }
 0x26c   : > { %v5094_v46 = vmax.f32 %v5092_v14, %v5093_v11  ;;  %v5100_v33 = vrot.slane %v5099_v47, 1  ;;  %v5035_v8 = vrot.slane %v5034_v27, 2  ;;  %v5048_v48 = vmax.f32 %v5046_v12, %v5047_v59 }
 0x26d   : > { %v5107_v3 = vrot.slane %v5106_v18, 1  ;;  %v5114_v10 = vrot.slane %v5113_v0, 1  ;;  %v5042_v44 = vrot.slane %v5041_v35, 2  ;;  %v5054_v15 = vrot.slane %v5053_v40, 4 }
 0x26e   : > { %v5581_v4 = vsel %vm3115_vm7, %v5460_v53, %v5580_v56  ;;  %v5101_v49 = vmax.f32 %v5099_v47, %v5100_v33  ;;  %v5036_v36 = vmax.f32 %v5034_v27, %v5035_v8  ;;  %v5049_v30 = vrot.slane %v5048_v48, 2 }
 0x26f   : > { %v5108_v29 = vmax.f32 %v5106_v18, %v5107_v3  ;;  %v5115_v1 = vmax.f32 %v5113_v0, %v5114_v10  ;;  %v5043_v39 = vmax.f32 %v5041_v35, %v5042_v44  ;;  %v5055_v24 = vmax.f32 %v5053_v40, %v5054_v15 }
 0x270   : > { %v5465_v5 = vsel %vm488_vm4, %v5094_v46, -inf  ;;  %v5468_v9 = vsel %vm488_vm4, %v5101_v49, -inf  ;;  %v5037_v57 = vrot.slane %v5036_v36, 1  ;;  %v5050_v37 = vmax.f32 %v5048_v48, %v5049_v30 }
 0x271   : > { %v5471_v17 = vsel %vm488_vm4, %v5108_v29, -inf  ;;  %v5044_v25 = vrot.slane %v5043_v39, 1  ;;  %v5056_v45 = vrot.slane %v5055_v24, 2  ;;  %v5582_v62 = vsel %vm3117_vm8, %v5463_v20, %v5581_v4 }
 0x272   : > { %v5038_v53 = vmax.f32 %v5036_v36, %v5037_v57  ;;  %v5051_v56 = vrot.slane %v5050_v37, 1  ;;  %v4642_v26 = vmax.f32 %v17591_v43, 0.0  ;;  %v4640_v21 = vmax.f32 %v17600_v2, 0.0 }
 0x273   : > { %v5474_v42 = vsel %vm488_vm4, %v5115_v1, -inf  ;;  %v5045_v34 = vmax.f32 %v5043_v39, %v5044_v25  ;;  %v5057_v54 = vmax.f32 %v5055_v24, %v5056_v45  ;;  %v4627_v6 = vadd.f32 %v17566_v50, %v17614_v19 }
 0x274   : > { %v5052_v14 = vmax.f32 %v5050_v37, %v5051_v56  ;;  %v5464_v63 = vsel %vm488_vm4, %v5038_v53, -inf  ;;  %v4770_v28 = vcombine.high %v4642_v26, %v4642_v26  ;;  %v4777_v55 = vrot.slane %v4642_v26, %v20088_v32 }
 0x275   : > { %v5058_v20 = vrot.slane %v5057_v54, 1  ;;  %v5466_v23 = vmax.f32 %v5464_v63, %v5465_v5  ;;  %v5467_v31 = vsel %vm488_vm4, %v5045_v34, -inf  ;;  %v4736_v43 = vcombine.high %v4640_v21, %v4640_v21 }
 0x276   : > { %v5469_v58 = vmax.f32 %v5467_v31, %v5468_v9  ;;  %v5470_v2 = vsel %vm488_vm4, %v5052_v14, -inf  ;;  %v4784_v12 = vrot.slane %v4770_v28, %v20088_v32  ;;  %v4785_v11 = vcombine.high %v4777_v55, %v4777_v55 }
 0x277   : > { %v5059_v47 = vmax.f32 %v5057_v54, %v5058_v20  ;;  %v5472_v27 = vmax.f32 %v5470_v2, %v5471_v17  ;;  %v5583_v19 = vsel %vm3119_vm9, %v5466_v23, %v5582_v62  ;;  %v5172_v59 = vsel %vm490_vm5, %v4777_v55, -inf }
 0x278   : > { %v5584_v18 = vsel %vm3121_vm10, %v5469_v58, %v5583_v19  ;;  %v4786_v0 = vcombine.high %v4784_v12, %v4784_v12  ;;  %v5173_v35 = vrot.slane %v5172_v59, 4  ;;  %v5179_v40 = vsel %vm490_vm5, %v4785_v11, -inf  ;;  %v15493_v19 = vld [vmem:[%s19912_s2 + $0x38] sm:$0xff]  }
 0x279   : > { %v5473_v46 = vsel %vm488_vm4, %v5059_v47, -inf  ;;  %v5585_v33 = vsel %vm3123_vm11, %v5472_v27, %v5584_v18  ;;  %v5180_v8 = vrot.slane %v5179_v40, 4  ;;  %v5186_v48 = vsel %vm490_vm5, %v4784_v12, -inf  ;;  %v15491_v47 = vld [vmem:[%s19912_s2 + $0x28] sm:$0xff]   ;;  %v15492_v27 = vld [vmem:[%s19912_s2 + $0x20] sm:$0xff]   ;;  %14748 = vmatprep.subr.bf16.mxu1 %v15493_v19 }
 0x27a   : > { %v5475_v3 = vmax.f32 %v5473_v46, %v5474_v42  ;;  %v5174_v10 = vmax.f32 %v5172_v59, %v5173_v35  ;;  %v5187_v44 = vrot.slane %v5186_v48, 4  ;;  %v5193_v15 = vsel %vm490_vm5, %v4786_v0, -inf  ;;  %14736 = vmatprep.subr.bf16.mxu0 %v15491_v47  ;;  %14749 = vmatpush3.bf16.msra.mxu1 %v15493_v19 }
 0x27b   : > { %v5181_v4 = vmax.f32 %v5179_v40, %v5180_v8  ;;  %v5194_v49 = vrot.slane %v5193_v15, 4  ;;  %v4743_v36 = vrot.slane %v4640_v21, %v20088_v32  ;;  %v4750_v30 = vrot.slane %v4736_v43, %v20088_v32  ;;  %v15494_v40 = vld [vmem:[%s19912_s2 + $0x30] sm:$0xff]   ;;  %14737 = vmatpush3.bf16.msra.mxu0 %v15491_v47 }
 0x27c   : > { %v5586_v29 = vsel %vm3125_vm12, %v5475_v3, %v5585_v33  ;;  %v5175_v1 = vrot.slane %v5174_v10, 2  ;;  %v5188_v39 = vmax.f32 %v5186_v48, %v5187_v44  ;;  %v4643_v24 = vmax.f32 %v4627_v6, 0.0  ;;  %v4553_v3 = vpop.f32.mrf.mxu1  ;;  %14738 = vmatprep.subr.bf16.mxu0 %v15492_v27  ;;  %14750 = vmatprep.subr.bf16.mxu1 %v15494_v40 }
 0x27d   : > { %5613 = vst.msk [vmem:[#allocation3 + $0x51] sm:$0xff] %vm488_vm4, %v5586_v29  ;;  %v5182_v5 = vrot.slane %v5181_v4, 2  ;;  %v5195_v9 = vmax.f32 %v5193_v15, %v5194_v49  ;;  %v4751_v57 = vcombine.high %v4743_v36, %v4743_v36  ;;  %v4752_v37 = vcombine.high %v4750_v30, %v4750_v30 }
 0x27e   : > { %v5176_v17 = vmax.f32 %v5174_v10, %v5175_v1  ;;  %v5189_v25 = vrot.slane %v5188_v39, 2  ;;  %v5116_v45 = vsel %vm490_vm5, %v4743_v36, -inf  ;;  %v5130_v62 = vsel %vm490_vm5, %v4750_v30, -inf  ;;  %v17715_v1 = vld [vmem:[%s19912_s2 + $0x48] sm:$0xff]   ;;  %14751 = vmatpush3.bf16.msra.mxu1 %v15494_v40 }
 0x27f   : > { %v5183_v53 = vmax.f32 %v5181_v4, %v5182_v5  ;;  %v5196_v56 = vrot.slane %v5195_v9, 2  ;;  %v5117_v26 = vrot.slane %v5116_v45, 4  ;;  %v5123_v21 = vsel %vm490_vm5, %v4751_v57, -inf  ;;  %14739 = vmatpush3.bf16.msra.mxu0 %v15492_v27 }
 0x280   : > { %v5177_v42 = vrot.slane %v5176_v17, 1  ;;  %v5190_v34 = vmax.f32 %v5188_v39, %v5189_v25  ;;  %v5124_v54 = vrot.slane %v5123_v21, 4  ;;  %v5131_v6 = vrot.slane %v5130_v62, 4  ;;  %14760 = vmatprep.subr.bf16.mxu0 %v17715_v1 }
 0x281   : > { %v5184_v14 = vrot.slane %v5183_v53, 1  ;;  %v5197_v63 = vmax.f32 %v5195_v9, %v5196_v56  ;;  %v5118_v28 = vmax.f32 %v5116_v45, %v5117_v26  ;;  %v5137_v55 = vsel %vm490_vm5, %v4752_v37, -inf }
 0x282   : > { %v5178_v20 = vmax.f32 %v5176_v17, %v5177_v42  ;;  %v5191_v23 = vrot.slane %v5190_v34, 1  ;;  %v5125_v31 = vmax.f32 %v5123_v21, %v5124_v54  ;;  %v5132_v43 = vmax.f32 %v5130_v62, %v5131_v6  ;;  %v14706_v54 = vpop.f32.mrf.mxu1 }
 0x283   : > { %v5185_v58 = vmax.f32 %v5183_v53, %v5184_v14  ;;  %v5198_v2 = vrot.slane %v5197_v63, 1  ;;  %v5119_v12 = vrot.slane %v5118_v28, 2  ;;  %v5138_v11 = vrot.slane %v5137_v55, 4 }
 0x284   : > { %v5192_v59 = vmax.f32 %v5190_v34, %v5191_v23  ;;  %v5477_v18 = vsel %vm488_vm4, %v5178_v20, -inf  ;;  %v5126_v0 = vrot.slane %v5125_v31, 2  ;;  %v5133_v35 = vrot.slane %v5132_v43, 2 }
 0x285   : > { %v5199_v46 = vmax.f32 %v5197_v63, %v5198_v2  ;;  %v5480_v33 = vsel %vm488_vm4, %v5185_v58, -inf  ;;  %v5120_v8 = vmax.f32 %v5118_v28, %v5119_v12  ;;  %v5139_v48 = vmax.f32 %v5137_v55, %v5138_v11 }
 0x286   : > { %v5483_v10 = vsel %vm488_vm4, %v5192_v59, -inf  ;;  %v5127_v44 = vmax.f32 %v5125_v31, %v5126_v0  ;;  %v5134_v15 = vmax.f32 %v5132_v43, %v5133_v35  ;;  %v4787_v4 = vcombine.high %v4643_v24, %v4643_v24  ;;  %v17729_v31 = vld [vmem:[%s19912_s2 + $0x58] sm:$0xff]   ;;  %v4566_v59 = vpop.f32.mrf.mxu1 }
 0x287   : > { %v5486_v49 = vsel %vm488_vm4, %v5199_v46, -inf  ;;  %v5121_v36 = vrot.slane %v5120_v8, 1  ;;  %v5140_v30 = vrot.slane %v5139_v48, 2  ;;  %v4794_v29 = vrot.slane %v4643_v24, %v20088_v32  ;;  %14772 = vmatprep.subr.bf16.mxu1 %v17729_v31 }
 0x288   : > { %v5128_v39 = vrot.slane %v5127_v44, 1  ;;  %v5135_v5 = vrot.slane %v5134_v15, 1  ;;  %v4801_v9 = vrot.slane %v4787_v4, %v20088_v32  ;;  %v4602_v57 = vadd.f32 %v4553_v3, %v17569_v16 }
 0x289   : > { %v5122_v37 = vmax.f32 %v5120_v8, %v5121_v36  ;;  %v5141_v17 = vmax.f32 %v5139_v48, %v5140_v30  ;;  %v4802_v25 = vcombine.high %v4794_v29, %v4794_v29  ;;  %v5200_v45 = vsel %vm490_vm5, %v4794_v29, -inf }
 0x28a   : > { %v5129_v62 = vmax.f32 %v5127_v44, %v5128_v39  ;;  %v5136_v24 = vmax.f32 %v5134_v15, %v5135_v5  ;;  %v4803_v53 = vcombine.high %v4801_v9, %v4801_v9  ;;  %v5201_v56 = vrot.slane %v5200_v45, 4 }
 0x28b   : > { %v5142_v26 = vrot.slane %v5141_v17, 1  ;;  %v5476_v21 = vsel %vm488_vm4, %v5122_v37, -inf  ;;  %v5207_v42 = vsel %vm490_vm5, %v4802_v25, -inf  ;;  %v5214_v34 = vsel %vm490_vm5, %v4801_v9, -inf }
 0x28c   : > { %v5478_v16 = vmax.f32 %v5476_v21, %v5477_v18  ;;  %v5479_v6 = vsel %vm488_vm4, %v5129_v62, -inf  ;;  %v5482_v14 = vsel %vm488_vm4, %v5136_v24, -inf  ;;  %v5202_v63 = vmax.f32 %v5200_v45, %v5201_v56 }
 0x28d   : > { %v5143_v28 = vmax.f32 %v5141_v17, %v5142_v26  ;;  %v5481_v55 = vmax.f32 %v5479_v6, %v5480_v33  ;;  %v5484_v20 = vmax.f32 %v5482_v14, %v5483_v10  ;;  %v5208_v23 = vrot.slane %v5207_v42, 4 }
 0x28e   : > { %v5203_v43 = vrot.slane %v5202_v63, 2  ;;  %v5215_v58 = vrot.slane %v5214_v34, 4  ;;  %v5221_v2 = vsel %vm490_vm5, %v4803_v53, -inf  ;;  %v4625_v12 = vadd.f32 %v17566_v50, %v4602_v57 }
 0x28f   : > { %v5485_v11 = vsel %vm488_vm4, %v5143_v28, -inf  ;;  %v5587_v47 = vsel %vm3113_vm6, %v5481_v55, %v5478_v16  ;;  %v5209_v27 = vmax.f32 %v5207_v42, %v5208_v23  ;;  %v5222_v19 = vrot.slane %v5221_v2, 4 }
 0x290   : > { %v5487_v18 = vmax.f32 %v5485_v11, %v5486_v49  ;;  %v5588_v0 = vsel %vm3115_vm7, %v5484_v20, %v5587_v47  ;;  %v5204_v35 = vmax.f32 %v5202_v63, %v5203_v43  ;;  %v5216_v40 = vmax.f32 %v5214_v34, %v5215_v58 }
 0x291   : > { %v5210_v46 = vrot.slane %v5209_v27, 2  ;;  %v5223_v33 = vmax.f32 %v5221_v2, %v5222_v19  ;;  %v4641_v8 = vmax.f32 %v4625_v12, 0.0  ;;  %v4607_v48 = vadd.f32 %v14706_v54, %v17572_v51 }
 0x292   : > { %v5205_v3 = vrot.slane %v5204_v35, 1  ;;  %v5217_v10 = vrot.slane %v5216_v40, 2  ;;  %v17739_v44 = vsel %vm3117_vm8, %v5487_v18, %v5588_v0  ;;  %v4605_v15 = vadd.f32 %v4566_v59, %v17577_v60 }
 0x293   : > { %v5211_v4 = vmax.f32 %v5209_v27, %v5210_v46  ;;  %v5224_v36 = vrot.slane %v5223_v33, 2  ;;  %v4753_v30 = vcombine.high %v4641_v8, %v4641_v8  ;;  %v4760_v49 = vrot.slane %v4641_v8, %v20088_v32 }
 0x294   : > { %v5206_v29 = vmax.f32 %v5204_v35, %v5205_v3  ;;  %v5218_v39 = vmax.f32 %v5216_v40, %v5217_v10  ;;  %v4630_v5 = vadd.f32 %v17566_v50, %v4607_v48  ;;  %v17745_v9 = vadd.f32 %v17566_v50, %v4605_v15 }
 0x295   : > { %v5212_v51 = vrot.slane %v5211_v4, 1  ;;  %v5225_v57 = vmax.f32 %v5223_v33, %v5224_v36  ;;  %v4767_v37 = vrot.slane %v4753_v30, %v20088_v32  ;;  %v4768_v17 = vcombine.high %v4760_v49, %v4760_v49 }
 0x296   : > { %v5219_v25 = vrot.slane %v5218_v39, 1  ;;  %v17749_v60 = vsel %vm488_vm4, %v5206_v29, -inf  ;;  %v5144_v45 = vsel %vm490_vm5, %v4760_v49, -inf  ;;  %v4646_v62 = vmax.f32 %v4630_v5, 0.0 }
 0x297   : > { %v5213_v24 = vmax.f32 %v5211_v4, %v5212_v51  ;;  %v5226_v53 = vrot.slane %v5225_v57, 1  ;;  %v4769_v56 = vcombine.high %v4767_v37, %v4767_v37  ;;  %v5145_v26 = vrot.slane %v5144_v45, 4 }
 0x298   : > { %v5220_v21 = vmax.f32 %v5218_v39, %v5219_v25  ;;  %v5151_v42 = vsel %vm490_vm5, %v4768_v17, -inf  ;;  %v5158_v34 = vsel %vm490_vm5, %v4767_v37, -inf  ;;  %v4838_v54 = vcombine.high %v4646_v62, %v4646_v62 }
 0x299   : > { %v5227_v16 = vmax.f32 %v5225_v57, %v5226_v53  ;;  %v17755_v6 = vsel %vm488_vm4, %v5213_v24, -inf  ;;  %v5146_v14 = vmax.f32 %v5144_v45, %v5145_v26  ;;  %v5152_v63 = vrot.slane %v5151_v42, 4  ;;  %v14707_v57 = vpop.f32.mrf.mxu1 }
 0x29a   : > { %v17758_v28 = vsel %vm488_vm4, %v5220_v21, -inf  ;;  %v5159_v55 = vrot.slane %v5158_v34, 4  ;;  %v5165_v20 = vsel %vm490_vm5, %v4769_v56, -inf  ;;  %v4845_v23 = vrot.slane %v4646_v62, %v20088_v32 }
 0x29b   : > { %v17763_v43 = vsel %vm488_vm4, %v5227_v16, -inf  ;;  %v5147_v58 = vrot.slane %v5146_v14, 2  ;;  %v5153_v2 = vmax.f32 %v5151_v42, %v5152_v63  ;;  %v5166_v12 = vrot.slane %v5165_v20, 4 }
 0x29c   : > { %v5160_v11 = vmax.f32 %v5158_v34, %v5159_v55  ;;  %v4852_v47 = vrot.slane %v4838_v54, %v20088_v32  ;;  %v4853_v27 = vcombine.high %v4845_v23, %v4845_v23  ;;  %v5284_v19 = vsel %vm490_vm5, %v4845_v23, -inf  ;;  %v4569_v55 = vpop.f32.mrf.mxu1 }
 0x29d   : > { %v5148_v59 = vmax.f32 %v5146_v14, %v5147_v58  ;;  %v5154_v18 = vrot.slane %v5153_v2, 2  ;;  %v5167_v0 = vmax.f32 %v5165_v20, %v5166_v12  ;;  %v5285_v35 = vrot.slane %v5284_v19, 4 }
 0x29e   : > { %v5161_v40 = vrot.slane %v5160_v11, 2  ;;  %v4854_v46 = vcombine.high %v4852_v47, %v4852_v47  ;;  %v5291_v33 = vsel %vm490_vm5, %v4853_v27, -inf  ;;  %v5298_v8 = vsel %vm490_vm5, %v4852_v47, -inf }
 0x29f   : > { %v5149_v48 = vrot.slane %v5148_v59, 1  ;;  %v5155_v3 = vmax.f32 %v5153_v2, %v5154_v18  ;;  %v5168_v10 = vrot.slane %v5167_v0, 2  ;;  %v5286_v15 = vmax.f32 %v5284_v19, %v5285_v35 }
 0x2a0   : > { %v5162_v4 = vmax.f32 %v5160_v11, %v5161_v40  ;;  %v5292_v36 = vrot.slane %v5291_v33, 4  ;;  %v5299_v30 = vrot.slane %v5298_v8, 4  ;;  %v5305_v49 = vsel %vm490_vm5, %v4854_v46, -inf  ;;  %v14710_v40 = vpop.f32.mrf.mxu1 }
 0x2a1   : > { %v5150_v29 = vmax.f32 %v5148_v59, %v5149_v48  ;;  %v5156_v39 = vrot.slane %v5155_v3, 1  ;;  %v5169_v5 = vmax.f32 %v5167_v0, %v5168_v10  ;;  %v5287_v51 = vrot.slane %v5286_v15, 2 }
 0x2a2   : > { %v5163_v37 = vrot.slane %v5162_v4, 1  ;;  %v5293_v17 = vmax.f32 %v5291_v33, %v5292_v36  ;;  %v5300_v25 = vmax.f32 %v5298_v8, %v5299_v30  ;;  %v5306_v45 = vrot.slane %v5305_v49, 4 }
 0x2a3   : > { %v5157_v62 = vmax.f32 %v5155_v3, %v5156_v39  ;;  %v5170_v24 = vrot.slane %v5169_v5, 1  ;;  %v5488_v53 = vsel %vm488_vm4, %v5150_v29, -inf  ;;  %v5288_v56 = vmax.f32 %v5286_v15, %v5287_v51 }
 0x2a4   : > { %v5164_v26 = vmax.f32 %v5162_v4, %v5163_v37  ;;  %v5490_v21 = vmax.f32 %v5488_v53, %v17749_v60  ;;  %v5294_v42 = vrot.slane %v5293_v17, 2  ;;  %v5301_v34 = vrot.slane %v5300_v25, 2 }
 0x2a5   : > { %v5171_v54 = vmax.f32 %v5169_v5, %v5170_v24  ;;  %v5491_v16 = vsel %vm488_vm4, %v5157_v62, -inf  ;;  %v5289_v14 = vrot.slane %v5288_v56, 1  ;;  %v5307_v63 = vmax.f32 %v5305_v49, %v5306_v45 }
 0x2a6   : > { %v5493_v20 = vmax.f32 %v5491_v16, %v17755_v6  ;;  %v5494_v23 = vsel %vm488_vm4, %v5164_v26, -inf  ;;  %v5590_v58 = vsel %vm3119_vm9, %v5490_v21, %v17739_v44  ;;  %v5295_v2 = vmax.f32 %v5293_v17, %v5294_v42 }
 0x2a7   : > { %v5496_v12 = vmax.f32 %v5494_v23, %v17758_v28  ;;  %v5497_v60 = vsel %vm488_vm4, %v5171_v54, -inf  ;;  %v5290_v11 = vmax.f32 %v5288_v56, %v5289_v14  ;;  %v5302_v47 = vmax.f32 %v5300_v25, %v5301_v34 }
 0x2a8   : > { %v5499_v27 = vmax.f32 %v5497_v60, %v17763_v43  ;;  %v5591_v19 = vsel %vm3121_vm10, %v5493_v20, %v5590_v58  ;;  %v5296_v59 = vrot.slane %v5295_v2, 1  ;;  %v5308_v18 = vrot.slane %v5307_v63, 2 }
 0x2a9   : > { %v5592_v6 = vsel %vm3123_vm11, %v5496_v12, %v5591_v19  ;;  %v5303_v0 = vrot.slane %v5302_v47, 1  ;;  %v17783_v35 = vsel %vm488_vm4, %v5290_v11, -inf  ;;  %v4644_v44 = vmax.f32 %v17745_v9, 0.0 }
 0x2aa   : > { %v5593_v28 = vsel %vm3125_vm12, %v5499_v27, %v5592_v6  ;;  %v5297_v46 = vmax.f32 %v5295_v2, %v5296_v59  ;;  %v5309_v33 = vmax.f32 %v5307_v63, %v5308_v18  ;;  %v4608_v8 = vadd.f32 %v14707_v57, %v17580_v41 }
 0x2ab   : > { %5614 = vst.msk [vmem:[#allocation3 + $0x61] sm:$0xff] %vm488_vm4, %v5593_v28  ;;  %v5304_v43 = vmax.f32 %v5302_v47, %v5303_v0  ;;  %v4804_v48 = vcombine.high %v4644_v44, %v4644_v44  ;;  %v4811_v3 = vrot.slane %v4644_v44, %v20088_v32  ;;  %v4606_v10 = vadd.f32 %v4569_v55, %v17584_v61 }
 0x2ac   : > { %v5310_v15 = vrot.slane %v5309_v33, 1  ;;  %v17792_v4 = vsel %vm488_vm4, %v5297_v46, -inf  ;;  %v4631_v9 = vadd.f32 %v17566_v50, %v4608_v8  ;;  %v4611_v36 = vadd.f32 %v14710_v40, %v17588_v7 }
 0x2ad   : > { %v17797_v30 = vsel %vm488_vm4, %v5304_v43, -inf  ;;  %v4818_v41 = vrot.slane %v4804_v48, %v20088_v32  ;;  %v4819_v49 = vcombine.high %v4811_v3, %v4811_v3  ;;  %v5228_v29 = vsel %vm490_vm5, %v4811_v3, -inf }
 0x2ae   : > { %v5311_v39 = vmax.f32 %v5309_v33, %v5310_v15  ;;  %v5229_v5 = vrot.slane %v5228_v29, 4  ;;  %v4647_v51 = vmax.f32 %v4631_v9, 0.0  ;;  %v4629_v61 = vadd.f32 %v17566_v50, %v4606_v10 }
 0x2af   : > { %v4820_v57 = vcombine.high %v4818_v41, %v4818_v41  ;;  %v5235_v37 = vsel %vm490_vm5, %v4819_v49, -inf  ;;  %v5242_v17 = vsel %vm490_vm5, %v4818_v41, -inf  ;;  %v17805_v7 = vadd.f32 %v17566_v50, %v4611_v36 }
 0x2b0   : > { %v17808_v25 = vsel %vm488_vm4, %v5311_v39, -inf  ;;  %v5230_v45 = vmax.f32 %v5228_v29, %v5229_v5  ;;  %v5236_v62 = vrot.slane %v5235_v37, 4  ;;  %v5243_v24 = vrot.slane %v5242_v17, 4 }
 0x2b1   : > { %v5249_v53 = vsel %vm490_vm5, %v4820_v57, -inf  ;;  %v4855_v56 = vcombine.high %v4647_v51, %v4647_v51  ;;  %v4862_v26 = vrot.slane %v4647_v51, %v20088_v32  ;;  %v4645_v21 = vmax.f32 %v4629_v61, 0.0 }
 0x2b2   : > { %v5231_v42 = vrot.slane %v5230_v45, 2  ;;  %v5237_v34 = vmax.f32 %v5235_v37, %v5236_v62  ;;  %v5244_v54 = vmax.f32 %v5242_v17, %v5243_v24  ;;  %v5250_v16 = vrot.slane %v5249_v53, 4 }
 0x2b3   : > { %v4869_v14 = vrot.slane %v4855_v56, %v20088_v32  ;;  %v4870_v50 = vcombine.high %v4862_v26, %v4862_v26  ;;  %v5312_v63 = vsel %vm490_vm5, %v4862_v26, -inf  ;;  %v4821_v55 = vcombine.high %v4645_v21, %v4645_v21 }
 0x2b4   : > { %v5232_v20 = vmax.f32 %v5230_v45, %v5231_v42  ;;  %v5238_v23 = vrot.slane %v5237_v34, 2  ;;  %v5245_v58 = vrot.slane %v5244_v54, 2  ;;  %v5251_v2 = vmax.f32 %v5249_v53, %v5250_v16 }
 0x2b5   : > { %v4871_v12 = vcombine.high %v4869_v14, %v4869_v14  ;;  %v5313_v60 = vrot.slane %v5312_v63, 4  ;;  %v5319_v11 = vsel %vm490_vm5, %v4870_v50, -inf  ;;  %v5326_v47 = vsel %vm490_vm5, %v4869_v14, -inf }
 0x2b6   : > { %v5233_v27 = vrot.slane %v5232_v20, 1  ;;  %v5239_v19 = vmax.f32 %v5237_v34, %v5238_v23  ;;  %v5246_v59 = vmax.f32 %v5244_v54, %v5245_v58  ;;  %v5252_v18 = vrot.slane %v5251_v2, 2 }
 0x2b7   : > { %v5314_v6 = vmax.f32 %v5312_v63, %v5313_v60  ;;  %v5320_v0 = vrot.slane %v5319_v11, 4  ;;  %v5327_v44 = vrot.slane %v5326_v47, 4  ;;  %v5333_v40 = vsel %vm490_vm5, %v4871_v12, -inf }
 0x2b8   : > { %v5234_v28 = vmax.f32 %v5232_v20, %v5233_v27  ;;  %v5240_v46 = vrot.slane %v5239_v19, 1  ;;  %v5247_v33 = vrot.slane %v5246_v59, 1  ;;  %v5253_v8 = vmax.f32 %v5251_v2, %v5252_v18 }
 0x2b9   : > { %v5315_v43 = vrot.slane %v5314_v6, 2  ;;  %v5321_v48 = vmax.f32 %v5319_v11, %v5320_v0  ;;  %v5328_v3 = vmax.f32 %v5326_v47, %v5327_v44  ;;  %v5334_v10 = vrot.slane %v5333_v40, 4 }
 0x2ba   : > { %v5241_v15 = vmax.f32 %v5239_v19, %v5240_v46  ;;  %v5248_v9 = vmax.f32 %v5246_v59, %v5247_v33  ;;  %v5254_v36 = vrot.slane %v5253_v8, 1  ;;  %v5500_v41 = vsel %vm488_vm4, %v5234_v28, -inf }
 0x2bb   : > { %v5502_v49 = vmax.f32 %v5500_v41, %v17783_v35  ;;  %v5316_v29 = vmax.f32 %v5314_v6, %v5315_v43  ;;  %v5322_v39 = vrot.slane %v5321_v48, 2  ;;  %v5329_v5 = vrot.slane %v5328_v3, 2 }
 0x2bc   : > { %v5255_v51 = vmax.f32 %v5253_v8, %v5254_v36  ;;  %v5503_v61 = vsel %vm488_vm4, %v5241_v15, -inf  ;;  %v5506_v57 = vsel %vm488_vm4, %v5248_v9, -inf  ;;  %v5335_v37 = vmax.f32 %v5333_v40, %v5334_v10  ;;  %v17852_v9 = vld [vmem:[%s19917_s7] ss:$0 sm:$0xff] }
 0x2bd   : > { %v5505_v17 = vmax.f32 %v5503_v61, %v17792_v4  ;;  %v5508_v45 = vmax.f32 %v5506_v57, %v17797_v30  ;;  %v5317_v62 = vrot.slane %v5316_v29, 1  ;;  %v5323_v24 = vmax.f32 %v5321_v48, %v5322_v39 }
 0x2be   : > { %v5509_v53 = vsel %vm488_vm4, %v5255_v51, -inf  ;;  %v5330_v56 = vmax.f32 %v5328_v3, %v5329_v5  ;;  %v5336_v26 = vrot.slane %v5335_v37, 2  ;;  %v4828_v35 = vrot.slane %v4645_v21, %v20088_v32  ;;  %v4582_v21 = vpop.f32.mrf.mxu1 }
 0x2bf   : > { %v5511_v42 = vmax.f32 %v5509_v53, %v17808_v25  ;;  %v5594_v34 = vsel %vm3113_vm6, %v5505_v17, %v5502_v49  ;;  %v5318_v54 = vmax.f32 %v5316_v29, %v5317_v62  ;;  %v5324_v16 = vrot.slane %v5323_v24, 1 }
 0x2c0   : > { %v5595_v14 = vsel %vm3115_vm7, %v5508_v45, %v5594_v34  ;;  %v5331_v50 = vrot.slane %v5330_v56, 1  ;;  %v5337_v4 = vmax.f32 %v5335_v37, %v5336_v26  ;;  %v4835_v30 = vrot.slane %v4821_v55, %v20088_v32  ;;  %v14711_v46 = vpop.f32.mrf.mxu1 }
 0x2c1   : > { %v5325_v63 = vmax.f32 %v5323_v24, %v5324_v16  ;;  %v17830_v20 = vsel %vm488_vm4, %v5318_v54, -inf  ;;  %v4836_v23 = vcombine.high %v4828_v35, %v4828_v35  ;;  %v5256_v58 = vsel %vm490_vm5, %v4828_v35, -inf }
 0x2c2   : > { %v5332_v2 = vmax.f32 %v5330_v56, %v5331_v50  ;;  %v5338_v25 = vrot.slane %v5337_v4, 1  ;;  %v4837_v12 = vcombine.high %v4835_v30, %v4835_v30  ;;  %v5257_v60 = vrot.slane %v5256_v58, 4 }
 0x2c3   : > { %v17834_v11 = vsel %vm488_vm4, %v5325_v63, -inf  ;;  %v5263_v47 = vsel %vm490_vm5, %v4836_v23, -inf  ;;  %v5270_v27 = vsel %vm490_vm5, %v4835_v30, -inf  ;;  %v5596_v55 = vsel %vm3117_vm8, %v5511_v42, %v5595_v14 }
 0x2c4   : > { %v5339_v19 = vmax.f32 %v5337_v4, %v5338_v25  ;;  %v17840_v59 = vsel %vm488_vm4, %v5332_v2, -inf  ;;  %v5258_v18 = vmax.f32 %v5256_v58, %v5257_v60  ;;  %v5264_v6 = vrot.slane %v5263_v47, 4 }
 0x2c5   : > { %v5271_v0 = vrot.slane %v5270_v27, 4  ;;  %v5277_v44 = vsel %vm490_vm5, %v4837_v12, -inf  ;;  %v4650_v40 = vmax.f32 %v17805_v7, 0.0  ;;  %v4609_v28 = vadd.f32 %v4582_v21, %v17593_v52 }
 0x2c6   : > { %v17846_v33 = vsel %vm488_vm4, %v5339_v19, -inf  ;;  %v5259_v8 = vrot.slane %v5258_v18, 2  ;;  %v5265_v43 = vmax.f32 %v5263_v47, %v5264_v6  ;;  %v5278_v48 = vrot.slane %v5277_v44, 4 }
 0x2c7   : > { %v5272_v3 = vmax.f32 %v5270_v27, %v5271_v0  ;;  %v4906_v10 = vcombine.high %v4650_v40, %v4650_v40  ;;  %v4913_v15 = vrot.slane %v4650_v40, %v20088_v32  ;;  %v4632_v7 = vadd.f32 %v17852_v9, %v4609_v28  ;;  %v20089_v40 = vld [vmem:[#allocation74_spill] sm:$0xff] }
 0x2c8   : > { %v5260_v36 = vmax.f32 %v5258_v18, %v5259_v8  ;;  %v5266_v52 = vrot.slane %v5265_v43, 2  ;;  %v5279_v41 = vmax.f32 %v5277_v44, %v5278_v48  ;;  %v4612_v49 = vadd.f32 %v14711_v46, %v17602_v22 }
 0x2c9   : > { %v5273_v29 = vrot.slane %v5272_v3, 2  ;;  %v4920_v39 = vrot.slane %v4906_v10, %v20088_v32  ;;  %v4921_v5 = vcombine.high %v4913_v15, %v4913_v15  ;;  %v5396_v51 = vsel %vm490_vm5, %v4913_v15, -inf }
 0x2ca   : > { %v5261_v61 = vrot.slane %v5260_v36, 1  ;;  %v5267_v57 = vmax.f32 %v5265_v43, %v5266_v52  ;;  %v5280_v37 = vrot.slane %v5279_v41, 2  ;;  %v5397_v17 = vrot.slane %v5396_v51, 4  ;;  %v4420_v52 = vpop.f32.mrf.mxu0 }
 0x2cb   : > { %v5274_v45 = vmax.f32 %v5272_v3, %v5273_v29  ;;  %v4922_v62 = vcombine.high %v4920_v39, %v4920_v39  ;;  %v5403_v24 = vsel %vm490_vm5, %v4921_v5, -inf  ;;  %v5410_v53 = vsel %vm490_vm5, %v4920_v39, -inf }
 0x2cc   : > { %v5262_v56 = vmax.f32 %v5260_v36, %v5261_v61  ;;  %v5268_v26 = vrot.slane %v5267_v57, 1  ;;  %v5281_v35 = vmax.f32 %v5279_v41, %v5280_v37  ;;  %v5398_v22 = vmax.f32 %v5396_v51, %v5397_v17 }
 0x2cd   : > { %v5275_v42 = vrot.slane %v5274_v45, 1  ;;  %v5404_v34 = vrot.slane %v5403_v24, 4  ;;  %v5411_v54 = vrot.slane %v5410_v53, 4  ;;  %v5417_v16 = vsel %vm490_vm5, %v4922_v62, -inf }
 0x2ce   : > { %v5269_v14 = vmax.f32 %v5267_v57, %v5268_v26  ;;  %v5282_v50 = vrot.slane %v5281_v35, 1  ;;  %v5512_v4 = vsel %vm488_vm4, %v5262_v56, -inf  ;;  %v5399_v30 = vrot.slane %v5398_v22, 2  ;;  %v4585_v56 = vpop.f32.mrf.mxu1 }
 0x2cf   : > { %v5276_v63 = vmax.f32 %v5274_v45, %v5275_v42  ;;  %v5514_v23 = vmax.f32 %v5512_v4, %v17830_v20  ;;  %v5405_v58 = vmax.f32 %v5403_v24, %v5404_v34  ;;  %v5412_v21 = vmax.f32 %v5410_v53, %v5411_v54 }
 0x2d0   : > { %v5283_v2 = vmax.f32 %v5281_v35, %v5282_v50  ;;  %v5515_v25 = vsel %vm488_vm4, %v5269_v14, -inf  ;;  %v5400_v12 = vmax.f32 %v5398_v22, %v5399_v30  ;;  %v5418_v60 = vrot.slane %v5417_v16, 4 }
 0x2d1   : > { %v5517_v47 = vmax.f32 %v5515_v25, %v17834_v11  ;;  %v5518_v27 = vsel %vm488_vm4, %v5276_v63, -inf  ;;  %v5597_v19 = vsel %vm3119_vm9, %v5514_v23, %v5596_v55  ;;  %v5406_v18 = vrot.slane %v5405_v58, 2  ;;  %v20090_v55 = vld [vmem:[#allocation83_spill] sm:$0xff] }
 0x2d2   : > { %v5520_v6 = vmax.f32 %v5518_v27, %v17840_v59  ;;  %v5521_v0 = vsel %vm488_vm4, %v5283_v2, -inf  ;;  %v5401_v44 = vrot.slane %v5400_v12, 1  ;;  %v5413_v20 = vrot.slane %v5412_v21, 2 }
 0x2d3   : > { %v3949_v28 = vadd.f32 %v20089_v40, %v17516_v13  ;;  %v5523_v46 = vmax.f32 %v5521_v0, %v17846_v33  ;;  %v5598_v8 = vsel %vm3121_vm10, %v5517_v47, %v5597_v19  ;;  %v5407_v43 = vmax.f32 %v5405_v58, %v5406_v18 }
 0x2d4   : > { %v5599_v11 = vsel %vm3123_vm11, %v5520_v6, %v5598_v8  ;;  %v5419_v48 = vmax.f32 %v5417_v16, %v5418_v60  ;;  %v4648_v3 = vmax.f32 %v4632_v7, 0.0  ;;  %v5414_v15 = vmax.f32 %v5412_v21, %v5413_v20 }
 0x2d5   : > { %v4114_v10 = vadd.f32 %v20090_v55, %v3949_v28  ;;  %v5600_v59 = vsel %vm3125_vm12, %v5523_v46, %v5599_v11  ;;  %v4635_v36 = vadd.f32 %v17852_v9, %v4612_v49  ;;  %v5402_v13 = vmax.f32 %v5400_v12, %v5401_v44 }
 0x2d6   : > { %5615 = vst.msk [vmem:[#allocation3 + $0x71] sm:$0xff] %vm488_vm4, %v5600_v59  ;;  %v4872_v41 = vcombine.high %v4648_v3, %v4648_v3  ;;  %v4879_v33 = vrot.slane %v4648_v3, %v20088_v32  ;;  %v5408_v39 = vrot.slane %v5407_v43, 1  ;;  %v5420_v51 = vrot.slane %v5419_v48, 2 }
 0x2d7   : > { %v4280_v29 = vadd.f32 %v17452_v38, %v4114_v10  ;;  %v4651_v5 = vmax.f32 %v4635_v36, 0.0  ;;  %v5415_v17 = vrot.slane %v5414_v15, 1  ;;  %v17883_v62 = vsel %vm488_vm4, %v5402_v13, -inf }
 0x2d8   : > { %v4886_v7 = vrot.slane %v4872_v41, %v20088_v32  ;;  %v4887_v61 = vcombine.high %v4879_v33, %v4879_v33  ;;  %v5340_v57 = vsel %vm490_vm5, %v4879_v33, -inf  ;;  %v5409_v26 = vmax.f32 %v5407_v43, %v5408_v39 }
 0x2d9   : > { %v4445_v37 = vadd.f32 %v4420_v52, %v4280_v29  ;;  %v5341_v49 = vrot.slane %v5340_v57, 4  ;;  %v4923_v45 = vcombine.high %v4651_v5, %v4651_v5  ;;  %v5421_v34 = vmax.f32 %v5419_v48, %v5420_v51 }
 0x2da   : > { %v4888_v24 = vcombine.high %v4886_v7, %v4886_v7  ;;  %v5347_v53 = vsel %vm490_vm5, %v4887_v61, -inf  ;;  %v5354_v38 = vsel %vm490_vm5, %v4886_v7, -inf  ;;  %v4930_v16 = vrot.slane %v4651_v5, %v20088_v32 }
 0x2db   : > { %v5342_v35 = vmax.f32 %v5340_v57, %v5341_v49  ;;  %v5348_v22 = vrot.slane %v5347_v53, 4  ;;  %v5355_v42 = vrot.slane %v5354_v38, 4  ;;  %v4937_v14 = vrot.slane %v4923_v45, %v20088_v32 }
 0x2dc   : > { %v5361_v54 = vsel %vm490_vm5, %v4888_v24, -inf  ;;  %v4610_v63 = vadd.f32 %v4585_v56, %v4445_v37  ;;  %v4938_v58 = vcombine.high %v4930_v16, %v4930_v16  ;;  %v5424_v2 = vsel %vm490_vm5, %v4930_v16, -inf  ;;  %v17904_v56 = vld [vmem:[#allocation3 + $0x41] sm:$0xff] }
 0x2dd   : > { %v5343_v50 = vrot.slane %v5342_v35, 2  ;;  %v5349_v4 = vmax.f32 %v5347_v53, %v5348_v22  ;;  %v5356_v30 = vmax.f32 %v5354_v38, %v5355_v42  ;;  %v5362_v23 = vrot.slane %v5361_v54, 4  ;;  %v17912_v42 = vld [vmem:[#allocation3 + $0x50] sm:$0xff] }
 0x2de   : > { %v4939_v21 = vcombine.high %v4937_v14, %v4937_v14  ;;  %v5425_v47 = vrot.slane %v5424_v2, 4  ;;  %v5422_v27 = vrot.slane %v5421_v34, 1  ;;  %v5431_v18 = vsel %vm490_vm5, %v4938_v58, -inf }
 0x2df   : > { %v5344_v25 = vmax.f32 %v5342_v35, %v5343_v50  ;;  %v5350_v12 = vrot.slane %v5349_v4, 2  ;;  %v5357_v60 = vrot.slane %v5356_v30, 2  ;;  %v5363_v19 = vmax.f32 %v5361_v54, %v5362_v23 }
 0x2e0   : > { %v5438_v6 = vsel %vm490_vm5, %v4937_v14, -inf  ;;  %v5416_v0 = vmax.f32 %v5414_v15, %v5415_v17  ;;  %v5426_v46 = vmax.f32 %v5424_v2, %v5425_v47  ;;  %v5432_v8 = vrot.slane %v5431_v18, 4  ;;  %v17901_v17 = vld [vmem:[#allocation3 + $0x51] sm:$0xff] }
 0x2e1   : > { %v5345_v44 = vrot.slane %v5344_v25, 1  ;;  %v5351_v20 = vmax.f32 %v5349_v4, %v5350_v12  ;;  %v5358_v40 = vmax.f32 %v5356_v30, %v5357_v60  ;;  %v5364_v28 = vrot.slane %v5363_v19, 2  ;;  %v17918_v30 = vld [vmem:[#allocation3 + $0x40] sm:$0xff]  ;;  %v17929_v2 = vld [vmem:[#allocation3 + $0x70] sm:$0xff] }
 0x2e2   : > { %v5445_v43 = vsel %vm490_vm5, %v4939_v21, -inf  ;;  %v5439_v55 = vrot.slane %v5438_v6, 4  ;;  %v5423_v10 = vmax.f32 %v5421_v34, %v5422_v27  ;;  %v5528_v59 = vsel %vm488_vm4, %v5409_v26, -inf  ;;  %v17933_v27 = vld [vmem:[#allocation3 + $0x61] sm:$0xff] }
 0x2e3   : > { %v5346_v11 = vmax.f32 %v5344_v25, %v5345_v44  ;;  %v5352_v48 = vrot.slane %v5351_v20, 1  ;;  %v5359_v3 = vrot.slane %v5358_v40, 1  ;;  %v5365_v36 = vmax.f32 %v5363_v19, %v5364_v28  ;;  %v5828_v19 = vld [vmem:[#allocation3 + $0x2] sm:$0xff] }
 0x2e4   : > { %v4633_v52 = vadd.f32 %v17852_v9, %v4610_v63  ;;  %v5446_v33 = vrot.slane %v5445_v43, 4  ;;  %v5531_v29 = vsel %vm488_vm4, %v5416_v0, -inf  ;;  %v5433_v51 = vmax.f32 %v5431_v18, %v5432_v8  ;;  %v17920_v63 = vld [vmem:[#allocation3 + $0x71] sm:$0xff]  ;;  %v17943_v28 = vld [vmem:[#allocation3 + $0x20] sm:$0xff] }
 0x2e5   : > { %v5353_v13 = vmax.f32 %v5351_v20, %v5352_v48  ;;  %v5360_v15 = vmax.f32 %v5358_v40, %v5359_v3  ;;  %v5524_v41 = vsel %vm488_vm4, %v5346_v11, -inf  ;;  %v5366_v39 = vrot.slane %v5365_v36, 1  ;;  %v17935_v18 = vld [vmem:[#allocation3 + $0x12] sm:$0xff]  ;;  %v5623_v40 = vld [vmem:[#allocation3 + $0x60] sm:$0xff] }
 0x2e6   : > { %v5526_v5 = vmax.f32 %v5524_v41, %v17883_v62  ;;  %v5427_v57 = vrot.slane %v5426_v46, 2  ;;  %v5440_v37 = vmax.f32 %v5438_v6, %v5439_v55  ;;  %v5534_v24 = vsel %vm488_vm4, %v5423_v10, -inf }
 0x2e7   : > { %v5527_v7 = vsel %vm488_vm4, %v5353_v13, -inf  ;;  %v5530_v61 = vsel %vm488_vm4, %v5360_v15, -inf  ;;  %v5367_v9 = vmax.f32 %v5365_v36, %v5366_v39  ;;  %v5447_v53 = vmax.f32 %v5445_v43, %v5446_v33 }
 0x2e8   : > { %v5529_v49 = vmax.f32 %v5527_v7, %v5528_v59  ;;  %v5532_v45 = vmax.f32 %v5530_v61, %v5531_v29  ;;  %v4649_v38 = vmax.f32 %v4633_v52, 0.0  ;;  %v5434_v35 = vrot.slane %v5433_v51, 2  ;;  %v5942_v59 = vld [vmem:[#allocation3 + $0x10] sm:$0xff] }
 0x2e9   : > { %v5533_v62 = vsel %vm488_vm4, %v5367_v9, -inf  ;;  %v17910_v22 = vpack.c.bf16 %v17901_v17, %v17904_v56  ;;  %v5428_v16 = vmax.f32 %v5426_v46, %v5427_v57  ;;  %v5441_v14 = vrot.slane %v5440_v37, 2  ;;  %v17961_v9 = vld [vmem:[#allocation3 + $0x22] sm:$0xff] }
 0x2ea   : > { %v5601_v26 = vsel %vm3113_vm6, %v5529_v49, %v5526_v5  ;;  %v5535_v34 = vmax.f32 %v5533_v62, %v5534_v24  ;;  %v4889_v50 = vcombine.high %v4649_v38, %v4649_v38  ;;  %v4896_v4 = vrot.slane %v4649_v38, %v20088_v32  ;;  %v17958_v5 = vld [vmem:[#allocation3 + $0x32] sm:$0xff] }
 0x2eb   : > { %v5602_v54 = vsel %vm3115_vm7, %v5532_v45, %v5601_v26  ;;  %14720 = vmatprep.mubr.msk.bf16.mxu0 %vm488_vm4, %v17910_v22  ;;  %v5448_v23 = vrot.slane %v5447_v53, 2  ;;  %v17927_v21 = vpack.c.bf16 %v17912_v42, %v17918_v30  ;;  %v5435_v25 = vmax.f32 %v5433_v51, %v5434_v35  ;;  %v17963_v49 = vld [vmem:[#allocation3 + $0x52] sm:$0xff] }
 0x2ec   : > { %v17923_v58 = vsel %vm3117_vm8, %v5535_v34, %v5602_v54  ;;  %v4903_v12 = vrot.slane %v4889_v50, %v20088_v32  ;;  %v4904_v60 = vcombine.high %v4896_v4, %v4896_v4  ;;  %v5368_v47 = vsel %vm490_vm5, %v4896_v4, -inf  ;;  %v17969_v54 = vld [vmem:[#allocation3 + $0x30] sm:$0xff] }
 0x2ed   : > { %v5429_v6 = vrot.slane %v5428_v16, 1  ;;  %v5442_v0 = vmax.f32 %v5440_v37, %v5441_v14  ;;  %v5369_v44 = vrot.slane %v5368_v47, 4  ;;  %14732 = vmatprep.mubr.msk.bf16.mxu1 %vm488_vm4, %v17927_v21  ;;  %v17941_v20 = vpack.c.bf16 %v17920_v63, %v17933_v27  ;;  %v17971_v14 = vld [vmem:[#allocation3 + $0x42] sm:$0xff] }
 0x2ee   : > { %v4905_v46 = vcombine.high %v4903_v12, %v4903_v12  ;;  %v5375_v8 = vsel %vm490_vm5, %v4904_v60, -inf  ;;  %v5382_v43 = vsel %vm490_vm5, %v4903_v12, -inf  ;;  %v17948_v11 = vpack.c.bf16 %v17929_v2, %v5623_v40 }
 0x2ef   : > { %v5370_v48 = vmax.f32 %v5368_v47, %v5369_v44  ;;  %v5376_v3 = vrot.slane %v5375_v8, 4  ;;  %v5383_v55 = vrot.slane %v5382_v43, 4  ;;  %14721 = vmatmul.mubr.msk.bf16.gmra.mxu0 %vm488_vm4, %v17941_v20  ;;  %v5836_v10 = vpack.c.bf16 %v17935_v18, %v5828_v19 }
 0x2f0   : > { %v5436_v36 = vrot.slane %v5435_v25, 1  ;;  %v5449_v52 = vmax.f32 %v5447_v53, %v5448_v23  ;;  %v5389_v13 = vsel %vm490_vm5, %v4905_v46, -inf  ;;  %14733 = vmatmul.mubr.msk.bf16.gmra.mxu1 %vm488_vm4, %v17948_v11  ;;  %v5950_v15 = vpack.c.bf16 %v17943_v28, %v5942_v59 }
 0x2f1   : > { %v5371_v41 = vrot.slane %v5370_v48, 2  ;;  %v5377_v33 = vmax.f32 %v5375_v8, %v5376_v3  ;;  %v5384_v29 = vmax.f32 %v5382_v43, %v5383_v55  ;;  %v5390_v39 = vrot.slane %v5389_v13, 4  ;;  %14740 = vmatprep.mubr.msk.bf16.mxu0 %vm488_vm4, %v5836_v10  ;;  %v15499_v8 = vld [vmem:[%s19912_s2 + $0x68] sm:$0xff]  }
 0x2f2   : > { %v5443_v51 = vrot.slane %v5442_v0, 1  ;;  %14752 = vmatprep.mubr.msk.bf16.mxu1 %vm488_vm4, %v5950_v15  ;;  %v5430_v45 = vmax.f32 %v5428_v16, %v5429_v6  ;;  %v5437_v24 = vmax.f32 %v5435_v25, %v5436_v36  ;;  %v5450_v53 = vrot.slane %v5449_v52, 1  ;;  %v15496_v25 = vld [vmem:[%s19912_s2 + $0x40] sm:$0xff]   ;;  %v18005_v36 = vld [vmem:[#allocation3 + $0x21] sm:$0xff] }
 0x2f3   : > { %v5372_v7 = vmax.f32 %v5370_v48, %v5371_v41  ;;  %v5378_v61 = vrot.slane %v5377_v33, 2  ;;  %v5385_v57 = vrot.slane %v5384_v29, 2  ;;  %v5391_v37 = vmax.f32 %v5389_v13, %v5390_v39  ;;  %v17999_v3 = vld [vmem:[#allocation3 + $0x72] sm:$0xff] }
 0x2f4   : > { %v17967_v38 = vpack.c.bf16 %v17958_v5, %v17961_v9  ;;  %v5444_v50 = vmax.f32 %v5442_v0, %v5443_v51  ;;  %v5951_v4 = vpack.c.bf16 %v17918_v30, %v17969_v54  ;;  %v17977_v16 = vpack.c.bf16 %v17963_v49, %v17971_v14  ;;  %v15498_v30 = vld [vmem:[%s19912_s2 + $0x50] sm:$0xff]   ;;  %v6056_v51 = vld [vmem:[#allocation3 + $0x11] sm:$0xff] }
 0x2f5   : > { %v5373_v62 = vrot.slane %v5372_v7, 1  ;;  %v5379_v26 = vmax.f32 %v5377_v33, %v5378_v61  ;;  %v5386_v35 = vmax.f32 %v5384_v29, %v5385_v57  ;;  %v5392_v34 = vrot.slane %v5391_v37, 2 }
 0x2f6   : > { %v5952_v23 = vpack.c.bf16 %v5623_v40, %v17912_v42  ;;  %v5451_v6 = vmax.f32 %v5449_v52, %v5450_v53  ;;  %v5537_v0 = vsel %vm488_vm4, %v5430_v45, -inf  ;;  %v5540_v43 = vsel %vm488_vm4, %v5437_v24, -inf  ;;  %v15501_v52 = vld [vmem:[%s19912_s2 + $0x78] sm:$0xff]   ;;  %v6058_v45 = vld [vmem:[#allocation3 + $0x31] sm:$0xff] }
 0x2f7   : > { %v5374_v12 = vmax.f32 %v5372_v7, %v5373_v62  ;;  %v5380_v60 = vrot.slane %v5379_v26, 1  ;;  %v5387_v47 = vrot.slane %v5386_v35, 1  ;;  %v5393_v19 = vmax.f32 %v5391_v37, %v5392_v34  ;;  %14741 = vmatmul.mubr.msk.bf16.vlgmr.msra.gmra.mxu0 %vm488_vm4, %v17967_v38  ;;  %v15500_v53 = vld [vmem:[%s19912_s2 + $0x60] sm:$0xff]  }
 0x2f8   : > { %14753 = vmatmul.mubr.msk.bf16.vlgmr.msra.gmra.mxu1 %vm488_vm4, %v5951_v4  ;;  %14761 = vmatpush3.bf16.msra.mxu0 %v17715_v1  ;;  %v5543_v1 = vsel %vm488_vm4, %v5444_v50, -inf  ;;  %v5546_v33 = vsel %vm488_vm4, %v5451_v6, -inf  ;;  %v6064_v57 = vpack.c.bf16 %v18005_v36, %v6056_v51  ;;  %v6065_v24 = vpack.c.bf16 %v17904_v56, %v6058_v45  ;;  %v15503_v56 = vld [vmem:[%s19912_s2 + $0x88] sm:$0xff]  }
 0x2f9   : > { %v5381_v42 = vmax.f32 %v5379_v26, %v5380_v60  ;;  %v5388_v44 = vmax.f32 %v5386_v35, %v5387_v47  ;;  %v5394_v40 = vrot.slane %v5393_v19, 1  ;;  %v5536_v46 = vsel %vm488_vm4, %v5374_v12, -inf  ;;  %14744 = vmatprep.mubr.msk.bf16.mxu0 %vm488_vm4, %v17977_v16  ;;  %14756 = vmatprep.mubr.msk.bf16.mxu1 %vm488_vm4, %v5952_v23  ;;  %v6520_v23 = vld [vmem:[#allocation3 + $0x92] sm:$0xff] }
 0x2fa   : > { %v5538_v48 = vmax.f32 %v5536_v46, %v5537_v0  ;;  %14762 = vmatprep.subr.bf16.mxu0 %v15496_v25  ;;  %14773 = vmatpush3.bf16.msra.mxu1 %v17729_v31  ;;  %v5834_v31 = vld [vmem:[#allocation3 + $0x62] sm:$0xff]  ;;  %v6066_v62 = vpack.c.bf16 %v17933_v27, %v17901_v17  ;;  %v6178_v34 = vpack.c.bf16 %v17961_v9, %v17935_v18  ;;  %vm7131_vm5 = vcmask 519168  }
 0x2fb   : > { %v5395_v55 = vmax.f32 %v5393_v19, %v5394_v40  ;;  %v5539_v10 = vsel %vm488_vm4, %v5381_v42, -inf  ;;  %v5542_v59 = vsel %vm488_vm4, %v5388_v44, -inf  ;;  %14774 = vmatprep.subr.bf16.mxu1 %v15498_v30  ;;  %v18015_v39 = vpack.c.bf16 %v17999_v3, %v5834_v31  ;;  %v15502_v18 = vld [vmem:[%s19912_s2 + $0x70] sm:$0xff]  }
 0x2fc   : > { %v5541_v13 = vmax.f32 %v5539_v10, %v5540_v43  ;;  %v5544_v15 = vmax.f32 %v5542_v59, %v5543_v1  ;;  %v5604_v41 = vsel %vm3119_vm9, %v5538_v48, %v17923_v58  ;;  %14763 = vmatpush3.bf16.msra.mxu0 %v15496_v25  ;;  %v6179_v27 = vpack.c.bf16 %v17971_v14, %v17958_v5 }
 0x2fd   : > { %v5545_v29 = vsel %vm488_vm4, %v5395_v55, -inf  ;;  %14784 = vmatprep.subr.bf16.mxu0 %v15499_v8  ;;  %v6180_v9 = vpack.c.bf16 %v5834_v31, %v17963_v49  ;;  %v6407_v49 = vpack.c.bf16 %v6058_v45, %v18005_v36  ;;  %v20091_v14 = vmov 0.0   ;;  %v15505_v45 = vld [vmem:[%s19913_s3 + $0x38] sm:$0xff]  }
 0x2fe   : > { %v5547_v7 = vmax.f32 %v5545_v29, %v5546_v33  ;;  %v5605_v61 = vsel %vm3121_vm10, %v5541_v13, %v5604_v41  ;;  %14775 = vmatpush3.bf16.msra.mxu1 %v15498_v30  ;;  %549 = vst.msk [vmem:[#allocation6] sm:$0xff] %vm548_vm14, %v20091_v14  ;;  %553 = vst.msk [vmem:[#allocation6 + $0x90] sm:$0xff] %vm548_vm14, %v20091_v14 }
 0x2ff   : > { %v5606_v37 = vsel %vm3123_vm11, %v5544_v15, %v5605_v61  ;;  %14745 = vmatmul.mubr.msk.bf16.gmra.mxu0 %vm488_vm4, %v18015_v39  ;;  %14796 = vmatprep.subr.bf16.mxu1 %v15501_v52  ;;  %551 = vst.msk [vmem:[#allocation6 + $0x8] sm:$0x3] %vm550_vm15, %v20091_v14  ;;  %554 = vst.msk [vmem:[#allocation6 + $0x98] sm:$0x3] %vm550_vm15, %v20091_v14 }
 0x300   : > { %v5607_v58 = vsel %vm3125_vm12, %v5547_v7, %v5606_v37  ;;  %14764 = vmatprep.mubr.msk.bf16.mxu0 %vm488_vm4, %v6064_v57  ;;  %517 = vst.msk [vmem:[#allocation4] sm:$0x3f] %vm516_vm1, %v20091_v14  ;;  %519 = vst.msk [vmem:[#allocation4 + $0x28] sm:$0x3f] %vm516_vm1, %v20091_v14 }
 0x301   : > { %5616 = vst.msk [vmem:[#allocation3 + $0x81] sm:$0xff] %vm488_vm4, %v5607_v58 }
 0x302   : > { %521 = vst.msk [vmem:[#allocation4] sm:$0x1] %vm520_vm3, %v20091_v14  ;;  %522 = vst.msk [vmem:[#allocation4 + $0x8] sm:$0x1] %vm520_vm3, %v20091_v14 }
 0x303   : > { %523 = vst.msk [vmem:[#allocation4 + $0x10] sm:$0x1] %vm520_vm3, %v20091_v14  ;;  %524 = vst.msk [vmem:[#allocation4 + $0x18] sm:$0x1] %vm520_vm3, %v20091_v14 }
 0x304   : > { %525 = vst.msk [vmem:[#allocation4 + $0x20] sm:$0x1] %vm520_vm3, %v20091_v14  ;;  %526 = vst.msk [vmem:[#allocation4 + $0x28] sm:$0x1] %vm520_vm3, %v20091_v14 }
 0x305   : > { %527 = vst.msk [vmem:[#allocation4 + $0x5] sm:$0x1] %vm520_vm3, %v20091_v14  ;;  %528 = vst.msk [vmem:[#allocation4 + $0xd] sm:$0x1] %vm520_vm3, %v20091_v14 }
 0x306   : > { %529 = vst.msk [vmem:[#allocation4 + $0x15] sm:$0x1] %vm520_vm3, %v20091_v14  ;;  %530 = vst.msk [vmem:[#allocation4 + $0x1d] sm:$0x1] %vm520_vm3, %v20091_v14 }
 0x307   : > { %14765 = vmatmul.mubr.msk.bf16.vlgmr.msra.gmra.mxu0 %vm488_vm4, %v6065_v24  ;;  %v15506_v24 = vld [vmem:[%s19913_s3 + $0x18] sm:$0xff]   ;;  %531 = vst.msk [vmem:[#allocation4 + $0x25] sm:$0x1] %vm520_vm3, %v20091_v14  ;;  %532 = vst.msk [vmem:[#allocation4 + $0x2d] sm:$0x1] %vm520_vm3, %v20091_v14 }
 0x308   : > { %v5949_v26 = vld [vmem:[#allocation3 + $0x80] sm:$0xff]  ;;  %14785 = vmatpush3.bf16.msra.mxu0 %v15499_v8  ;;  %14768 = vmatprep.mubr.msk.bf16.mxu0 %vm488_vm4, %v6066_v62  ;;  %555 = vst.msk [vmem:[#allocation6] sm:$0x1] %vm520_vm3, %v20091_v14  ;;  %556 = vst.msk [vmem:[#allocation6 + $0x10] sm:$0x1] %vm520_vm3, %v20091_v14 }
 0x309   : > { %v5953_v35 = vpack.c.bf16 %v5949_v26, %v17929_v2  ;;  %14786 = vmatprep.subr.bf16.mxu0 %v15500_v53  ;;  %v6063_v50 = vld [vmem:[#allocation3 + $0x81] sm:$0xff]  ;;  %v6293_v2 = vpack.c.bf16 %v17969_v54, %v17943_v28  ;;  %v6292_v54 = vld [vmem:[#allocation3 + $0x90] sm:$0xff]  ;;  %557 = vst.msk [vmem:[#allocation6 + $0x20] sm:$0x1] %vm520_vm3, %v20091_v14  ;;  %558 = vst.msk [vmem:[#allocation6 + $0x30] sm:$0x1] %vm520_vm3, %v20091_v14 }
 0x30a   : > { %v6067_v17 = vpack.c.bf16 %v6063_v50, %v17920_v63  ;;  %v15504_v63 = vld [vmem:[%s19912_s2 + $0x80] sm:$0xff]   ;;  %v6177_v28 = vld [vmem:[#allocation3 + $0x82] sm:$0xff]  ;;  %v6296_v4 = vpack.c.bf16 %v6292_v54, %v5949_v26  ;;  %559 = vst.msk [vmem:[#allocation6 + $0x40] sm:$0x1] %vm520_vm3, %v20091_v14  ;;  %560 = vst.msk [vmem:[#allocation6 + $0x50] sm:$0x1] %vm520_vm3, %v20091_v14 }
 0x30b   : > { %14757 = vmatmul.mubr.msk.bf16.gmra.mxu1 %vm488_vm4, %v5953_v35  ;;  %v6181_v5 = vpack.c.bf16 %v6177_v28, %v17999_v3  ;;  %v6524_v25 = vpack.c.bf16 %v6520_v23, %v6177_v28  ;;  %v15507_v35 = vld [vmem:[%s19913_s3 + $0x30] sm:$0xff]   ;;  %v15512_v23 = vld [vmem:[%s19913_s3] sm:$0xff]   ;;  %561 = vst.msk [vmem:[#allocation6 + $0x60] sm:$0x1] %vm520_vm3, %v20091_v14  ;;  %562 = vst.msk [vmem:[#allocation6 + $0x70] sm:$0x1] %vm520_vm3, %v20091_v14 }
 0x30c   : > { %14776 = vmatprep.mubr.msk.bf16.mxu1 %vm488_vm4, %v6178_v34  ;;  %14787 = vmatpush3.bf16.msra.mxu0 %v15500_v53  ;;  %563 = vst.msk [vmem:[#allocation6 + $0x80] sm:$0x1] %vm520_vm3, %v20091_v14  ;;  %564 = vst.msk [vmem:[#allocation6 + $0x90] sm:$0x1] %vm520_vm3, %v20091_v14 }
 0x30d   : > { %14808 = vmatprep.subr.bf16.mxu0 %v15503_v56  ;;  %565 = vst.msk [vmem:[#allocation6 + $0x9] sm:$0x1] %vm520_vm3, %v20091_v14  ;;  %566 = vst.msk [vmem:[#allocation6 + $0x19] sm:$0x1] %vm520_vm3, %v20091_v14 }
 0x30e   : > { %567 = vst.msk [vmem:[#allocation6 + $0x29] sm:$0x1] %vm520_vm3, %v20091_v14  ;;  %568 = vst.msk [vmem:[#allocation6 + $0x39] sm:$0x1] %vm520_vm3, %v20091_v14 }
 0x30f   : > { %14769 = vmatmul.mubr.msk.bf16.gmra.mxu0 %vm488_vm4, %v6067_v17  ;;  %569 = vst.msk [vmem:[#allocation6 + $0x49] sm:$0x1] %vm520_vm3, %v20091_v14  ;;  %570 = vst.msk [vmem:[#allocation6 + $0x59] sm:$0x1] %vm520_vm3, %v20091_v14 }
 0x310   : > { %14788 = vmatprep.mubr.msk.bf16.mxu0 %vm488_vm4, %v6293_v2  ;;  %571 = vst.msk [vmem:[#allocation6 + $0x69] sm:$0x1] %vm520_vm3, %v20091_v14  ;;  %572 = vst.msk [vmem:[#allocation6 + $0x79] sm:$0x1] %vm520_vm3, %v20091_v14 }
 0x311   : > { %573 = vst.msk [vmem:[#allocation6 + $0x89] sm:$0x1] %vm520_vm3, %v20091_v14  ;;  %574 = vst.msk [vmem:[#allocation6 + $0x99] sm:$0x1] %vm520_vm3, %v20091_v14 }
 0x313   : > { %14777 = vmatmul.mubr.msk.bf16.vlgmr.msra.gmra.mxu1 %vm488_vm4, %v6179_v27 }
 0x314   : > { %14780 = vmatprep.mubr.msk.bf16.mxu1 %vm488_vm4, %v6180_v9  ;;  %14797 = vmatpush3.bf16.msra.mxu1 %v15501_v52  ;;  %v15509_v9 = vld [vmem:[%s19913_s3 + $0x28] sm:$0xff]  }
 0x315   : > { %14798 = vmatprep.subr.bf16.mxu1 %v15502_v18 }
 0x317   : > { %14789 = vmatmul.mubr.msk.bf16.vlgmr.msra.gmra.mxu0 %vm488_vm4, %v17927_v21  ;;  %v6406_v21 = vld [vmem:[#allocation3 + $0x91] sm:$0xff] }
 0x318   : > { %14799 = vmatpush3.bf16.msra.mxu1 %v15502_v18  ;;  %14809 = vmatpush3.bf16.msra.mxu0 %v15503_v56  ;;  %v15508_v56 = vld [vmem:[%s19913_s3 + $0x10] sm:$0xff]  }
 0x319   : > { %14792 = vmatprep.mubr.msk.bf16.mxu0 %vm488_vm4, %v17948_v11  ;;  %14810 = vmatprep.subr.bf16.mxu0 %v15504_v63  ;;  %v6410_v11 = vpack.c.bf16 %v6406_v21, %v6063_v50 }
 0x31a   : > { %14820 = vmatprep.subr.bf16.mxu1 %v20091_v14 }
 0x31b   : > { %14781 = vmatmul.mubr.msk.bf16.gmra.mxu1 %vm488_vm4, %v6181_v5 }
 0x31c   : > { %14800 = vmatprep.mubr.msk.bf16.mxu1 %vm488_vm4, %v6407_v49  ;;  %14811 = vmatpush3.bf16.msra.mxu0 %v15504_v63  ;;  %v15510_v63 = vld [vmem:[%s19913_s3 + $0x8] sm:$0xff]  }
 0x31d   : > { %14832 = vmatprep.subr.bf16.mxu0 %v20091_v14 }
 0x31f   : > { %14793 = vmatmul.mubr.msk.bf16.gmra.mxu0 %vm488_vm4, %v6296_v4 }
 0x320   : > { %14812 = vmatprep.mubr.msk.bf16.mxu0 %vm488_vm4, %v17967_v38 }
 0x323   : > { %14801 = vmatmul.mubr.msk.bf16.vlgmr.msra.gmra.mxu1 %vm488_vm4, %v17910_v22  ;;  %v18088_v22 = vpop.f32.mrf.mxu0 }
 0x324   : > { %14804 = vmatprep.mubr.msk.bf16.mxu1 %vm488_vm4, %v17941_v20  ;;  %v18090_v20 = vpop.f32.mrf.mxu1  ;;  %14821 = vmatpush3.bf16.msra.mxu1 %v15505_v45 }
 0x325   : > { %v18092_v38 = vpop.f32.mrf.mxu0  ;;  %14822 = vmatprep.subr.bf16.mxu1 %v20091_v14  ;;  %v5806_v54 = vadd.f32 %v18090_v20, %v18088_v22 }
 0x327   : > { %14813 = vmatmul.mubr.msk.bf16.vlgmr.msra.gmra.mxu0 %vm488_vm4, %v17977_v16  ;;  %v18094_v16 = vpop.f32.mrf.mxu1  ;;  %v18096_v12 = vpop.f32.mrf.mxu0 }
 0x328   : > { %14816 = vmatprep.mubr.msk.bf16.mxu0 %vm488_vm4, %v18015_v39  ;;  %14833 = vmatpush3.bf16.msra.mxu0 %v15506_v24 }
 0x329   : > { %v18098_v60 = vpop.f32.mrf.mxu1  ;;  %v18100_v47 = vpop.f32.mrf.mxu0  ;;  %14834 = vmatprep.subr.bf16.mxu0 %v20091_v14  ;;  %14823 = vmatpush3.bf16.msra.mxu1 %v15507_v35 }
 0x32a   : > { %14824 = vmatprep.subr.bf16.mxu1 %v20091_v14 }
 0x32b   : > { %14805 = vmatmul.mubr.msk.bf16.gmra.mxu1 %vm488_vm4, %v6410_v11  ;;  %v18102_v19 = vpop.f32.mrf.mxu1  ;;  %v15511_v11 = vld [vmem:[%s19913_s3 + $0x20] sm:$0xff]  }
 0x32c   : > { %14828 = vmatprep.mubr.msk.bf16.mxu1 %vm15705_vm2, %v20091_v14  ;;  %14835 = vmatpush3.bf16.msra.mxu0 %v15508_v56 }
 0x32d   : > { %14836 = vmatprep.subr.bf16.mxu0 %v20091_v14  ;;  %14825 = vmatpush3.bf16.msra.mxu1 %v15509_v9 }
 0x32e   : > { %14826 = vmatprep.subr.bf16.mxu1 %v20091_v14 }
 0x32f   : > { %14817 = vmatmul.mubr.msk.bf16.gmra.mxu0 %vm488_vm4, %v6524_v25  ;;  %v5798_v25 = vadd.f32 %v18094_v16, %v18092_v38  ;;  %v5809_v38 = vadd.f32 %v18098_v60, %v18096_v12  ;;  %v5801_v60 = vadd.f32 %v18102_v19, %v18100_v47 }
 0x330   : > { %14840 = vmatprep.mubr.msk.bf16.mxu0 %vm15705_vm2, %v20091_v14  ;;  %14837 = vmatpush3.bf16.msra.mxu0 %v15510_v63 }
 0x331   : > { %14838 = vmatprep.subr.bf16.mxu0 %v20091_v14  ;;  %14827 = vmatpush3.bf16.msra.mxu1 %v15511_v11 }
 0x332   : > { %14844 = vmatprep.subr.bf16.mxu1 %v20091_v14 }
 0x334   : > { %14839 = vmatpush3.bf16.msra.mxu0 %v15512_v23 }
 0x335   : > { %14856 = vmatprep.subr.bf16.mxu0 %v20091_v14 }
 0x3af   : > { %v14722_v30 = vpop.f32.mrf.mxu0 }
 0x3b0   : > { %v14734_v6 = vpop.f32.mrf.mxu1 }
 0x3b1   : > { %v5822_v0 = vadd.f32 %v14734_v6, %v14722_v30  ;;  %v5724_v42 = vpop.f32.mrf.mxu0 }
 0x3b2   : > { %v5813_v44 = vpop.f32.mrf.mxu1 }
 0x3b3   : > { %v5814_v40 = vadd.f32 %v5813_v44, %v5724_v42  ;;  %v14723_v46 = vpop.f32.mrf.mxu0 }
 0x3b4   : > { %v14735_v8 = vpop.f32.mrf.mxu1 }
 0x3b5   : > { %v5825_v43 = vadd.f32 %v14735_v8, %v14723_v46  ;;  %v18104_v48 = vpop.f32.mrf.mxu0 }
 0x3b6   : > { %v18106_v3 = vpop.f32.mrf.mxu1 }
 0x3b7   : > { %v14742_v1 = vpop.f32.mrf.mxu0  ;;  %v5817_v47 = vadd.f32 %v18106_v3, %v18104_v48  ;;  %v18286_v48 = vld [vmem:[%s19918_s8] ss:$0 sm:$0xff] }
 0x3b8   : > { %v18110_v10 = vpop.f32.mrf.mxu1  ;;  %v5936_v30 = vadd.f32 %v14742_v1, %v5806_v54 }
 0x3b9   : > { %v18108_v55 = vpop.f32.mrf.mxu0 }
 0x3ba   : > { %v18116_v52 = vpop.f32.mrf.mxu1  ;;  %v5934_v16 = vadd.f32 %v18108_v55, %v5798_v25  ;;  %v6050_v42 = vadd.f32 %v18110_v10, %v5936_v30 }
 0x3bb   : > { %v18112_v59 = vpop.f32.mrf.mxu0 }
 0x3bc   : > { %v18118_v33 = vpop.f32.mrf.mxu1  ;;  %v5937_v44 = vadd.f32 %v18112_v59, %v5809_v38  ;;  %v6048_v8 = vadd.f32 %v18116_v52, %v5934_v16 }
 0x3bd   : > { %v18114_v36 = vpop.f32.mrf.mxu0 }
 0x3be   : > { %v18124_v7 = vpop.f32.mrf.mxu1  ;;  %v6051_v55 = vadd.f32 %v18118_v33, %v5937_v44  ;;  %v5935_v59 = vadd.f32 %v18114_v36, %v5801_v60 }
 0x3bf   : > { %v14746_v13 = vpop.f32.mrf.mxu0 }
 0x3c0   : > { %v5940_v15 = vadd.f32 %v14746_v13, %v5822_v0  ;;  %v6049_v19 = vadd.f32 %v18124_v7, %v5935_v59 }
 0x3c1   : > { %v5919_v41 = vpop.f32.mrf.mxu0 }
 0x3c2   : > { %v5938_v31 = vadd.f32 %v5919_v41, %v5814_v40 }
 0x3c3   : > { %v14747_v29 = vpop.f32.mrf.mxu0 }
 0x3c4   : > { %v18120_v39 = vadd.f32 %v14747_v29, %v5825_v43 }
 0x3c5   : > { %v18122_v51 = vpop.f32.mrf.mxu0 }
 0x3c6   : > { %v5939_v24 = vadd.f32 %v18122_v51, %v5817_v47 }
 0x3c7   : > { %v18126_v61 = vpop.f32.mrf.mxu0 }
 0x3c8   : > { %v6164_v12 = vadd.f32 %v18126_v61, %v6050_v42 }
 0x3c9   : > { %v18128_v57 = vpop.f32.mrf.mxu0 }
 0x3ca   : > { %v6162_v10 = vadd.f32 %v18128_v57, %v6048_v8 }
 0x3cb   : > { %v14758_v37 = vpop.f32.mrf.mxu1  ;;  %v18130_v58 = vpop.f32.mrf.mxu0 }
 0x3cc   : > { %v6054_v53 = vadd.f32 %v14758_v37, %v5940_v15 }
 0x3cd   : > { %v6033_v62 = vpop.f32.mrf.mxu1  ;;  %v18144_v26 = vpop.f32.mrf.mxu0 }
 0x3ce   : > { %v6052_v34 = vadd.f32 %v6033_v62, %v5938_v31  ;;  %v6165_v31 = vadd.f32 %v18130_v58, %v6051_v55  ;;  %v6163_v58 = vadd.f32 %v18144_v26, %v6049_v19 }
 0x3cf   : > { %v18154_v50 = vpop.f32.mrf.mxu1  ;;  %v14770_v17 = vpop.f32.mrf.mxu0 }
 0x3d0   : > { %v18156_v2 = vadd.f32 %v14770_v17, %v6054_v53 }
 0x3d1   : > { %v18158_v27 = vpop.f32.mrf.mxu1  ;;  %v6147_v18 = vpop.f32.mrf.mxu0 }
 0x3d2   : > { %v18166_v28 = vadd.f32 %v6147_v18, %v6052_v34  ;;  %v6055_v18 = vadd.f32 %v18154_v50, %v18120_v39  ;;  %v6053_v51 = vadd.f32 %v18158_v27, %v5939_v24 }
 0x3d3   : > { %v18170_v5 = vpop.f32.mrf.mxu1  ;;  %v18172_v49 = vpop.f32.mrf.mxu0 }
 0x3d4   : > { %v6278_v41 = vadd.f32 %v18170_v5, %v6164_v12  ;;  %v6169_v23 = vadd.f32 %v18172_v49, %v6055_v18 }
 0x3d5   : > { %v18176_v4 = vpop.f32.mrf.mxu1  ;;  %v18178_v21 = vpop.f32.mrf.mxu0 }
 0x3d6   : > { %v6276_v61 = vadd.f32 %v18176_v4, %v6162_v10  ;;  %v6167_v25 = vadd.f32 %v18178_v21, %v6053_v51 }
 0x3d7   : > { %v18190_v22 = vpop.f32.mrf.mxu1  ;;  %v14790_v20 = vpop.f32.mrf.mxu0 }
 0x3d8   : > { %v6393_v37 = vadd.f32 %v14790_v20, %v6278_v41  ;;  %v6279_v36 = vadd.f32 %v18190_v22, %v6165_v31 }
 0x3d9   : > { %v6248_v6 = vpop.f32.mrf.mxu1  ;;  %v6360_v0 = vpop.f32.mrf.mxu0 }
 0x3da   : > { %v6391_v45 = vadd.f32 %v6360_v0, %v6276_v61  ;;  %v6277_v26 = vadd.f32 %v6248_v6, %v6163_v58 }
 0x3db   : > { %v14782_v40 = vpop.f32.mrf.mxu1  ;;  %v14791_v46 = vpop.f32.mrf.mxu0 }
 0x3dc   : > { %v6394_v56 = vadd.f32 %v14791_v46, %v6279_v36  ;;  %v6282_v11 = vadd.f32 %v14782_v40, %v18156_v2 }
 0x3dd   : > { %v6261_v43 = vpop.f32.mrf.mxu1  ;;  %v6363_v1 = vpop.f32.mrf.mxu0 }
 0x3de   : > { %v6392_v30 = vadd.f32 %v6363_v1, %v6277_v26  ;;  %v6280_v20 = vadd.f32 %v6261_v43, %v18166_v28 }
 0x3df   : > { %v14783_v13 = vpop.f32.mrf.mxu1  ;;  %v14794_v15 = vpop.f32.mrf.mxu0 }
 0x3e0   : > { %v6397_v38 = vadd.f32 %v14794_v15, %v6282_v11  ;;  %v18298_v2 = vadd.f32 %v14783_v13, %v6169_v23 }
 0x3e1   : > { %v6264_v52 = vpop.f32.mrf.mxu1  ;;  %v6376_v29 = vpop.f32.mrf.mxu0 }
 0x3e2   : > { %v6395_v6 = vadd.f32 %v6376_v29, %v6280_v20  ;;  %v18300_v49 = vadd.f32 %v6264_v52, %v6167_v25 }
 0x3e3   : > { %v14802_v33 = vpop.f32.mrf.mxu1  ;;  %v18276_v57 = vpop.f32.mrf.mxu0 }
 0x3e4   : > { %v6507_v35 = vadd.f32 %v14802_v33, %v6393_v37 }
 0x3e5   : > { %v6474_v53 = vpop.f32.mrf.mxu1  ;;  %v18281_v62 = vpop.f32.mrf.mxu0 }
 0x3e6   : > { %v6505_v3 = vadd.f32 %v6474_v53, %v6391_v45 }
 0x3e7   : > { %v14803_v34 = vpop.f32.mrf.mxu1  ;;  %v14814_v17 = vpop.f32.mrf.mxu0 }
 0x3e8   : > { %v6621_v7 = vadd.f32 %v14814_v17, %v6507_v35  ;;  %v6508_v5 = vadd.f32 %v14803_v34, %v6394_v56 }
 0x3e9   : > { %v6477_v9 = vpop.f32.mrf.mxu1  ;;  %v6588_v63 = vpop.f32.mrf.mxu0 }
 0x3ea   : > { %v6636_v54 = vadd.f32 %v18286_v48, %v6621_v7  ;;  %v6619_v4 = vadd.f32 %v6588_v63, %v6505_v3  ;;  %v18302_v21 = vadd.f32 %v6477_v9, %v6392_v30 }
 0x3eb   : > { %v14815_v22 = vpop.f32.mrf.mxu0  ;;  %v14806_v16 = vpop.f32.mrf.mxu1 }
 0x3ec   : > { %v6644_v39 = vmax.f32 %v6636_v54, 0.0  ;;  %v6634_v50 = vadd.f32 %v18286_v48, %v6619_v4  ;;  %v6622_v27 = vadd.f32 %v14815_v22, %v6508_v5  ;;  %v18307_v12 = vadd.f32 %v14806_v16, %v6397_v38 }
 0x3ed   : > { %v6490_v60 = vpop.f32.mrf.mxu1 }
 0x3ee   : > { %v6692_v0 = vcombine.high %v6644_v39, %v6644_v39  ;;  %v6699_v42 = vrot.slane %v6644_v39, %v20088_v32  ;;  %v6642_v44 = vmax.f32 %v6634_v50, 0.0  ;;  %v6637_v8 = vadd.f32 %v18286_v48, %v6622_v27 }
 0x3ef   : > { %v18310_v10 = vadd.f32 %v6490_v60, %v6395_v6 }
 0x3f0   : > { %v6706_v40 = vrot.slane %v6692_v0, %v20088_v32  ;;  %v6707_v28 = vcombine.high %v6699_v42, %v6699_v42  ;;  %v6882_v46 = vsel %vm550_vm15, %v6699_v42, -inf  ;;  %v6658_v1 = vcombine.high %v6642_v44, %v6642_v44  ;;  %v6591_v0 = vpop.f32.mrf.mxu0 }
 0x3f1   : > { %v6883_v43 = vrot.slane %v6882_v46, 4  ;;  %v6665_v55 = vrot.slane %v6642_v44, %v20088_v32  ;;  %v6645_v19 = vmax.f32 %v6637_v8, 0.0 }
 0x3f2   : > { %v6708_v59 = vcombine.high %v6706_v40, %v6706_v40  ;;  %v6889_v13 = vsel %vm550_vm15, %v6707_v28, -inf  ;;  %v6896_v15 = vsel %vm550_vm15, %v6706_v40, -inf  ;;  %v6672_v29 = vrot.slane %v6658_v1, %v20088_v32 }
 0x3f3   : > { %v6884_v41 = vmax.f32 %v6882_v46, %v6883_v43  ;;  %v6890_v31 = vrot.slane %v6889_v13, 4  ;;  %v6897_v52 = vrot.slane %v6896_v15, 4  ;;  %v6673_v37 = vcombine.high %v6665_v55, %v6665_v55 }
 0x3f4   : > { %v6903_v61 = vsel %vm550_vm15, %v6708_v59, -inf  ;;  %v6826_v47 = vsel %vm550_vm15, %v6665_v55, -inf  ;;  %v6674_v58 = vcombine.high %v6672_v29, %v6672_v29  ;;  %v6840_v56 = vsel %vm550_vm15, %v6672_v29, -inf  ;;  %v14818_v29 = vpop.f32.mrf.mxu0 }
 0x3f5   : > { %v6885_v33 = vrot.slane %v6884_v41, 2  ;;  %v6891_v36 = vmax.f32 %v6889_v13, %v6890_v31  ;;  %v6898_v45 = vmax.f32 %v6896_v15, %v6897_v52  ;;  %v6904_v24 = vrot.slane %v6903_v61, 4 }
 0x3f6   : > { %v6827_v53 = vrot.slane %v6826_v47, 4  ;;  %v6833_v35 = vsel %vm550_vm15, %v6673_v37, -inf  ;;  %v6841_v26 = vrot.slane %v6840_v56, 4  ;;  %v6847_v9 = vsel %vm550_vm15, %v6674_v58, -inf }
 0x3f7   : > { %v6886_v34 = vmax.f32 %v6884_v41, %v6885_v33  ;;  %v6892_v17 = vrot.slane %v6891_v36, 2  ;;  %v6899_v3 = vrot.slane %v6898_v45, 2  ;;  %v6905_v7 = vmax.f32 %v6903_v61, %v6904_v24 }
 0x3f8   : > { %v6828_v18 = vmax.f32 %v6826_v47, %v6827_v53  ;;  %v6834_v51 = vrot.slane %v6833_v35, 4  ;;  %v6842_v25 = vmax.f32 %v6840_v56, %v6841_v26  ;;  %v6848_v30 = vrot.slane %v6847_v9, 4 }
 0x3f9   : > { %v6887_v63 = vrot.slane %v6886_v34, 1  ;;  %v6893_v5 = vmax.f32 %v6891_v36, %v6892_v17  ;;  %v6900_v54 = vmax.f32 %v6898_v45, %v6899_v3  ;;  %v6906_v4 = vrot.slane %v6905_v7, 2 }
 0x3fa   : > { %v6829_v11 = vrot.slane %v6828_v18, 2  ;;  %v6835_v23 = vmax.f32 %v6833_v35, %v6834_v51  ;;  %v6843_v16 = vrot.slane %v6842_v25, 2  ;;  %v6849_v6 = vmax.f32 %v6847_v9, %v6848_v30 }
 0x3fb   : > { %v6888_v22 = vmax.f32 %v6886_v34, %v6887_v63  ;;  %v6894_v20 = vrot.slane %v6893_v5, 1  ;;  %v6901_v39 = vrot.slane %v6900_v54, 1  ;;  %v6907_v50 = vmax.f32 %v6905_v7, %v6906_v4  ;;  %v6604_v7 = vpop.f32.mrf.mxu0 }
 0x3fc   : > { %v6830_v27 = vmax.f32 %v6828_v18, %v6829_v11  ;;  %v6836_v38 = vrot.slane %v6835_v23, 2  ;;  %v6709_v28 = vcombine.high %v6645_v19, %v6645_v19  ;;  %v6844_v60 = vmax.f32 %v6842_v25, %v6843_v16 }
 0x3fd   : > { %v6895_v42 = vmax.f32 %v6893_v5, %v6894_v20  ;;  %v6902_v44 = vmax.f32 %v6900_v54, %v6901_v39  ;;  %v6908_v40 = vrot.slane %v6907_v50, 1  ;;  %v6850_v43 = vrot.slane %v6849_v6, 2 }
 0x3fe   : > { %v6831_v46 = vrot.slane %v6830_v27, 1  ;;  %v6837_v8 = vmax.f32 %v6835_v23, %v6836_v38  ;;  %v18321_v55 = vsel %vm548_vm14, %v6888_v22, -inf  ;;  %v6716_v59 = vrot.slane %v6645_v19, %v20088_v32 }
 0x3ff   : > { %v6909_v1 = vmax.f32 %v6907_v50, %v6908_v40  ;;  %v6620_v13 = vadd.f32 %v6591_v0, %v18302_v21  ;;  %v6845_v31 = vrot.slane %v6844_v60, 1  ;;  %v6851_v52 = vmax.f32 %v6849_v6, %v6850_v43 }
 0x400   : > { %v6832_v15 = vmax.f32 %v6830_v27, %v6831_v46  ;;  %v6838_v41 = vrot.slane %v6837_v8, 1  ;;  %v18326_v61 = vsel %vm548_vm14, %v6895_v42, -inf  ;;  %v6723_v37 = vrot.slane %v6709_v28, %v20088_v32 }
 0x401   : > { %v6724_v47 = vcombine.high %v6716_v59, %v6716_v59  ;;  %v6910_v33 = vsel %vm550_vm15, %v6716_v59, -inf  ;;  %v18331_v36 = vsel %vm548_vm14, %v6902_v44, -inf  ;;  %v18334_v19 = vsel %vm548_vm14, %v6909_v1, -inf }
 0x402   : > { %v6839_v21 = vmax.f32 %v6837_v8, %v6838_v41  ;;  %v6852_v45 = vrot.slane %v6851_v52, 1  ;;  %v6725_v24 = vcombine.high %v6723_v37, %v6723_v37  ;;  %v6911_v58 = vrot.slane %v6910_v33, 4 }
 0x403   : > { %v6917_v53 = vsel %vm550_vm15, %v6724_v47, -inf  ;;  %v6924_v35 = vsel %vm550_vm15, %v6723_v37, -inf  ;;  %v6846_v56 = vmax.f32 %v6844_v60, %v6845_v31  ;;  %v18341_v17 = vsel %vm548_vm14, %v6832_v15, -inf }
 0x404   : > { %v18338_v34 = vmax.f32 %v6851_v52, %v6852_v45  ;;  %v6918_v3 = vrot.slane %v6917_v53, 4  ;;  %v6912_v18 = vmax.f32 %v6910_v33, %v6911_v58  ;;  %v6925_v51 = vrot.slane %v6924_v35, 4 }
 0x405   : > { %v6931_v26 = vsel %vm550_vm15, %v6725_v24, -inf  ;;  %v6635_v9 = vadd.f32 %v18286_v48, %v6620_v13  ;;  %v18346_v63 = vsel %vm548_vm14, %v6839_v21, -inf  ;;  %v6625_v4 = vadd.f32 %v14818_v29, %v18307_v12 }
 0x406   : > { %v6919_v5 = vmax.f32 %v6917_v53, %v6918_v3  ;;  %v6932_v54 = vrot.slane %v6931_v26, 4  ;;  %v6913_v11 = vrot.slane %v6912_v18, 2  ;;  %v6926_v23 = vmax.f32 %v6924_v35, %v6925_v51 }
 0x407   : > { %v6643_v25 = vmax.f32 %v6635_v9, 0.0  ;;  %v6623_v30 = vadd.f32 %v6604_v7, %v18310_v10  ;;  %v18351_v22 = vsel %vm548_vm14, %v6846_v56, -inf  ;;  %v6640_v50 = vadd.f32 %v18286_v48, %v6625_v4 }
 0x408   : > { %v6920_v20 = vrot.slane %v6919_v5, 2  ;;  %v6933_v39 = vmax.f32 %v6931_v26, %v6932_v54  ;;  %v6914_v27 = vmax.f32 %v6912_v18, %v6913_v11  ;;  %v6927_v38 = vrot.slane %v6926_v23, 2 }
 0x409   : > { %v6675_v16 = vcombine.high %v6643_v25, %v6643_v25  ;;  %v6682_v6 = vrot.slane %v6643_v25, %v20088_v32  ;;  %v6648_v12 = vmax.f32 %v6640_v50, 0.0  ;;  %v18356_v44 = vadd.f32 %v18286_v48, %v6623_v30 }
 0x40a   : > { %v6921_v0 = vmax.f32 %v6919_v5, %v6920_v20  ;;  %v6934_v42 = vrot.slane %v6933_v39, 2  ;;  %v6915_v40 = vrot.slane %v6914_v27, 1  ;;  %v6928_v10 = vmax.f32 %v6926_v23, %v6927_v38 }
 0x40b   : > { %v6689_v28 = vrot.slane %v6675_v16, %v20088_v32  ;;  %v6690_v46 = vcombine.high %v6682_v6, %v6682_v6  ;;  %v6854_v43 = vsel %vm550_vm15, %v6682_v6, -inf  ;;  %v6760_v1 = vcombine.high %v6648_v12, %v6648_v12 }
 0x40c   : > { %v6922_v8 = vrot.slane %v6921_v0, 1  ;;  %v6935_v60 = vmax.f32 %v6933_v39, %v6934_v42  ;;  %v6916_v59 = vmax.f32 %v6914_v27, %v6915_v40  ;;  %v6929_v13 = vrot.slane %v6928_v10, 1 }
 0x40d   : > { %v6691_v15 = vcombine.high %v6689_v28, %v6689_v28  ;;  %v6855_v41 = vrot.slane %v6854_v43, 4  ;;  %v6861_v29 = vsel %vm550_vm15, %v6690_v46, -inf  ;;  %v6868_v37 = vsel %vm550_vm15, %v6689_v28, -inf }
 0x40e   : > { %v6923_v31 = vmax.f32 %v6921_v0, %v6922_v8  ;;  %v6936_v52 = vrot.slane %v6935_v60, 1  ;;  %v6930_v47 = vmax.f32 %v6928_v10, %v6929_v13  ;;  %v7063_v33 = vsel %vm548_vm14, %v6916_v59, -inf }
 0x40f   : > { %v6856_v21 = vmax.f32 %v6854_v43, %v6855_v41  ;;  %v6862_v45 = vrot.slane %v6861_v29, 4  ;;  %v7064_v58 = vmax.f32 %v18321_v55, %v7063_v33  ;;  %v6869_v35 = vrot.slane %v6868_v37, 4 }
 0x410   : > { %v6937_v24 = vmax.f32 %v6935_v60, %v6936_v52  ;;  %v7066_v53 = vsel %vm548_vm14, %v6923_v31, -inf  ;;  %v7069_v3 = vsel %vm548_vm14, %v6930_v47, -inf  ;;  %v6875_v5 = vsel %vm550_vm15, %v6691_v15, -inf }
 0x411   : > { %v7067_v56 = vmax.f32 %v18326_v61, %v7066_v53  ;;  %v6857_v7 = vrot.slane %v6856_v21, 2  ;;  %v6863_v18 = vmax.f32 %v6861_v29, %v6862_v45  ;;  %v7070_v51 = vmax.f32 %v18331_v36, %v7069_v3 }
 0x412   : > { %v7072_v26 = vsel %vm548_vm14, %v6937_v24, -inf  ;;  %v6870_v9 = vmax.f32 %v6868_v37, %v6869_v35  ;;  %v6876_v25 = vrot.slane %v6875_v5, 4  ;;  %v6767_v30 = vrot.slane %v6648_v12, %v20088_v32 }
 0x413   : > { %v7073_v54 = vmax.f32 %v18334_v19, %v7072_v26  ;;  %v7117_v55 = vsel %vm3113_vm6, %v7067_v56, %v7064_v58  ;;  %v6858_v4 = vmax.f32 %v6856_v21, %v6857_v7  ;;  %v6864_v11 = vrot.slane %v6863_v18, 2 }
 0x414   : > { %v7118_v23 = vsel %vm3115_vm7, %v7070_v51, %v7117_v55  ;;  %v6871_v61 = vrot.slane %v6870_v9, 2  ;;  %v6774_v50 = vrot.slane %v6760_v1, %v20088_v32  ;;  %v6877_v19 = vmax.f32 %v6875_v5, %v6876_v25 }
 0x415   : > { %v7119_v20 = vsel %vm3117_vm8, %v7073_v54, %v7118_v23  ;;  %v6859_v36 = vrot.slane %v6858_v4, 1  ;;  %v6865_v39 = vmax.f32 %v6863_v18, %v6864_v11  ;;  %v6775_v38 = vcombine.high %v6767_v30, %v6767_v30  ;;  %v14819_v54 = vpop.f32.mrf.mxu0 }
 0x416   : > { %7133 = vst.msk [vmem:[#allocation4 + $0x11] sm:$0xf] %vm7131_vm5, %v7119_v20  ;;  %v6872_v27 = vmax.f32 %v6870_v9, %v6871_v61  ;;  %v6994_v16 = vsel %vm550_vm15, %v6767_v30, -inf  ;;  %v6776_v42 = vcombine.high %v6774_v50, %v6774_v50  ;;  %v6878_v28 = vrot.slane %v6877_v19, 2  ;;  %v14807_v9 = vpop.f32.mrf.mxu1 }
 0x417   : > { %v6860_v6 = vmax.f32 %v6858_v4, %v6859_v36  ;;  %v6866_v0 = vrot.slane %v6865_v39, 1  ;;  %v6995_v40 = vrot.slane %v6994_v16, 4  ;;  %v7001_v12 = vsel %vm550_vm15, %v6775_v38, -inf }
 0x418   : > { %v6873_v10 = vrot.slane %v6872_v27, 1  ;;  %v7008_v46 = vsel %vm550_vm15, %v6774_v50, -inf  ;;  %v7002_v1 = vrot.slane %v7001_v12, 4  ;;  %v6879_v13 = vmax.f32 %v6877_v19, %v6878_v28  ;;  %v6493_v20 = vpop.f32.mrf.mxu1 }
 0x419   : > { %v6867_v8 = vmax.f32 %v6865_v39, %v6866_v0  ;;  %v7051_v60 = vsel %vm548_vm14, %v6860_v6, -inf  ;;  %v6996_v43 = vmax.f32 %v6994_v16, %v6995_v40  ;;  %v7009_v41 = vrot.slane %v7008_v46, 4  ;;  %v6607_v0 = vpop.f32.mrf.mxu0 }
 0x41a   : > { %v6874_v59 = vmax.f32 %v6872_v27, %v6873_v10  ;;  %v7052_v15 = vmax.f32 %v18341_v17, %v7051_v60  ;;  %v7003_v29 = vmax.f32 %v7001_v12, %v7002_v1  ;;  %v7015_v37 = vsel %vm550_vm15, %v6776_v42, -inf }
 0x41b   : > { %v7054_v31 = vsel %vm548_vm14, %v6867_v8, -inf  ;;  %v6997_v52 = vrot.slane %v6996_v43, 2  ;;  %v6880_v47 = vrot.slane %v6879_v13, 1  ;;  %v7010_v45 = vmax.f32 %v7008_v46, %v7009_v41 }
 0x41c   : > { %v7055_v33 = vmax.f32 %v18346_v63, %v7054_v31  ;;  %v7057_v21 = vsel %vm548_vm14, %v6874_v59, -inf  ;;  %v6398_v24 = vadd.f32 %v18276_v57, %v18298_v2  ;;  %v7004_v53 = vrot.slane %v7003_v29, 2 }
 0x41d   : > { %v7058_v58 = vmax.f32 %v18351_v22, %v7057_v21  ;;  %v7016_v17 = vrot.slane %v7015_v37, 4  ;;  %v6881_v35 = vmax.f32 %v6879_v13, %v6880_v47  ;;  %v7011_v3 = vrot.slane %v7010_v45, 2 }
 0x41e   : > { %v7114_v56 = vsel %vm3113_vm6, %v7055_v33, %v7052_v15  ;;  %v6646_v7 = vmax.f32 %v18356_v44, 0.0  ;;  %v6396_v18 = vadd.f32 %v18281_v62, %v18300_v49  ;;  %v7059_v63 = vsel %vm548_vm14, %v18338_v34, -inf }
 0x41f   : > { %v6998_v51 = vmax.f32 %v6996_v43, %v6997_v52  ;;  %v7017_v26 = vmax.f32 %v7015_v37, %v7016_v17  ;;  %v7060_v57 = vsel %vm548_vm14, %v6881_v35, -inf  ;;  %v7115_v2 = vsel %vm3115_vm7, %v7058_v58, %v7114_v56 }
 0x420   : > { %v6726_v22 = vcombine.high %v6646_v7, %v6646_v7  ;;  %v6733_v5 = vrot.slane %v6646_v7, %v20088_v32  ;;  %v6512_v55 = vadd.f32 %v14807_v9, %v6398_v24  ;;  %v7061_v4 = vmax.f32 %v7059_v63, %v7060_v57 }
 0x421   : > { %v7005_v44 = vmax.f32 %v7003_v29, %v7004_v53  ;;  %v7018_v11 = vrot.slane %v7017_v26, 2  ;;  %v7012_v23 = vmax.f32 %v7010_v45, %v7011_v3  ;;  %v6999_v25 = vrot.slane %v6998_v51, 1 }
 0x422   : > { %v6740_v62 = vrot.slane %v6726_v22, %v20088_v32  ;;  %v6741_v49 = vcombine.high %v6733_v5, %v6733_v5  ;;  %v6938_v34 = vsel %vm550_vm15, %v6733_v5, -inf  ;;  %v7116_v61 = vsel %vm3117_vm8, %v7061_v4, %v7115_v2 }
 0x423   : > { %v6626_v30 = vadd.f32 %v14819_v54, %v6512_v55  ;;  %7132 = vst.msk [vmem:[#allocation4 + $0x9] sm:$0xf] %vm7131_vm5, %v7116_v61  ;;  %v7019_v36 = vmax.f32 %v7017_v26, %v7018_v11  ;;  %v6939_v50 = vrot.slane %v6938_v34, 4  ;;  %v6510_v19 = vadd.f32 %v6493_v20, %v6396_v18 }
 0x424   : > { %v6742_v39 = vcombine.high %v6740_v62, %v6740_v62  ;;  %v6945_v27 = vsel %vm550_vm15, %v6741_v49, -inf  ;;  %v7006_v38 = vrot.slane %v7005_v44, 1  ;;  %v6952_v6 = vsel %vm550_vm15, %v6740_v62, -inf }
 0x425   : > { %v6946_v16 = vrot.slane %v6945_v27, 4  ;;  %v7013_v42 = vrot.slane %v7012_v23, 1  ;;  %v6940_v40 = vmax.f32 %v6938_v34, %v6939_v50  ;;  %v6953_v10 = vrot.slane %v6952_v6, 4 }
 0x426   : > { %v6959_v28 = vsel %vm550_vm15, %v6742_v39, -inf  ;;  %v7000_v12 = vmax.f32 %v6998_v51, %v6999_v25  ;;  %v6641_v60 = vadd.f32 %v18286_v48, %v6626_v30  ;;  %v7020_v43 = vrot.slane %v7019_v36, 1 }
 0x427   : > { %v6947_v46 = vmax.f32 %v6945_v27, %v6946_v16  ;;  %v6960_v8 = vrot.slane %v6959_v28, 4  ;;  %v6941_v1 = vrot.slane %v6940_v40, 2  ;;  %v6954_v59 = vmax.f32 %v6952_v6, %v6953_v10 }
 0x428   : > { %v6624_v13 = vadd.f32 %v6607_v0, %v6510_v19  ;;  %v7007_v15 = vmax.f32 %v7005_v44, %v7006_v38  ;;  %v6649_v52 = vmax.f32 %v6641_v60, 0.0  ;;  %v7014_v29 = vmax.f32 %v7012_v23, %v7013_v42 }
 0x429   : > { %v6948_v41 = vrot.slane %v6947_v46, 2  ;;  %v6961_v31 = vmax.f32 %v6959_v28, %v6960_v8  ;;  %v6942_v37 = vmax.f32 %v6940_v40, %v6941_v1  ;;  %v6955_v47 = vrot.slane %v6954_v59, 2 }
 0x42a   : > { %v6639_v33 = vadd.f32 %v18286_v48, %v6624_v13  ;;  %v6777_v24 = vcombine.high %v6649_v52, %v6649_v52  ;;  %v6784_v58 = vrot.slane %v6649_v52, %v20088_v32  ;;  %v7021_v53 = vmax.f32 %v7019_v36, %v7020_v43 }
 0x42b   : > { %v6949_v21 = vmax.f32 %v6947_v46, %v6948_v41  ;;  %v6962_v45 = vrot.slane %v6961_v31, 2  ;;  %v6956_v17 = vmax.f32 %v6954_v59, %v6955_v47  ;;  %v6943_v56 = vrot.slane %v6942_v37, 1 }
 0x42c   : > { %v6647_v35 = vmax.f32 %v6639_v33, 0.0  ;;  %v6791_v7 = vrot.slane %v6777_v24, %v20088_v32  ;;  %v6792_v18 = vcombine.high %v6784_v58, %v6784_v58  ;;  %v18410_v63 = vsel %vm548_vm14, %v7000_v12, -inf }
 0x42d   : > { %v6950_v3 = vrot.slane %v6949_v21, 1  ;;  %v18413_v51 = vsel %vm548_vm14, %v7007_v15, -inf  ;;  %v18415_v48 = vmax.f32 %v6961_v31, %v6962_v45  ;;  %v7022_v26 = vsel %vm550_vm15, %v6784_v58, -inf }
 0x42e   : > { %v18419_v9 = vsel %vm548_vm14, %v7014_v29, -inf  ;;  %v6957_v57 = vrot.slane %v6956_v17, 1  ;;  %v6793_v2 = vcombine.high %v6791_v7, %v6791_v7  ;;  %v7023_v22 = vrot.slane %v7022_v26, 4 }
 0x42f   : > { %v18422_v5 = vsel %vm548_vm14, %v7021_v53, -inf  ;;  %v7029_v54 = vsel %vm550_vm15, %v6792_v18, -inf  ;;  %v7036_v55 = vsel %vm550_vm15, %v6791_v7, -inf  ;;  %v6743_v4 = vcombine.high %v6647_v35, %v6647_v35 }
 0x430   : > { %v18426_v44 = vmax.f32 %v6942_v37, %v6943_v56  ;;  %v18428_v11 = vmax.f32 %v6949_v21, %v6950_v3  ;;  %v7024_v23 = vmax.f32 %v7022_v26, %v7023_v22  ;;  %v7030_v62 = vrot.slane %v7029_v54, 4 }
 0x431   : > { %v6964_v49 = vrot.slane %v18415_v48, 1  ;;  %v7037_v34 = vrot.slane %v7036_v55, 4  ;;  %v7043_v61 = vsel %vm550_vm15, %v6793_v2, -inf  ;;  %v6750_v25 = vrot.slane %v6647_v35, %v20088_v32 }
 0x432   : > { %v18433_v30 = vmax.f32 %v6956_v17, %v6957_v57  ;;  %v7025_v20 = vrot.slane %v7024_v23, 2  ;;  %v7031_v36 = vmax.f32 %v7029_v54, %v7030_v62  ;;  %v7044_v39 = vrot.slane %v7043_v61, 4 }
 0x433   : > { %v7038_v50 = vmax.f32 %v7036_v55, %v7037_v34  ;;  %v6757_v27 = vrot.slane %v6743_v4, %v20088_v32  ;;  %v6758_v19 = vcombine.high %v6750_v25, %v6750_v25  ;;  %v6966_v38 = vsel %vm550_vm15, %v6750_v25, -inf }
 0x434   : > { %v7026_v16 = vmax.f32 %v7024_v23, %v7025_v20  ;;  %v7032_v6 = vrot.slane %v7031_v36, 2  ;;  %v7045_v0 = vmax.f32 %v7043_v61, %v7044_v39  ;;  %v6967_v42 = vrot.slane %v6966_v38, 4 }
 0x435   : > { %v7039_v40 = vrot.slane %v7038_v50, 2  ;;  %v6759_v10 = vcombine.high %v6757_v27, %v6757_v27  ;;  %v6973_v28 = vsel %vm550_vm15, %v6758_v19, -inf  ;;  %v6980_v12 = vsel %vm550_vm15, %v6757_v27, -inf }
 0x436   : > { %v7027_v46 = vrot.slane %v7026_v16, 1  ;;  %v7033_v8 = vmax.f32 %v7031_v36, %v7032_v6  ;;  %v7046_v60 = vrot.slane %v7045_v0, 2  ;;  %v6968_v43 = vmax.f32 %v6966_v38, %v6967_v42 }
 0x437   : > { %v7040_v1 = vmax.f32 %v7038_v50, %v7039_v40  ;;  %v6974_v59 = vrot.slane %v6973_v28, 4  ;;  %v6981_v13 = vrot.slane %v6980_v12, 4  ;;  %v6987_v15 = vsel %vm550_vm15, %v6759_v10, -inf }
 0x438   : > { %v7028_v41 = vmax.f32 %v7026_v16, %v7027_v46  ;;  %v7034_v31 = vrot.slane %v7033_v8, 1  ;;  %v7047_v52 = vmax.f32 %v7045_v0, %v7046_v60  ;;  %v6969_v29 = vrot.slane %v6968_v43, 2  ;;  %v15517_v60 = vld [vmem:[%s19913_s3 + $0x58] sm:$0xff]  }
 0x439   : > { %v7041_v37 = vrot.slane %v7040_v1, 1  ;;  %v6975_v47 = vmax.f32 %v6973_v28, %v6974_v59  ;;  %v6982_v33 = vmax.f32 %v6980_v12, %v6981_v13  ;;  %v6988_v21 = vrot.slane %v6987_v15, 4 }
 0x43a   : > { %v7035_v45 = vmax.f32 %v7033_v8, %v7034_v31  ;;  %v7048_v24 = vrot.slane %v7047_v52, 1  ;;  %v7087_v58 = vsel %vm548_vm14, %v7028_v41, -inf  ;;  %v6970_v53 = vmax.f32 %v6968_v43, %v6969_v29  ;;  %v15519_v31 = vld [vmem:[%s19913_s3 + $0x50] sm:$0xff]   ;;  %v15521_v29 = vld [vmem:[%s19913_s3 + $0x48] sm:$0xff]  }
 0x43b   : > { %v7042_v17 = vmax.f32 %v7040_v1, %v7041_v37  ;;  %v7088_v35 = vmax.f32 %v18410_v63, %v7087_v58  ;;  %v6976_v56 = vrot.slane %v6975_v47, 2  ;;  %v6983_v3 = vrot.slane %v6982_v33, 2  ;;  %v15515_v1 = vld [vmem:[#allocation4] ss:$8 sps:$4 sm:$0xff]   ;;  %v15522_v37 = vld [vmem:[%s19913_s3 + $0x68] sm:$0xff]  }
 0x43c   : > { %v7049_v7 = vmax.f32 %v7047_v52, %v7048_v24  ;;  %v7090_v18 = vsel %vm548_vm14, %v7035_v45, -inf  ;;  %v6971_v26 = vrot.slane %v6970_v53, 1  ;;  %v6989_v57 = vmax.f32 %v6987_v15, %v6988_v21  ;;  %v15518_v15 = vld [vmem:[%s19913_s3 + $0x78] sm:$0xff]   ;;  %v15520_v52 = vld [vmem:[%s19913_s3 + $0x70] sm:$0xff]  }
 0x43d   : > { %v7091_v2 = vmax.f32 %v18413_v51, %v7090_v18  ;;  %v7093_v22 = vsel %vm548_vm14, %v7042_v17, -inf  ;;  %v6977_v54 = vmax.f32 %v6975_v47, %v6976_v56  ;;  %v6984_v55 = vmax.f32 %v6982_v33, %v6983_v3  ;;  %v15523_v47 = vld [vmem:[%s19913_s3 + $0x40] sm:$0xff]   ;;  %v15525_v24 = vld [vmem:[#allocation4 + $0x2] ss:$8 sps:$4 sm:$0xff]   ;;  %v15533_v18 = vld [vmem:[%s19913_s3 + $0x88] sm:$0xff]  }
 0x43e   : > { %v7094_v4 = vmax.f32 %v18419_v9, %v7093_v22  ;;  %v7096_v23 = vsel %vm548_vm14, %v7049_v7, -inf  ;;  %v6972_v62 = vmax.f32 %v6970_v53, %v6971_v26  ;;  %v6990_v34 = vrot.slane %v6989_v57, 2  ;;  %v15524_v33 = vld [vmem:[%s19913_s3 + $0x60] sm:$0xff]   ;;  %v15529_v53 = vld [vmem:[%s19913_s3 + $0x98] sm:$0xff]   ;;  %v15531_v3 = vld [vmem:[%s19913_s3 + $0x90] sm:$0xff]  }
 0x43f   : > { %v7097_v63 = vmax.f32 %v18422_v5, %v7096_v23  ;;  %v7123_v61 = vsel %vm3113_vm6, %v7091_v2, %v7088_v35  ;;  %v6978_v25 = vrot.slane %v6977_v54, 1  ;;  %v6985_v20 = vrot.slane %v6984_v55, 1  ;;  %v15527_v58 = vld [vmem:[#allocation4 + $0x8] ss:$8 sps:$4 sm:$0xff]   ;;  %v15532_v7 = vld [vmem:[%s19913_s3 + $0xb0] sm:$0xff]   ;;  %v15534_v26 = vld [vmem:[%s19913_s3 + $0xa8] sm:$0xff]  }
 0x440   : > { %v7124_v36 = vsel %vm3115_vm7, %v7094_v4, %v7123_v61  ;;  %v6991_v39 = vmax.f32 %v6989_v57, %v6990_v34  ;;  %v7075_v19 = vsel %vm548_vm14, %v6972_v62, -inf  ;;  %v6965_v9 = vmax.f32 %v18415_v48, %v6964_v49  ;;  %v15530_v35 = vld [vmem:[%s19913_s3 + $0xb8] sm:$0xff]   ;;  %v15535_v57 = vld [vmem:[%s19913_s3 + $0x80] sm:$0xff]   ;;  %v15543_v61 = vld [vmem:[%s19913_s3 + $0xd0] sm:$0xff]  }
 0x441   : > { %v7125_v51 = vsel %vm3117_vm8, %v7097_v63, %v7124_v36  ;;  %v6979_v50 = vmax.f32 %v6977_v54, %v6978_v25  ;;  %v6986_v27 = vmax.f32 %v6984_v55, %v6985_v20  ;;  %v7074_v5 = vsel %vm548_vm14, %v18426_v44, -inf  ;;  %v15536_v2 = vld [vmem:[%s19913_s3 + $0xa0] sm:$0xff]   ;;  %v15541_v23 = vld [vmem:[%s19913_s3 + $0xd8] sm:$0xff]   ;;  %v15544_v25 = vld [vmem:[%s19913_s3 + $0xf0] sm:$0xff]  }
 0x442   : > { %7135 = vst.msk [vmem:[#allocation4 + $0x21] sm:$0xf] %vm7131_vm5, %v7125_v51  ;;  %v6992_v38 = vrot.slane %v6991_v39, 1  ;;  %v7077_v16 = vsel %vm548_vm14, %v18428_v11, -inf  ;;  %v7080_v6 = vsel %vm548_vm14, %v18433_v30, -inf  ;;  %v7076_v10 = vmax.f32 %v7074_v5, %v7075_v19  ;;  %v15542_v34 = vld [vmem:[%s19913_s3 + $0xf8] sm:$0xff]  }
 0x443   : > { %v7078_v0 = vsel %vm548_vm14, %v6979_v50, -inf  ;;  %v7081_v42 = vsel %vm548_vm14, %v6986_v27, -inf  ;;  %v7083_v49 = vsel %vm548_vm14, %v6965_v9, -inf  ;;  %v15513_v30 = vld [vmem:[#allocation4 + $0x1] ss:$8 sps:$4 sm:$0xff]   ;;  %v15545_v20 = vld [vmem:[%s19913_s3 + $0xc8] sm:$0xff]  }
 0x444   : > { %v6993_v40 = vmax.f32 %v6991_v39, %v6992_v38  ;;  %v7079_v28 = vmax.f32 %v7077_v16, %v7078_v0  ;;  %v7082_v48 = vmax.f32 %v7080_v6, %v7081_v42  ;;  %v15537_v55 = vld [vmem:[#allocation4 + $0x9] ss:$8 sps:$4 sm:$0xff]   ;;  %v15546_v36 = vld [vmem:[%s19913_s3 + $0xe8] sm:$0xff]   ;;  %v15554_v6 = vld [vmem:[%s19913_s3 + $0x110] sm:$0xff]  }
 0x445   : > { %v15539_v4 = vld [vmem:[#allocation4 + $0xa] ss:$8 sps:$4 sm:$0xff]   ;;  %v15555_v0 = vld [vmem:[%s19913_s3 + $0x108] sm:$0xff]  }
 0x446   : > { %v7084_v44 = vsel %vm548_vm14, %v6993_v40, -inf  ;;  %v7120_v12 = vsel %vm3113_vm6, %v7079_v28, %v7076_v10  ;;  %v15547_v39 = vld [vmem:[%s19913_s3 + $0xc0] sm:$0xff]   ;;  %v15553_v5 = vld [vmem:[%s19913_s3 + $0x118] sm:$0xff]  }
 0x447   : > { %v7085_v46 = vmax.f32 %v7083_v49, %v7084_v44  ;;  %v7121_v11 = vsel %vm3115_vm7, %v7082_v48, %v7120_v12  ;;  %v15548_v51 = vld [vmem:[%s19913_s3 + $0xe0] sm:$0xff]   ;;  %v15559_v48 = vld [vmem:[%s19914_s4 + $0x78] sm:$0xff]  }
 0x448   : > { %v15556_v42 = vld [vmem:[%s19913_s3 + $0x100] sm:$0xff]   ;;  %v15560_v49 = vld [vmem:[%s19914_s4 + $0xf8] sm:$0xff]  }
 0x449   : > { %v7122_v8 = vsel %vm3117_vm8, %v7085_v46, %v7121_v11  ;;  %v15550_v19 = vld [vmem:[#allocation4 + $0x20] ss:$8 sps:$4 sm:$0xff]  }
 0x44a   : > { %7134 = vst.msk [vmem:[#allocation4 + $0x19] sm:$0xf] %vm7131_vm5, %v7122_v8  ;;  %v15552_v9 = vld [vmem:[#allocation4 + $0x21] ss:$8 sps:$4 sm:$0xff]  }
 0x44b   : > { %v15558_v10 = vld [vmem:[#allocation4 + $0x22] ss:$8 sps:$4 sm:$0xff]  }
 0x44c   : > { %v15561_v44 = vld [vmem:[%s19914_s4 + $0x38] sm:$0xff]   ;;  %v15563_v46 = vld [vmem:[%s19914_s4 + $0x70] sm:$0xff]  }
 0x44d   : > { %v15562_v12 = vld [vmem:[%s19914_s4 + $0xb8] sm:$0xff]   ;;  %v15564_v11 = vld [vmem:[%s19914_s4 + $0xf0] sm:$0xff]  }
 0x44e   : > { %v15565_v8 = vld [vmem:[%s19914_s4 + $0x30] sm:$0xff]  }
 0x451   : > { %v15514_v43 = vld [vmem:[#allocation4 + $0x11] ss:$8 sps:$4 sm:$0xff]  }
 0x452   : > { %v15516_v59 = vld [vmem:[#allocation4 + $0x10] ss:$8 sps:$4 sm:$0xff]   ;;  %v7169_v13 = vpack.c.bf16 %v15514_v43, %v15513_v30  ;;  %v15566_v30 = vld [vmem:[%s19914_s4 + $0xb0] sm:$0xff]  }
 0x453   : > { %v7148_v41 = vpack.c.bf16 %v15516_v59, %v15515_v1  ;;  %v15526_v21 = vld [vmem:[#allocation4 + $0x12] ss:$8 sps:$4 sm:$0xff]  }
 0x454   : > { %14829 = vmatmul.mubr.msk.bf16.vlgmr.msra.gmra.mxu1 %vm548_vm14, %v7169_v13  ;;  %v15528_v45 = vld [vmem:[#allocation4 + $0x18] ss:$8 sps:$4 sm:$0xff]   ;;  %v7327_v17 = vpack.c.bf16 %v15526_v21, %v15525_v24  ;;  %v15571_v13 = vld [vmem:[%s19914_s4 + $0x60] sm:$0xff]  }
 0x455   : > { %14841 = vmatmul.mubr.msk.bf16.vlgmr.msra.gmra.mxu0 %vm548_vm14, %v7148_v41  ;;  %14845 = vmatpush3.bf16.msra.mxu1 %v15517_v60  ;;  %v7419_v56 = vpack.c.bf16 %v15528_v45, %v15527_v58  ;;  %v15538_v22 = vld [vmem:[#allocation4 + $0x19] ss:$8 sps:$4 sm:$0xff]   ;;  %v15573_v41 = vld [vmem:[%s19914_s4 + $0x20] sm:$0xff]  }
 0x456   : > { %14857 = vmatpush3.bf16.msra.mxu0 %v15518_v15  ;;  %14846 = vmatprep.subr.bf16.mxu1 %v20091_v14  ;;  %v15540_v54 = vld [vmem:[#allocation4 + $0x1a] ss:$8 sps:$4 sm:$0xff]   ;;  %v7511_v62 = vpack.c.bf16 %v15538_v22, %v15537_v55  ;;  %v15572_v15 = vld [vmem:[%s19914_s4 + $0xe0] sm:$0xff]  }
 0x457   : > { %14858 = vmatprep.subr.bf16.mxu0 %v20091_v14  ;;  %14852 = vmatprep.mubr.msk.bf16.mxu1 %vm15705_vm2, %v20091_v14  ;;  %v7603_v63 = vpack.c.bf16 %v15540_v54, %v15539_v4  ;;  %v15549_v50 = vld [vmem:[#allocation4 + $0x10] ss:$8 sps:$4 sm:$0xff]   ;;  %v15580_v21 = vld [vmem:[%s19914_s4 + $0xd0] sm:$0xff]  }
 0x458   : > { %14864 = vmatprep.mubr.msk.bf16.mxu0 %vm15705_vm2, %v20091_v14  ;;  %v15551_v27 = vld [vmem:[#allocation4 + $0x11] ss:$8 sps:$4 sm:$0xff]   ;;  %v7696_v38 = vpack.c.bf16 %v15550_v19, %v15549_v50  ;;  %v15581_v45 = vld [vmem:[%s19914_s4 + $0x10] sm:$0xff]  }
 0x459   : > { %14847 = vmatpush3.bf16.msra.mxu1 %v15519_v31  ;;  %v7788_v16 = vpack.c.bf16 %v15552_v9, %v15551_v27  ;;  %v15557_v40 = vld [vmem:[#allocation4 + $0x12] ss:$8 sps:$4 sm:$0xff]   ;;  %v15582_v24 = vld [vmem:[%s19914_s4 + $0x90] sm:$0xff]  }
 0x45a   : > { %14859 = vmatpush3.bf16.msra.mxu0 %v15520_v52  ;;  %14848 = vmatprep.subr.bf16.mxu1 %v20091_v14  ;;  %v7880_v28 = vpack.c.bf16 %v15558_v10, %v15557_v40  ;;  %v15567_v60 = vld [vmem:[%s19914_s4 + $0x68] sm:$0xff]   ;;  %v15574_v31 = vld [vmem:[%s19914_s4 + $0xa0] sm:$0xff]   ;;  %v15575_v52 = vld [vmem:[%s19914_s4 + $0x58] sm:$0xff]  }
 0x45b   : > { %14860 = vmatprep.subr.bf16.mxu0 %v20091_v14  ;;  %v15568_v43 = vld [vmem:[%s19914_s4 + $0xe8] sm:$0xff]  }
 0x45c   : > { %v15569_v1 = vld [vmem:[%s19914_s4 + $0x28] sm:$0xff]  }
 0x45d   : > { %14849 = vmatpush3.bf16.msra.mxu1 %v15521_v29  ;;  %v15570_v59 = vld [vmem:[%s19914_s4 + $0xa8] sm:$0xff]   ;;  %v15576_v29 = vld [vmem:[%s19914_s4 + $0xd8] sm:$0xff]  }
 0x45e   : > { %14861 = vmatpush3.bf16.msra.mxu0 %v15522_v37  ;;  %14850 = vmatprep.subr.bf16.mxu1 %v20091_v14  ;;  %v15577_v37 = vld [vmem:[%s19914_s4 + $0x18] sm:$0xff]   ;;  %v15583_v58 = vld [vmem:[%s19914_s4 + $0x48] sm:$0xff]  }
 0x45f   : > { %14862 = vmatprep.subr.bf16.mxu0 %v20091_v14 }
 0x461   : > { %14851 = vmatpush3.bf16.msra.mxu1 %v15523_v47  ;;  %v15578_v47 = vld [vmem:[%s19914_s4 + $0x98] sm:$0xff]  }
 0x462   : > { %14863 = vmatpush3.bf16.msra.mxu0 %v15524_v33  ;;  %14868 = vmatprep.subr.bf16.mxu1 %v20091_v14  ;;  %v15579_v33 = vld [vmem:[%s19914_s4 + $0x50] sm:$0xff]  }
 0x463   : > { %14880 = vmatprep.subr.bf16.mxu0 %v20091_v14 }
 0x464   : > { %14853 = vmatmul.mubr.msk.bf16.vlgmr.msra.gmra.mxu1 %vm548_vm14, %v7327_v17  ;;  %v15585_v17 = vld [vmem:[%s19914_s4 + $0x8] sm:$0xff]  }
 0x465   : > { %14865 = vmatmul.mubr.msk.bf16.vlgmr.msra.gmra.mxu0 %vm548_vm14, %v7419_v56  ;;  %14869 = vmatpush3.bf16.msra.mxu1 %v15529_v53  ;;  %v15584_v53 = vld [vmem:[%s19914_s4 + $0xc8] sm:$0xff]   ;;  %v15587_v56 = vld [vmem:[%s19914_s4 + $0x40] sm:$0xff]  }
 0x466   : > { %14881 = vmatpush3.bf16.msra.mxu0 %v15530_v35  ;;  %14870 = vmatprep.subr.bf16.mxu1 %v20091_v14  ;;  %v15586_v35 = vld [vmem:[%s19914_s4 + $0x88] sm:$0xff]  }
 0x467   : > { %14882 = vmatprep.subr.bf16.mxu0 %v20091_v14  ;;  %14876 = vmatprep.mubr.msk.bf16.mxu1 %vm15705_vm2, %v20091_v14 }
 0x468   : > { %14888 = vmatprep.mubr.msk.bf16.mxu0 %vm15705_vm2, %v20091_v14 }
 0x469   : > { %14871 = vmatpush3.bf16.msra.mxu1 %v15531_v3  ;;  %v15588_v3 = vld [vmem:[%s19914_s4 + $0xc0] sm:$0xff]  }
 0x46a   : > { %14883 = vmatpush3.bf16.msra.mxu0 %v15532_v7  ;;  %14872 = vmatprep.subr.bf16.mxu1 %v20091_v14  ;;  %v15589_v7 = vld [vmem:[%s19914_s4] sm:$0xff]  }
 0x46b   : > { %14884 = vmatprep.subr.bf16.mxu0 %v20091_v14 }
 0x46d   : > { %14873 = vmatpush3.bf16.msra.mxu1 %v15533_v18  ;;  %v15590_v18 = vld [vmem:[%s19914_s4 + $0x80] sm:$0xff]  }
 0x46e   : > { %14885 = vmatpush3.bf16.msra.mxu0 %v15534_v26  ;;  %14874 = vmatprep.subr.bf16.mxu1 %v20091_v14  ;;  %v15595_v26 = vld [vmem:[%s19914_s4 + $0x178] sm:$0xff]  }
 0x46f   : > { %14886 = vmatprep.subr.bf16.mxu0 %v20091_v14 }
 0x471   : > { %14875 = vmatpush3.bf16.msra.mxu1 %v15535_v57  ;;  %v15596_v57 = vld [vmem:[%s19914_s4 + $0x1f8] sm:$0xff]  }
 0x472   : > { %14887 = vmatpush3.bf16.msra.mxu0 %v15536_v2  ;;  %14892 = vmatprep.subr.bf16.mxu1 %v20091_v14 }
 0x473   : > { %14904 = vmatprep.subr.bf16.mxu0 %v20091_v14 }
 0x474   : > { %14877 = vmatmul.mubr.msk.bf16.vlgmr.msra.gmra.mxu1 %vm548_vm14, %v7511_v62 }
 0x475   : > { %14889 = vmatmul.mubr.msk.bf16.vlgmr.msra.gmra.mxu0 %vm548_vm14, %v7603_v63  ;;  %14893 = vmatpush3.bf16.msra.mxu1 %v15541_v23 }
 0x476   : > { %14905 = vmatpush3.bf16.msra.mxu0 %v15542_v34  ;;  %14894 = vmatprep.subr.bf16.mxu1 %v20091_v14 }
 0x477   : > { %14906 = vmatprep.subr.bf16.mxu0 %v20091_v14  ;;  %14900 = vmatprep.mubr.msk.bf16.mxu1 %vm15705_vm2, %v20091_v14 }
 0x478   : > { %14912 = vmatprep.mubr.msk.bf16.mxu0 %vm15705_vm2, %v20091_v14 }
 0x479   : > { %14895 = vmatpush3.bf16.msra.mxu1 %v15543_v61 }
 0x47a   : > { %14907 = vmatpush3.bf16.msra.mxu0 %v15544_v25  ;;  %14896 = vmatprep.subr.bf16.mxu1 %v20091_v14 }
 0x47b   : > { %14908 = vmatprep.subr.bf16.mxu0 %v20091_v14 }
 0x47d   : > { %14897 = vmatpush3.bf16.msra.mxu1 %v15545_v20 }
 0x47e   : > { %14909 = vmatpush3.bf16.msra.mxu0 %v15546_v36  ;;  %14898 = vmatprep.subr.bf16.mxu1 %v20091_v14 }
 0x47f   : > { %14910 = vmatprep.subr.bf16.mxu0 %v20091_v14 }
 0x481   : > { %14899 = vmatpush3.bf16.msra.mxu1 %v15547_v39 }
 0x482   : > { %14911 = vmatpush3.bf16.msra.mxu0 %v15548_v51  ;;  %14916 = vmatprep.subr.bf16.mxu1 %v20091_v14 }
 0x483   : > { %14057 = vmatprep.subr.bf16.mxu0 %v15559_v48 }
 0x484   : > { %14901 = vmatmul.mubr.msk.bf16.vlgmr.msra.gmra.mxu1 %vm548_vm14, %v7696_v38 }
 0x485   : > { %14913 = vmatmul.mubr.msk.bf16.vlgmr.msra.gmra.mxu0 %vm548_vm14, %v7788_v16  ;;  %14917 = vmatpush3.bf16.msra.mxu1 %v15553_v5 }
 0x486   : > { %14918 = vmatprep.subr.bf16.mxu1 %v20091_v14  ;;  %14924 = vmatprep.mubr.msk.bf16.mxu1 %vm15705_vm2, %v20091_v14 }
 0x487   : > { %14058 = vmatpush3.bf16.msra.mxu0 %v15561_v44 }
 0x488   : > { %14059 = vmatprep.subr.bf16.mxu0 %v15563_v46 }
 0x489   : > { %14919 = vmatpush3.bf16.msra.mxu1 %v15554_v6 }
 0x48a   : > { %14920 = vmatprep.subr.bf16.mxu1 %v20091_v14 }
 0x48b   : > { %14060 = vmatpush3.bf16.msra.mxu0 %v15565_v8 }
 0x48c   : > { %14061 = vmatprep.subr.bf16.mxu0 %v15567_v60 }
 0x48d   : > { %14921 = vmatpush3.bf16.msra.mxu1 %v15555_v0 }
 0x48e   : > { %14922 = vmatprep.subr.bf16.mxu1 %v20091_v14 }
 0x48f   : > { %14062 = vmatpush3.bf16.msra.mxu0 %v15569_v1 }
 0x490   : > { %14063 = vmatprep.subr.bf16.mxu0 %v15571_v13 }
 0x491   : > { %14923 = vmatpush3.bf16.msra.mxu1 %v15556_v42 }
 0x492   : > { %14079 = vmatprep.subr.bf16.mxu1 %v15560_v49 }
 0x493   : > { %14064 = vmatpush3.bf16.msra.mxu0 %v15573_v41 }
 0x494   : > { %14925 = vmatmul.mubr.msk.bf16.vlgmr.msra.gmra.mxu1 %vm548_vm14, %v7880_v28  ;;  %14065 = vmatprep.subr.bf16.mxu0 %v15575_v52 }
 0x495   : > { %14080 = vmatpush3.bf16.msra.mxu1 %v15562_v12 }
 0x496   : > { %14081 = vmatprep.subr.bf16.mxu1 %v15564_v11 }
 0x497   : > { %14066 = vmatpush3.bf16.msra.mxu0 %v15577_v37  ;;  %v13541_v37 = vld [vmem:[%s19919_s9] ss:$0 sm:$0xff] }
 0x498   : > { %14067 = vmatprep.subr.bf16.mxu0 %v15579_v33 }
 0x499   : > { %14082 = vmatpush3.bf16.msra.mxu1 %v15566_v30 }
 0x49a   : > { %14083 = vmatprep.subr.bf16.mxu1 %v15568_v43 }
 0x49b   : > { %14068 = vmatpush3.bf16.msra.mxu0 %v15581_v45 }
 0x49c   : > { %14069 = vmatprep.subr.bf16.mxu0 %v15583_v58 }
 0x49d   : > { %14084 = vmatpush3.bf16.msra.mxu1 %v15570_v59 }
 0x49e   : > { %14085 = vmatprep.subr.bf16.mxu1 %v15572_v15 }
 0x49f   : > { %14070 = vmatpush3.bf16.msra.mxu0 %v15585_v17 }
 0x4a0   : > { %14071 = vmatprep.subr.bf16.mxu0 %v15587_v56 }
 0x4a1   : > { %14086 = vmatpush3.bf16.msra.mxu1 %v15574_v31 }
 0x4a2   : > { %14087 = vmatprep.subr.bf16.mxu1 %v15576_v29 }
 0x4a3   : > { %14072 = vmatpush3.bf16.msra.mxu0 %v15589_v7 }
 0x4a4   : > { %14101 = vmatprep.subr.bf16.mxu0 %v15595_v26 }
 0x4a5   : > { %14088 = vmatpush3.bf16.msra.mxu1 %v15578_v47 }
 0x4a6   : > { %14089 = vmatprep.subr.bf16.mxu1 %v15580_v21 }
 0x4a9   : > { %14090 = vmatpush3.bf16.msra.mxu1 %v15582_v24 }
 0x4aa   : > { %14091 = vmatprep.subr.bf16.mxu1 %v15584_v53 }
 0x4ad   : > { %14092 = vmatpush3.bf16.msra.mxu1 %v15586_v35 }
 0x4ae   : > { %14093 = vmatprep.subr.bf16.mxu1 %v15588_v3 }
 0x4b1   : > { %14094 = vmatpush3.bf16.msra.mxu1 %v15590_v18 }
 0x4b2   : > { %14123 = vmatprep.subr.bf16.mxu1 %v15596_v57 }
 0x514   : > { %v7240_v2 = vpop.f32.mrf.mxu1 }
 0x515   : > { %v7308_v22 = vpop.f32.mrf.mxu0 }
 0x516   : > { %v14830_v54 = vpop.f32.mrf.mxu1  ;;  %v7309_v42 = vadd.f32 %v7308_v22, %v7240_v2 }
 0x517   : > { %v14842_v55 = vpop.f32.mrf.mxu0 }
 0x518   : > { %v7243_v4 = vpop.f32.mrf.mxu1 }
 0x519   : > { %v7311_v23 = vpop.f32.mrf.mxu0 }
 0x51a   : > { %v14831_v62 = vpop.f32.mrf.mxu1  ;;  %v7312_v28 = vadd.f32 %v7311_v23, %v7243_v4 }
 0x51b   : > { %v14843_v34 = vpop.f32.mrf.mxu0 }
 0x524   : > { %v7398_v63 = vpop.f32.mrf.mxu1 }
 0x525   : > { %v7490_v61 = vpop.f32.mrf.mxu0  ;;  %v7405_v40 = vadd.f32 %v7398_v63, %v7309_v42 }
 0x526   : > { %v14854_v25 = vpop.f32.mrf.mxu1 }
 0x527   : > { %v14866_v20 = vpop.f32.mrf.mxu0  ;;  %v7497_v44 = vadd.f32 %v7490_v61, %v7405_v40 }
 0x528   : > { %v7401_v36 = vpop.f32.mrf.mxu1 }
 0x529   : > { %v7493_v39 = vpop.f32.mrf.mxu0  ;;  %v7406_v12 = vadd.f32 %v7401_v36, %v7312_v28 }
 0x52a   : > { %v14855_v51 = vpop.f32.mrf.mxu1 }
 0x52b   : > { %v14867_v50 = vpop.f32.mrf.mxu0  ;;  %v7498_v43 = vadd.f32 %v7493_v39, %v7406_v12 }
 0x534   : > { %v7582_v27 = vpop.f32.mrf.mxu1 }
 0x535   : > { %v7674_v19 = vpop.f32.mrf.mxu0  ;;  %v7589_v8 = vadd.f32 %v7582_v27, %v7497_v44 }
 0x536   : > { %v14878_v9 = vpop.f32.mrf.mxu1 }
 0x537   : > { %v14890_v5 = vpop.f32.mrf.mxu0  ;;  %v7681_v59 = vadd.f32 %v7674_v19, %v7589_v8 }
 0x538   : > { %v7585_v38 = vpop.f32.mrf.mxu1 }
 0x539   : > { %v7677_v16 = vpop.f32.mrf.mxu0  ;;  %v7590_v13 = vadd.f32 %v7585_v38, %v7498_v43 }
 0x53a   : > { %v14879_v6 = vpop.f32.mrf.mxu1 }
 0x53b   : > { %v14891_v0 = vpop.f32.mrf.mxu0  ;;  %v7682_v41 = vadd.f32 %v7677_v16, %v7590_v13 }
 0x544   : > { %v7767_v10 = vpop.f32.mrf.mxu1 }
 0x545   : > { %v7859_v48 = vpop.f32.mrf.mxu0  ;;  %v7774_v15 = vadd.f32 %v7767_v10, %v7681_v59 }
 0x546   : > { %v14902_v49 = vpop.f32.mrf.mxu1 }
 0x547   : > { %v14914_v46 = vpop.f32.mrf.mxu0  ;;  %v7866_v31 = vadd.f32 %v7859_v48, %v7774_v15 }
 0x548   : > { %v7770_v11 = vpop.f32.mrf.mxu1 }
 0x549   : > { %v7862_v30 = vpop.f32.mrf.mxu0  ;;  %v7775_v52 = vadd.f32 %v7770_v11, %v7682_v41 }
 0x54a   : > { %v14903_v60 = vpop.f32.mrf.mxu1 }
 0x54b   : > { %v14915_v1 = vpop.f32.mrf.mxu0  ;;  %v7867_v21 = vadd.f32 %v7862_v30, %v7775_v52 }
 0x554   : > { %v7951_v29 = vpop.f32.mrf.mxu1 }
 0x555   : > { %v7958_v47 = vadd.f32 %v7951_v29, %v7866_v31 }
 0x556   : > { %v14926_v33 = vpop.f32.mrf.mxu1 }
 0x557   : > { %v7967_v45 = vadd.f32 %v13541_v37, %v7958_v47 }
 0x558   : > { %v7954_v24 = vpop.f32.mrf.mxu1 }
 0x559   : > { %v7969_v58 = vmax.f32 %v7967_v45, 0.0  ;;  %v7959_v53 = vadd.f32 %v7954_v24, %v7867_v21 }
 0x55a   : > { %v14927_v17 = vpop.f32.mrf.mxu1 }
 0x55b   : > { %v7973_v35 = vcombine.high %v7969_v58, %v7969_v58  ;;  %v7980_v56 = vrot.slane %v7969_v58, %v20088_v32  ;;  %v7968_v3 = vadd.f32 %v13541_v37, %v7959_v53 }
 0x55d   : > { %v7987_v7 = vrot.slane %v7973_v35, %v20088_v32  ;;  %v7988_v18 = vcombine.high %v7980_v56, %v7980_v56  ;;  %v8015_v26 = vsel %vm758_vm0, %v7980_v56, -inf  ;;  %v7970_v57 = vmax.f32 %v7968_v3, 0.0 }
 0x55e   : > { %v8016_v2 = vrot.slane %v8015_v26, 4 }
 0x55f   : > { %v7989_v22 = vcombine.high %v7987_v7, %v7987_v7  ;;  %v8022_v54 = vsel %vm758_vm0, %v7988_v18, -inf  ;;  %v8029_v55 = vsel %vm758_vm0, %v7987_v7, -inf  ;;  %v7990_v4 = vcombine.high %v7970_v57, %v7970_v57 }
 0x560   : > { %v8017_v23 = vmax.f32 %v8015_v26, %v8016_v2  ;;  %v8023_v62 = vrot.slane %v8022_v54, 4  ;;  %v8030_v34 = vrot.slane %v8029_v55, 4  ;;  %v7997_v63 = vrot.slane %v7970_v57, %v20088_v32 }
 0x561   : > { %v8036_v61 = vsel %vm758_vm0, %v7989_v22, -inf  ;;  %v8004_v25 = vrot.slane %v7990_v4, %v20088_v32 }
 0x562   : > { %v8018_v20 = vrot.slane %v8017_v23, 2  ;;  %v8024_v36 = vmax.f32 %v8022_v54, %v8023_v62  ;;  %v8031_v39 = vmax.f32 %v8029_v55, %v8030_v34  ;;  %v8037_v51 = vrot.slane %v8036_v61, 4 }
 0x563   : > { %v8005_v50 = vcombine.high %v7997_v63, %v7997_v63  ;;  %v8006_v27 = vcombine.high %v8004_v25, %v8004_v25  ;;  %v8043_v19 = vsel %vm758_vm0, %v7997_v63, -inf  ;;  %v8057_v9 = vsel %vm758_vm0, %v8004_v25, -inf }
 0x564   : > { %v8019_v5 = vmax.f32 %v8017_v23, %v8018_v20  ;;  %v8025_v38 = vrot.slane %v8024_v36, 2  ;;  %v8032_v16 = vrot.slane %v8031_v39, 2  ;;  %v8038_v6 = vmax.f32 %v8036_v61, %v8037_v51  ;;  %v15601_v20 = vld [vmem:[%s19914_s4 + $0x138] sm:$0xff]  }
 0x565   : > { %v8044_v0 = vrot.slane %v8043_v19, 4  ;;  %v8050_v42 = vsel %vm758_vm0, %v8005_v50, -inf  ;;  %v8058_v40 = vrot.slane %v8057_v9, 4  ;;  %v8064_v10 = vsel %vm758_vm0, %v8006_v27, -inf }
 0x566   : > { %v8026_v28 = vmax.f32 %v8024_v36, %v8025_v38  ;;  %v8033_v48 = vmax.f32 %v8031_v39, %v8032_v16  ;;  %v8039_v49 = vrot.slane %v8038_v6, 2  ;;  %v8051_v12 = vrot.slane %v8050_v42, 4  ;;  %v15602_v36 = vld [vmem:[%s19914_s4 + $0x1b8] sm:$0xff]   ;;  %v15608_v38 = vld [vmem:[%s19914_s4 + $0x1f0] sm:$0xff]  }
 0x567   : > { %v8045_v44 = vmax.f32 %v8043_v19, %v8044_v0  ;;  %v8059_v46 = vmax.f32 %v8057_v9, %v8058_v40  ;;  %v8065_v11 = vrot.slane %v8064_v10, 4  ;;  %v8020_v8 = vrot.slane %v8019_v5, 1  ;;  %v15607_v19 = vld [vmem:[%s19914_s4 + $0x170] sm:$0xff]  }
 0x568   : > { %v8027_v30 = vrot.slane %v8026_v28, 1  ;;  %v8034_v60 = vrot.slane %v8033_v48, 1  ;;  %v8040_v43 = vmax.f32 %v8038_v6, %v8039_v49  ;;  %v8052_v59 = vmax.f32 %v8050_v42, %v8051_v12  ;;  %v15609_v40 = vld [vmem:[%s19914_s4 + $0x130] sm:$0xff]   ;;  %v15611_v49 = vld [vmem:[%s19914_s4 + $0x168] sm:$0xff]  }
 0x569   : > { %v8046_v1 = vrot.slane %v8045_v44, 2  ;;  %v8060_v13 = vrot.slane %v8059_v46, 2  ;;  %v8066_v15 = vmax.f32 %v8064_v10, %v8065_v11  ;;  %v8021_v33 = vmax.f32 %v8019_v5, %v8020_v8  ;;  %v15613_v12 = vld [vmem:[%s19914_s4 + $0x128] sm:$0xff]   ;;  %v15615_v11 = vld [vmem:[%s19914_s4 + $0x160] sm:$0xff]  }
 0x56a   : > { %v8035_v41 = vmax.f32 %v8033_v48, %v8034_v60  ;;  %v8041_v31 = vrot.slane %v8040_v43, 1  ;;  %v8053_v29 = vrot.slane %v8052_v59, 2  ;;  %v8028_v21 = vmax.f32 %v8026_v28, %v8027_v30  ;;  %v15610_v48 = vld [vmem:[%s19914_s4 + $0x1b0] sm:$0xff]   ;;  %v15616_v8 = vld [vmem:[%s19914_s4 + $0x1e0] sm:$0xff]  }
 0x56b   : > { %v8047_v52 = vmax.f32 %v8045_v44, %v8046_v1  ;;  %v8061_v37 = vmax.f32 %v8059_v46, %v8060_v13  ;;  %v8067_v47 = vrot.slane %v8066_v15, 2  ;;  %v15612_v44 = vld [vmem:[%s19914_s4 + $0x1e8] sm:$0xff]   ;;  %v15617_v30 = vld [vmem:[%s19914_s4 + $0x120] sm:$0xff]   ;;  %v15620_v1 = vld [vmem:[%s19914_s4 + $0x1d8] sm:$0xff]  }
 0x56c   : > { %v8042_v45 = vmax.f32 %v8040_v43, %v8041_v31  ;;  %v8054_v58 = vmax.f32 %v8052_v59, %v8053_v29  ;;  %v8071_v35 = vmax.f32 %v8021_v33, %v8035_v41  ;;  %v15614_v46 = vld [vmem:[%s19914_s4 + $0x1a8] sm:$0xff]   ;;  %v15618_v60 = vld [vmem:[%s19914_s4 + $0x1a0] sm:$0xff]   ;;  %v15619_v43 = vld [vmem:[%s19914_s4 + $0x158] sm:$0xff]  }
 0x56d   : > { %v8048_v24 = vrot.slane %v8047_v52, 1  ;;  %v8062_v53 = vrot.slane %v8061_v37, 1  ;;  %v8068_v17 = vmax.f32 %v8066_v15, %v8067_v47  ;;  %v15621_v59 = vld [vmem:[%s19914_s4 + $0x118] sm:$0xff]   ;;  %v15623_v15 = vld [vmem:[%s19914_s4 + $0x150] sm:$0xff]   ;;  %v15627_v29 = vld [vmem:[%s19914_s4 + $0x148] sm:$0xff]  }
 0x56e   : > { %v8072_v56 = vmax.f32 %v8028_v21, %v8042_v45  ;;  %v8055_v3 = vrot.slane %v8054_v58, 1  ;;  %v15622_v13 = vld [vmem:[%s19914_s4 + $0x198] sm:$0xff]   ;;  %v15624_v41 = vld [vmem:[%s19914_s4 + $0x1d0] sm:$0xff]   ;;  %v15629_v47 = vld [vmem:[%s19914_s4 + $0x108] sm:$0xff]  }
 0x56f   : > { %v8063_v7 = vmax.f32 %v8061_v37, %v8062_v53  ;;  %v8069_v18 = vrot.slane %v8068_v17, 1  ;;  %v8049_v57 = vmax.f32 %v8047_v52, %v8048_v24  ;;  %v15625_v31 = vld [vmem:[%s19914_s4 + $0x110] sm:$0xff]   ;;  %v15628_v37 = vld [vmem:[%s19914_s4 + $0x1c8] sm:$0xff]   ;;  %v15631_v21 = vld [vmem:[%s19914_s4 + $0x140] sm:$0xff]  }
 0x570   : > { %v8079_v26 = vcombine.low %v8071_v35, %v8072_v56  ;;  %v8056_v2 = vmax.f32 %v8054_v58, %v8055_v3  ;;  %v15626_v52 = vld [vmem:[%s19914_s4 + $0x190] sm:$0xff]   ;;  %v15630_v33 = vld [vmem:[%s19914_s4 + $0x188] sm:$0xff]   ;;  %v15632_v45 = vld [vmem:[%s19914_s4 + $0x1c0] sm:$0xff]  }
 0x571   : > { %v8070_v22 = vmax.f32 %v8068_v17, %v8069_v18  ;;  %v8073_v54 = vmax.f32 %v8049_v57, %v8063_v7  ;;  %v15633_v24 = vld [vmem:[%s19914_s4 + $0x100] sm:$0xff]   ;;  %v15639_v3 = vld [vmem:[%s19914_s4 + $0x238] sm:$0xff]   ;;  %v15641_v57 = vld [vmem:[%s19914_s4 + $0x228] sm:$0xff]  }
 0x572   : > { %13542 = vst.sshfl [vmem:[#allocation5 + $0x9] sm:$0x33 pattern:$0x76325410] %v8079_v26  ;;  %v15634_v58 = vld [vmem:[%s19914_s4 + $0x180] sm:$0xff]  }
 0x573   : > { %13543 = vst.sshfl [vmem:[#allocation5 + $0x11] sm:$0x33 pattern:$0x76325410] %v8079_v26  ;;  %v8074_v55 = vmax.f32 %v8056_v2, %v8070_v22  ;;  %v15640_v26 = vld [vmem:[%s19914_s4 + $0x230] sm:$0xff]   ;;  %v15642_v2 = vld [vmem:[%s19914_s4 + $0x220] sm:$0xff]  }
 0x574   : > { %v15643_v22 = vld [vmem:[%s19914_s4 + $0x218] sm:$0xff]  }
 0x575   : > { %v8087_v4 = vcombine.low %v8073_v54, %v8074_v55  ;;  %v15644_v54 = vld [vmem:[%s19914_s4 + $0x210] sm:$0xff]   ;;  %v15645_v55 = vld [vmem:[%s19914_s4 + $0x208] sm:$0xff]  }
 0x577   : > { %13544 = vst.sshfl [vmem:[#allocation5 + $0x19] sm:$0x33 pattern:$0x76325410] %v8087_v4 }
 0x578   : > { %13545 = vst.sshfl [vmem:[#allocation5 + $0x21] sm:$0x33 pattern:$0x76325410] %v8087_v4  ;;  %v15646_v4 = vld [vmem:[%s19914_s4 + $0x200] sm:$0xff]  }
 0x579   : > { %v15591_v23 = vld [vmem:[#allocation5 + $0x1] ss:$8 sps:$4 sm:$0xff]  }
 0x57a   : > { %v15593_v62 = vld [vmem:[#allocation5 + $0x8] ss:$8 sps:$4 sm:$0xff]  }
 0x57b   : > { %v15597_v63 = vld [vmem:[#allocation5] ss:$8 sps:$4 sm:$0xff]  }
 0x57c   : > { %v15599_v61 = vld [vmem:[#allocation5 + $0x2] ss:$8 sps:$4 sm:$0xff]  }
 0x57d   : > { %v15603_v27 = vld [vmem:[#allocation5 + $0xa] ss:$8 sps:$4 sm:$0xff]  }
 0x57e   : > { %v15592_v34 = vld [vmem:[#allocation5 + $0x11] ss:$8 sps:$4 sm:$0xff]  }
 0x57f   : > { %v15594_v25 = vld [vmem:[#allocation5 + $0x18] ss:$8 sps:$4 sm:$0xff]   ;;  %v8127_v39 = vpack.c.bf16 %v15592_v34, %v15591_v23  ;;  %v15635_v56 = vld [vmem:[#allocation5 + $0x9] ss:$8 sps:$4 sm:$0xff]  }
 0x580   : > { %v15598_v51 = vld [vmem:[#allocation5 + $0x10] ss:$8 sps:$4 sm:$0xff]   ;;  %v8153_v9 = vpack.c.bf16 %v15594_v25, %v15593_v62  ;;  %v15606_v42 = vld [vmem:[#allocation5 + $0x21] ss:$8 sps:$4 sm:$0xff]  }
 0x581   : > { %v15600_v50 = vld [vmem:[#allocation5 + $0x12] ss:$8 sps:$4 sm:$0xff]   ;;  %8835 = vmatprep.mubr.bf16.mxu0 %v8127_v39  ;;  %v8114_v16 = vpack.c.bf16 %v15598_v51, %v15597_v63  ;;  %v15638_v35 = vld [vmem:[#allocation5 + $0x20] ss:$8 sps:$4 sm:$0xff]  }
 0x582   : > { %v15604_v5 = vld [vmem:[#allocation5 + $0x1a] ss:$8 sps:$4 sm:$0xff]   ;;  %v8140_v6 = vpack.c.bf16 %v15600_v50, %v15599_v61  ;;  %8876 = vmatprep.mubr.bf16.mxu1 %v8153_v9  ;;  %v15651_v25 = vld [vmem:[%s19915_s5 + $0x30] sm:$0xff]   ;;  %v15654_v39 = vld [vmem:[%s19915_s5 + $0x48] sm:$0xff]  }
 0x583   : > { %v15605_v0 = vld [vmem:[#allocation5 + $0x11] ss:$8 sps:$4 sm:$0xff]   ;;  %8836 = vmatmul.mubr.bf16.vlgmr.msra.gmra.mxu0 %v8114_v16  ;;  %v8179_v10 = vpack.c.bf16 %v15604_v5, %v15603_v27  ;;  %v15648_v62 = vld [vmem:[#allocation5 + $0x22] ss:$8 sps:$4 sm:$0xff]  }
 0x584   : > { %8877 = vmatmul.mubr.bf16.vlgmr.msra.gmra.mxu1 %v8140_v6  ;;  %14102 = vmatpush3.bf16.msra.mxu0 %v15601_v20  ;;  %v8206_v28 = vpack.c.bf16 %v15606_v42, %v15605_v0  ;;  %v15636_v53 = vld [vmem:[#allocation5 + $0x19] ss:$8 sps:$4 sm:$0xff]   ;;  %v15652_v20 = vld [vmem:[%s19915_s5 + $0x50] sm:$0xff]  }
 0x585   : > { %14124 = vmatpush3.bf16.msra.mxu1 %v15602_v36  ;;  %8917 = vmatprep.mubr.bf16.mxu0 %v8179_v10  ;;  %v15637_v17 = vld [vmem:[#allocation5 + $0x10] ss:$8 sps:$4 sm:$0xff]   ;;  %v8166_v7 = vpack.c.bf16 %v15636_v53, %v15635_v56  ;;  %v15653_v36 = vld [vmem:[%s19915_s5 + $0x28] sm:$0xff]   ;;  %v15655_v51 = vld [vmem:[%s19915_s5 + $0x20] sm:$0xff]  }
 0x586   : > { %14103 = vmatprep.subr.bf16.mxu0 %v15607_v19  ;;  %8958 = vmatprep.mubr.bf16.mxu1 %v8206_v28  ;;  %v8193_v18 = vpack.c.bf16 %v15638_v35, %v15637_v17  ;;  %v15647_v23 = vld [vmem:[#allocation5 + $0x12] ss:$8 sps:$4 sm:$0xff]   ;;  %v15656_v50 = vld [vmem:[%s19915_s5 + $0x40] sm:$0xff]  }
 0x587   : > { %14125 = vmatprep.subr.bf16.mxu1 %v15608_v38  ;;  %v8219_v34 = vpack.c.bf16 %v15648_v62, %v15647_v23  ;;  %v15649_v63 = vld [vmem:[%s19915_s5 + $0x38] sm:$0xff]   ;;  %v20092_v35 = vld [vmem:[#allocation8_spill] sm:$0xff] }
 0x588   : > { %14104 = vmatpush3.bf16.msra.mxu0 %v15609_v40  ;;  %v15650_v61 = vld [vmem:[%s19915_s5 + $0x58] sm:$0xff]  }
 0x589   : > { %14126 = vmatpush3.bf16.msra.mxu1 %v15610_v48  ;;  %14105 = vmatprep.subr.bf16.mxu0 %v15611_v49  ;;  %v18871_v27 = vld [vmem:[%s19915_s5 + $0x18] sm:$0xff]   ;;  %v13546_v49 = vld [vmem:[%s19920_s10] ss:$0 sm:$0xff] }
 0x58a   : > { %14127 = vmatprep.subr.bf16.mxu1 %v15612_v44  ;;  %v18876_v19 = vld [vmem:[%s19915_s5 + $0x98] sm:$0xff]  }
 0x58c   : > { %14106 = vmatpush3.bf16.msra.mxu0 %v15613_v12 }
 0x58d   : > { %14128 = vmatpush3.bf16.msra.mxu1 %v15614_v46  ;;  %14107 = vmatprep.subr.bf16.mxu0 %v15615_v11 }
 0x58e   : > { %14129 = vmatprep.subr.bf16.mxu1 %v15616_v8 }
 0x590   : > { %14108 = vmatpush3.bf16.msra.mxu0 %v15617_v30 }
 0x591   : > { %14130 = vmatpush3.bf16.msra.mxu1 %v15618_v60  ;;  %14109 = vmatprep.subr.bf16.mxu0 %v15619_v43 }
 0x592   : > { %14131 = vmatprep.subr.bf16.mxu1 %v15620_v1 }
 0x594   : > { %14110 = vmatpush3.bf16.msra.mxu0 %v15621_v59 }
 0x595   : > { %14132 = vmatpush3.bf16.msra.mxu1 %v15622_v13  ;;  %14111 = vmatprep.subr.bf16.mxu0 %v15623_v15  ;;  %v15706_v13 = vmov 1966171168  }
 0x596   : > { %14133 = vmatprep.subr.bf16.mxu1 %v15624_v41  ;;  %v9014_v15 = vunpack.c.l.s4 %v15706_v13 }
 0x598   : > { %14112 = vmatpush3.bf16.msra.mxu0 %v15625_v31 }
 0x599   : > { %14134 = vmatpush3.bf16.msra.mxu1 %v15626_v52  ;;  %14113 = vmatprep.subr.bf16.mxu0 %v15627_v29 }
 0x59a   : > { %14135 = vmatprep.subr.bf16.mxu1 %v15628_v37 }
 0x59c   : > { %14114 = vmatpush3.bf16.msra.mxu0 %v15629_v47 }
 0x59d   : > { %14136 = vmatpush3.bf16.msra.mxu1 %v15630_v33  ;;  %14115 = vmatprep.subr.bf16.mxu0 %v15631_v21  ;;  %v9015_v33 = vunpack.c.0.s8 %v9014_v15 }
 0x59e   : > { %14137 = vmatprep.subr.bf16.mxu1 %v15632_v45 }
 0x59f   : > { %v18884_v56 = vsub.s32 %v9015_v33, %v20092_v35 }
 0x5a0   : > { %14116 = vmatpush3.bf16.msra.mxu0 %v15633_v24 }
 0x5a1   : > { %14138 = vmatpush3.bf16.msra.mxu1 %v15634_v58  ;;  %14928 = vmatprep.subr.bf16.mxu0 %v20091_v14 }
 0x5a2   : > { %14948 = vmatprep.subr.bf16.mxu1 %v15649_v63 }
 0x5a3   : > { %8918 = vmatmul.mubr.bf16.vlgmr.msra.gmra.mxu0 %v8166_v7 }
 0x5a4   : > { %8959 = vmatmul.mubr.bf16.vlgmr.msra.gmra.mxu1 %v8193_v18  ;;  %14929 = vmatpush3.bf16.msra.mxu0 %v15639_v3 }
 0x5a5   : > { %14944 = vmatprep.mubr.msk.bf16.mxu0 %vm15705_vm2, %v20091_v14  ;;  %14930 = vmatprep.subr.bf16.mxu0 %v20091_v14 }
 0x5a6   : > { %14949 = vmatpush3.bf16.msra.mxu1 %v15649_v63 }
 0x5a7   : > { %14950 = vmatprep.subr.bf16.mxu1 %v15651_v25 }
 0x5a8   : > { %14931 = vmatpush3.bf16.msra.mxu0 %v15640_v26 }
 0x5a9   : > { %14932 = vmatprep.subr.bf16.mxu0 %v20091_v14 }
 0x5aa   : > { %14951 = vmatpush3.bf16.msra.mxu1 %v15651_v25 }
 0x5ab   : > { %14952 = vmatprep.subr.bf16.mxu1 %v15653_v36 }
 0x5ac   : > { %14933 = vmatpush3.bf16.msra.mxu0 %v15641_v57 }
 0x5ad   : > { %14934 = vmatprep.subr.bf16.mxu0 %v20091_v14 }
 0x5ae   : > { %14953 = vmatpush3.bf16.msra.mxu1 %v15653_v36 }
 0x5af   : > { %14954 = vmatprep.subr.bf16.mxu1 %v15655_v51 }
 0x5b0   : > { %14935 = vmatpush3.bf16.msra.mxu0 %v15642_v2 }
 0x5b1   : > { %14936 = vmatprep.subr.bf16.mxu0 %v20091_v14 }
 0x5b2   : > { %14955 = vmatpush3.bf16.msra.mxu1 %v15655_v51 }
 0x5b3   : > { %14964 = vmatprep.subr.bf16.mxu1 %v18871_v27 }
 0x5b4   : > { %14937 = vmatpush3.bf16.msra.mxu0 %v15643_v22 }
 0x5b5   : > { %14938 = vmatprep.subr.bf16.mxu0 %v20091_v14 }
 0x5b8   : > { %14939 = vmatpush3.bf16.msra.mxu0 %v15644_v54  ;;  %v18888_v54 = vsub.s32 0, %v20092_v35 }
 0x5b9   : > { %14940 = vmatprep.subr.bf16.mxu0 %v20091_v14 }
 0x5bc   : > { %14941 = vmatpush3.bf16.msra.mxu0 %v15645_v55 }
 0x5bd   : > { %14942 = vmatprep.subr.bf16.mxu0 %v20091_v14 }
 0x5c0   : > { %14943 = vmatpush3.bf16.msra.mxu0 %v15646_v4 }
 0x5c1   : > { %14980 = vmatprep.subr.bf16.mxu0 %v15650_v61 }
 0x5c3   : > { %14945 = vmatmul.mubr.bf16.vlgmr.msra.gmra.mxu0 %v8219_v34 }
 0x5c4   : > { %14981 = vmatpush3.bf16.msra.mxu0 %v15650_v61 }
 0x5c5   : > { %14982 = vmatprep.subr.bf16.mxu0 %v15652_v20 }
 0x5c8   : > { %14983 = vmatpush3.bf16.msra.mxu0 %v15652_v20 }
 0x5c9   : > { %14984 = vmatprep.subr.bf16.mxu0 %v15654_v39 }
 0x5cc   : > { %14985 = vmatpush3.bf16.msra.mxu0 %v15654_v39 }
 0x5cd   : > { %14986 = vmatprep.subr.bf16.mxu0 %v15656_v50 }
 0x5d0   : > { %14987 = vmatpush3.bf16.msra.mxu0 %v15656_v50 }
 0x5d1   : > { %15012 = vmatprep.subr.bf16.mxu0 %v18876_v19 }
 0x643   : > { %v14073_v9 = vpop.f32.mrf.mxu0 }
 0x644   : > { %v14095_v38 = vpop.f32.mrf.mxu1 }
 0x645   : > { %v14074_v5 = vpop.f32.mrf.mxu0 }
 0x646   : > { %v14096_v6 = vpop.f32.mrf.mxu1  ;;  %v14075_v48 = vadd.f32 %v14074_v5, %v14073_v9 }
 0x647   : > { %v14076_v16 = vpop.f32.mrf.mxu0  ;;  %v14097_v30 = vadd.f32 %v14096_v6, %v14095_v38 }
 0x648   : > { %v14098_v42 = vpop.f32.mrf.mxu1  ;;  %v8838_v46 = vadd.f32 %v14075_v48, %v13546_v49 }
 0x649   : > { %v14077_v0 = vpop.f32.mrf.mxu0 }
 0x64a   : > { %v14099_v10 = vpop.f32.mrf.mxu1  ;;  %v14078_v11 = vadd.f32 %v14077_v0, %v14076_v16  ;;  %v8879_v1 = vadd.f32 %v14097_v30, %v8838_v46 }
 0x64b   : > { %v14100_v31 = vadd.f32 %v14099_v10, %v14098_v42 }
 0x64c   : > { %v8841_v59 = vadd.f32 %v14078_v11, %v13546_v49 }
 0x64e   : > { %v8882_v37 = vadd.f32 %v14100_v31, %v8841_v59 }
 0x663   : > { %v14117_v40 = vpop.f32.mrf.mxu0 }
 0x664   : > { %v14139_v44 = vpop.f32.mrf.mxu1 }
 0x665   : > { %v14118_v28 = vpop.f32.mrf.mxu0 }
 0x666   : > { %v14140_v8 = vpop.f32.mrf.mxu1  ;;  %v14119_v60 = vadd.f32 %v14118_v28, %v14117_v40 }
 0x667   : > { %v14120_v12 = vpop.f32.mrf.mxu0  ;;  %v14141_v47 = vadd.f32 %v14140_v8, %v14139_v44 }
 0x668   : > { %v14142_v41 = vpop.f32.mrf.mxu1  ;;  %v8920_v52 = vadd.f32 %v14119_v60, %v8879_v1 }
 0x669   : > { %v14121_v43 = vpop.f32.mrf.mxu0 }
 0x66a   : > { %v14122_v29 = vadd.f32 %v14121_v43, %v14120_v12  ;;  %v14143_v21 = vpop.f32.mrf.mxu1  ;;  %v8961_v24 = vadd.f32 %v14141_v47, %v8920_v52 }
 0x66b   : > { %v14144_v53 = vadd.f32 %v14143_v21, %v14142_v41 }
 0x66c   : > { %v8923_v45 = vadd.f32 %v14122_v29, %v8882_v37 }
 0x66e   : > { %v8964_v18 = vadd.f32 %v14144_v53, %v8923_v45 }
 0x683   : > { %v9001_v58 = vpop.f32.mrf.mxu0 }
 0x684   : > { %v9002_v17 = vadd.f32 %v9001_v58, %v8961_v24 }
 0x685   : > { %v14946_v3 = vpop.f32.mrf.mxu0 }
 0x686   : > { %v9008_v7 = vmax.f32 %v9002_v17, 0.0 }
 0x687   : > { %v9004_v26 = vpop.f32.mrf.mxu0 }
 0x688   : > { %v9012_v57 = vcombine.high %v9008_v7, %v9008_v7  ;;  %v9019_v2 = vrot.slane %v9008_v7, %v18884_v56  ;;  %v9005_v22 = vadd.f32 %v9004_v26, %v8964_v18 }
 0x689   : > { %v14947_v55 = vpop.f32.mrf.mxu0 }
 0x68a   : > { %v9026_v4 = vrot.slane %v9012_v57, %v18884_v56  ;;  %v9027_v23 = vcombine.high %v9019_v2, %v9019_v2  ;;  %v9035_v62 = vrot.slane %v9019_v2, %v18884_v56  ;;  %v9009_v34 = vmax.f32 %v9005_v22, 0.0 }
 0x68c   : > { %v9028_v63 = vcombine.high %v9026_v4, %v9026_v4  ;;  %v9042_v61 = vrot.slane %v9026_v4, %v18884_v56  ;;  %v9049_v25 = vrot.slane %v9027_v23, %v18884_v56  ;;  %v9057_v20 = vcombine.high %v9035_v62, %v9035_v62 }
 0x68d   : > { %v9113_v36 = vrot.slane %v9035_v62, %v18888_v54  ;;  %v9061_v39 = vcombine.high %v9009_v34, %v9009_v34  ;;  %v9068_v51 = vrot.slane %v9009_v34, %v18884_v56  ;;  %v9275_v34 = vld [vmem:[#allocation6 + $0x1] sm:$0xff] }
 0x68e   : > { %v9056_v50 = vrot.slane %v9028_v63, %v18884_v56  ;;  %v9058_v9 = vcombine.high %v9042_v61, %v9042_v61  ;;  %v9059_v5 = vcombine.high %v9049_v25, %v9049_v25  ;;  %v9117_v38 = vrot.slane %v9049_v25, %v18888_v54  ;;  %v9498_v63 = vld [vmem:[#allocation6 + $0x2] sm:$0xff] }
 0x68f   : > { %v9121_v16 = vrot.slane %v9057_v20, %v18888_v54  ;;  %v9129_v6 = vrot.slane %v9042_v61, %v18888_v54  ;;  %v9075_v0 = vrot.slane %v9061_v39, %v18884_v56  ;;  %v9076_v42 = vcombine.high %v9068_v51, %v9068_v51 }
 0x690   : > { %v9060_v40 = vcombine.high %v9056_v50, %v9056_v50  ;;  %v9125_v10 = vrot.slane %v9059_v5, %v18888_v54  ;;  %v9133_v28 = vrot.slane %v9056_v50, %v18888_v54  ;;  %v9137_v48 = vrot.slane %v9058_v9, %v18888_v54 }
 0x691   : > { %v9174_v49 = vcombine.low %v9113_v36, %v9117_v38  ;;  %v9077_v44 = vcombine.high %v9075_v0, %v9075_v0  ;;  %v9084_v12 = vrot.slane %v9068_v51, %v18884_v56  ;;  %v9091_v46 = vrot.slane %v9075_v0, %v18884_v56 }
 0x692   : > { %v9141_v11 = vrot.slane %v9060_v40, %v18888_v54  ;;  %v9175_v8 = vcombine.low %v9121_v16, %v9125_v10  ;;  %v9191_v30 = vcombine.low %v9129_v6, %v9133_v28  ;;  %v9098_v60 = vrot.slane %v9076_v42, %v18884_v56  ;;  %v15659_v16 = vld [vmem:[%s19915_s5 + $0x10] sm:$0xff]  }
 0x693   : > { %v9182_v43 = vrot.slane %v9174_v49, %v20088_v32  ;;  %v9105_v1 = vrot.slane %v9077_v44, %v18884_v56  ;;  %v9106_v59 = vcombine.high %v9084_v12, %v9084_v12  ;;  %v9107_v13 = vcombine.high %v9091_v46, %v9091_v46  ;;  %v15660_v6 = vld [vmem:[%s19915_s5 + $0x90] sm:$0xff]   ;;  %v15661_v49 = vld [vmem:[%s19915_s5 + $0x8] sm:$0xff]  }
 0x694   : > { %v9189_v15 = vrot.slane %v9175_v8, %v20088_v32  ;;  %v9192_v41 = vcombine.low %v9137_v48, %v9141_v11  ;;  %v9199_v31 = vrot.slane %v9191_v30, %v20088_v32  ;;  %v9108_v52 = vcombine.high %v9098_v60, %v9098_v60 }
 0x695   : > { %v9109_v29 = vcombine.high %v9105_v1, %v9105_v1  ;;  %v9145_v37 = vrot.slane %v9084_v12, %v18888_v54  ;;  %v9149_v47 = vrot.slane %v9098_v60, %v18888_v54  ;;  %v9153_v33 = vrot.slane %v9106_v59, %v18888_v54  ;;  %v9255_v12 = vld [vmem:[#allocation6] sm:$0xff]  ;;  %v15664_v59 = vld [vmem:[%s19915_s5 + $0x80] sm:$0xff]  }
 0x696   : > { %v9190_v21 = vcombine.low %v9182_v43, %v9189_v15  ;;  %v9206_v45 = vrot.slane %v9192_v41, %v20088_v32  ;;  %v9157_v24 = vrot.slane %v9108_v52, %v18888_v54  ;;  %v9161_v58 = vrot.slane %v9091_v46, %v18888_v54  ;;  %v15665_v15 = vld [vmem:[%s19915_s5 + $0x78] sm:$0xff]  }
 0x697   : > { %v9165_v53 = vrot.slane %v9105_v1, %v18888_v54  ;;  %v9169_v17 = vrot.slane %v9107_v13, %v18888_v54  ;;  %v9173_v35 = vrot.slane %v9109_v29, %v18888_v54  ;;  %v9208_v3 = vcombine.low %v9145_v37, %v9149_v47  ;;  %v15663_v1 = vld [vmem:[%s19915_s5] sm:$0xff]  }
 0x698   : > { %v9207_v7 = vcombine.low %v9199_v31, %v9206_v45  ;;  %9247 = vst.msk [vmem:[#allocation6 + $0x11] sm:$0xff] %vm548_vm14, %v9190_v21  ;;  %9248 = vst.msk [vmem:[#allocation6 + $0x21] sm:$0xff] %vm548_vm14, %v9190_v21  ;;  %v9209_v18 = vcombine.low %v9153_v33, %v9157_v24  ;;  %v15666_v31 = vld [vmem:[%s19915_s5 + $0xd8] sm:$0xff]   ;;  %v15667_v21 = vld [vmem:[%s19915_s5 + $0x70] sm:$0xff]  }
 0x699   : > { %v9225_v26 = vcombine.low %v9161_v58, %v9165_v53  ;;  %v9226_v57 = vcombine.low %v9169_v17, %v9173_v35  ;;  %v9216_v2 = vrot.slane %v9208_v3, %v20088_v32  ;;  %v15668_v58 = vld [vmem:[%s19915_s5 + $0xd0] sm:$0xff]   ;;  %v15669_v53 = vld [vmem:[%s19915_s5 + $0x68] sm:$0xff]  }
 0x69a   : > { %9249 = vst.msk [vmem:[#allocation6 + $0x31] sm:$0xff] %vm548_vm14, %v9207_v7  ;;  %9250 = vst.msk [vmem:[#allocation6 + $0x41] sm:$0xff] %vm548_vm14, %v9207_v7  ;;  %v9223_v22 = vrot.slane %v9209_v18, %v20088_v32  ;;  %v15670_v3 = vld [vmem:[%s19915_s5 + $0xc8] sm:$0xff]  }
 0x69b   : > { %v9233_v55 = vrot.slane %v9225_v26, %v20088_v32  ;;  %v9240_v4 = vrot.slane %v9226_v57, %v20088_v32  ;;  %v15671_v57 = vld [vmem:[%s19915_s5 + $0x60] sm:$0xff]  }
 0x69c   : > { %v9224_v23 = vcombine.low %v9216_v2, %v9223_v22  ;;  %v15672_v22 = vld [vmem:[%s19915_s5 + $0xc0] sm:$0xff]  }
 0x69d   : > { %v9241_v62 = vcombine.low %v9233_v55, %v9240_v4  ;;  %v15673_v55 = vld [vmem:[%s19915_s5 + $0xb8] sm:$0xff]  }
 0x69e   : > { %9251 = vst.msk [vmem:[#allocation6 + $0x51] sm:$0xff] %vm548_vm14, %v9224_v23  ;;  %9252 = vst.msk [vmem:[#allocation6 + $0x61] sm:$0xff] %vm548_vm14, %v9224_v23  ;;  %v15674_v4 = vld [vmem:[%s19915_s5 + $0x118] sm:$0xff]  }
 0x69f   : > { %9253 = vst.msk [vmem:[#allocation6 + $0x71] sm:$0xff] %vm548_vm14, %v9241_v62  ;;  %9254 = vst.msk [vmem:[#allocation6 + $0x81] sm:$0xff] %vm548_vm14, %v9241_v62  ;;  %v9276_v61 = vld [vmem:[#allocation6 + $0x11] sm:$0xff]  ;;  %v9277_v39 = vld [vmem:[#allocation6 + $0x21] sm:$0xff] }
 0x6a0   : > { %v18933_v25 = vld [vmem:[#allocation6 + $0x12] sm:$0xff]  ;;  %v9283_v20 = vpack.c.bf16 %v9276_v61, %v9275_v34  ;;  %v18938_v50 = vld [vmem:[#allocation6 + $0x22] sm:$0xff]  ;;  %v9766_v13 = vpack.c.bf16 %v9277_v39, %v9276_v61 }
 0x6a1   : > { %v9506_v36 = vpack.c.bf16 %v18933_v25, %v9498_v63  ;;  %v18936_v51 = vld [vmem:[#allocation6 + $0x31] sm:$0xff]  ;;  %v9279_v0 = vld [vmem:[#allocation6 + $0x41] sm:$0xff] }
 0x6a2   : > { %v18940_v9 = vld [vmem:[#allocation6 + $0x32] sm:$0xff]  ;;  %14956 = vmatprep.mubr.msk.bf16.mxu1 %vm548_vm14, %v9283_v20  ;;  %v18945_v5 = vpack.c.bf16 %v18936_v51, %v9277_v39  ;;  %v18963_v40 = vld [vmem:[#allocation6 + $0x42] sm:$0xff]  ;;  %v9767_v47 = vpack.c.bf16 %v9279_v0, %v18936_v51 }
 0x6a3   : > { %14988 = vmatprep.mubr.msk.bf16.mxu0 %vm548_vm14, %v9506_v36  ;;  %v18949_v38 = vpack.c.bf16 %v18940_v9, %v18938_v50  ;;  %v18987_v46 = vld [vmem:[#allocation6 + $0x10] sm:$0xff]  ;;  %v9257_v52 = vld [vmem:[#allocation6 + $0x20] sm:$0xff]  ;;  %v15677_v61 = vld [vmem:[%s19915_s5 + $0xa8] sm:$0xff]  }
 0x6a4   : > { %14957 = vmatmul.mubr.msk.bf16.vlgmr.msra.gmra.mxu1 %vm548_vm14, %v18945_v5  ;;  %v9263_v43 = vpack.c.bf16 %v18987_v46, %v9255_v12  ;;  %v9258_v41 = vld [vmem:[#allocation6 + $0x30] sm:$0xff]  ;;  %v9259_v33 = vld [vmem:[#allocation6 + $0x40] sm:$0xff]  ;;  %v9636_v2 = vpack.c.bf16 %v9257_v52, %v18987_v46  ;;  %v15678_v36 = vld [vmem:[%s19915_s5 + $0x108] sm:$0xff]  }
 0x6a5   : > { %14989 = vmatmul.mubr.msk.bf16.vlgmr.msra.gmra.mxu0 %vm548_vm14, %v18949_v38  ;;  %14965 = vmatpush3.bf16.msra.mxu1 %v18871_v27  ;;  %v9280_v42 = vld [vmem:[#allocation6 + $0x51] sm:$0xff]  ;;  %v9281_v11 = vld [vmem:[#allocation6 + $0x61] sm:$0xff]  ;;  %v9264_v37 = vpack.c.bf16 %v9258_v41, %v9257_v52  ;;  %v9637_v23 = vpack.c.bf16 %v9259_v33, %v9258_v41 }
 0x6a6   : > { %15013 = vmatpush3.bf16.msra.mxu0 %v18876_v19  ;;  %v18965_v10 = vld [vmem:[#allocation6 + $0x52] sm:$0xff]  ;;  %v18967_v28 = vpack.c.bf16 %v9280_v42, %v9279_v0  ;;  %14966 = vmatprep.subr.bf16.mxu1 %v15659_v16  ;;  %v18989_v8 = vld [vmem:[#allocation6 + $0x62] sm:$0xff]  ;;  %v9768_v24 = vpack.c.bf16 %v9281_v11, %v9280_v42 }
 0x6a7   : > { %v18971_v48 = vpack.c.bf16 %v18965_v10, %v18963_v40  ;;  %15014 = vmatprep.subr.bf16.mxu0 %v15660_v6  ;;  %v15662_v27 = vld [vmem:[%s19915_s5 + $0x88] sm:$0xff]   ;;  %v9260_v29 = vld [vmem:[#allocation6 + $0x50] sm:$0xff]  ;;  %v19031_v35 = vld [vmem:[#allocation6 + $0x81] sm:$0xff] }
 0x6a8   : > { %v18979_v19 = vld [vmem:[#allocation6 + $0x71] sm:$0xff]  ;;  %14960 = vmatprep.mubr.msk.bf16.mxu1 %vm548_vm14, %v18967_v28  ;;  %v9265_v45 = vpack.c.bf16 %v9260_v29, %v9259_v33  ;;  %v9261_v7 = vld [vmem:[#allocation6 + $0x60] sm:$0xff] }
 0x6a9   : > { %v18981_v44 = vld [vmem:[#allocation6 + $0x72] sm:$0xff]  ;;  %14992 = vmatprep.mubr.msk.bf16.mxu0 %vm548_vm14, %v18971_v48  ;;  %14967 = vmatpush3.bf16.msra.mxu1 %v15659_v16  ;;  %v18992_v30 = vpack.c.bf16 %v18979_v19, %v9281_v11  ;;  %v9769_v26 = vpack.c.bf16 %v19031_v35, %v18979_v19  ;;  %v15675_v62 = vld [vmem:[%s19915_s5 + $0xb0] sm:$0xff]   ;;  %v9638_v34 = vpack.c.bf16 %v9261_v7, %v9260_v29 }
 0x6aa   : > { %15015 = vmatpush3.bf16.msra.mxu0 %v15660_v6  ;;  %14968 = vmatprep.subr.bf16.mxu1 %v15661_v49  ;;  %v18996_v60 = vpack.c.bf16 %v18981_v44, %v18989_v8  ;;  %v9262_v17 = vld [vmem:[#allocation6 + $0x70] sm:$0xff]  ;;  %v15676_v63 = vld [vmem:[%s19915_s5 + $0x110] sm:$0xff]   ;;  %v9896_v6 = vpack.c.bf16 %v18938_v50, %v18933_v25  ;;  %v9897_v25 = vpack.c.bf16 %v18963_v40, %v18940_v9  ;;  %v15683_v9 = vld [vmem:[%s19915_s5 + $0xe8] sm:$0xff]  }
 0x6ab   : > { %15016 = vmatprep.subr.bf16.mxu0 %v15662_v27  ;;  %v9266_v18 = vpack.c.bf16 %v9262_v17, %v9261_v7  ;;  %v9635_v20 = vld [vmem:[#allocation6 + $0x80] sm:$0xff]  ;;  %v10026_v39 = vld [vmem:[#allocation6 + $0x90] sm:$0xff] }
 0x6ac   : > { %14961 = vmatmul.mubr.msk.bf16.gmra.mxu1 %vm548_vm14, %v18992_v30  ;;  %v9639_v51 = vpack.c.bf16 %v9635_v20, %v9262_v17  ;;  %v15679_v16 = vld [vmem:[%s19915_s5 + $0xa0] sm:$0xff]   ;;  %v10030_v0 = vpack.c.bf16 %v10026_v39, %v9635_v20  ;;  %v15682_v50 = vld [vmem:[%s19915_s5 + $0xf0] sm:$0xff]  }
 0x6ad   : > { %14993 = vmatmul.mubr.msk.bf16.gmra.mxu0 %vm548_vm14, %v18996_v60  ;;  %14969 = vmatpush3.bf16.msra.mxu1 %v15661_v49  ;;  %v15680_v42 = vld [vmem:[%s19915_s5 + $0x100] sm:$0xff]   ;;  %v15681_v49 = vld [vmem:[%s19915_s5 + $0xf8] sm:$0xff]  }
 0x6ae   : > { %14972 = vmatprep.mubr.msk.bf16.mxu1 %vm548_vm14, %v9263_v43  ;;  %15017 = vmatpush3.bf16.msra.mxu0 %v15662_v27  ;;  %v9898_v27 = vpack.c.bf16 %v18989_v8, %v18965_v10  ;;  %v10286_v40 = vld [vmem:[#allocation6 + $0x92] sm:$0xff] }
 0x6af   : > { %15020 = vmatprep.mubr.msk.bf16.mxu0 %vm548_vm14, %v9766_v13  ;;  %14970 = vmatprep.subr.bf16.mxu1 %v15663_v1  ;;  %v15684_v19 = vld [vmem:[%s19915_s5 + $0xe0] sm:$0xff]  }
 0x6b0   : > { %15018 = vmatprep.subr.bf16.mxu0 %v15664_v59 }
 0x6b1   : > { %14971 = vmatpush3.bf16.msra.mxu1 %v15663_v1 }
 0x6b2   : > { %15019 = vmatpush3.bf16.msra.mxu0 %v15664_v59  ;;  %14996 = vmatprep.subr.bf16.mxu1 %v15665_v15 }
 0x6b3   : > { %15044 = vmatprep.subr.bf16.mxu0 %v15666_v31 }
 0x6b4   : > { %14973 = vmatmul.mubr.msk.bf16.vlgmr.msra.gmra.mxu1 %vm548_vm14, %v9264_v37 }
 0x6b5   : > { %14997 = vmatpush3.bf16.msra.mxu1 %v15665_v15  ;;  %15021 = vmatmul.mubr.msk.bf16.vlgmr.msra.gmra.mxu0 %vm548_vm14, %v9767_v47 }
 0x6b6   : > { %14976 = vmatprep.mubr.msk.bf16.mxu1 %vm548_vm14, %v9265_v45  ;;  %15024 = vmatprep.mubr.msk.bf16.mxu0 %vm548_vm14, %v9768_v24 }
 0x6b7   : > { %15045 = vmatpush3.bf16.msra.mxu0 %v15666_v31  ;;  %14998 = vmatprep.subr.bf16.mxu1 %v15667_v21 }
 0x6b8   : > { %15046 = vmatprep.subr.bf16.mxu0 %v15668_v58 }
 0x6b9   : > { %14999 = vmatpush3.bf16.msra.mxu1 %v15667_v21 }
 0x6ba   : > { %15000 = vmatprep.subr.bf16.mxu1 %v15669_v53 }
 0x6bb   : > { %15047 = vmatpush3.bf16.msra.mxu0 %v15668_v58 }
 0x6bc   : > { %14977 = vmatmul.mubr.msk.bf16.gmra.mxu1 %vm548_vm14, %v9266_v18  ;;  %15048 = vmatprep.subr.bf16.mxu0 %v15670_v3 }
 0x6bd   : > { %15001 = vmatpush3.bf16.msra.mxu1 %v15669_v53  ;;  %15025 = vmatmul.mubr.msk.bf16.gmra.mxu0 %vm548_vm14, %v9769_v26 }
 0x6be   : > { %15004 = vmatprep.mubr.msk.bf16.mxu1 %vm548_vm14, %v9636_v2  ;;  %15052 = vmatprep.mubr.msk.bf16.mxu0 %vm548_vm14, %v9264_v37 }
 0x6bf   : > { %15049 = vmatpush3.bf16.msra.mxu0 %v15670_v3  ;;  %15002 = vmatprep.subr.bf16.mxu1 %v15671_v57 }
 0x6c0   : > { %15050 = vmatprep.subr.bf16.mxu0 %v15672_v22 }
 0x6c1   : > { %15003 = vmatpush3.bf16.msra.mxu1 %v15671_v57 }
 0x6c2   : > { %15028 = vmatprep.subr.bf16.mxu1 %v15673_v55 }
 0x6c3   : > { %15051 = vmatpush3.bf16.msra.mxu0 %v15672_v22 }
 0x6c4   : > { %15005 = vmatmul.mubr.msk.bf16.vlgmr.msra.gmra.mxu1 %vm548_vm14, %v9637_v23  ;;  %15076 = vmatprep.subr.bf16.mxu0 %v15674_v4 }
 0x6c5   : > { %15029 = vmatpush3.bf16.msra.mxu1 %v15673_v55  ;;  %15008 = vmatprep.mubr.msk.bf16.mxu1 %vm548_vm14, %v9638_v34 }
 0x6c6   : > { %15053 = vmatmul.mubr.msk.bf16.vlgmr.msra.gmra.mxu0 %vm548_vm14, %v9265_v45  ;;  %15030 = vmatprep.subr.bf16.mxu1 %v15675_v62 }
 0x6c7   : > { %15056 = vmatprep.mubr.msk.bf16.mxu0 %vm548_vm14, %v9266_v18  ;;  %15077 = vmatpush3.bf16.msra.mxu0 %v15674_v4 }
 0x6c8   : > { %15078 = vmatprep.subr.bf16.mxu0 %v15676_v63 }
 0x6c9   : > { %15031 = vmatpush3.bf16.msra.mxu1 %v15675_v62 }
 0x6ca   : > { %15032 = vmatprep.subr.bf16.mxu1 %v15677_v61 }
 0x6cb   : > { %15079 = vmatpush3.bf16.msra.mxu0 %v15676_v63 }
 0x6cc   : > { %15009 = vmatmul.mubr.msk.bf16.gmra.mxu1 %vm548_vm14, %v9639_v51  ;;  %15080 = vmatprep.subr.bf16.mxu0 %v15678_v36 }
 0x6cd   : > { %15033 = vmatpush3.bf16.msra.mxu1 %v15677_v61  ;;  %15036 = vmatprep.mubr.msk.bf16.mxu1 %vm548_vm14, %v9896_v6 }
 0x6ce   : > { %15057 = vmatmul.mubr.msk.bf16.gmra.mxu0 %vm548_vm14, %v10030_v0  ;;  %15034 = vmatprep.subr.bf16.mxu1 %v15679_v16 }
 0x6cf   : > { %15081 = vmatpush3.bf16.msra.mxu0 %v15678_v36  ;;  %15084 = vmatprep.mubr.msk.bf16.mxu0 %vm548_vm14, %v18949_v38  ;;  %v9895_v38 = vld [vmem:[#allocation6 + $0x82] sm:$0xff] }
 0x6d0   : > { %15082 = vmatprep.subr.bf16.mxu0 %v15680_v42  ;;  %v9899_v10 = vpack.c.bf16 %v9895_v38, %v18981_v44  ;;  %v10156_v44 = vld [vmem:[#allocation6 + $0x91] sm:$0xff] }
 0x6d1   : > { %15035 = vmatpush3.bf16.msra.mxu1 %v15679_v16  ;;  %v10160_v12 = vpack.c.bf16 %v10156_v44, %v19031_v35 }
 0x6d2   : > { %15060 = vmatprep.subr.bf16.mxu1 %v15681_v49 }
 0x6d3   : > { %15083 = vmatpush3.bf16.msra.mxu0 %v15680_v42 }
 0x6d4   : > { %15037 = vmatmul.mubr.msk.bf16.vlgmr.msra.gmra.mxu1 %vm548_vm14, %v9897_v25  ;;  %15112 = vmatprep.subr.bf16.mxu0 %v20091_v14 }
 0x6d5   : > { %15061 = vmatpush3.bf16.msra.mxu1 %v15681_v49  ;;  %15040 = vmatprep.mubr.msk.bf16.mxu1 %vm548_vm14, %v9898_v27 }
 0x6d6   : > { %15085 = vmatmul.mubr.msk.bf16.vlgmr.msra.gmra.mxu0 %vm548_vm14, %v18971_v48  ;;  %15062 = vmatprep.subr.bf16.mxu1 %v15682_v50  ;;  %v10290_v48 = vpack.c.bf16 %v10286_v40, %v9895_v38 }
 0x6d7   : > { %15088 = vmatprep.mubr.msk.bf16.mxu0 %vm548_vm14, %v18996_v60 }
 0x6d9   : > { %15063 = vmatpush3.bf16.msra.mxu1 %v15682_v50 }
 0x6da   : > { %15064 = vmatprep.subr.bf16.mxu1 %v15683_v9 }
 0x6dc   : > { %15041 = vmatmul.mubr.msk.bf16.gmra.mxu1 %vm548_vm14, %v9899_v10 }
 0x6dd   : > { %15065 = vmatpush3.bf16.msra.mxu1 %v15683_v9  ;;  %15068 = vmatprep.mubr.msk.bf16.mxu1 %vm548_vm14, %v18945_v5 }
 0x6de   : > { %15089 = vmatmul.mubr.msk.bf16.gmra.mxu0 %vm548_vm14, %v10290_v48  ;;  %15066 = vmatprep.subr.bf16.mxu1 %v15684_v19 }
 0x6df   : > { %15128 = vmatprep.mubr.msk.bf16.mxu0 %vm15705_vm2, %v20091_v14 }
 0x6e1   : > { %15067 = vmatpush3.bf16.msra.mxu1 %v15684_v19 }
 0x6e2   : > { %15092 = vmatprep.subr.bf16.mxu1 %v20091_v14 }
 0x6e4   : > { %15069 = vmatmul.mubr.msk.bf16.vlgmr.msra.gmra.mxu1 %vm548_vm14, %v18967_v28 }
 0x6e5   : > { %15072 = vmatprep.mubr.msk.bf16.mxu1 %vm548_vm14, %v18992_v30 }
 0x6ec   : > { %15073 = vmatmul.mubr.msk.bf16.gmra.mxu1 %vm548_vm14, %v10160_v12 }
 0x6ed   : > { %15108 = vmatprep.mubr.msk.bf16.mxu1 %vm15705_vm2, %v20091_v14 }
 0x764   : > { %v14958_v5 = vpop.f32.mrf.mxu1 }
 0x765   : > { %v14990_v46 = vpop.f32.mrf.mxu0 }
 0x766   : > { %v9366_v11 = vpop.f32.mrf.mxu1 }
 0x767   : > { %v9589_v8 = vpop.f32.mrf.mxu0 }
 0x768   : > { %v14959_v60 = vpop.f32.mrf.mxu1 }
 0x769   : > { %v14991_v43 = vpop.f32.mrf.mxu0 }
 0x76a   : > { %v9369_v1 = vpop.f32.mrf.mxu1 }
 0x76b   : > { %v19123_v59 = vpop.f32.mrf.mxu0 }
 0x76c   : > { %v14962_v28 = vpop.f32.mrf.mxu1 }
 0x76d   : > { %v19125_v13 = vpop.f32.mrf.mxu0 }
 0x76e   : > { %v9382_v30 = vpop.f32.mrf.mxu1 }
 0x76f   : > { %v9605_v15 = vpop.f32.mrf.mxu0 }
 0x770   : > { %v14963_v41 = vpop.f32.mrf.mxu1 }
 0x771   : > { %v14995_v31 = vpop.f32.mrf.mxu0 }
 0x772   : > { %v9385_v52 = vpop.f32.mrf.mxu1 }
 0x773   : > { %v9608_v29 = vpop.f32.mrf.mxu0 }
 0x774   : > { %v14974_v37 = vpop.f32.mrf.mxu1 }
 0x775   : > { %v15022_v47 = vpop.f32.mrf.mxu0  ;;  %v9476_v27 = vadd.f32 %v14974_v37, %v14958_v5 }
 0x776   : > { %v9467_v33 = vpop.f32.mrf.mxu1 }
 0x777   : > { %v9849_v21 = vpop.f32.mrf.mxu0  ;;  %v9468_v10 = vadd.f32 %v9467_v33, %v9366_v11  ;;  %v9622_v12 = vadd.f32 %v14990_v46, %v9476_v27 }
 0x778   : > { %v14975_v45 = vpop.f32.mrf.mxu1 }
 0x779   : > { %v15023_v24 = vpop.f32.mrf.mxu0  ;;  %v9479_v44 = vadd.f32 %v14975_v45, %v14959_v60 }
 0x77a   : > { %v9470_v58 = vpop.f32.mrf.mxu1 }
 0x77b   : > { %v19127_v53 = vpop.f32.mrf.mxu0 }
 0x77c   : > { %v14978_v17 = vpop.f32.mrf.mxu1 }
 0x77d   : > { %v19129_v35 = vpop.f32.mrf.mxu0  ;;  %v9492_v5 = vadd.f32 %v14978_v17, %v14962_v28 }
 0x77e   : > { %v9483_v3 = vpop.f32.mrf.mxu1 }
 0x77f   : > { %v9484_v7 = vadd.f32 %v9483_v3, %v9382_v30  ;;  %v19131_v18 = vpop.f32.mrf.mxu0 }
 0x780   : > { %v14979_v26 = vpop.f32.mrf.mxu1 }
 0x781   : > { %v9495_v57 = vadd.f32 %v14979_v26, %v14963_v41  ;;  %v19133_v2 = vpop.f32.mrf.mxu0  ;;  %v9624_v22 = vadd.f32 %v9605_v15, %v9484_v7  ;;  %v9471_v41 = vadd.f32 %v9470_v58, %v9369_v1  ;;  %v9623_v7 = vadd.f32 %v14991_v43, %v9479_v44 }
 0x782   : > { %v9486_v55 = vpop.f32.mrf.mxu1 }
 0x783   : > { %v9487_v4 = vadd.f32 %v9486_v55, %v9385_v52  ;;  %v9868_v23 = vpop.f32.mrf.mxu0  ;;  %v9627_v62 = vadd.f32 %v14995_v31, %v9495_v57  ;;  %v9620_v52 = vadd.f32 %v9589_v8, %v9468_v10  ;;  %v9621_v55 = vadd.f32 %v19123_v59, %v9471_v41 }
 0x784   : > { %v15006_v34 = vpop.f32.mrf.mxu1 }
 0x785   : > { %v9625_v63 = vadd.f32 %v9608_v29, %v9487_v4  ;;  %v9752_v31 = vadd.f32 %v15006_v34, %v9622_v12 }
 0x786   : > { %v15054_v61 = vpop.f32.mrf.mxu0  ;;  %v9719_v20 = vpop.f32.mrf.mxu1 }
 0x787   : > { %v9750_v3 = vadd.f32 %v9719_v20, %v9620_v52  ;;  %v9882_v11 = vadd.f32 %v15022_v47, %v9752_v31 }
 0x788   : > { %v10110_v36 = vpop.f32.mrf.mxu0  ;;  %v15007_v39 = vpop.f32.mrf.mxu1 }
 0x789   : > { %v9753_v57 = vadd.f32 %v15007_v39, %v9623_v7  ;;  %v9880_v45 = vadd.f32 %v9849_v21, %v9750_v3 }
 0x78a   : > { %v15055_v51 = vpop.f32.mrf.mxu0  ;;  %v9722_v16 = vpop.f32.mrf.mxu1 }
 0x78b   : > { %v9751_v4 = vadd.f32 %v9722_v16, %v9621_v55  ;;  %v9883_v8 = vadd.f32 %v15023_v24, %v9753_v57  ;;  %v19151_v24 = vld [vmem:[%s19921_s11] ss:$0 sm:$0xff] }
 0x78c   : > { %v19135_v6 = vpop.f32.mrf.mxu0  ;;  %v15010_v0 = vpop.f32.mrf.mxu1 }
 0x78d   : > { %v9881_v17 = vadd.f32 %v19127_v53, %v9751_v4 }
 0x78e   : > { %v9735_v42 = vpop.f32.mrf.mxu1  ;;  %v19137_v49 = vpop.f32.mrf.mxu0 }
 0x790   : > { %v15011_v25 = vpop.f32.mrf.mxu1  ;;  %v19139_v9 = vpop.f32.mrf.mxu0 }
 0x791   : > { %v9757_v59 = vadd.f32 %v15011_v25, %v9627_v62 }
 0x792   : > { %v9738_v50 = vpop.f32.mrf.mxu1  ;;  %v19141_v30 = vpop.f32.mrf.mxu0 }
 0x793   : > { %v9755_v38 = vadd.f32 %v9738_v50, %v9625_v63  ;;  %v9754_v63 = vadd.f32 %v9735_v42, %v9624_v22  ;;  %v9887_v25 = vadd.f32 %v19133_v2, %v9757_v59 }
 0x794   : > { %v15038_v40 = vpop.f32.mrf.mxu1  ;;  %v10129_v26 = vpop.f32.mrf.mxu0 }
 0x795   : > { %v9885_v19 = vadd.f32 %v9868_v23, %v9755_v38  ;;  %v10012_v60 = vadd.f32 %v15038_v40, %v9882_v11  ;;  %v9626_v23 = vadd.f32 %v19125_v13, %v9492_v5  ;;  %v9884_v13 = vadd.f32 %v19131_v18, %v9754_v63 }
 0x796   : > { %v9979_v48 = vpop.f32.mrf.mxu1  ;;  %v15086_v46 = vpop.f32.mrf.mxu0 }
 0x797   : > { %v10010_v58 = vadd.f32 %v9979_v48, %v9880_v45  ;;  %v9756_v34 = vadd.f32 %v15010_v0, %v9626_v23  ;;  %v10143_v39 = vadd.f32 %v15054_v61, %v10012_v60 }
 0x798   : > { %v15039_v15 = vpop.f32.mrf.mxu1  ;;  %v10370_v20 = vpop.f32.mrf.mxu0 }
 0x799   : > { %v10013_v28 = vadd.f32 %v15039_v15, %v9883_v8  ;;  %v10141_v27 = vadd.f32 %v10110_v36, %v10010_v58  ;;  %v9886_v21 = vadd.f32 %v19129_v35, %v9756_v34 }
 0x79a   : > { %v9982_v29 = vpop.f32.mrf.mxu1  ;;  %v15087_v0 = vpop.f32.mrf.mxu0 }
 0x79b   : > { %v10011_v50 = vadd.f32 %v9982_v29, %v9881_v17  ;;  %v10144_v53 = vadd.f32 %v15055_v51, %v10013_v28 }
 0x79c   : > { %v15042_v37 = vpop.f32.mrf.mxu1  ;;  %v10373_v15 = vpop.f32.mrf.mxu0 }
 0x79d   : > { %v10016_v61 = vadd.f32 %v15042_v37, %v9886_v21  ;;  %v10142_v18 = vadd.f32 %v19135_v6, %v10011_v50 }
 0x79e   : > { %v9995_v33 = vpop.f32.mrf.mxu1 }
 0x79f   : > { %v10014_v62 = vadd.f32 %v9995_v33, %v9884_v13  ;;  %v10147_v29 = vadd.f32 %v19137_v49, %v10016_v61  ;;  %v15090_v33 = vpop.f32.mrf.mxu0 }
 0x7a0   : > { %v15043_v1 = vpop.f32.mrf.mxu1 }
 0x7a1   : > { %v10017_v48 = vadd.f32 %v15043_v1, %v9887_v25  ;;  %v19159_v2 = vadd.f32 %v19139_v9, %v10014_v62 }
 0x7a2   : > { %v9998_v43 = vpop.f32.mrf.mxu1 }
 0x7a3   : > { %v10015_v44 = vadd.f32 %v9998_v43, %v9885_v19  ;;  %v19164_v55 = vadd.f32 %v19141_v30, %v10017_v48 }
 0x7a4   : > { %v15070_v47 = vpop.f32.mrf.mxu1 }
 0x7a5   : > { %v10273_v16 = vadd.f32 %v15070_v47, %v10143_v39  ;;  %v19166_v11 = vadd.f32 %v10129_v26, %v10015_v44 }
 0x7a6   : > { %v10240_v22 = vpop.f32.mrf.mxu1 }
 0x7a7   : > { %v10403_v42 = vadd.f32 %v15086_v46, %v10273_v16  ;;  %v10271_v38 = vadd.f32 %v10240_v22, %v10141_v27 }
 0x7a8   : > { %v15071_v40 = vpop.f32.mrf.mxu1 }
 0x7a9   : > { %v10418_v36 = vadd.f32 %v19151_v24, %v10403_v42  ;;  %v10401_v35 = vadd.f32 %v10370_v20, %v10271_v38  ;;  %v10274_v10 = vadd.f32 %v15071_v40, %v10144_v53 }
 0x7aa   : > { %v10243_v12 = vpop.f32.mrf.mxu1 }
 0x7ab   : > { %v10426_v41 = vmax.f32 %v10418_v36, 0.0  ;;  %v10416_v31 = vadd.f32 %v19151_v24, %v10401_v35  ;;  %v10404_v52 = vadd.f32 %v15087_v0, %v10274_v10  ;;  %v10272_v51 = vadd.f32 %v10243_v12, %v10142_v18 }
 0x7ac   : > { %v15074_v3 = vpop.f32.mrf.mxu1 }
 0x7ad   : > { %v10538_v7 = vcombine.high %v10426_v41, %v10426_v41  ;;  %v10545_v5 = vrot.slane %v10426_v41, %v18884_v56  ;;  %v10424_v37 = vmax.f32 %v10416_v31, 0.0  ;;  %v10419_v6 = vadd.f32 %v19151_v24, %v10404_v52 }
 0x7ae   : > { %v10402_v19 = vadd.f32 %v10373_v15, %v10272_v51  ;;  %v10277_v57 = vadd.f32 %v15074_v3, %v10147_v29 }
 0x7af   : > { %v10552_v49 = vrot.slane %v10538_v7, %v18884_v56  ;;  %v10553_v4 = vcombine.high %v10545_v5, %v10545_v5  ;;  %v10561_v9 = vrot.slane %v10545_v5, %v18884_v56  ;;  %v10440_v60 = vcombine.high %v10424_v37, %v10424_v37 }
 0x7b0   : > { %v10447_v46 = vrot.slane %v10424_v37, %v18884_v56  ;;  %v10427_v45 = vmax.f32 %v10419_v6, 0.0  ;;  %v10417_v23 = vadd.f32 %v19151_v24, %v10402_v19  ;;  %v19172_v1 = vadd.f32 %v15090_v33, %v10277_v57 }
 0x7b1   : > { %v10554_v58 = vcombine.high %v10552_v49, %v10552_v49  ;;  %v10568_v30 = vrot.slane %v10552_v49, %v18884_v56  ;;  %v10575_v26 = vrot.slane %v10553_v4, %v18884_v56  ;;  %v10583_v8 = vcombine.high %v10561_v9, %v10561_v9 }
 0x7b2   : > { %v10899_v34 = vrot.slane %v10561_v9, %v18888_v54  ;;  %v10454_v63 = vrot.slane %v10440_v60, %v18884_v56  ;;  %v10455_v43 = vcombine.high %v10447_v46, %v10447_v46  ;;  %v10463_v20 = vrot.slane %v10447_v46, %v18884_v56 }
 0x7b3   : > { %v10582_v28 = vrot.slane %v10554_v58, %v18884_v56  ;;  %v10584_v17 = vcombine.high %v10568_v30, %v10568_v30  ;;  %v10585_v39 = vcombine.high %v10575_v26, %v10575_v26  ;;  %v10903_v59 = vrot.slane %v10575_v26, %v18888_v54 }
 0x7b4   : > { %v10907_v47 = vrot.slane %v10583_v8, %v18888_v54  ;;  %v10915_v50 = vrot.slane %v10568_v30, %v18888_v54  ;;  %v10456_v16 = vcombine.high %v10454_v63, %v10454_v63  ;;  %v10470_v27 = vrot.slane %v10454_v63, %v18884_v56 }
 0x7b5   : > { %v10586_v21 = vcombine.high %v10582_v28, %v10582_v28  ;;  %v10911_v13 = vrot.slane %v10585_v39, %v18888_v54  ;;  %v10919_v22 = vrot.slane %v10582_v28, %v18888_v54  ;;  %v10923_v0 = vrot.slane %v10584_v17, %v18888_v54 }
 0x7b6   : > { %v11156_v42 = vcombine.low %v10899_v34, %v10903_v59  ;;  %v10477_v38 = vrot.slane %v10455_v43, %v18884_v56  ;;  %v10484_v53 = vrot.slane %v10456_v16, %v18884_v56  ;;  %v10485_v61 = vcombine.high %v10463_v20, %v10463_v20 }
 0x7b7   : > { %v10927_v62 = vrot.slane %v10586_v21, %v18888_v54  ;;  %v11157_v25 = vcombine.low %v10907_v47, %v10911_v13  ;;  %v11173_v40 = vcombine.low %v10915_v50, %v10919_v22  ;;  %v10486_v36 = vcombine.high %v10470_v27, %v10470_v27 }
 0x7b8   : > { %v11164_v35 = vrot.slane %v11156_v42, %v20088_v32  ;;  %v10487_v10 = vcombine.high %v10477_v38, %v10477_v38  ;;  %v10488_v18 = vcombine.high %v10484_v53, %v10484_v53  ;;  %v10835_v48 = vrot.slane %v10463_v20, %v18888_v54 }
 0x7b9   : > { %v11171_v44 = vrot.slane %v11157_v25, %v20088_v32  ;;  %v11174_v12 = vcombine.low %v10923_v0, %v10927_v62  ;;  %v11181_v15 = vrot.slane %v11173_v40, %v20088_v32  ;;  %v10839_v41 = vrot.slane %v10477_v38, %v18888_v54  ;;  %v10256_v38 = vpop.f32.mrf.mxu1 }
 0x7ba   : > { %v10843_v31 = vrot.slane %v10485_v61, %v18888_v54  ;;  %v10847_v52 = vrot.slane %v10487_v10, %v18888_v54  ;;  %v10851_v51 = vrot.slane %v10470_v27, %v18888_v54  ;;  %v10855_v29 = vrot.slane %v10484_v53, %v18888_v54 }
 0x7bb   : > { %v11172_v3 = vcombine.low %v11164_v35, %v11171_v44  ;;  %v11188_v7 = vrot.slane %v11174_v12, %v20088_v32  ;;  %v10859_v5 = vrot.slane %v10486_v36, %v18888_v54  ;;  %v10863_v37 = vrot.slane %v10488_v18, %v18888_v54 }
 0x7bc   : > { %v11088_v6 = vcombine.low %v10835_v48, %v10839_v41  ;;  %v11089_v19 = vcombine.low %v10843_v31, %v10847_v52  ;;  %v11105_v57 = vcombine.low %v10851_v51, %v10855_v29  ;;  %v10587_v33 = vcombine.high %v10427_v45, %v10427_v45  ;;  %v15075_v29 = vpop.f32.mrf.mxu1 }
 0x7bd   : > { %v11189_v49 = vcombine.low %v11181_v15, %v11188_v7  ;;  %11385 = vst.msk [vmem:[#allocation7 + $0x79] sm:$0xff] %vm488_vm4, %v11172_v3  ;;  %11387 = vst.msk [vmem:[#allocation7 + $0x91] sm:$0xff] %vm488_vm4, %v11172_v3  ;;  %v11106_v4 = vcombine.low %v10859_v5, %v10863_v37  ;;  %v10594_v9 = vrot.slane %v10427_v45, %v18884_v56  ;;  %v10425_v60 = vmax.f32 %v10417_v23, 0.0  ;;  %v10386_v15 = vpop.f32.mrf.mxu0 }
 0x7be   : > { %v11096_v46 = vrot.slane %v11088_v6, %v20088_v32  ;;  %v11103_v58 = vrot.slane %v11089_v19, %v20088_v32  ;;  %v11113_v30 = vrot.slane %v11105_v57, %v20088_v32  ;;  %v10601_v26 = vrot.slane %v10587_v33, %v18884_v56 }
 0x7bf   : > { %11386 = vst.msk [vmem:[#allocation7 + $0x81] sm:$0xff] %vm488_vm4, %v11189_v49  ;;  %11388 = vst.msk [vmem:[#allocation7 + $0x99] sm:$0xff] %vm488_vm4, %v11189_v49  ;;  %v11120_v8 = vrot.slane %v11106_v4, %v20088_v32  ;;  %v10602_v34 = vcombine.high %v10594_v9, %v10594_v9  ;;  %v10610_v63 = vrot.slane %v10594_v9, %v18884_v56 }
 0x7c0   : > { %v10489_v43 = vcombine.high %v10425_v60, %v10425_v60  ;;  %v11104_v45 = vcombine.low %v11096_v46, %v11103_v58  ;;  %v10603_v23 = vcombine.high %v10601_v26, %v10601_v26  ;;  %v10617_v20 = vrot.slane %v10601_v26, %v18884_v56  ;;  %v15091_v46 = vpop.f32.mrf.mxu0 }
 0x7c1   : > { %v10496_v28 = vrot.slane %v10425_v60, %v18884_v56  ;;  %v11121_v17 = vcombine.low %v11113_v30, %v11120_v8  ;;  %v10624_v39 = vrot.slane %v10602_v34, %v18884_v56  ;;  %v10632_v59 = vcombine.high %v10610_v63, %v10610_v63  ;;  %v10259_v34 = vpop.f32.mrf.mxu1 }
 0x7c2   : > { %v10931_v47 = vrot.slane %v10610_v63, %v18888_v54  ;;  %11377 = vst.msk [vmem:[#allocation7 + $0x19] sm:$0xff] %vm488_vm4, %v11104_v45  ;;  %11379 = vst.msk [vmem:[#allocation7 + $0x31] sm:$0xff] %vm488_vm4, %v11104_v45  ;;  %v10631_v50 = vrot.slane %v10603_v23, %v18884_v56  ;;  %v10633_v16 = vcombine.high %v10617_v20, %v10617_v20 }
 0x7c3   : > { %v10947_v27 = vrot.slane %v10617_v20, %v18888_v54  ;;  %v10503_v21 = vrot.slane %v10489_v43, %v18884_v56  ;;  %11378 = vst.msk [vmem:[#allocation7 + $0x21] sm:$0xff] %vm488_vm4, %v11121_v17  ;;  %11380 = vst.msk [vmem:[#allocation7 + $0x39] sm:$0xff] %vm488_vm4, %v11121_v17  ;;  %v10634_v13 = vcombine.high %v10624_v39, %v10624_v39 }
 0x7c4   : > { %v10935_v22 = vrot.slane %v10624_v39, %v18888_v54  ;;  %v10939_v0 = vrot.slane %v10632_v59, %v18888_v54  ;;  %v10504_v42 = vcombine.high %v10496_v28, %v10496_v28  ;;  %v10635_v53 = vcombine.high %v10631_v50, %v10631_v50 }
 0x7c5   : > { %v10951_v61 = vrot.slane %v10631_v50, %v18888_v54  ;;  %v10955_v62 = vrot.slane %v10633_v16, %v18888_v54  ;;  %v10505_v25 = vcombine.high %v10503_v21, %v10503_v21  ;;  %v10943_v40 = vrot.slane %v10634_v13, %v18888_v54  ;;  %v10389_v50 = vpop.f32.mrf.mxu0 }
 0x7c6   : > { %v11190_v36 = vcombine.low %v10931_v47, %v10935_v22  ;;  %v10512_v35 = vrot.slane %v10496_v28, %v18884_v56  ;;  %v10519_v10 = vrot.slane %v10503_v21, %v18884_v56  ;;  %v10959_v18 = vrot.slane %v10635_v53, %v18888_v54 }
 0x7c7   : > { %v11207_v48 = vcombine.low %v10947_v27, %v10951_v61  ;;  %v10526_v44 = vrot.slane %v10504_v42, %v18884_v56  ;;  %v10533_v12 = vrot.slane %v10505_v25, %v18884_v56  ;;  %v11191_v41 = vcombine.low %v10939_v0, %v10943_v40 }
 0x7c8   : > { %v11198_v31 = vrot.slane %v11190_v36, %v20088_v32  ;;  %v10534_v52 = vcombine.high %v10512_v35, %v10512_v35  ;;  %v10535_v51 = vcombine.high %v10519_v10, %v10519_v10  ;;  %v11208_v3 = vcombine.low %v10955_v62, %v10959_v18 }
 0x7c9   : > { %v11215_v7 = vrot.slane %v11207_v48, %v20088_v32  ;;  %v10536_v5 = vcombine.high %v10526_v44, %v10526_v44  ;;  %v10537_v37 = vcombine.high %v10533_v12, %v10533_v12  ;;  %v11205_v6 = vrot.slane %v11191_v41, %v20088_v32 }
 0x7ca   : > { %v10867_v19 = vrot.slane %v10512_v35, %v18888_v54  ;;  %v10871_v57 = vrot.slane %v10526_v44, %v18888_v54  ;;  %v10875_v33 = vrot.slane %v10534_v52, %v18888_v54  ;;  %v11222_v49 = vrot.slane %v11208_v3, %v20088_v32 }
 0x7cb   : > { %v10879_v4 = vrot.slane %v10536_v5, %v18888_v54  ;;  %v10883_v9 = vrot.slane %v10519_v10, %v18888_v54  ;;  %v10887_v60 = vrot.slane %v10533_v12, %v18888_v54  ;;  %v11206_v58 = vcombine.low %v11198_v31, %v11205_v6 }
 0x7cc   : > { %v10891_v30 = vrot.slane %v10535_v51, %v18888_v54  ;;  %v10895_v26 = vrot.slane %v10537_v37, %v18888_v54  ;;  %v11122_v8 = vcombine.low %v10867_v19, %v10871_v57  ;;  %v11223_v63 = vcombine.low %v11215_v7, %v11222_v49 }
 0x7cd   : > { %v11123_v43 = vcombine.low %v10875_v33, %v10879_v4  ;;  %v11139_v45 = vcombine.low %v10883_v9, %v10887_v60  ;;  %v10422_v23 = vadd.f32 %v19151_v24, %v19172_v1  ;;  %11389 = vst.msk [vmem:[#allocation7 + $0xa9] sm:$0xff] %vm488_vm4, %v11206_v58  ;;  %11391 = vst.msk [vmem:[#allocation7 + $0xc1] sm:$0xff] %vm488_vm4, %v11206_v58 }
 0x7ce   : > { %v11140_v20 = vcombine.low %v10891_v30, %v10895_v26  ;;  %v10275_v28 = vadd.f32 %v10256_v38, %v19159_v2  ;;  %v10278_v17 = vadd.f32 %v15075_v29, %v19164_v55  ;;  %11390 = vst.msk [vmem:[#allocation7 + $0xb1] sm:$0xff] %vm488_vm4, %v11223_v63  ;;  %11392 = vst.msk [vmem:[#allocation7 + $0xc9] sm:$0xff] %vm488_vm4, %v11223_v63 }
 0x7cf   : > { %v11130_v39 = vrot.slane %v11122_v8, %v20088_v32  ;;  %v11137_v59 = vrot.slane %v11123_v43, %v20088_v32  ;;  %v10430_v47 = vmax.f32 %v10422_v23, 0.0  ;;  %v10276_v1 = vadd.f32 %v10259_v34, %v19166_v11 }
 0x7d0   : > { %v11147_v16 = vrot.slane %v11139_v45, %v20088_v32  ;;  %v11154_v27 = vrot.slane %v11140_v20, %v20088_v32  ;;  %v10405_v21 = vadd.f32 %v10386_v15, %v10275_v28  ;;  %v10408_v2 = vadd.f32 %v15091_v46, %v10278_v17 }
 0x7d1   : > { %v11138_v13 = vcombine.low %v11130_v39, %v11137_v59  ;;  %v10734_v55 = vcombine.high %v10430_v47, %v10430_v47  ;;  %v10741_v22 = vrot.slane %v10430_v47, %v18884_v56  ;;  %v10406_v0 = vadd.f32 %v10389_v50, %v10276_v1 }
 0x7d2   : > { %v11155_v42 = vcombine.low %v11147_v16, %v11154_v27  ;;  %v10420_v38 = vadd.f32 %v19151_v24, %v10405_v21  ;;  %v10423_v53 = vadd.f32 %v19151_v24, %v10408_v2 }
 0x7d3   : > { %11381 = vst.msk [vmem:[#allocation7 + $0x49] sm:$0xff] %vm488_vm4, %v11138_v13  ;;  %11383 = vst.msk [vmem:[#allocation7 + $0x61] sm:$0xff] %vm488_vm4, %v11138_v13  ;;  %v10748_v11 = vrot.slane %v10734_v55, %v18884_v56  ;;  %v10749_v61 = vcombine.high %v10741_v22, %v10741_v22  ;;  %v10757_v62 = vrot.slane %v10741_v22, %v18884_v56 }
 0x7d4   : > { %11382 = vst.msk [vmem:[#allocation7 + $0x51] sm:$0xff] %vm488_vm4, %v11155_v42  ;;  %11384 = vst.msk [vmem:[#allocation7 + $0x69] sm:$0xff] %vm488_vm4, %v11155_v42  ;;  %v10428_v25 = vmax.f32 %v10420_v38, 0.0  ;;  %v10431_v40 = vmax.f32 %v10423_v53, 0.0  ;;  %v10421_v36 = vadd.f32 %v19151_v24, %v10406_v0 }
 0x7d5   : > { %v10750_v35 = vcombine.high %v10748_v11, %v10748_v11  ;;  %v10764_v10 = vrot.slane %v10748_v11, %v18884_v56  ;;  %v10771_v18 = vrot.slane %v10749_v61, %v18884_v56  ;;  %v10779_v48 = vcombine.high %v10757_v62, %v10757_v62 }
 0x7d6   : > { %v11027_v44 = vrot.slane %v10757_v62, %v18888_v54  ;;  %v10636_v12 = vcombine.high %v10428_v25, %v10428_v25  ;;  %v10643_v15 = vrot.slane %v10428_v25, %v18884_v56  ;;  %v10783_v41 = vcombine.high %v10431_v40, %v10431_v40 }
 0x7d7   : > { %v10778_v31 = vrot.slane %v10750_v35, %v18884_v56  ;;  %v10780_v52 = vcombine.high %v10764_v10, %v10764_v10  ;;  %v10781_v51 = vcombine.high %v10771_v18, %v10771_v18  ;;  %v11031_v29 = vrot.slane %v10771_v18, %v18888_v54 }
 0x7d8   : > { %v11035_v24 = vrot.slane %v10779_v48, %v18888_v54  ;;  %v11043_v3 = vrot.slane %v10764_v10, %v18888_v54  ;;  %v10650_v7 = vrot.slane %v10636_v12, %v18884_v56  ;;  %v10651_v5 = vcombine.high %v10643_v15, %v10643_v15 }
 0x7d9   : > { %v10782_v37 = vcombine.high %v10778_v31, %v10778_v31  ;;  %v11039_v6 = vrot.slane %v10781_v51, %v18888_v54  ;;  %v11047_v19 = vrot.slane %v10778_v31, %v18888_v54  ;;  %v11051_v57 = vrot.slane %v10780_v52, %v18888_v54 }
 0x7da   : > { %v11292_v33 = vcombine.low %v11027_v44, %v11031_v29  ;;  %v10652_v49 = vcombine.high %v10650_v7, %v10650_v7  ;;  %v10659_v4 = vrot.slane %v10643_v15, %v18884_v56  ;;  %v10666_v9 = vrot.slane %v10650_v7, %v18884_v56 }
 0x7db   : > { %v11055_v60 = vrot.slane %v10782_v37, %v18888_v54  ;;  %v11293_v46 = vcombine.low %v11035_v24, %v11039_v6  ;;  %v11309_v58 = vcombine.low %v11043_v3, %v11047_v19  ;;  %v10673_v30 = vrot.slane %v10651_v5, %v18884_v56  ;;  %v11449_v24 = vld [vmem:[#allocation7 + $0xb1] sm:$0xff] }
 0x7dc   : > { %v11300_v26 = vrot.slane %v11292_v33, %v20088_v32  ;;  %v10680_v8 = vrot.slane %v10652_v49, %v18884_v56  ;;  %v10681_v34 = vcombine.high %v10659_v4, %v10659_v4  ;;  %v10682_v63 = vcombine.high %v10666_v9, %v10666_v9  ;;  %v11448_v49 = vld [vmem:[#allocation7 + $0xa9] sm:$0xff] }
 0x7dd   : > { %v11307_v43 = vrot.slane %v11293_v46, %v20088_v32  ;;  %v11310_v45 = vcombine.low %v11051_v57, %v11055_v60  ;;  %v11317_v23 = vrot.slane %v11309_v58, %v20088_v32  ;;  %v10683_v20 = vcombine.high %v10673_v30, %v10673_v30 }
 0x7de   : > { %v10684_v28 = vcombine.high %v10680_v8, %v10680_v8  ;;  %v10963_v17 = vrot.slane %v10659_v4, %v18888_v54  ;;  %v10967_v39 = vrot.slane %v10673_v30, %v18888_v54  ;;  %v10971_v59 = vrot.slane %v10681_v34, %v18888_v54 }
 0x7df   : > { %v11308_v47 = vcombine.low %v11300_v26, %v11307_v43  ;;  %v11324_v1 = vrot.slane %v11310_v45, %v20088_v32  ;;  %v10975_v50 = vrot.slane %v10683_v20, %v18888_v54  ;;  %v10979_v16 = vrot.slane %v10666_v9, %v18888_v54 }
 0x7e0   : > { %v10983_v27 = vrot.slane %v10680_v8, %v18888_v54  ;;  %v10987_v21 = vrot.slane %v10682_v63, %v18888_v54  ;;  %v10991_v2 = vrot.slane %v10684_v28, %v18888_v54  ;;  %v11224_v13 = vcombine.low %v10963_v17, %v10967_v39 }
 0x7e1   : > { %v11325_v55 = vcombine.low %v11317_v23, %v11324_v1  ;;  %11401 = vst.msk [vmem:[#allocation7 + $0x139] sm:$0xff] %vm488_vm4, %v11308_v47  ;;  %11403 = vst.msk [vmem:[#allocation7 + $0x151] sm:$0xff] %vm488_vm4, %v11308_v47  ;;  %v11225_v22 = vcombine.low %v10971_v59, %v10975_v50  ;;  %v10790_v0 = vrot.slane %v10431_v40, %v18884_v56  ;;  %v10429_v61 = vmax.f32 %v10421_v36, 0.0 }
 0x7e2   : > { %v10797_v42 = vrot.slane %v10783_v41, %v18884_v56  ;;  %v11232_v38 = vrot.slane %v11224_v13, %v20088_v32  ;;  %v11241_v53 = vcombine.low %v10979_v16, %v10983_v27  ;;  %v11242_v11 = vcombine.low %v10987_v21, %v10991_v2  ;;  %v11424_v2 = vld [vmem:[#allocation7 + $0xb0] sm:$0xff] }
 0x7e3   : > { %11402 = vst.msk [vmem:[#allocation7 + $0x141] sm:$0xff] %vm488_vm4, %v11325_v55  ;;  %11404 = vst.msk [vmem:[#allocation7 + $0x159] sm:$0xff] %vm488_vm4, %v11325_v55  ;;  %v11239_v62 = vrot.slane %v11225_v22, %v20088_v32  ;;  %v10798_v25 = vcombine.high %v10790_v0, %v10790_v0  ;;  %v10806_v10 = vrot.slane %v10790_v0, %v18884_v56 }
 0x7e4   : > { %v10799_v35 = vcombine.high %v10797_v42, %v10797_v42  ;;  %v11249_v18 = vrot.slane %v11241_v53, %v20088_v32  ;;  %v11256_v40 = vrot.slane %v11242_v11, %v20088_v32  ;;  %v10813_v48 = vrot.slane %v10797_v42, %v18884_v56  ;;  %v11423_v11 = vld [vmem:[#allocation7 + $0xa8] sm:$0xff] }
 0x7e5   : > { %v10685_v44 = vcombine.high %v10429_v61, %v10429_v61  ;;  %v11240_v12 = vcombine.low %v11232_v38, %v11239_v62  ;;  %v10820_v36 = vrot.slane %v10798_v25, %v18884_v56  ;;  %v10828_v41 = vcombine.high %v10806_v10, %v10806_v10 }
 0x7e6   : > { %v10827_v15 = vrot.slane %v10799_v35, %v18884_v56  ;;  %v11257_v31 = vcombine.low %v11249_v18, %v11256_v40  ;;  %v10829_v52 = vcombine.high %v10813_v48, %v10813_v48  ;;  %v11059_v51 = vrot.slane %v10806_v10, %v18888_v54 }
 0x7e7   : > { %v11075_v29 = vrot.slane %v10813_v48, %v18888_v54  ;;  %11393 = vst.msk [vmem:[#allocation7 + $0xd9] sm:$0xff] %vm488_vm4, %v11240_v12  ;;  %11395 = vst.msk [vmem:[#allocation7 + $0xf1] sm:$0xff] %vm488_vm4, %v11240_v12  ;;  %v10830_v3 = vcombine.high %v10820_v36, %v10820_v36  ;;  %v11063_v5 = vrot.slane %v10820_v36, %v18888_v54  ;;  %v11446_v36 = vld [vmem:[#allocation7 + $0x91] sm:$0xff] }
 0x7e8   : > { %v10831_v7 = vcombine.high %v10827_v15, %v10827_v15  ;;  %v11067_v37 = vrot.slane %v10828_v41, %v18888_v54  ;;  %11394 = vst.msk [vmem:[#allocation7 + $0xe1] sm:$0xff] %vm488_vm4, %v11257_v31  ;;  %11396 = vst.msk [vmem:[#allocation7 + $0xf9] sm:$0xff] %vm488_vm4, %v11257_v31  ;;  %v11079_v6 = vrot.slane %v10827_v15, %v18888_v54  ;;  %v11422_v15 = vld [vmem:[#allocation7 + $0x98] sm:$0xff] }
 0x7e9   : > { %v11083_v19 = vrot.slane %v10829_v52, %v18888_v54  ;;  %v10692_v57 = vrot.slane %v10429_v61, %v18884_v56  ;;  %v10699_v33 = vrot.slane %v10685_v44, %v18884_v56  ;;  %v11071_v4 = vrot.slane %v10830_v3, %v18888_v54 }
 0x7ea   : > { %v11087_v9 = vrot.slane %v10831_v7, %v18888_v54  ;;  %v11326_v60 = vcombine.low %v11059_v51, %v11063_v5  ;;  %v11457_v46 = vpack.c.bf16 %v11449_v24, %v11448_v49  ;;  %v11343_v58 = vcombine.low %v11075_v29, %v11079_v6  ;;  %v11421_v51 = vld [vmem:[#allocation7 + $0x90] sm:$0xff]  ;;  %v11445_v24 = vld [vmem:[#allocation7 + $0x81] sm:$0xff]  ;;  %v11444_v7 = vld [vmem:[#allocation7 + $0x79] sm:$0xff] }
 0x7eb   : > { %v10700_v30 = vcombine.high %v10692_v57, %v10692_v57  ;;  %v10701_v26 = vcombine.high %v10699_v33, %v10699_v33  ;;  %v10708_v8 = vrot.slane %v10692_v57, %v18884_v56  ;;  %v11327_v34 = vcombine.low %v11067_v37, %v11071_v4  ;;  %v11420_v5 = vld [vmem:[#allocation7 + $0x80] sm:$0xff]  ;;  %v11419_v6 = vld [vmem:[#allocation7 + $0x78] sm:$0xff] }
 0x7ec   : > { %v11334_v63 = vrot.slane %v11326_v60, %v20088_v32  ;;  %v11344_v43 = vcombine.low %v11083_v19, %v11087_v9  ;;  %v10715_v45 = vrot.slane %v10699_v33, %v18884_v56  ;;  %v11351_v23 = vrot.slane %v11343_v58, %v20088_v32  ;;  %v11443_v33 = vld [vmem:[#allocation7 + $0x69] sm:$0xff]  ;;  %v11442_v4 = vld [vmem:[#allocation7 + $0x61] sm:$0xff] }
 0x7ed   : > { %v10722_v20 = vrot.slane %v10700_v30, %v18884_v56  ;;  %v10729_v28 = vrot.slane %v10701_v26, %v18884_v56  ;;  %v10730_v17 = vcombine.high %v10708_v8, %v10708_v8  ;;  %v11341_v39 = vrot.slane %v11327_v34, %v20088_v32  ;;  %v11418_v9 = vld [vmem:[#allocation7 + $0x68] sm:$0xff]  ;;  %v11441_v26 = vld [vmem:[#allocation7 + $0x51] sm:$0xff] }
 0x7ee   : > { %v11358_v59 = vrot.slane %v11344_v43, %v20088_v32  ;;  %v10731_v47 = vcombine.high %v10715_v45, %v10715_v45  ;;  %v10995_v1 = vrot.slane %v10708_v8, %v18888_v54  ;;  %v11011_v22 = vrot.slane %v10715_v45, %v18888_v54  ;;  %v11440_v34 = vld [vmem:[#allocation7 + $0x49] sm:$0xff] }
 0x7ef   : > { %v10732_v50 = vcombine.high %v10722_v20, %v10722_v20  ;;  %v10733_v16 = vcombine.high %v10729_v28, %v10729_v28  ;;  %v10999_v27 = vrot.slane %v10722_v20, %v18888_v54  ;;  %v11003_v21 = vrot.slane %v10730_v17, %v18888_v54  ;;  %v11415_v45 = vld [vmem:[#allocation7 + $0x48] sm:$0xff] }
 0x7f0   : > { %v11342_v13 = vcombine.low %v11334_v63, %v11341_v39  ;;  %v11359_v55 = vcombine.low %v11351_v23, %v11358_v59  ;;  %v11015_v56 = vrot.slane %v10729_v28, %v18888_v54  ;;  %v11019_v42 = vrot.slane %v10731_v47, %v18888_v54  ;;  %v11416_v63 = vld [vmem:[#allocation7 + $0x50] sm:$0xff]  ;;  %v11439_v28 = vld [vmem:[#allocation7 + $0x39] sm:$0xff] }
 0x7f1   : > { %v11007_v0 = vrot.slane %v10732_v50, %v18888_v54  ;;  %v11023_v38 = vrot.slane %v10733_v16, %v18888_v54  ;;  %v11258_v53 = vcombine.low %v10995_v1, %v10999_v27  ;;  %v19347_v62 = vsel %vm488_vm4, %v11457_v46, 0  ;;  %v11447_v54 = vld [vmem:[#allocation7 + $0x99] sm:$0xff]  ;;  %v11438_v39 = vld [vmem:[#allocation7 + $0x31] sm:$0xff]  ;;  %v11437_v27 = vld [vmem:[#allocation7 + $0x21] sm:$0xff] }
 0x7f2   : > { %11405 = vst.msk [vmem:[#allocation7 + $0x169] sm:$0xff] %vm488_vm4, %v11342_v13  ;;  %11406 = vst.msk [vmem:[#allocation7 + $0x171] sm:$0xff] %vm488_vm4, %v11359_v55  ;;  %v11275_v61 = vcombine.low %v11011_v22, %v11015_v56  ;;  %v11432_v25 = vpack.c.bf16 %v11424_v2, %v11423_v11  ;;  %15093 = vmatpush3.bf16.xpose.msra.mxu1 %v19347_v62  ;;  %v11456_v41 = vpack.c.bf16 %v11447_v54, %v11446_v36  ;;  %v11417_v46 = vld [vmem:[#allocation7 + $0x60] sm:$0xff]  ;;  %v11414_v59 = vld [vmem:[#allocation7 + $0x38] sm:$0xff] }
 0x7f3   : > { %11407 = vst.msk [vmem:[#allocation7 + $0x181] sm:$0xff] %vm488_vm4, %v11342_v13  ;;  %11408 = vst.msk [vmem:[#allocation7 + $0x189] sm:$0xff] %vm488_vm4, %v11359_v55  ;;  %v11259_v35 = vcombine.low %v11003_v21, %v11007_v0  ;;  %v11276_v10 = vcombine.low %v11019_v42, %v11023_v38  ;;  %15094 = vmatprep.subr.bf16.mxu1 %v20091_v14  ;;  %v11266_v40 = vrot.slane %v11258_v53, %v20088_v32  ;;  %v11413_v1 = vld [vmem:[#allocation7 + $0x30] sm:$0xff]  ;;  %v11436_v2 = vld [vmem:[#allocation7 + $0x19] sm:$0xff] }
 0x7f4   : > { %v19351_v18 = vsel %vm488_vm4, %v11432_v25, 0  ;;  %v11283_v44 = vrot.slane %v11275_v61, %v20088_v32  ;;  %v11431_v29 = vpack.c.bf16 %v11422_v15, %v11421_v51  ;;  %v11455_v37 = vpack.c.bf16 %v11445_v24, %v11444_v7  ;;  %v11412_v13 = vld [vmem:[#allocation7 + $0x20] sm:$0xff]  ;;  %v11411_v22 = vld [vmem:[#allocation7 + $0x18] sm:$0xff]  ;;  %v11435_v42 = vld [vmem:[#allocation7 + $0x9] sm:$0xff] }
 0x7f5   : > { %v11273_v48 = vrot.slane %v11259_v35, %v20088_v32  ;;  %v11290_v12 = vrot.slane %v11276_v10, %v20088_v32  ;;  %15113 = vmatpush3.bf16.xpose.msra.mxu0 %v19351_v18  ;;  %v19365_v32 = vsel %vm488_vm4, %v11456_v41, 0  ;;  %v11430_v19 = vpack.c.bf16 %v11420_v5, %v11419_v6  ;;  %v11434_v0 = vld [vmem:[#allocation7 + $0x1] sm:$0xff]  ;;  %v13756_v36 = vld [vmem:[%s19916_s6 + $0x2] sm:$0x3] }
 0x7f6   : > { %15114 = vmatprep.subr.bf16.mxu0 %v20091_v14  ;;  %v19369_v3 = vsel %vm488_vm4, %v11431_v29, 0  ;;  %v19375_v57 = vsel %vm488_vm4, %v11455_v37, 0  ;;  %v11454_v60 = vpack.c.bf16 %v11443_v33, %v11442_v4  ;;  %v11429_v58 = vpack.c.bf16 %v11418_v9, %v11417_v46  ;;  %v11409_v53 = vld [vmem:[#allocation7] sm:$0xff]  ;;  %v11410_v11 = vld [vmem:[#allocation7 + $0x8] sm:$0xff]  ;;  %v11606_v51 = vld [vmem:[#allocation7 + $0x92] sm:$0xff] }
 0x7f7   : > { %v11274_v31 = vcombine.low %v11266_v40, %v11273_v48  ;;  %v11291_v52 = vcombine.low %v11283_v44, %v11290_v12  ;;  %v19379_v49 = vsel %vm488_vm4, %v11430_v19, 0  ;;  %v11453_v43 = vpack.c.bf16 %v11441_v26, %v11440_v34  ;;  %v11608_v40 = vld [vmem:[#allocation7 + $0xaa] sm:$0xff]  ;;  %v11609_v48 = vld [vmem:[#allocation7 + $0xb2] sm:$0xff]  ;;  %v11702_v15 = vld [vmem:[#allocation7 + $0xc0] sm:$0xff] }
 0x7f8   : > { %v19385_v30 = vsel %vm488_vm4, %v11454_v60, 0  ;;  %v19389_v8 = vsel %vm488_vm4, %v11429_v58, 0  ;;  %v11428_v23 = vpack.c.bf16 %v11416_v63, %v11415_v45  ;;  %v11452_v47 = vpack.c.bf16 %v11439_v28, %v11438_v39  ;;  %v11703_v44 = vld [vmem:[#allocation7 + $0xc8] sm:$0xff]  ;;  %v11607_v29 = vld [vmem:[#allocation7 + $0x9a] sm:$0xff]  ;;  %v11601_v26 = vld [vmem:[#allocation7 + $0x52] sm:$0xff] }
 0x7f9   : > { %11397 = vst.msk [vmem:[#allocation7 + $0x109] sm:$0xff] %vm488_vm4, %v11274_v31  ;;  %11398 = vst.msk [vmem:[#allocation7 + $0x111] sm:$0xff] %vm488_vm4, %v11291_v52  ;;  %v19395_v20 = vsel %vm488_vm4, %v11453_v43, 0  ;;  %v11427_v50 = vpack.c.bf16 %v11414_v59, %v11413_v1  ;;  %v11451_v55 = vpack.c.bf16 %v11437_v27, %v11436_v2  ;;  %v11426_v56 = vpack.c.bf16 %v11412_v13, %v11411_v22  ;;  %v11604_v37 = vld [vmem:[#allocation7 + $0x7a] sm:$0xff]  ;;  %v11605_v6 = vld [vmem:[#allocation7 + $0x82] sm:$0xff] }
 0x7fa   : > { %11399 = vst.msk [vmem:[#allocation7 + $0x121] sm:$0xff] %vm488_vm4, %v11274_v31  ;;  %11400 = vst.msk [vmem:[#allocation7 + $0x129] sm:$0xff] %vm488_vm4, %v11291_v52  ;;  %15095 = vmatpush3.bf16.xpose.msra.mxu1 %v19365_v32  ;;  %v19399_v17 = vsel %vm488_vm4, %v11428_v23, 0  ;;  %v19405_v16 = vsel %vm488_vm4, %v11452_v47, 0  ;;  %v11450_v25 = vpack.c.bf16 %v11435_v42, %v11434_v0  ;;  %v11425_v35 = vpack.c.bf16 %v11410_v11, %v11409_v53  ;;  %v11433_v31 = vld [vmem:[%s19916_s6] sm:$0x3] }
 0x7fb   : > { %15096 = vmatprep.subr.bf16.mxu1 %v20091_v14  ;;  %v19409_v21 = vsel %vm488_vm4, %v11427_v50, 0  ;;  %v19415_v38 = vsel %vm488_vm4, %v11451_v55, 0  ;;  %v19419_v61 = vsel %vm488_vm4, %v11426_v56, 0  ;;  %v11617_v12 = vpack.c.bf16 %v11609_v48, %v11608_v40  ;;  %v11602_v4 = vld [vmem:[#allocation7 + $0x62] sm:$0xff]  ;;  %v11603_v9 = vld [vmem:[#allocation7 + $0x6a] sm:$0xff]  ;;  %v11598_v43 = vld [vmem:[#allocation7 + $0x32] sm:$0xff] }
 0x7fc   : > { %v11464_v10 = vsel %vm488_vm4, %v11450_v25, 0  ;;  %v11531_v54 = vsel %vm488_vm4, %v11425_v35, 0  ;;  %v11711_v41 = vpack.c.bf16 %v11703_v44, %v11702_v15  ;;  %v11616_v7 = vpack.c.bf16 %v11607_v29, %v11606_v51  ;;  %v11600_v58 = vld [vmem:[#allocation7 + $0x4a] sm:$0xff]  ;;  %v11599_v45 = vld [vmem:[#allocation7 + $0x3a] sm:$0xff]  ;;  %v11597_v59 = vld [vmem:[#allocation7 + $0x22] sm:$0xff] }
 0x7fd   : > { %15115 = vmatpush3.bf16.xpose.msra.mxu0 %v19369_v3  ;;  %v19436_v52 = vsel %vm488_vm4, %v11617_v12, 0  ;;  %v11615_v19 = vpack.c.bf16 %v11605_v6, %v11604_v37  ;;  %v11614_v60 = vpack.c.bf16 %v11603_v9, %v11602_v4  ;;  %v11613_v34 = vpack.c.bf16 %v11601_v26, %v11600_v58  ;;  %v11596_v39 = vld [vmem:[#allocation7 + $0x1a] sm:$0xff]  ;;  %v11594_v1 = vld [vmem:[#allocation7 + $0x2] sm:$0xff]  ;;  %v11595_v50 = vld [vmem:[#allocation7 + $0xa] sm:$0xff] }
 0x7fe   : > { %15116 = vmatprep.subr.bf16.mxu0 %v20091_v14  ;;  %v19443_v24 = vsel %vm488_vm4, %v11711_v41, 0  ;;  %v19451_v5 = vsel %vm488_vm4, %v11616_v7, 0  ;;  %v11612_v23 = vpack.c.bf16 %v11599_v45, %v11598_v43  ;;  %v11611_v47 = vpack.c.bf16 %v11597_v59, %v11596_v39  ;;  %v11797_v55 = vld [vmem:[#allocation7 + $0xc9] sm:$0xff]  ;;  %v11796_v22 = vld [vmem:[#allocation7 + $0xc1] sm:$0xff]  ;;  %v13759_v53 = vld [vmem:[%s19916_s6 + $0x4] sm:$0x3] }
 0x7ff   : > { %v19458_v33 = vsel %vm488_vm4, %v11615_v19, 0  ;;  %v19465_v46 = vsel %vm488_vm4, %v11614_v60, 0  ;;  %v19472_v63 = vsel %vm488_vm4, %v11613_v34, 0  ;;  %v11610_v2 = vpack.c.bf16 %v11595_v50, %v11594_v1  ;;  %v11890_v56 = vld [vmem:[#allocation7 + $0xc2] sm:$0xff]  ;;  %v11891_v0 = vld [vmem:[#allocation7 + $0xca] sm:$0xff]  ;;  %v12079_v12 = vld [vmem:[#allocation7 + $0xd9] sm:$0xff] }
 0x800   : > { %v19479_v28 = vsel %vm488_vm4, %v11612_v23, 0  ;;  %v11627_v27 = vsel %vm488_vm4, %v11611_v47, 0  ;;  %v11805_v42 = vpack.c.bf16 %v11797_v55, %v11796_v22  ;;  %v11899_v11 = vpack.c.bf16 %v11891_v0, %v11890_v56  ;;  %v13761_v25 = vld [vmem:[%s19916_s6 + $0x6] sm:$0x3]  ;;  %v12080_v40 = vld [vmem:[#allocation7 + $0xe1] sm:$0xff]  ;;  %v12306_v29 = vld [vmem:[#allocation7 + $0x159] sm:$0xff] }
 0x801   : > { %v11624_v13 = vsel %vm488_vm4, %v11610_v2, 0  ;;  %v13763_v44 = vld [vmem:[%s19916_s6 + $0x8] sm:$0x3]  ;;  %v13765_v15 = vld [vmem:[%s19916_s6 + $0xa] sm:$0x3]  ;;  %v15707_v60 = vmov 0  }
 0x802   : > { %15097 = vmatpush3.bf16.xpose.msra.mxu1 %v19375_v57  ;;  %v19501_v35 = vsel %vm488_vm4, %v11805_v42, 0  ;;  %v12305_v6 = vld [vmem:[#allocation7 + $0x151] sm:$0xff]  ;;  %15486 = vset.pattern.permute.xlu0 %v15707_v60  ;;  %v12304_v43 = vld [vmem:[#allocation7 + $0x141] sm:$0xff]  ;;  %v12303_v45 = vld [vmem:[#allocation7 + $0x139] sm:$0xff] }
 0x803   : > { %15098 = vmatprep.subr.bf16.mxu1 %v20091_v14  ;;  %v12315_v9 = vpack.c.bf16 %v12306_v29, %v12305_v6  ;;  %v12253_v26 = vld [vmem:[%s19922_s12] sm:$0xf]  ;;  %v12314_v23 = vpack.c.bf16 %v12304_v43, %v12303_v45  ;;  %v12301_v47 = vld [vmem:[#allocation7 + $0x121] sm:$0xff] }
 0x804   : > { %12256 = vperm.xlu0 %15486, %v12253_v26   ;;  %v12302_v59 = vld [vmem:[#allocation7 + $0x129] sm:$0xff]  ;;  %v12297_v55 = vld [vmem:[#allocation7 + $0xf1] sm:$0xff]  ;;  %v12462_v29 = vld [vmem:[#allocation7 + $0x13a] sm:$0xff] }
 0x805   : > { %15117 = vmatpush3.bf16.xpose.msra.mxu0 %v19379_v49  ;;  %v19621_v34 = vsel %vm488_vm4, %v12315_v9, 0  ;;  %v19628_v39 = vsel %vm488_vm4, %v12314_v23, 0  ;;  %v12313_v1 = vpack.c.bf16 %v12302_v59, %v12301_v47  ;;  %v12466_v0 = vld [vmem:[#allocation7 + $0x16a] sm:$0xff]  ;;  %v12467_v42 = vld [vmem:[#allocation7 + $0x172] sm:$0xff]  ;;  %v12276_v60 = vld [vmem:[#allocation7 + $0x120] sm:$0xff] }
 0x806   : > { %15118 = vmatprep.subr.bf16.mxu0 %v20091_v14  ;;  %v12461_v26 = vld [vmem:[#allocation7 + $0x12a] sm:$0xff] }
 0x807   : > { %v19635_v50 = vsel %vm488_vm4, %v12313_v1, 0  ;;  %v12275_v59 = vld [vmem:[#allocation7 + $0x110] sm:$0xff]  ;;  %v12274_v1 = vld [vmem:[#allocation7 + $0x108] sm:$0xff] }
 0x80a   : > { %15099 = vmatpush3.bf16.xpose.msra.mxu1 %v19385_v30 }
 0x80b   : > { %15100 = vmatprep.subr.bf16.mxu1 %v20091_v14 }
 0x80d   : > { %15119 = vmatpush3.bf16.xpose.msra.mxu0 %v19389_v8 }
 0x80e   : > { %15120 = vmatprep.subr.bf16.mxu0 %v20091_v14 }
 0x812   : > { %15101 = vmatpush3.bf16.xpose.msra.mxu1 %v19395_v20 }
 0x813   : > { %15102 = vmatprep.subr.bf16.mxu1 %v20091_v14 }
 0x815   : > { %15121 = vmatpush3.bf16.xpose.msra.mxu0 %v19399_v17 }
 0x816   : > { %15122 = vmatprep.subr.bf16.mxu0 %v20091_v14 }
 0x81a   : > { %15103 = vmatpush3.bf16.xpose.msra.mxu1 %v19405_v16 }
 0x81b   : > { %15104 = vmatprep.subr.bf16.mxu1 %v20091_v14 }
 0x81d   : > { %15123 = vmatpush3.bf16.xpose.msra.mxu0 %v19409_v21 }
 0x81e   : > { %15124 = vmatprep.subr.bf16.mxu0 %v20091_v14 }
 0x822   : > { %15105 = vmatpush3.bf16.xpose.msra.mxu1 %v19415_v38 }
 0x823   : > { %15106 = vmatprep.subr.bf16.mxu1 %v20091_v14 }
 0x825   : > { %15125 = vmatpush3.bf16.xpose.msra.mxu0 %v19419_v61 }
 0x826   : > { %15126 = vmatprep.subr.bf16.mxu0 %v20091_v14 }
 0x82a   : > { %15107 = vmatpush3.bf16.xpose.msra.mxu1 %v11464_v10  ;;  %v11986_v10 = vld [vmem:[#allocation7 + $0xe0] sm:$0xff] }
 0x82b   : > { %15132 = vmatprep.subr.bf16.mxu1 %v20091_v14 }
 0x82d   : > { %15127 = vmatpush3.bf16.xpose.msra.mxu0 %v11531_v54  ;;  %v11985_v54 = vld [vmem:[#allocation7 + $0xd8] sm:$0xff] }
 0x82e   : > { %15152 = vmatprep.subr.bf16.mxu0 %v20091_v14  ;;  %v11994_v48 = vpack.c.bf16 %v11986_v10, %v11985_v54  ;;  %v12281_v54 = vld [vmem:[#allocation7 + $0x158] sm:$0xff] }
 0x831   : > { %15109 = vmatmul.mubr.msk.bf16.vlgmr.msra.gmra.mxu1 %vm488_vm4, %v13756_v36  ;;  %v12088_v36 = vpack.c.bf16 %v12080_v40, %v12079_v12 }
 0x832   : > { %15133 = vmatpush3.bf16.xpose.msra.mxu1 %v19436_v52  ;;  %15148 = vmatprep.mubr.msk.bf16.mxu1 %vm15705_vm2, %v20091_v14 }
 0x833   : > { %15134 = vmatprep.subr.bf16.mxu1 %v20091_v14  ;;  %v19557_v41 = vsel %vm488_vm4, %v12088_v36, 0  ;;  %v12280_v36 = vld [vmem:[#allocation7 + $0x150] sm:$0xff] }
 0x834   : > { %15129 = vmatmul.mubr.msk.bf16.vlgmr.msra.gmra.mxu0 %vm488_vm4, %v11433_v31 }
 0x835   : > { %15153 = vmatpush3.bf16.xpose.msra.mxu0 %v19443_v24  ;;  %15168 = vmatprep.mubr.msk.bf16.mxu0 %vm15705_vm2, %v20091_v14 }
 0x836   : > { %15154 = vmatprep.subr.bf16.mxu0 %v20091_v14 }
 0x83a   : > { %15135 = vmatpush3.bf16.xpose.msra.mxu1 %v19451_v5 }
 0x83b   : > { %15136 = vmatprep.subr.bf16.mxu1 %v20091_v14 }
 0x83d   : > { %15155 = vmatpush3.bf16.xpose.msra.mxu0 %v19351_v18 }
 0x83e   : > { %15156 = vmatprep.subr.bf16.mxu0 %v20091_v14 }
 0x842   : > { %15137 = vmatpush3.bf16.xpose.msra.mxu1 %v19458_v33 }
 0x843   : > { %15138 = vmatprep.subr.bf16.mxu1 %v20091_v14 }
 0x845   : > { %15157 = vmatpush3.bf16.xpose.msra.mxu0 %v19369_v3 }
 0x846   : > { %15158 = vmatprep.subr.bf16.mxu0 %v20091_v14 }
 0x84a   : > { %15139 = vmatpush3.bf16.xpose.msra.mxu1 %v19465_v46 }
 0x84b   : > { %15140 = vmatprep.subr.bf16.mxu1 %v20091_v14 }
 0x84d   : > { %15159 = vmatpush3.bf16.xpose.msra.mxu0 %v19379_v49 }
 0x84e   : > { %15160 = vmatprep.subr.bf16.mxu0 %v20091_v14 }
 0x852   : > { %15141 = vmatpush3.bf16.xpose.msra.mxu1 %v19472_v63 }
 0x853   : > { %15142 = vmatprep.subr.bf16.mxu1 %v20091_v14 }
 0x855   : > { %15161 = vmatpush3.bf16.xpose.msra.mxu0 %v19389_v8 }
 0x856   : > { %15162 = vmatprep.subr.bf16.mxu0 %v20091_v14 }
 0x85a   : > { %15143 = vmatpush3.bf16.xpose.msra.mxu1 %v19479_v28 }
 0x85b   : > { %15144 = vmatprep.subr.bf16.mxu1 %v20091_v14 }
 0x85d   : > { %15163 = vmatpush3.bf16.xpose.msra.mxu0 %v19399_v17 }
 0x85e   : > { %15164 = vmatprep.subr.bf16.mxu0 %v20091_v14 }
 0x862   : > { %15145 = vmatpush3.bf16.xpose.msra.mxu1 %v11627_v27 }
 0x863   : > { %15146 = vmatprep.subr.bf16.mxu1 %v20091_v14 }
 0x865   : > { %15165 = vmatpush3.bf16.xpose.msra.mxu0 %v19409_v21 }
 0x866   : > { %15166 = vmatprep.subr.bf16.mxu0 %v20091_v14 }
 0x86a   : > { %15147 = vmatpush3.bf16.xpose.msra.mxu1 %v11624_v13 }
 0x86b   : > { %15172 = vmatprep.subr.bf16.mxu1 %v20091_v14 }
 0x86d   : > { %15167 = vmatpush3.bf16.xpose.msra.mxu0 %v19419_v61  ;;  %v19508_v61 = vsel %vm488_vm4, %v11899_v11, 0  ;;  %v12475_v11 = vpack.c.bf16 %v12467_v42, %v12466_v0  ;;  %v12456_v0 = vld [vmem:[#allocation7 + $0xf2] sm:$0xff]  ;;  %v12457_v42 = vld [vmem:[#allocation7 + $0xfa] sm:$0xff] }
 0x86e   : > { %15192 = vmatprep.subr.bf16.mxu0 %v20091_v14 }
 0x871   : > { %15149 = vmatmul.mubr.msk.bf16.vlgmr.msra.gmra.mxu1 %vm488_vm4, %v13759_v53 }
 0x872   : > { %15173 = vmatpush3.bf16.xpose.msra.mxu1 %v19501_v35  ;;  %15188 = vmatprep.mubr.msk.bf16.mxu1 %vm15705_vm2, %v20091_v14 }
 0x873   : > { %15174 = vmatprep.subr.bf16.mxu1 %v20091_v14 }
 0x874   : > { %15169 = vmatmul.mubr.msk.bf16.vlgmr.msra.gmra.mxu0 %vm488_vm4, %v13761_v25 }
 0x875   : > { %15193 = vmatpush3.bf16.xpose.msra.mxu0 %v19508_v61  ;;  %15208 = vmatprep.mubr.msk.bf16.mxu0 %vm15705_vm2, %v20091_v14 }
 0x876   : > { %15194 = vmatprep.subr.bf16.mxu0 %v20091_v14 }
 0x87a   : > { %15175 = vmatpush3.bf16.xpose.msra.mxu1 %v19347_v62 }
 0x87b   : > { %15176 = vmatprep.subr.bf16.mxu1 %v20091_v14 }
 0x87d   : > { %15195 = vmatpush3.bf16.xpose.msra.mxu0 %v19436_v52 }
 0x87e   : > { %15196 = vmatprep.subr.bf16.mxu0 %v20091_v14 }
 0x882   : > { %15177 = vmatpush3.bf16.xpose.msra.mxu1 %v19365_v32 }
 0x883   : > { %15178 = vmatprep.subr.bf16.mxu1 %v20091_v14 }
 0x885   : > { %15197 = vmatpush3.bf16.xpose.msra.mxu0 %v19451_v5 }
 0x886   : > { %15198 = vmatprep.subr.bf16.mxu0 %v20091_v14 }
 0x88a   : > { %15179 = vmatpush3.bf16.xpose.msra.mxu1 %v19375_v57 }
 0x88b   : > { %15180 = vmatprep.subr.bf16.mxu1 %v20091_v14 }
 0x88d   : > { %15199 = vmatpush3.bf16.xpose.msra.mxu0 %v19458_v33 }
 0x88e   : > { %15200 = vmatprep.subr.bf16.mxu0 %v20091_v14 }
 0x892   : > { %15181 = vmatpush3.bf16.xpose.msra.mxu1 %v19385_v30 }
 0x893   : > { %15182 = vmatprep.subr.bf16.mxu1 %v20091_v14 }
 0x895   : > { %15201 = vmatpush3.bf16.xpose.msra.mxu0 %v19465_v46 }
 0x896   : > { %15202 = vmatprep.subr.bf16.mxu0 %v20091_v14 }
 0x89a   : > { %15183 = vmatpush3.bf16.xpose.msra.mxu1 %v19395_v20 }
 0x89b   : > { %15184 = vmatprep.subr.bf16.mxu1 %v20091_v14 }
 0x89d   : > { %15203 = vmatpush3.bf16.xpose.msra.mxu0 %v19472_v63 }
 0x89e   : > { %15204 = vmatprep.subr.bf16.mxu0 %v20091_v14 }
 0x8a2   : > { %15185 = vmatpush3.bf16.xpose.msra.mxu1 %v19405_v16 }
 0x8a3   : > { %15186 = vmatprep.subr.bf16.mxu1 %v20091_v14 }
 0x8a5   : > { %15205 = vmatpush3.bf16.xpose.msra.mxu0 %v19479_v28 }
 0x8a6   : > { %15206 = vmatprep.subr.bf16.mxu0 %v20091_v14 }
 0x8aa   : > { %15187 = vmatpush3.bf16.xpose.msra.mxu1 %v19415_v38  ;;  %v19550_v38 = vsel %vm488_vm4, %v11994_v48, 0  ;;  %v19678_v48 = vsel %vm488_vm4, %v12475_v11, 0 }
 0x8ab   : > { %15212 = vmatprep.subr.bf16.mxu1 %v20091_v14 }
 0x8ad   : > { %15207 = vmatpush3.bf16.xpose.msra.mxu0 %v11627_v27  ;;  %v12299_v27 = vld [vmem:[#allocation7 + $0x109] sm:$0xff] }
 0x8ae   : > { %15232 = vmatprep.subr.bf16.mxu0 %v20091_v14 }
 0x8b1   : > { %15189 = vmatmul.mubr.msk.bf16.vlgmr.msra.gmra.mxu1 %vm488_vm4, %v13763_v44 }
 0x8b2   : > { %15213 = vmatpush3.bf16.xpose.msra.mxu1 %v19550_v38  ;;  %15228 = vmatprep.mubr.msk.bf16.mxu1 %vm15705_vm2, %v20091_v14 }
 0x8b3   : > { %15214 = vmatprep.subr.bf16.mxu1 %v20091_v14 }
 0x8b4   : > { %15209 = vmatmul.mubr.msk.bf16.vlgmr.msra.gmra.mxu0 %vm488_vm4, %v13765_v15  ;;  %v12464_v15 = vld [vmem:[#allocation7 + $0x152] sm:$0xff] }
 0x8b5   : > { %15233 = vmatpush3.bf16.xpose.msra.mxu0 %v19557_v41  ;;  %15248 = vmatprep.mubr.msk.bf16.mxu0 %vm15705_vm2, %v20091_v14 }
 0x8b6   : > { %15234 = vmatprep.subr.bf16.mxu0 %v20091_v14 }
 0x8ba   : > { %15215 = vmatpush3.bf16.xpose.msra.mxu1 %v19443_v24 }
 0x8bb   : > { %15216 = vmatprep.subr.bf16.mxu1 %v20091_v14 }
 0x8bd   : > { %15235 = vmatpush3.bf16.xpose.msra.mxu0 %v19501_v35 }
 0x8be   : > { %15236 = vmatprep.subr.bf16.mxu0 %v20091_v14 }
 0x8c2   : > { %15217 = vmatpush3.bf16.xpose.msra.mxu1 %v19351_v18  ;;  %v12174_v18 = vld [vmem:[#allocation7 + $0xe2] sm:$0xff] }
 0x8c3   : > { %15218 = vmatprep.subr.bf16.mxu1 %v20091_v14 }
 0x8c5   : > { %15237 = vmatpush3.bf16.xpose.msra.mxu0 %v19347_v62  ;;  %v12173_v62 = vld [vmem:[#allocation7 + $0xda] sm:$0xff] }
 0x8c6   : > { %15238 = vmatprep.subr.bf16.mxu0 %v20091_v14 }
 0x8ca   : > { %15219 = vmatpush3.bf16.xpose.msra.mxu1 %v19369_v3  ;;  %v12182_v3 = vpack.c.bf16 %v12174_v18, %v12173_v62  ;;  %v12465_v62 = vld [vmem:[#allocation7 + $0x15a] sm:$0xff] }
 0x8cb   : > { %15220 = vmatprep.subr.bf16.mxu1 %v20091_v14 }
 0x8cd   : > { %15239 = vmatpush3.bf16.xpose.msra.mxu0 %v19365_v32  ;;  %v12308_v32 = vld [vmem:[#allocation7 + $0x171] sm:$0xff] }
 0x8ce   : > { %15240 = vmatprep.subr.bf16.mxu0 %v20091_v14 }
 0x8d2   : > { %15221 = vmatpush3.bf16.xpose.msra.mxu1 %v19379_v49  ;;  %v12307_v49 = vld [vmem:[#allocation7 + $0x169] sm:$0xff] }
 0x8d3   : > { %15222 = vmatprep.subr.bf16.mxu1 %v20091_v14 }
 0x8d5   : > { %15241 = vmatpush3.bf16.xpose.msra.mxu0 %v19375_v57  ;;  %v13767_v57 = vld [vmem:[%s19916_s6 + $0xc] sm:$0x3] }
 0x8d6   : > { %15242 = vmatprep.subr.bf16.mxu0 %v20091_v14 }
 0x8da   : > { %15223 = vmatpush3.bf16.xpose.msra.mxu1 %v19389_v8  ;;  %v13769_v8 = vld [vmem:[%s19916_s6 + $0xe] sm:$0x3] }
 0x8db   : > { %15224 = vmatprep.subr.bf16.mxu1 %v20091_v14 }
 0x8dd   : > { %15243 = vmatpush3.bf16.xpose.msra.mxu0 %v19385_v30  ;;  %v12316_v30 = vpack.c.bf16 %v12308_v32, %v12307_v49 }
 0x8de   : > { %15244 = vmatprep.subr.bf16.mxu0 %v20091_v14 }
 0x8e2   : > { %15225 = vmatpush3.bf16.xpose.msra.mxu1 %v19399_v17  ;;  %v19600_v17 = vsel %vm488_vm4, %v12182_v3, 0  ;;  %v12290_v3 = vpack.c.bf16 %v12281_v54, %v12280_v36  ;;  %v12654_v54 = vld [vmem:[#allocation7 + $0x189] sm:$0xff]  ;;  %v12653_v36 = vld [vmem:[#allocation7 + $0x181] sm:$0xff] }
 0x8e3   : > { %15226 = vmatprep.subr.bf16.mxu1 %v20091_v14 }
 0x8e5   : > { %15245 = vmatpush3.bf16.xpose.msra.mxu0 %v19395_v20 }
 0x8e6   : > { %15246 = vmatprep.subr.bf16.mxu0 %v20091_v14 }
 0x8ea   : > { %15227 = vmatpush3.bf16.xpose.msra.mxu1 %v19409_v21  ;;  %v19607_v21 = vsel %vm488_vm4, %v12316_v30, 0  ;;  %v12474_v30 = vpack.c.bf16 %v12465_v62, %v12464_v15  ;;  %v12662_v15 = vpack.c.bf16 %v12654_v54, %v12653_v36 }
 0x8eb   : > { %15252 = vmatprep.subr.bf16.mxu1 %v20091_v14 }
 0x8ed   : > { %15247 = vmatpush3.bf16.xpose.msra.mxu0 %v19405_v16 }
 0x8ee   : > { %15272 = vmatprep.subr.bf16.mxu0 %v20091_v14 }
 0x8f1   : > { %v11521_v20 = vpop.f32.mrf.mxu1  ;;  %15229 = vmatmul.mubr.msk.bf16.vlgmr.msra.gmra.mxu1 %vm488_vm4, %v13767_v57 }
 0x8f2   : > { %15253 = vmatpush3.bf16.xpose.msra.mxu1 %v19600_v17  ;;  %15268 = vmatprep.mubr.msk.bf16.mxu1 %vm15705_vm2, %v20091_v14 }
 0x8f3   : > { %v15110_v31 = vpop.f32.mrf.mxu1  ;;  %15254 = vmatprep.subr.bf16.mxu1 %v20091_v14 }
 0x8f4   : > { %v11588_v16 = vpop.f32.mrf.mxu0  ;;  %15249 = vmatmul.mubr.msk.bf16.vlgmr.msra.gmra.mxu0 %vm488_vm4, %v13769_v8  ;;  %v19692_v31 = vsel %vm488_vm4, %v12474_v30, 0 }
 0x8f5   : > { %v19610_v51 = vadd.f32 %v11588_v16, %v11521_v20  ;;  %15273 = vmatpush3.bf16.xpose.msra.mxu0 %v19607_v21  ;;  %15288 = vmatprep.mubr.msk.bf16.mxu0 %vm15705_vm2, %v20091_v14  ;;  %v11524_v37 = vpop.f32.mrf.mxu1  ;;  %v19688_v20 = vsel %vm488_vm4, %v12290_v3, 0  ;;  %v12279_v16 = vld [vmem:[#allocation7 + $0x140] sm:$0xff]  ;;  %v19761_v3 = vsel %vm488_vm4, %v12662_v15, 0 }
 0x8f6   : > { %v15130_v7 = vpop.f32.mrf.mxu0  ;;  %15274 = vmatprep.subr.bf16.mxu0 %v20091_v14 }
 0x8f7   : > { %v15111_v4 = vpop.f32.mrf.mxu1  ;;  %v12463_v7 = vld [vmem:[#allocation7 + $0x142] sm:$0xff] }
 0x8f8   : > { %v11591_v19 = vpop.f32.mrf.mxu0  ;;  %v12473_v6 = vpack.c.bf16 %v12463_v7, %v12462_v29  ;;  %v12277_v4 = vld [vmem:[#allocation7 + $0x128] sm:$0xff] }
 0x8f9   : > { %v12288_v43 = vpack.c.bf16 %v12277_v4, %v12276_v60  ;;  %v12746_v29 = vld [vmem:[#allocation7 + $0x182] sm:$0xff]  ;;  %v12747_v7 = vld [vmem:[#allocation7 + $0x18a] sm:$0xff] }
 0x8fa   : > { %v15131_v58 = vpop.f32.mrf.mxu0  ;;  %15255 = vmatpush3.bf16.xpose.msra.mxu1 %v19508_v61  ;;  %v19702_v9 = vsel %vm488_vm4, %v12473_v6, 0  ;;  %v12841_v6 = vld [vmem:[#allocation7 + $0x1a0] sm:$0xff]  ;;  %v12755_v4 = vpack.c.bf16 %v12747_v7, %v12746_v29 }
 0x8fb   : > { %15256 = vmatprep.subr.bf16.mxu1 %v20091_v14  ;;  %v12460_v58 = vld [vmem:[#allocation7 + $0x122] sm:$0xff]  ;;  %v19708_v23 = vsel %vm488_vm4, %v12288_v43, 0 }
 0x8fc   : > { %v12472_v45 = vpack.c.bf16 %v12461_v26, %v12460_v58  ;;  %v13779_v58 = vld [vmem:[%s19916_s6 + $0x6] sm:$0x3]  ;;  %v13781_v26 = vld [vmem:[%s19916_s6 + $0x8] sm:$0x3]  ;;  %v19806_v43 = vsel %vm488_vm4, %v12755_v4, 0 }
 0x8fd   : > { %15275 = vmatpush3.bf16.xpose.msra.mxu0 %v19621_v34 }
 0x8fe   : > { %15276 = vmatprep.subr.bf16.mxu0 %v20091_v14  ;;  %v19712_v47 = vsel %vm488_vm4, %v12472_v45, 0 }
 0x902   : > { %15257 = vmatpush3.bf16.xpose.msra.mxu1 %v19436_v52  ;;  %v12300_v52 = vld [vmem:[#allocation7 + $0x111] sm:$0xff] }
 0x903   : > { %15258 = vmatprep.subr.bf16.mxu1 %v20091_v14  ;;  %v12312_v2 = vpack.c.bf16 %v12300_v52, %v12299_v27  ;;  %v12458_v52 = vld [vmem:[#allocation7 + $0x10a] sm:$0xff]  ;;  %v12459_v27 = vld [vmem:[#allocation7 + $0x112] sm:$0xff] }
 0x905   : > { %15277 = vmatpush3.bf16.xpose.msra.mxu0 %v19628_v39  ;;  %v19642_v13 = vsel %vm488_vm4, %v12312_v2, 0  ;;  %v12287_v2 = vpack.c.bf16 %v12275_v59, %v12274_v1 }
 0x906   : > { %15278 = vmatprep.subr.bf16.mxu0 %v20091_v14 }
 0x90a   : > { %15259 = vmatpush3.bf16.xpose.msra.mxu1 %v19451_v5  ;;  %v12298_v5 = vld [vmem:[#allocation7 + $0xf9] sm:$0xff] }
 0x90b   : > { %15260 = vmatprep.subr.bf16.mxu1 %v20091_v14  ;;  %v12311_v22 = vpack.c.bf16 %v12298_v5, %v12297_v55  ;;  %v12471_v5 = vpack.c.bf16 %v12459_v27, %v12458_v52  ;;  %v19718_v55 = vsel %vm488_vm4, %v12287_v2, 0 }
 0x90d   : > { %15279 = vmatpush3.bf16.xpose.msra.mxu0 %v19635_v50  ;;  %v19649_v56 = vsel %vm488_vm4, %v12311_v22, 0  ;;  %v12273_v22 = vld [vmem:[#allocation7 + $0xf8] sm:$0xff] }
 0x90e   : > { %15280 = vmatprep.subr.bf16.mxu0 %v20091_v14 }
 0x912   : > { %15261 = vmatpush3.bf16.xpose.msra.mxu1 %v19458_v33  ;;  %v12283_v33 = vld [vmem:[#allocation7 + $0x170] sm:$0xff] }
 0x913   : > { %15262 = vmatprep.subr.bf16.mxu1 %v20091_v14 }
 0x915   : > { %15281 = vmatpush3.bf16.xpose.msra.mxu0 %v19642_v13 }
 0x916   : > { %15282 = vmatprep.subr.bf16.mxu0 %v20091_v14 }
 0x91a   : > { %15263 = vmatpush3.bf16.xpose.msra.mxu1 %v19465_v46  ;;  %v12282_v46 = vld [vmem:[#allocation7 + $0x168] sm:$0xff] }
 0x91b   : > { %15264 = vmatprep.subr.bf16.mxu1 %v20091_v14  ;;  %v12291_v53 = vpack.c.bf16 %v12283_v33, %v12282_v46  ;;  %v19722_v33 = vsel %vm488_vm4, %v12471_v5, 0  ;;  %v12272_v46 = vld [vmem:[#allocation7 + $0xf0] sm:$0xff] }
 0x91d   : > { %15283 = vmatpush3.bf16.xpose.msra.mxu0 %v19649_v56 }
 0x91e   : > { %15284 = vmatprep.subr.bf16.mxu0 %v20091_v14 }
 0x922   : > { %15265 = vmatpush3.bf16.xpose.msra.mxu1 %v19472_v63  ;;  %v13771_v63 = vld [vmem:[%s19916_s6 + $0x10] sm:$0x3] }
 0x923   : > { %15266 = vmatprep.subr.bf16.mxu1 %v20091_v14 }
 0x925   : > { %15285 = vmatpush3.bf16.xpose.msra.mxu0 %v19557_v41 }
 0x926   : > { %15286 = vmatprep.subr.bf16.mxu0 %v20091_v14 }
 0x92a   : > { %15267 = vmatpush3.bf16.xpose.msra.mxu1 %v19479_v28  ;;  %v13774_v28 = vld [vmem:[%s19916_s6 + $0x2] sm:$0x3] }
 0x92b   : > { %15292 = vmatprep.subr.bf16.mxu1 %v20091_v14 }
 0x92d   : > { %15287 = vmatpush3.bf16.xpose.msra.mxu0 %v19501_v35  ;;  %v19670_v35 = vsel %vm488_vm4, %v12291_v53, 0  ;;  %v12286_v53 = vpack.c.bf16 %v12273_v22, %v12272_v46  ;;  %v13027_v22 = vld [vmem:[#allocation7 + $0x1a2] sm:$0xff] }
 0x92e   : > { %15312 = vmatprep.subr.bf16.mxu0 %v20091_v14 }
 0x92f   : > { %v19728_v11 = vsel %vm488_vm4, %v12286_v53, 0 }
 0x931   : > { %v11681_v25 = vpop.f32.mrf.mxu1  ;;  %15269 = vmatmul.mubr.msk.bf16.vlgmr.msra.gmra.mxu1 %vm488_vm4, %v13771_v63  ;;  %v12470_v63 = vpack.c.bf16 %v12457_v42, %v12456_v0 }
 0x932   : > { %v11687_v10 = vadd.f32 %v11681_v25, %v19610_v51  ;;  %15293 = vmatpush3.bf16.xpose.msra.mxu1 %v19670_v35  ;;  %15308 = vmatprep.mubr.msk.bf16.mxu1 %vm15705_vm2, %v20091_v14  ;;  %v12278_v51 = vld [vmem:[#allocation7 + $0x138] sm:$0xff]  ;;  %v12561_v25 = vld [vmem:[#allocation7 + $0x188] sm:$0xff] }
 0x933   : > { %v15150_v44 = vpop.f32.mrf.mxu1  ;;  %15294 = vmatprep.subr.bf16.mxu1 %v20091_v14  ;;  %v12289_v37 = vpack.c.bf16 %v12279_v16, %v12278_v51 }
 0x934   : > { %v11775_v40 = vpop.f32.mrf.mxu0  ;;  %15289 = vmatmul.mubr.msk.bf16.vlgmr.msra.gmra.mxu0 %vm488_vm4, %v13774_v28  ;;  %v19732_v28 = vsel %vm488_vm4, %v12470_v63, 0  ;;  %v12292_v44 = vld [vmem:[%s19916_s6] sm:$0x3] }
 0x935   : > { %v19681_v12 = vadd.f32 %v11775_v40, %v11687_v10  ;;  %15313 = vmatpush3.bf16.xpose.msra.mxu0 %v19678_v48  ;;  %15328 = vmatprep.mubr.msk.bf16.mxu0 %vm15705_vm2, %v20091_v14  ;;  %v11684_v32 = vpop.f32.mrf.mxu1  ;;  %v19698_v19 = vsel %vm488_vm4, %v12289_v37, 0  ;;  %v12560_v10 = vld [vmem:[#allocation7 + $0x180] sm:$0xff]  ;;  %v12840_v37 = vld [vmem:[#allocation7 + $0x198] sm:$0xff] }
 0x936   : > { %v15170_v18 = vpop.f32.mrf.mxu0  ;;  %15314 = vmatprep.subr.bf16.mxu0 %v20091_v14  ;;  %v12569_v40 = vpack.c.bf16 %v12561_v25, %v12560_v10  ;;  %v12849_v60 = vpack.c.bf16 %v12841_v6, %v12840_v37 }
 0x937   : > { %v15151_v49 = vpop.f32.mrf.mxu1 }
 0x938   : > { %v11778_v57 = vpop.f32.mrf.mxu0 }
 0x93a   : > { %v15171_v8 = vpop.f32.mrf.mxu0  ;;  %15295 = vmatpush3.bf16.xpose.msra.mxu1 %v19688_v20 }
 0x93b   : > { %15296 = vmatprep.subr.bf16.mxu1 %v20091_v14 }
 0x93d   : > { %15315 = vmatpush3.bf16.xpose.msra.mxu0 %v19692_v31 }
 0x93e   : > { %15316 = vmatprep.subr.bf16.mxu0 %v20091_v14 }
 0x942   : > { %15297 = vmatpush3.bf16.xpose.msra.mxu1 %v19698_v19 }
 0x943   : > { %15298 = vmatprep.subr.bf16.mxu1 %v20091_v14 }
 0x945   : > { %15317 = vmatpush3.bf16.xpose.msra.mxu0 %v19702_v9 }
 0x946   : > { %15318 = vmatprep.subr.bf16.mxu0 %v20091_v14 }
 0x94a   : > { %15299 = vmatpush3.bf16.xpose.msra.mxu1 %v19708_v23 }
 0x94b   : > { %15300 = vmatprep.subr.bf16.mxu1 %v20091_v14 }
 0x94d   : > { %15319 = vmatpush3.bf16.xpose.msra.mxu0 %v19712_v47 }
 0x94e   : > { %15320 = vmatprep.subr.bf16.mxu0 %v20091_v14 }
 0x952   : > { %15301 = vmatpush3.bf16.xpose.msra.mxu1 %v19718_v55 }
 0x953   : > { %15302 = vmatprep.subr.bf16.mxu1 %v20091_v14 }
 0x955   : > { %15321 = vmatpush3.bf16.xpose.msra.mxu0 %v19722_v33 }
 0x956   : > { %15322 = vmatprep.subr.bf16.mxu0 %v20091_v14 }
 0x95a   : > { %15303 = vmatpush3.bf16.xpose.msra.mxu1 %v19728_v11 }
 0x95b   : > { %15304 = vmatprep.subr.bf16.mxu1 %v20091_v14 }
 0x95d   : > { %15323 = vmatpush3.bf16.xpose.msra.mxu0 %v19732_v28 }
 0x95e   : > { %15324 = vmatprep.subr.bf16.mxu0 %v20091_v14 }
 0x962   : > { %15305 = vmatpush3.bf16.xpose.msra.mxu1 %v19550_v38 }
 0x963   : > { %15306 = vmatprep.subr.bf16.mxu1 %v20091_v14 }
 0x965   : > { %15325 = vmatpush3.bf16.xpose.msra.mxu0 %v19600_v17 }
 0x966   : > { %15326 = vmatprep.subr.bf16.mxu0 %v20091_v14 }
 0x96a   : > { %15307 = vmatpush3.bf16.xpose.msra.mxu1 %v19443_v24  ;;  %v13777_v24 = vld [vmem:[%s19916_s6 + $0x4] sm:$0x3] }
 0x96b   : > { %15332 = vmatprep.subr.bf16.mxu1 %v20091_v14 }
 0x96d   : > { %15327 = vmatpush3.bf16.xpose.msra.mxu0 %v19508_v61  ;;  %v19753_v61 = vsel %vm488_vm4, %v12569_v40, 0 }
 0x96e   : > { %15352 = vmatprep.subr.bf16.mxu0 %v20091_v14 }
 0x971   : > { %v11869_v62 = vpop.f32.mrf.mxu1  ;;  %15309 = vmatmul.mubr.msk.bf16.vlgmr.msra.gmra.mxu1 %vm488_vm4, %v12292_v44 }
 0x972   : > { %v11875_v18 = vadd.f32 %v11869_v62, %v19681_v12  ;;  %15333 = vmatpush3.bf16.xpose.msra.mxu1 %v19753_v61  ;;  %15348 = vmatprep.mubr.msk.bf16.mxu1 %vm15705_vm2, %v20091_v14 }
 0x973   : > { %v15190_v57 = vpop.f32.mrf.mxu1  ;;  %15334 = vmatprep.subr.bf16.mxu1 %v20091_v14 }
 0x974   : > { %v11963_v32 = vpop.f32.mrf.mxu0  ;;  %15329 = vmatmul.mubr.msk.bf16.vlgmr.msra.gmra.mxu0 %vm488_vm4, %v13777_v24 }
 0x975   : > { %v19764_v49 = vadd.f32 %v11963_v32, %v11875_v18  ;;  %15353 = vmatpush3.bf16.xpose.msra.mxu0 %v19761_v3  ;;  %15368 = vmatprep.mubr.msk.bf16.mxu0 %vm15705_vm2, %v20091_v14  ;;  %v11872_v30 = vpop.f32.mrf.mxu1  ;;  %v13105_v18 = vld [vmem:[%s19922_s12] sm:$0xf] }
 0x976   : > { %v15210_v12 = vpop.f32.mrf.mxu0  ;;  %15354 = vmatprep.subr.bf16.mxu0 %v20091_v14  ;;  %13108 = vperm.xlu0 %15486, %v13105_v18  }
 0x977   : > { %v15191_v16 = vpop.f32.mrf.mxu1 }
 0x978   : > { %v11966_v8 = vpop.f32.mrf.mxu0 }
 0x97a   : > { %v15211_v51 = vpop.f32.mrf.mxu0  ;;  %15335 = vmatpush3.bf16.xpose.msra.mxu1 %v19670_v35 }
 0x97b   : > { %15336 = vmatprep.subr.bf16.mxu1 %v20091_v14 }
 0x97d   : > { %15355 = vmatpush3.bf16.xpose.msra.mxu0 %v19607_v21 }
 0x97e   : > { %15356 = vmatprep.subr.bf16.mxu0 %v20091_v14 }
 0x982   : > { %15337 = vmatpush3.bf16.xpose.msra.mxu1 %v19688_v20 }
 0x983   : > { %15338 = vmatprep.subr.bf16.mxu1 %v20091_v14 }
 0x985   : > { %15357 = vmatpush3.bf16.xpose.msra.mxu0 %v19621_v34 }
 0x986   : > { %15358 = vmatprep.subr.bf16.mxu0 %v20091_v14 }
 0x98a   : > { %15339 = vmatpush3.bf16.xpose.msra.mxu1 %v19698_v19 }
 0x98b   : > { %15340 = vmatprep.subr.bf16.mxu1 %v20091_v14 }
 0x98d   : > { %15359 = vmatpush3.bf16.xpose.msra.mxu0 %v19628_v39 }
 0x98e   : > { %15360 = vmatprep.subr.bf16.mxu0 %v20091_v14 }
 0x992   : > { %15341 = vmatpush3.bf16.xpose.msra.mxu1 %v19708_v23 }
 0x993   : > { %15342 = vmatprep.subr.bf16.mxu1 %v20091_v14 }
 0x995   : > { %15361 = vmatpush3.bf16.xpose.msra.mxu0 %v19635_v50 }
 0x996   : > { %15362 = vmatprep.subr.bf16.mxu0 %v20091_v14 }
 0x99a   : > { %15343 = vmatpush3.bf16.xpose.msra.mxu1 %v19718_v55 }
 0x99b   : > { %15344 = vmatprep.subr.bf16.mxu1 %v20091_v14 }
 0x99d   : > { %15363 = vmatpush3.bf16.xpose.msra.mxu0 %v19642_v13 }
 0x99e   : > { %15364 = vmatprep.subr.bf16.mxu0 %v20091_v14 }
 0x9a2   : > { %15345 = vmatpush3.bf16.xpose.msra.mxu1 %v19728_v11 }
 0x9a3   : > { %15346 = vmatprep.subr.bf16.mxu1 %v20091_v14 }
 0x9a5   : > { %15365 = vmatpush3.bf16.xpose.msra.mxu0 %v19649_v56 }
 0x9a6   : > { %15366 = vmatprep.subr.bf16.mxu0 %v20091_v14 }
 0x9aa   : > { %15347 = vmatpush3.bf16.xpose.msra.mxu1 %v19550_v38 }
 0x9ab   : > { %15372 = vmatprep.subr.bf16.mxu1 %v20091_v14 }
 0x9ad   : > { %15367 = vmatpush3.bf16.xpose.msra.mxu0 %v19557_v41  ;;  %v12876_v41 = vsel %vm488_vm4, %v12849_v60, 0 }
 0x9ae   : > { %15392 = vmatprep.subr.bf16.mxu0 %v20091_v14 }
 0x9b1   : > { %v12058_v38 = vpop.f32.mrf.mxu1  ;;  %15349 = vmatmul.mubr.msk.bf16.vlgmr.msra.gmra.mxu1 %vm488_vm4, %v13779_v58 }
 0x9b2   : > { %15373 = vmatpush3.bf16.xpose.msra.mxu1 %v19806_v43  ;;  %15388 = vmatprep.mubr.msk.bf16.mxu1 %vm15705_vm2, %v20091_v14 }
 0x9b3   : > { %v15230_v59 = vpop.f32.mrf.mxu1  ;;  %15374 = vmatprep.subr.bf16.mxu1 %v20091_v14 }
 0x9b4   : > { %v12152_v45 = vpop.f32.mrf.mxu0  ;;  %15369 = vmatmul.mubr.msk.bf16.vlgmr.msra.gmra.mxu0 %vm488_vm4, %v13781_v26 }
 0x9b5   : > { %15393 = vmatpush3.bf16.xpose.msra.mxu0 %v12876_v41  ;;  %15408 = vmatprep.mubr.msk.bf16.mxu0 %vm15705_vm2, %v20091_v14  ;;  %v12061_v52 = vpop.f32.mrf.mxu1 }
 0x9b6   : > { %v15250_v1 = vpop.f32.mrf.mxu0  ;;  %15394 = vmatprep.subr.bf16.mxu0 %v20091_v14 }
 0x9b7   : > { %v15231_v2 = vpop.f32.mrf.mxu1 }
 0x9b8   : > { %v12155_v27 = vpop.f32.mrf.mxu0 }
 0x9ba   : > { %v15251_v5 = vpop.f32.mrf.mxu0  ;;  %15375 = vmatpush3.bf16.xpose.msra.mxu1 %v19678_v48 }
 0x9bb   : > { %15376 = vmatprep.subr.bf16.mxu1 %v20091_v14 }
 0x9bd   : > { %15395 = vmatpush3.bf16.xpose.msra.mxu0 %v19753_v61 }
 0x9be   : > { %15396 = vmatprep.subr.bf16.mxu0 %v20091_v14 }
 0x9c2   : > { %15377 = vmatpush3.bf16.xpose.msra.mxu1 %v19692_v31 }
 0x9c3   : > { %15378 = vmatprep.subr.bf16.mxu1 %v20091_v14 }
 0x9c5   : > { %15397 = vmatpush3.bf16.xpose.msra.mxu0 %v19670_v35  ;;  %v12933_v35 = vld [vmem:[#allocation7 + $0x199] sm:$0xff] }
 0x9c6   : > { %15398 = vmatprep.subr.bf16.mxu0 %v20091_v14 }
 0x9ca   : > { %15379 = vmatpush3.bf16.xpose.msra.mxu1 %v19702_v9 }
 0x9cb   : > { %15380 = vmatprep.subr.bf16.mxu1 %v20091_v14 }
 0x9cd   : > { %15399 = vmatpush3.bf16.xpose.msra.mxu0 %v19688_v20  ;;  %v12934_v20 = vld [vmem:[#allocation7 + $0x1a1] sm:$0xff] }
 0x9ce   : > { %15400 = vmatprep.subr.bf16.mxu0 %v20091_v14  ;;  %v12942_v46 = vpack.c.bf16 %v12934_v20, %v12933_v35 }
 0x9d0   : > { %v12969_v42 = vsel %vm488_vm4, %v12942_v46, 0 }
 0x9d2   : > { %15381 = vmatpush3.bf16.xpose.msra.mxu1 %v19712_v47 }
 0x9d3   : > { %15382 = vmatprep.subr.bf16.mxu1 %v20091_v14 }
 0x9d5   : > { %15401 = vmatpush3.bf16.xpose.msra.mxu0 %v19698_v19  ;;  %v13026_v19 = vld [vmem:[#allocation7 + $0x19a] sm:$0xff] }
 0x9d6   : > { %15402 = vmatprep.subr.bf16.mxu0 %v20091_v14  ;;  %v13035_v0 = vpack.c.bf16 %v13027_v22, %v13026_v19 }
 0x9d8   : > { %v13062_v25 = vsel %vm488_vm4, %v13035_v0, 0 }
 0x9da   : > { %15383 = vmatpush3.bf16.xpose.msra.mxu1 %v19722_v33 }
 0x9db   : > { %15384 = vmatprep.subr.bf16.mxu1 %v20091_v14 }
 0x9dd   : > { %15403 = vmatpush3.bf16.xpose.msra.mxu0 %v19708_v23  ;;  %v12064_v23 = vadd.f32 %v12058_v38, %v19764_v49 }
 0x9de   : > { %15404 = vmatprep.subr.bf16.mxu0 %v20091_v14 }
 0x9df   : > { %v12158_v53 = vadd.f32 %v12152_v45, %v12064_v23 }
 0x9e2   : > { %15385 = vmatpush3.bf16.xpose.msra.mxu1 %v19732_v28 }
 0x9e3   : > { %15386 = vmatprep.subr.bf16.mxu1 %v20091_v14 }
 0x9e5   : > { %15405 = vmatpush3.bf16.xpose.msra.mxu0 %v19718_v55  ;;  %v13783_v55 = vld [vmem:[%s19916_s6 + $0xa] sm:$0x3] }
 0x9e6   : > { %15406 = vmatprep.subr.bf16.mxu0 %v20091_v14 }
 0x9ea   : > { %15387 = vmatpush3.bf16.xpose.msra.mxu1 %v19600_v17  ;;  %v13785_v17 = vld [vmem:[%s19916_s6 + $0xc] sm:$0x3] }
 0x9eb   : > { %15412 = vmatprep.subr.bf16.mxu1 %v20091_v14 }
 0x9ed   : > { %15407 = vmatpush3.bf16.xpose.msra.mxu0 %v19728_v11  ;;  %v12257_v11 = vpop.permute.xlu0 %12256 }
 0x9ee   : > { %15432 = vmatprep.subr.bf16.mxu0 %v20091_v14 }
 0x9f1   : > { %v12246_v63 = vpop.f32.mrf.mxu1  ;;  %15389 = vmatmul.mubr.msk.bf16.vlgmr.msra.gmra.mxu1 %vm488_vm4, %v13783_v55  ;;  %v13109_v35 = vpop.permute.xlu0 %13108 }
 0x9f2   : > { %v12252_v10 = vadd.f32 %v12246_v63, %v12158_v53  ;;  %15413 = vmatpush3.bf16.xpose.msra.mxu1 %v12969_v42  ;;  %15428 = vmatprep.mubr.msk.bf16.mxu1 %vm15705_vm2, %v20091_v14 }
 0x9f3   : > { %v15270_v40 = vpop.f32.mrf.mxu1  ;;  %15414 = vmatprep.subr.bf16.mxu1 %v20091_v14 }
 0x9f4   : > { %v12379_v54 = vpop.f32.mrf.mxu0  ;;  %15409 = vmatmul.mubr.msk.bf16.vlgmr.msra.gmra.mxu0 %vm488_vm4, %v13785_v17  ;;  %v12259_v44 = vadd.f32 %v12257_v11, %v12252_v10 }
 0x9f5   : > { %15433 = vmatpush3.bf16.xpose.msra.mxu0 %v13062_v25  ;;  %15448 = vmatprep.mubr.msk.bf16.mxu0 %vm15705_vm2, %v20091_v14  ;;  %v12249_v15 = vpop.f32.mrf.mxu1 }
 0x9f6   : > { %v15290_v36 = vpop.f32.mrf.mxu0  ;;  %15434 = vmatprep.subr.bf16.mxu0 %v20091_v14  ;;  %v13773_v24 = vmul.f32 -1.442695, %v12259_v44 }
 0x9f7   : > { %v15271_v61 = vpop.f32.mrf.mxu1 }
 0x9f8   : > { %v12382_v62 = vpop.f32.mrf.mxu0  ;;  %15685 = vpow2.f32 %v13773_v24 }
 0x9fa   : > { %v15291_v32 = vpop.f32.mrf.mxu0  ;;  %15415 = vmatpush3.bf16.xpose.msra.mxu1 %v19761_v3 }
 0x9fb   : > { %15416 = vmatprep.subr.bf16.mxu1 %v20091_v14 }
 0x9fd   : > { %15435 = vmatpush3.bf16.xpose.msra.mxu0 %v19806_v43 }
 0x9fe   : > { %15436 = vmatprep.subr.bf16.mxu0 %v20091_v14 }
 0xa02   : > { %15417 = vmatpush3.bf16.xpose.msra.mxu1 %v19607_v21 }
 0xa03   : > { %15418 = vmatprep.subr.bf16.mxu1 %v20091_v14 }
 0xa05   : > { %15437 = vmatpush3.bf16.xpose.msra.mxu0 %v19678_v48  ;;  %v15686_v57 = vpop.eup %15685 }
 0xa06   : > { %15438 = vmatprep.subr.bf16.mxu0 %v20091_v14  ;;  %v12263_v49 = vadd.f32 1.0, %v15686_v57 }
 0xa08   : > { %15687 = vrcp.f32 %v12263_v49 }
 0xa0a   : > { %15419 = vmatpush3.bf16.xpose.msra.mxu1 %v19621_v34  ;;  %v13787_v34 = vld [vmem:[%s19916_s6 + $0xe] sm:$0x3] }
 0xa0b   : > { %15420 = vmatprep.subr.bf16.mxu1 %v20091_v14 }
 0xa0d   : > { %15439 = vmatpush3.bf16.xpose.msra.mxu0 %v19692_v31 }
 0xa0e   : > { %15440 = vmatprep.subr.bf16.mxu0 %v20091_v14 }
 0xa12   : > { %15421 = vmatpush3.bf16.xpose.msra.mxu1 %v19628_v39  ;;  %v13789_v39 = vld [vmem:[%s19916_s6 + $0x10] sm:$0x3] }
 0xa13   : > { %15422 = vmatprep.subr.bf16.mxu1 %v20091_v14 }
 0xa15   : > { %15441 = vmatpush3.bf16.xpose.msra.mxu0 %v19702_v9  ;;  %v15688_v21 = vpop.eup %15687 }
 0xa16   : > { %15442 = vmatprep.subr.bf16.mxu0 %v20091_v14  ;;  %12266 = vst [vmem:[%s19882_s27] sm:$0xf] %v15688_v21 }
 0xa1a   : > { %15423 = vmatpush3.bf16.xpose.msra.mxu1 %v19635_v50 }
 0xa1b   : > { %15424 = vmatprep.subr.bf16.mxu1 %v20091_v14 }
 0xa1d   : > { %15443 = vmatpush3.bf16.xpose.msra.mxu0 %v19712_v47 }
 0xa1e   : > { %15444 = vmatprep.subr.bf16.mxu0 %v20091_v14 }
 0xa22   : > { %15425 = vmatpush3.bf16.xpose.msra.mxu1 %v19642_v13 }
 0xa23   : > { %15426 = vmatprep.subr.bf16.mxu1 %v20091_v14 }
 0xa25   : > { %15445 = vmatpush3.bf16.xpose.msra.mxu0 %v19722_v33 }
 0xa26   : > { %15446 = vmatprep.subr.bf16.mxu0 %v20091_v14 }
 0xa2a   : > { %15427 = vmatpush3.bf16.xpose.msra.mxu1 %v19649_v56 }
 0xa2d   : > { %15447 = vmatpush3.bf16.xpose.msra.mxu0 %v19732_v28 }
 0xa31   : > { %v12446_v50 = vpop.f32.mrf.mxu1  ;;  %15429 = vmatmul.mubr.msk.bf16.vlgmr.msra.gmra.mxu1 %vm488_vm4, %v13787_v34 }
 0xa32   : > { %v12447_v13 = vadd.f32 %v12446_v50, %v12379_v54 }
 0xa33   : > { %v15310_v14 = vpop.f32.mrf.mxu1 }
 0xa34   : > { %v12538_v48 = vpop.f32.mrf.mxu0  ;;  %15449 = vmatmul.mubr.msk.bf16.vlgmr.msra.gmra.mxu0 %vm488_vm4, %v13789_v39 }
 0xa35   : > { %v12544_v31 = vadd.f32 %v12538_v48, %v12447_v13  ;;  %v12449_v9 = vpop.f32.mrf.mxu1 }
 0xa36   : > { %v15330_v56 = vpop.f32.mrf.mxu0 }
 0xa37   : > { %v15311_v33 = vpop.f32.mrf.mxu1 }
 0xa38   : > { %v12541_v47 = vpop.f32.mrf.mxu0 }
 0xa3a   : > { %v15331_v28 = vpop.f32.mrf.mxu0 }
 0xa71   : > { %v12632_v3 = vpop.f32.mrf.mxu1 }
 0xa72   : > { %v12638_v12 = vadd.f32 %v12632_v3, %v12544_v31 }
 0xa73   : > { %v15350_v8 = vpop.f32.mrf.mxu1 }
 0xa74   : > { %v12725_v30 = vpop.f32.mrf.mxu0 }
 0xa75   : > { %v12731_v16 = vadd.f32 %v12725_v30, %v12638_v12  ;;  %v12635_v29 = vpop.f32.mrf.mxu1 }
 0xa76   : > { %v15370_v51 = vpop.f32.mrf.mxu0 }
 0xa77   : > { %v15351_v37 = vpop.f32.mrf.mxu1 }
 0xa78   : > { %v12728_v7 = vpop.f32.mrf.mxu0 }
 0xa7a   : > { %v15371_v6 = vpop.f32.mrf.mxu0 }
 0xab1   : > { %v12818_v4 = vpop.f32.mrf.mxu1 }
 0xab2   : > { %v12824_v59 = vadd.f32 %v12818_v4, %v12731_v16 }
 0xab3   : > { %v15390_v58 = vpop.f32.mrf.mxu1 }
 0xab4   : > { %v12912_v60 = vpop.f32.mrf.mxu0 }
 0xab5   : > { %v12821_v38 = vpop.f32.mrf.mxu1  ;;  %v12918_v1 = vadd.f32 %v12912_v60, %v12824_v59 }
 0xab6   : > { %v15410_v26 = vpop.f32.mrf.mxu0 }
 0xab7   : > { %v15391_v41 = vpop.f32.mrf.mxu1 }
 0xab8   : > { %v12915_v43 = vpop.f32.mrf.mxu0 }
 0xaba   : > { %v15411_v45 = vpop.f32.mrf.mxu0 }
 0xaf1   : > { %v13005_v52 = vpop.f32.mrf.mxu1 }
 0xaf2   : > { %v13011_v27 = vadd.f32 %v13005_v52, %v12918_v1 }
 0xaf3   : > { %v15430_v5 = vpop.f32.mrf.mxu1 }
 0xaf4   : > { %v13098_v2 = vpop.f32.mrf.mxu0 }
 0xaf5   : > { %v13104_v20 = vadd.f32 %v13098_v2, %v13011_v27  ;;  %v13008_v22 = vpop.f32.mrf.mxu1 }
 0xaf6   : > { %v15450_v19 = vpop.f32.mrf.mxu0 }
 0xaf7   : > { %v13111_v46 = vadd.f32 %v13109_v35, %v13104_v20  ;;  %v15431_v0 = vpop.f32.mrf.mxu1 }
 0xaf8   : > { %v13101_v23 = vpop.f32.mrf.mxu0 }
 0xaf9   : > { %v13791_v55 = vmul.f32 -1.442695, %v13111_v46 }
 0xafa   : > { %v15451_v42 = vpop.f32.mrf.mxu0 }
 0xafb   : > { %15689 = vpow2.f32 %v13791_v55 }
 0xb08   : > { %v15690_v53 = vpop.eup %15689 }
 0xb09   : > { %v13115_v17 = vadd.f32 1.0, %v15690_v53 }
 0xb0b   : > { %15691 = vrcp.f32 %v13115_v17 }
 0xb18   : > { %v15692_v63 = vpop.eup %15691 }
 0xb19   : > { %13118 = vst [vmem:[%s19882_s27 + $0x4] sm:$0xf] %v15692_v63 }
 0xb1a PF: > { %s23_s25 = sadd.s32 1, %s15701_s25  }
 0xb1b   : > { %p20_p4 = scmp.ge.s32.totalorder %s23_s25, 4  }
 0xb1d   :  { %22 = sbr.rel (!%p20_p4) target bundleno = 1 (0x1), region = 167 }

</bundles_post_ra>
